<compile_context>
chip_gen: v7x
topology: tpu7x:2x2x1
jax: 0.10.0
libtpu: 0.0.40
codegen_flags: <defaults>
</compile_context>

<pallas_src>
import jax
import jax.numpy as jnp
from jax import lax
from jax.experimental import pallas as pl
from jax.experimental.pallas import tpu as pltpu

# ----------------------- synthetic small config -----------------------
B = 2          # batch
L = 8          # sequence length
H = 128        # hidden size
V = 512        # vocab size
NH = 4         # attention heads
DH = H // NH   # head dim
INTER = 256    # FFN intermediate size
NLAYERS = 2
BOW_LOSS_WEIGHT = 0.1
NEG_INF = -1e9     # stands in for torch.finfo(dtype).min in get_extended_attention_mask
LN_EPS = 1e-5
M = B * L          # flattened rows


# ============================ in-kernel helpers (traced) ============================

def _ln(x, ln):
    """LayerNorm; ln packs [gamma; beta] as a (2, H) block. f32 math."""
    g = ln[0:1, :]
    b = ln[1:2, :]
    mu = jnp.mean(x, axis=-1, keepdims=True)
    var = jnp.mean((x - mu) * (x - mu), axis=-1, keepdims=True)
    return (x - mu) * lax.rsqrt(var + LN_EPS) * g + b


def _gelu(x):
    # tanh-approximate GELU (safe transcendental path on all TPU generations).
    c = 0.7978845608028654  # sqrt(2/pi)
    return 0.5 * x * (1.0 + jnp.tanh(c * (x + 0.044715 * x * x * x)))


def _mmb(a_f32, w_bf16, bias_f32):
    """a (f32) @ w (bf16) + bias (f32 row); bf16 MXU operands, f32 accumulation."""
    return jnp.dot(a_f32.astype(jnp.bfloat16), w_bf16,
                   preferred_element_type=jnp.float32) + bias_f32


def _embed(ids, tok_emb_bf):
    """Token-embedding gather done in-kernel as a one-hot bf16 MXU matmul. ids: (M, 1) int32."""
    iota = lax.broadcasted_iota(jnp.int32, (M, V), 1)
    onehot = (iota == ids).astype(jnp.float32).astype(jnp.bfloat16)
    return jnp.dot(onehot, tok_emb_bf, preferred_element_type=jnp.float32)   # (M, H)


def _mha(q, k, v, bias_mm, wo_bf, bo):
    """Multi-head attention over the flattened (M, H) activations with a block-diagonal
    (batch + key-validity) additive bias, followed by ONE full-K output projection.

    q/k/v: (M, H) f32 (q is pre-scaled by 1/sqrt(DH) via the weights); bias_mm: (M, M) f32;
    wo_bf: (H, H) bf16; bo: (1, H) f32. Returns (M, H) f32. All matmul operands are bf16.
    """
    parts = []
    for h in range(NH):
        sl = slice(h * DH, (h + 1) * DH)
        qh = q[:, sl].astype(jnp.bfloat16)
        kh_t = k[:, sl].T.astype(jnp.bfloat16)                       # (DH, M)
        vh = v[:, sl].astype(jnp.bfloat16)
        s = jnp.dot(qh, kh_t, preferred_element_type=jnp.float32) + bias_mm
        s = s - jnp.max(s, axis=-1, keepdims=True)
        e = jnp.exp(s)
        p = e * pl.reciprocal(jnp.sum(e, axis=-1, keepdims=True), approx=True)
        parts.append(jnp.dot(p.astype(jnp.bfloat16), vh,
                             preferred_element_type=jnp.float32))    # (M, DH)
    ctx = jnp.concatenate(parts, axis=1)                             # (M, H)
    return jnp.dot(ctx.astype(jnp.bfloat16), wo_bf,
                   preferred_element_type=jnp.float32) + bo


def _ce_mean(logits, labels):
    """nn.CrossEntropyLoss(ignore_index=-100, reduction='mean'); returns a (1, 1) value.
    Single (M, V) pass: the label logit is selected directly (no one-hot materialization)."""
    mx = jnp.max(logits, axis=-1, keepdims=True)
    sh = logits - mx
    lse = jnp.log(jnp.sum(jnp.exp(sh), axis=-1, keepdims=True))
    iota = lax.broadcasted_iota(jnp.int32, logits.shape, 1)
    picked = jnp.sum(jnp.where(iota == labels, sh, 0.0), axis=-1, keepdims=True)   # (rows, 1)
    valid = (labels != -100).astype(jnp.float32)
    per_tok = (lse - picked) * valid
    num = jnp.sum(per_tok, axis=0, keepdims=True)
    den = jnp.sum(valid, axis=0, keepdims=True)
    return num * pl.reciprocal(den, approx=True)


# ============================ the single fused Pallas kernel ============================

def _dupmae_kernel(
    enc_ids_ref, dec_ids_ref, enc_lbl_ref, dec_lbl_ref,
    enc_bias_ref, dec_bias_ref, pool_mask_ref, cnt_ref, ot_bias_ref, bagw_ref,
    tokemb_ref, embln_ref,
    lnA_ref, wqkv_ref, bqkv_ref, wo_ref, bo_ref, lnB_ref, w1_ref, b1_ref, w2_ref, b2_ref,
    finln_ref, headw_ref, headb_ref, headln_ref, embt_ref, decb_ref,
    cwq_ref, cbq_ref, cwkv_ref, cbkv_ref, cwo_ref, cbo_ref, cattnln_ref,
    cwi_ref, cbi_ref, cwo2_ref, cbo2_ref, coutln_ref,
    loss_ref):

    embln = embln_ref[...]
    tokemb = tokemb_ref[...]
    enc_bias = enc_bias_ref[...]          # (M, M) block-diag batch mask + key-validity bias
    embt = embt_ref[...]                  # (H, V) tied decoder weight (loaded once, reused twice)
    decb = decb_ref[...]

    # ---------------- encoder: embeddings + LN + NLAYERS pre-norm transformer layers ----------------
    x = _ln(_embed(enc_ids_ref[...], tokemb), embln)                     # (M, H)
    for li in range(NLAYERS):                                            # layer loop stays in VMEM
        xn = _ln(x, lnA_ref[li])
        qkv = _mmb(xn, wqkv_ref[li], bqkv_ref[li])                       # fused QKV, q pre-scaled
        q = qkv[:, 0:H]
        k = qkv[:, H:2 * H]
        v = qkv[:, 2 * H:3 * H]
        x = x + _mha(q, k, v, enc_bias, wo_ref[li], bo_ref[li])          # attention residual
        xn2 = _ln(x, lnB_ref[li])
        hmid = _gelu(_mmb(xn2, w1_ref[li], b1_ref[li]))
        x = x + _mmb(hmid, w2_ref[li], b2_ref[li])                       # FFN residual

    # ---------------- encoder head: final LN, masked mean pool, MLM CE, ot / bag-of-words ----------------
    xf = _ln(x, finln_ref[...])                                          # last hidden state (M, H)
    h3 = xf.reshape(B, L, H)
    pooled = jnp.sum(h3 * pool_mask_ref[...], axis=1)                    # (B, H)
    # no guard on cnt: matches the reference (divide by sum(attention_mask))
    sent = pooled * pl.reciprocal(cnt_ref[...], approx=True)             # sentence embedding (B, H)

    hh = _ln(_gelu(_mmb(xf, headw_ref[...], headb_ref[...])), headln_ref[...])
    logits = _mmb(hh, embt, decb)                                        # (M, V) tied decoder logits
    enc_ce = _ce_mean(logits, enc_lbl_ref[...])                          # encoder MLM loss

    # ot_embedding: masked max over sequence (position 0 excluded via -1e9 bias entry)
    ot = jnp.max(logits.reshape(B, L, V) + ot_bias_ref[...], axis=1)     # (B, V)
    mx2 = jnp.max(ot, axis=-1, keepdims=True)
    sh2 = ot - mx2
    logp2 = sh2 - jnp.log(jnp.sum(jnp.exp(sh2), axis=-1, keepdims=True))
    per_ex = -jnp.sum(bagw_ref[...] * logp2, axis=-1, keepdims=True)     # (B, 1)
    bow = jnp.sum(per_ex, axis=0, keepdims=True) * (1.0 / B)

    # ---------------- decoder c_head (cross attention) + tied logits + CE ----------------
    dec_emb = _ln(_embed(dec_ids_ref[...], tokemb), embln)               # decoder_embeddings(input_ids)
    sent3 = sent.reshape(B, 1, H)
    first = (lax.broadcasted_iota(jnp.int32, (B, L, 1), 1) == 0).astype(jnp.float32)
    # cat([sentence_embedding, dec_emb[:, 1:]]) built in-kernel (no jnp.repeat glue)
    hiddens = (first * sent3 + (1.0 - first) * dec_emb.reshape(B, L, H)).reshape(M, H)
    query = _ln(jnp.broadcast_to(sent3, (B, L, H)).reshape(M, H), embln)

    qd = _mmb(query, cwq_ref[...], cbq_ref[...])                         # q pre-scaled
    kvd = _mmb(hiddens, cwkv_ref[...], cbkv_ref[...])                    # fused K/V projection
    kd = kvd[:, 0:H]
    vd = kvd[:, H:2 * H]
    attn = _mha(qd, kd, vd, dec_bias_ref[...], cwo_ref[...], cbo_ref[...])
    attn_out = _ln(attn + query, cattnln_ref[...])                       # BertSelfOutput
    inter = _gelu(_mmb(attn_out, cwi_ref[...], cbi_ref[...]))
    dec_hidden = _ln(_mmb(inter, cwo2_ref[...], cbo2_ref[...]) + attn_out, coutln_ref[...])  # BertOutput

    dec_logits = _mmb(dec_hidden, embt, decb)                            # tied lm.decoder(hiddens)
    dec_ce = _ce_mean(dec_logits, dec_lbl_ref[...])

    loss_ref[...] = dec_ce + BOW_LOSS_WEIGHT * bow + enc_ce


# ============================ pallas_call plumbing ============================

def _full_spec(shape):
    nd = len(shape)
    return pl.BlockSpec(shape, lambda *_: (0,) * nd)


def dupmae_pallas(args):
    return pl.pallas_call(
        _dupmae_kernel,
        out_shape=jax.ShapeDtypeStruct((1, 1), jnp.float32),
        grid=(1,),
        in_specs=[_full_spec(tuple(a.shape)) for a in args],
        out_specs=_full_spec((1, 1)),
        compiler_params=pltpu.CompilerParams(dimension_semantics=("arbitrary",)),
    )(*args)


# ============================ params ============================

def init_params(key):
    def normal(k, shape, scale=0.02):
        return scale * jax.random.normal(k, shape, dtype=jnp.float32)

    keys = iter(jax.random.split(key, 64))
    p = {
        'tok_emb': normal(next(keys), (V, H)),
        'emb_ln_g': jnp.ones((H,), jnp.float32), 'emb_ln_b': jnp.zeros((H,), jnp.float32),
        'final_ln_g': jnp.ones((H,), jnp.float32), 'final_ln_b': jnp.zeros((H,), jnp.float32),
        'head_w': normal(next(keys), (H, H)), 'head_b': jnp.zeros((H,), jnp.float32),
        'head_ln_g': jnp.ones((H,), jnp.float32), 'head_ln_b': jnp.zeros((H,), jnp.float32),
        'dec_bias': jnp.zeros((V,), jnp.float32),
        'layers': [],
    }
    for _ in range(NLAYERS):
        p['layers'].append({
            'ln1_g': jnp.ones((H,), jnp.float32), 'ln1_b': jnp.zeros((H,), jnp.float32),
            'wq': normal(next(keys), (H, H)), 'bq': jnp.zeros((H,), jnp.float32),
            'wk': normal(next(keys), (H, H)), 'bk': jnp.zeros((H,), jnp.float32),
            'wv': normal(next(keys), (H, H)), 'bv': jnp.zeros((H,), jnp.float32),
            'wo': normal(next(keys), (H, H)), 'bo': jnp.zeros((H,), jnp.float32),
            'ln2_g': jnp.ones((H,), jnp.float32), 'ln2_b': jnp.zeros((H,), jnp.float32),
            'w1': normal(next(keys), (H, INTER)), 'b1': jnp.zeros((INTER,), jnp.float32),
            'w2': normal(next(keys), (INTER, H)), 'b2': jnp.zeros((H,), jnp.float32),
        })
    p['chead'] = {
        'wq': normal(next(keys), (H, H)), 'bq': jnp.zeros((H,), jnp.float32),
        'wk': normal(next(keys), (H, H)), 'bk': jnp.zeros((H,), jnp.float32),
        'wv': normal(next(keys), (H, H)), 'bv': jnp.zeros((H,), jnp.float32),
        'wo': normal(next(keys), (H, H)), 'bo': jnp.zeros((H,), jnp.float32),
        'attn_ln_g': jnp.ones((H,), jnp.float32), 'attn_ln_b': jnp.zeros((H,), jnp.float32),
        'wi': normal(next(keys), (H, INTER)), 'bi': jnp.zeros((INTER,), jnp.float32),
        'wo2': normal(next(keys), (INTER, H)), 'bo2': jnp.zeros((H,), jnp.float32),
        'out_ln_g': jnp.ones((H,), jnp.float32), 'out_ln_b': jnp.zeros((H,), jnp.float32),
    }
    return p


def prepare_params(p):
    """One-time prep: fuse QKV / KV weights (Q pre-scaled by 1/sqrt(DH)), stack per-layer weights
    on a leading axis, cast matmul weights to bf16, hoist tok_emb / tok_emb^T, pack LN params."""
    bf16 = jnp.bfloat16
    scale = 1.0 / (DH ** 0.5)

    def pack_ln(g, b):
        return jnp.stack([g, b])

    lnA, wqkv, bqkv, wo, bo, lnB, w1, b1, w2, b2 = ([] for _ in range(10))
    for lp in p['layers']:
        lnA.append(pack_ln(lp['ln1_g'], lp['ln1_b']))
        wqkv.append(jnp.concatenate([lp['wq'] * scale, lp['wk'], lp['wv']], axis=1))
        bqkv.append(jnp.concatenate([lp['bq'] * scale, lp['bk'], lp['bv']]).reshape(1, 3 * H))
        wo.append(lp['wo'])
        bo.append(lp['bo'].reshape(1, H))
        lnB.append(pack_ln(lp['ln2_g'], lp['ln2_b']))
        w1.append(lp['w1'])
        b1.append(lp['b1'].reshape(1, INTER))
        w2.append(lp['w2'])
        b2.append(lp['b2'].reshape(1, H))

    cp = p['chead']
    pp = {
        'tok_emb_bf': p['tok_emb'].astype(bf16),                       # (V, H) for the in-kernel gather
        'emb_t': p['tok_emb'].T.astype(bf16),                          # hoisted once: tied decoder [H, V]
        'dec_bias': p['dec_bias'].reshape(1, V),
        'embln': pack_ln(p['emb_ln_g'], p['emb_ln_b']),
        'finln': pack_ln(p['final_ln_g'], p['final_ln_b']),
        'head_w': p['head_w'].astype(bf16),
        'head_b': p['head_b'].reshape(1, H),
        'headln': pack_ln(p['head_ln_g'], p['head_ln_b']),
        # encoder layer stacks (leading axis = layer)
        'lnA': jnp.stack(lnA), 'wqkv': jnp.stack(wqkv).astype(bf16), 'bqkv': jnp.stack(bqkv),
        'wo': jnp.stack(wo).astype(bf16), 'bo': jnp.stack(bo), 'lnB': jnp.stack(lnB),
        'w1': jnp.stack(w1).astype(bf16), 'b1': jnp.stack(b1),
        'w2': jnp.stack(w2).astype(bf16), 'b2': jnp.stack(b2),
        # c_head
        'c_wq': (cp['wq'] * scale).astype(bf16), 'c_bq': (cp['bq'] * scale).reshape(1, H),
        'c_wkv': jnp.concatenate([cp['wk'], cp['wv']], axis=1).astype(bf16),
        'c_bkv': jnp.concatenate([cp['bk'], cp['bv']]).reshape(1, 2 * H),
        'c_wo': cp['wo'].astype(bf16), 'c_bo': cp['bo'].reshape(1, H),
        'c_attnln': pack_ln(cp['attn_ln_g'], cp['attn_ln_b']),
        'c_wi': cp['wi'].astype(bf16), 'c_bi': cp['bi'].reshape(1, INTER),
        'c_wo2': cp['wo2'].astype(bf16), 'c_bo2': cp['bo2'].reshape(1, H),
        'c_outln': pack_ln(cp['out_ln_g'], cp['out_ln_b']),
    }
    return pp


# ============================ forward (tiny mask glue, one pallas_call) ============================

def dupmae_forward(pp, encoder_input_ids, input_ids_length, encoder_attention_mask,
                   encoder_labels, decoder_input_ids, decoder_attention_mask,
                   decoder_labels, bag_word_weight):
    attn_f = encoder_attention_mask.astype(jnp.float32)
    dec_attn_f = decoder_attention_mask.astype(jnp.float32)

    # block-diagonal batch mask + extended (key-validity) attention bias, flattened to (M, M)
    batch_ids = jnp.repeat(jnp.arange(B), L)
    block = jnp.where(batch_ids[:, None] == batch_ids[None, :], 0.0, NEG_INF)
    enc_bias = block + ((1.0 - attn_f) * NEG_INF).reshape(1, M)
    dec_bias = block + ((1.0 - dec_attn_f) * NEG_INF).reshape(1, M)

    # unpadded->padded repack emulation: positions >= input_ids_length[i] are zeroed before pooling.
    pos = jnp.arange(L)[None, :]
    length_mask = (pos < input_ids_length[:, None]).astype(jnp.float32)
    pool_mask = (length_mask * attn_f).reshape(B, L, 1)
    cnt = jnp.sum(attn_f, axis=1, keepdims=True)                     # (B, 1), no guard (as reference)
    # ot bias: exclude position 0 (large negative), (1-mask)*-1000 elsewhere == logits[:, 1:] masked max.
    ot_bias = jnp.concatenate(
        [jnp.full((B, 1), NEG_INF, jnp.float32), (1.0 - attn_f[:, 1:]) * (-1000.0)],
        axis=1).reshape(B, L, 1)

    args = [
        encoder_input_ids.reshape(M, 1).astype(jnp.int32),
        decoder_input_ids.reshape(M, 1).astype(jnp.int32),
        encoder_labels.reshape(M, 1).astype(jnp.int32),
        decoder_labels.reshape(M, 1).astype(jnp.int32),
        enc_bias, dec_bias, pool_mask, cnt, ot_bias,
        bag_word_weight.astype(jnp.float32),
        pp['tok_emb_bf'], pp['embln'],
        pp['lnA'], pp['wqkv'], pp['bqkv'], pp['wo'], pp['bo'],
        pp['lnB'], pp['w1'], pp['b1'], pp['w2'], pp['b2'],
        pp['finln'], pp['head_w'], pp['head_b'], pp['headln'], pp['emb_t'], pp['dec_bias'],
        pp['c_wq'], pp['c_bq'], pp['c_wkv'], pp['c_bkv'], pp['c_wo'], pp['c_bo'], pp['c_attnln'],
        pp['c_wi'], pp['c_bi'], pp['c_wo2'], pp['c_bo2'], pp['c_outln'],
    ]
    loss = dupmae_pallas(args)
    return loss[0, 0]


# ================================== main ==================================

if __name__ == "__main__":
    key = jax.random.PRNGKey(0)
    pkey, dkey = jax.random.split(key)
    params = init_params(pkey)
    pp = prepare_params(params)   # one-time: stacked/fused/bf16 weights, pre-scaled Q, hoisted tok_emb^T

    ks = jax.random.split(dkey, 8)
    encoder_input_ids = jax.random.randint(ks[0], (B, L), 0, V, dtype=jnp.int32)
    input_ids_length = jnp.array([L, L - 2], dtype=jnp.int32)
    pos = jnp.arange(L)[None, :]
    encoder_attention_mask = (pos < input_ids_length[:, None]).astype(jnp.int32)

    lbl_mask = (jax.random.uniform(ks[1], (B, L)) < 0.25) & (encoder_attention_mask == 1)
    encoder_labels = jnp.where(lbl_mask, encoder_input_ids, -100).astype(jnp.int32)
    encoder_labels = encoder_labels.at[:, 1].set(encoder_input_ids[:, 1])  # >=1 valid label/row

    decoder_input_ids = jax.random.randint(ks[2], (B, L), 0, V, dtype=jnp.int32)
    decoder_attention_mask = jnp.ones((B, L), dtype=jnp.int32)
    dec_lbl_mask = jax.random.uniform(ks[3], (B, L)) < 0.5
    decoder_labels = jnp.where(dec_lbl_mask, decoder_input_ids, -100).astype(jnp.int32)
    decoder_labels = decoder_labels.at[:, 2].set(decoder_input_ids[:, 2])

    bw = jax.random.uniform(ks[4], (B, V), dtype=jnp.float32)
    bag_word_weight = bw / jnp.sum(bw, axis=-1, keepdims=True)

    forward = jax.jit(dupmae_forward)
    loss = forward(pp, encoder_input_ids, input_ids_length, encoder_attention_mask,
                   encoder_labels, decoder_input_ids, decoder_attention_mask,
                   decoder_labels, bag_word_weight)
    loss = jax.block_until_ready(loss)
    assert jnp.isfinite(loss), loss
    print("KERNEL_OK")
</pallas_src>

<mosaic_0001>
module attributes {stable_mosaic.version = 11 : i64} {
  func.func @_dupmae_kernel(%arg0: i32, %arg1: memref<16x1xi32, #tpu.memory_space<vmem>>, %arg2: memref<16x1xi32, #tpu.memory_space<vmem>>, %arg3: memref<16x1xi32, #tpu.memory_space<vmem>>, %arg4: memref<16x1xi32, #tpu.memory_space<vmem>>, %arg5: memref<16x16xf32, #tpu.memory_space<vmem>>, %arg6: memref<16x16xf32, #tpu.memory_space<vmem>>, %arg7: memref<2x8x1xf32, #tpu.memory_space<vmem>>, %arg8: memref<2x1xf32, #tpu.memory_space<vmem>>, %arg9: memref<2x8x1xf32, #tpu.memory_space<vmem>>, %arg10: memref<2x512xf32, #tpu.memory_space<vmem>>, %arg11: memref<512x128xbf16, #tpu.memory_space<vmem>>, %arg12: memref<2x128xf32, #tpu.memory_space<vmem>>, %arg13: memref<2x2x128xf32, #tpu.memory_space<vmem>>, %arg14: memref<2x128x384xbf16, #tpu.memory_space<vmem>>, %arg15: memref<2x1x384xf32, #tpu.memory_space<vmem>>, %arg16: memref<2x128x128xbf16, #tpu.memory_space<vmem>>, %arg17: memref<2x1x128xf32, #tpu.memory_space<vmem>>, %arg18: memref<2x2x128xf32, #tpu.memory_space<vmem>>, %arg19: memref<2x128x256xbf16, #tpu.memory_space<vmem>>, %arg20: memref<2x1x256xf32, #tpu.memory_space<vmem>>, %arg21: memref<2x256x128xbf16, #tpu.memory_space<vmem>>, %arg22: memref<2x1x128xf32, #tpu.memory_space<vmem>>, %arg23: memref<2x128xf32, #tpu.memory_space<vmem>>, %arg24: memref<128x128xbf16, #tpu.memory_space<vmem>>, %arg25: memref<1x128xf32, #tpu.memory_space<vmem>>, %arg26: memref<2x128xf32, #tpu.memory_space<vmem>>, %arg27: memref<128x512xbf16, #tpu.memory_space<vmem>>, %arg28: memref<1x512xf32, #tpu.memory_space<vmem>>, %arg29: memref<128x128xbf16, #tpu.memory_space<vmem>>, %arg30: memref<1x128xf32, #tpu.memory_space<vmem>>, %arg31: memref<128x256xbf16, #tpu.memory_space<vmem>>, %arg32: memref<1x256xf32, #tpu.memory_space<vmem>>, %arg33: memref<128x128xbf16, #tpu.memory_space<vmem>>, %arg34: memref<1x128xf32, #tpu.memory_space<vmem>>, %arg35: memref<2x128xf32, #tpu.memory_space<vmem>>, %arg36: memref<128x256xbf16, #tpu.memory_space<vmem>>, %arg37: memref<1x256xf32, #tpu.memory_space<vmem>>, %arg38: memref<256x128xbf16, #tpu.memory_space<vmem>>, %arg39: memref<1x128xf32, #tpu.memory_space<vmem>>, %arg40: memref<2x128xf32, #tpu.memory_space<vmem>>, %arg41: memref<1x1xf32, #tpu.memory_space<vmem>>) attributes {dimension_semantics = [#tpu.dimension_semantics<arbitrary>], iteration_bounds = array<i64: 1>, scalar_prefetch = 0 : i64, scratch_operands = 0 : i64, tpu.core_type = #tpu.core_type<tc>, window_params = [{pipeline_mode = #tpu.pipeline_mode<synchronous>, transform_indices = @transform_0, window_bounds = array<i64: 16, 1>}, {pipeline_mode = #tpu.pipeline_mode<synchronous>, transform_indices = @transform_1, window_bounds = array<i64: 16, 1>}, {pipeline_mode = #tpu.pipeline_mode<synchronous>, transform_indices = @transform_2, window_bounds = array<i64: 16, 1>}, {pipeline_mode = #tpu.pipeline_mode<synchronous>, transform_indices = @transform_3, window_bounds = array<i64: 16, 1>}, {pipeline_mode = #tpu.pipeline_mode<synchronous>, transform_indices = @transform_4, window_bounds = array<i64: 16, 16>}, {pipeline_mode = #tpu.pipeline_mode<synchronous>, transform_indices = @transform_5, window_bounds = array<i64: 16, 16>}, {pipeline_mode = #tpu.pipeline_mode<synchronous>, transform_indices = @transform_6, window_bounds = array<i64: 2, 8, 1>}, {pipeline_mode = #tpu.pipeline_mode<synchronous>, transform_indices = @transform_7, window_bounds = array<i64: 2, 1>}, {pipeline_mode = #tpu.pipeline_mode<synchronous>, transform_indices = @transform_8, window_bounds = array<i64: 2, 8, 1>}, {pipeline_mode = #tpu.pipeline_mode<synchronous>, transform_indices = @transform_9, window_bounds = array<i64: 2, 512>}, {pipeline_mode = #tpu.pipeline_mode<synchronous>, transform_indices = @transform_10, window_bounds = array<i64: 512, 128>}, {pipeline_mode = #tpu.pipeline_mode<synchronous>, transform_indices = @transform_11, window_bounds = array<i64: 2, 128>}, {pipeline_mode = #tpu.pipeline_mode<synchronous>, transform_indices = @transform_12, window_bounds = array<i64: 2, 2, 128>}, {pipeline_mode = #tpu.pipeline_mode<synchronous>, transform_indices = @transform_13, window_bounds = array<i64: 2, 128, 384>}, {pipeline_mode = #tpu.pipeline_mode<synchronous>, transform_indices = @transform_14, window_bounds = array<i64: 2, 1, 384>}, {pipeline_mode = #tpu.pipeline_mode<synchronous>, transform_indices = @transform_15, window_bounds = array<i64: 2, 128, 128>}, {pipeline_mode = #tpu.pipeline_mode<synchronous>, transform_indices = @transform_16, window_bounds = array<i64: 2, 1, 128>}, {pipeline_mode = #tpu.pipeline_mode<synchronous>, transform_indices = @transform_17, window_bounds = array<i64: 2, 2, 128>}, {pipeline_mode = #tpu.pipeline_mode<synchronous>, transform_indices = @transform_18, window_bounds = array<i64: 2, 128, 256>}, {pipeline_mode = #tpu.pipeline_mode<synchronous>, transform_indices = @transform_19, window_bounds = array<i64: 2, 1, 256>}, {pipeline_mode = #tpu.pipeline_mode<synchronous>, transform_indices = @transform_20, window_bounds = array<i64: 2, 256, 128>}, {pipeline_mode = #tpu.pipeline_mode<synchronous>, transform_indices = @transform_21, window_bounds = array<i64: 2, 1, 128>}, {pipeline_mode = #tpu.pipeline_mode<synchronous>, transform_indices = @transform_22, window_bounds = array<i64: 2, 128>}, {pipeline_mode = #tpu.pipeline_mode<synchronous>, transform_indices = @transform_23, window_bounds = array<i64: 128, 128>}, {pipeline_mode = #tpu.pipeline_mode<synchronous>, transform_indices = @transform_24, window_bounds = array<i64: 1, 128>}, {pipeline_mode = #tpu.pipeline_mode<synchronous>, transform_indices = @transform_25, window_bounds = array<i64: 2, 128>}, {pipeline_mode = #tpu.pipeline_mode<synchronous>, transform_indices = @transform_26, window_bounds = array<i64: 128, 512>}, {pipeline_mode = #tpu.pipeline_mode<synchronous>, transform_indices = @transform_27, window_bounds = array<i64: 1, 512>}, {pipeline_mode = #tpu.pipeline_mode<synchronous>, transform_indices = @transform_28, window_bounds = array<i64: 128, 128>}, {pipeline_mode = #tpu.pipeline_mode<synchronous>, transform_indices = @transform_29, window_bounds = array<i64: 1, 128>}, {pipeline_mode = #tpu.pipeline_mode<synchronous>, transform_indices = @transform_30, window_bounds = array<i64: 128, 256>}, {pipeline_mode = #tpu.pipeline_mode<synchronous>, transform_indices = @transform_31, window_bounds = array<i64: 1, 256>}, {pipeline_mode = #tpu.pipeline_mode<synchronous>, transform_indices = @transform_32, window_bounds = array<i64: 128, 128>}, {pipeline_mode = #tpu.pipeline_mode<synchronous>, transform_indices = @transform_33, window_bounds = array<i64: 1, 128>}, {pipeline_mode = #tpu.pipeline_mode<synchronous>, transform_indices = @transform_34, window_bounds = array<i64: 2, 128>}, {pipeline_mode = #tpu.pipeline_mode<synchronous>, transform_indices = @transform_35, window_bounds = array<i64: 128, 256>}, {pipeline_mode = #tpu.pipeline_mode<synchronous>, transform_indices = @transform_36, window_bounds = array<i64: 1, 256>}, {pipeline_mode = #tpu.pipeline_mode<synchronous>, transform_indices = @transform_37, window_bounds = array<i64: 256, 128>}, {pipeline_mode = #tpu.pipeline_mode<synchronous>, transform_indices = @transform_38, window_bounds = array<i64: 1, 128>}, {pipeline_mode = #tpu.pipeline_mode<synchronous>, transform_indices = @transform_39, window_bounds = array<i64: 2, 128>}, {pipeline_mode = #tpu.pipeline_mode<synchronous>, transform_indices = @transform_40, window_bounds = array<i64: 1, 1>}]} {
    %c0 = arith.constant 0 : index
    %c0_0 = arith.constant 0 : index
    %0 = vector.load %arg12[%c0, %c0_0] : memref<2x128xf32, #tpu.memory_space<vmem>>, vector<2x128xf32>
    %c0_1 = arith.constant 0 : index
    %c0_2 = arith.constant 0 : index
    %1 = vector.load %arg11[%c0_1, %c0_2] : memref<512x128xbf16, #tpu.memory_space<vmem>>, vector<512x128xbf16>
    %c0_3 = arith.constant 0 : index
    %c0_4 = arith.constant 0 : index
    %2 = vector.load %arg5[%c0_3, %c0_4] : memref<16x16xf32, #tpu.memory_space<vmem>>, vector<16x16xf32>
    %c0_5 = arith.constant 0 : index
    %c0_6 = arith.constant 0 : index
    %3 = vector.load %arg27[%c0_5, %c0_6] : memref<128x512xbf16, #tpu.memory_space<vmem>>, vector<128x512xbf16>
    %c0_7 = arith.constant 0 : index
    %c0_8 = arith.constant 0 : index
    %4 = vector.load %arg28[%c0_7, %c0_8] : memref<1x512xf32, #tpu.memory_space<vmem>>, vector<1x512xf32>
    %c0_9 = arith.constant 0 : index
    %c0_10 = arith.constant 0 : index
    %5 = vector.load %arg1[%c0_9, %c0_10] : memref<16x1xi32, #tpu.memory_space<vmem>>, vector<16x1xi32>
    %6 = tpu.iota {dimensions = array<i32: 1>} : vector<16x512xi32>
    %7 = vector.broadcast %5 : vector<16x1xi32> to vector<16x512xi32>
    %8 = arith.cmpi eq, %6, %7 : vector<16x512xi32>
    %9 = arith.extui %8 : vector<16x512xi1> to vector<16x512xi32>
    %10 = arith.sitofp %9 : vector<16x512xi32> to vector<16x512xf32>
    %11 = arith.truncf %10 : vector<16x512xf32> to vector<16x512xbf16>
    %cst = arith.constant dense<0.000000e+00> : vector<16x128xf32>
    %12 = tpu.matmul %11, %1, %cst {dimension_numbers = #tpu.dot_dimension_numbers<[1], [0], [0], [1], [0, 0, 1, 1], [], []>} : vector<16x512xbf16>, vector<512x128xbf16>, vector<16x128xf32> -> vector<16x128xf32>
    %13 = vector.extract_strided_slice %0 {offsets = [0, 0], sizes = [1, 128], strides = [1, 1]} : vector<2x128xf32> to vector<1x128xf32>
    %14 = vector.extract_strided_slice %0 {offsets = [1, 0], sizes = [1, 128], strides = [1, 1]} : vector<2x128xf32> to vector<1x128xf32>
    %cst_11 = arith.constant dense<0.000000e+00> : vector<16xf32>
    %15 = vector.multi_reduction <add>, %12, %cst_11 [1] : vector<16x128xf32> to vector<16xf32>
    %16 = vector.shape_cast %15 : vector<16xf32> to vector<16x1xf32>
    %cst_12 = arith.constant 1.280000e+02 : f32
    %17 = vector.broadcast %cst_12 : f32 to vector<16x1xf32>
    %18 = arith.divf %16, %17 : vector<16x1xf32>
    %19 = vector.broadcast %18 : vector<16x1xf32> to vector<16x128xf32>
    %20 = arith.subf %12, %19 : vector<16x128xf32>
    %21 = vector.broadcast %18 : vector<16x1xf32> to vector<16x128xf32>
    %22 = arith.subf %12, %21 : vector<16x128xf32>
    %23 = arith.mulf %20, %22 : vector<16x128xf32>
    %cst_13 = arith.constant dense<0.000000e+00> : vector<16xf32>
    %24 = vector.multi_reduction <add>, %23, %cst_13 [1] : vector<16x128xf32> to vector<16xf32>
    %25 = vector.shape_cast %24 : vector<16xf32> to vector<16x1xf32>
    %cst_14 = arith.constant 1.280000e+02 : f32
    %26 = vector.broadcast %cst_14 : f32 to vector<16x1xf32>
    %27 = arith.divf %25, %26 : vector<16x1xf32>
    %28 = vector.broadcast %18 : vector<16x1xf32> to vector<16x128xf32>
    %29 = arith.subf %12, %28 : vector<16x128xf32>
    %cst_15 = arith.constant 9.99999974E-6 : f32
    %30 = vector.broadcast %cst_15 : f32 to vector<16x1xf32>
    %31 = arith.addf %27, %30 : vector<16x1xf32>
    %32 = math.rsqrt %31 : vector<16x1xf32>
    %33 = vector.broadcast %32 : vector<16x1xf32> to vector<16x128xf32>
    %34 = arith.mulf %29, %33 : vector<16x128xf32>
    %35 = vector.broadcast %13 : vector<1x128xf32> to vector<16x128xf32>
    %36 = arith.mulf %34, %35 : vector<16x128xf32>
    %37 = vector.broadcast %14 : vector<1x128xf32> to vector<16x128xf32>
    %38 = arith.addf %36, %37 : vector<16x128xf32>
    %c0_16 = arith.constant 0 : index
    %c0_17 = arith.constant 0 : index
    %c0_18 = arith.constant 0 : index
    %39 = vector.load %arg13[%c0_16, %c0_17, %c0_18] : memref<2x2x128xf32, #tpu.memory_space<vmem>>, vector<1x2x128xf32>
    %40 = vector.shape_cast %39 : vector<1x2x128xf32> to vector<2x128xf32>
    %41 = vector.extract_strided_slice %40 {offsets = [0, 0], sizes = [1, 128], strides = [1, 1]} : vector<2x128xf32> to vector<1x128xf32>
    %42 = vector.extract_strided_slice %40 {offsets = [1, 0], sizes = [1, 128], strides = [1, 1]} : vector<2x128xf32> to vector<1x128xf32>
    %cst_19 = arith.constant dense<0.000000e+00> : vector<16xf32>
    %43 = vector.multi_reduction <add>, %38, %cst_19 [1] : vector<16x128xf32> to vector<16xf32>
    %44 = vector.shape_cast %43 : vector<16xf32> to vector<16x1xf32>
    %cst_20 = arith.constant 1.280000e+02 : f32
    %45 = vector.broadcast %cst_20 : f32 to vector<16x1xf32>
    %46 = arith.divf %44, %45 : vector<16x1xf32>
    %47 = vector.broadcast %46 : vector<16x1xf32> to vector<16x128xf32>
    %48 = arith.subf %38, %47 : vector<16x128xf32>
    %49 = vector.broadcast %46 : vector<16x1xf32> to vector<16x128xf32>
    %50 = arith.subf %38, %49 : vector<16x128xf32>
    %51 = arith.mulf %48, %50 : vector<16x128xf32>
    %cst_21 = arith.constant dense<0.000000e+00> : vector<16xf32>
    %52 = vector.multi_reduction <add>, %51, %cst_21 [1] : vector<16x128xf32> to vector<16xf32>
    %53 = vector.shape_cast %52 : vector<16xf32> to vector<16x1xf32>
    %cst_22 = arith.constant 1.280000e+02 : f32
    %54 = vector.broadcast %cst_22 : f32 to vector<16x1xf32>
    %55 = arith.divf %53, %54 : vector<16x1xf32>
    %56 = vector.broadcast %46 : vector<16x1xf32> to vector<16x128xf32>
    %57 = arith.subf %38, %56 : vector<16x128xf32>
    %cst_23 = arith.constant 9.99999974E-6 : f32
    %58 = vector.broadcast %cst_23 : f32 to vector<16x1xf32>
    %59 = arith.addf %55, %58 : vector<16x1xf32>
    %60 = math.rsqrt %59 : vector<16x1xf32>
    %61 = vector.broadcast %60 : vector<16x1xf32> to vector<16x128xf32>
    %62 = arith.mulf %57, %61 : vector<16x128xf32>
    %63 = vector.broadcast %41 : vector<1x128xf32> to vector<16x128xf32>
    %64 = arith.mulf %62, %63 : vector<16x128xf32>
    %65 = vector.broadcast %42 : vector<1x128xf32> to vector<16x128xf32>
    %66 = arith.addf %64, %65 : vector<16x128xf32>
    %c0_24 = arith.constant 0 : index
    %c0_25 = arith.constant 0 : index
    %c0_26 = arith.constant 0 : index
    %67 = vector.load %arg14[%c0_24, %c0_25, %c0_26] : memref<2x128x384xbf16, #tpu.memory_space<vmem>>, vector<1x128x384xbf16>
    %68 = vector.shape_cast %67 : vector<1x128x384xbf16> to vector<128x384xbf16>
    %c0_27 = arith.constant 0 : index
    %c0_28 = arith.constant 0 : index
    %c0_29 = arith.constant 0 : index
    %69 = vector.load %arg15[%c0_27, %c0_28, %c0_29] : memref<2x1x384xf32, #tpu.memory_space<vmem>>, vector<1x1x384xf32>
    %70 = vector.shape_cast %69 : vector<1x1x384xf32> to vector<1x384xf32>
    %71 = arith.truncf %66 : vector<16x128xf32> to vector<16x128xbf16>
    %cst_30 = arith.constant dense<0.000000e+00> : vector<16x384xf32>
    %72 = tpu.matmul %71, %68, %cst_30 {dimension_numbers = #tpu.dot_dimension_numbers<[1], [0], [0], [1], [0, 0, 1, 1], [], []>} : vector<16x128xbf16>, vector<128x384xbf16>, vector<16x384xf32> -> vector<16x384xf32>
    %73 = vector.broadcast %70 : vector<1x384xf32> to vector<16x384xf32>
    %74 = arith.addf %72, %73 : vector<16x384xf32>
    %75 = vector.extract_strided_slice %74 {offsets = [0, 0], sizes = [16, 128], strides = [1, 1]} : vector<16x384xf32> to vector<16x128xf32>
    %76 = vector.extract_strided_slice %74 {offsets = [0, 128], sizes = [16, 128], strides = [1, 1]} : vector<16x384xf32> to vector<16x128xf32>
    %77 = vector.extract_strided_slice %74 {offsets = [0, 256], sizes = [16, 128], strides = [1, 1]} : vector<16x384xf32> to vector<16x128xf32>
    %c0_31 = arith.constant 0 : index
    %c0_32 = arith.constant 0 : index
    %c0_33 = arith.constant 0 : index
    %78 = vector.load %arg16[%c0_31, %c0_32, %c0_33] : memref<2x128x128xbf16, #tpu.memory_space<vmem>>, vector<1x128x128xbf16>
    %79 = vector.shape_cast %78 : vector<1x128x128xbf16> to vector<128x128xbf16>
    %c0_34 = arith.constant 0 : index
    %c0_35 = arith.constant 0 : index
    %c0_36 = arith.constant 0 : index
    %80 = vector.load %arg17[%c0_34, %c0_35, %c0_36] : memref<2x1x128xf32, #tpu.memory_space<vmem>>, vector<1x1x128xf32>
    %81 = vector.shape_cast %80 : vector<1x1x128xf32> to vector<1x128xf32>
    %82 = vector.extract_strided_slice %75 {offsets = [0, 0], sizes = [16, 32], strides = [1, 1]} : vector<16x128xf32> to vector<16x32xf32>
    %83 = arith.truncf %82 : vector<16x32xf32> to vector<16x32xbf16>
    %84 = vector.extract_strided_slice %76 {offsets = [0, 0], sizes = [16, 32], strides = [1, 1]} : vector<16x128xf32> to vector<16x32xf32>
    %85 = tpu.transpose %84, [1, 0] : vector<16x32xf32> -> vector<32x16xf32>
    %86 = arith.truncf %85 : vector<32x16xf32> to vector<32x16xbf16>
    %87 = vector.extract_strided_slice %77 {offsets = [0, 0], sizes = [16, 32], strides = [1, 1]} : vector<16x128xf32> to vector<16x32xf32>
    %88 = arith.truncf %87 : vector<16x32xf32> to vector<16x32xbf16>
    %cst_37 = arith.constant dense<0.000000e+00> : vector<16x16xf32>
    %89 = tpu.matmul %83, %86, %cst_37 {dimension_numbers = #tpu.dot_dimension_numbers<[1], [0], [0], [1], [0, 0, 1, 1], [], []>} : vector<16x32xbf16>, vector<32x16xbf16>, vector<16x16xf32> -> vector<16x16xf32>
    %90 = arith.addf %89, %2 : vector<16x16xf32>
    %cst_38 = arith.constant dense<0xFF800000> : vector<16xf32>
    %91 = vector.multi_reduction <maximumf>, %90, %cst_38 [1] : vector<16x16xf32> to vector<16xf32>
    %92 = vector.shape_cast %91 : vector<16xf32> to vector<16x1xf32>
    %93 = vector.broadcast %92 : vector<16x1xf32> to vector<16x16xf32>
    %94 = arith.subf %90, %93 : vector<16x16xf32>
    %95 = math.exp %94 : vector<16x16xf32>
    %cst_39 = arith.constant dense<0.000000e+00> : vector<16xf32>
    %96 = vector.multi_reduction <add>, %95, %cst_39 [1] : vector<16x16xf32> to vector<16xf32>
    %97 = vector.shape_cast %96 : vector<16xf32> to vector<16x1xf32>
    %98 = tpu.reciprocal %97 {approx = true} : vector<16x1xf32> -> vector<16x1xf32>
    %99 = vector.broadcast %98 : vector<16x1xf32> to vector<16x16xf32>
    %100 = arith.mulf %95, %99 : vector<16x16xf32>
    %101 = arith.truncf %100 : vector<16x16xf32> to vector<16x16xbf16>
    %cst_40 = arith.constant dense<0.000000e+00> : vector<16x32xf32>
    %102 = tpu.matmul %101, %88, %cst_40 {dimension_numbers = #tpu.dot_dimension_numbers<[1], [0], [0], [1], [0, 0, 1, 1], [], []>} : vector<16x16xbf16>, vector<16x32xbf16>, vector<16x32xf32> -> vector<16x32xf32>
    %103 = vector.extract_strided_slice %75 {offsets = [0, 32], sizes = [16, 32], strides = [1, 1]} : vector<16x128xf32> to vector<16x32xf32>
    %104 = arith.truncf %103 : vector<16x32xf32> to vector<16x32xbf16>
    %105 = vector.extract_strided_slice %76 {offsets = [0, 32], sizes = [16, 32], strides = [1, 1]} : vector<16x128xf32> to vector<16x32xf32>
    %106 = tpu.transpose %105, [1, 0] : vector<16x32xf32> -> vector<32x16xf32>
    %107 = arith.truncf %106 : vector<32x16xf32> to vector<32x16xbf16>
    %108 = vector.extract_strided_slice %77 {offsets = [0, 32], sizes = [16, 32], strides = [1, 1]} : vector<16x128xf32> to vector<16x32xf32>
    %109 = arith.truncf %108 : vector<16x32xf32> to vector<16x32xbf16>
    %cst_41 = arith.constant dense<0.000000e+00> : vector<16x16xf32>
    %110 = tpu.matmul %104, %107, %cst_41 {dimension_numbers = #tpu.dot_dimension_numbers<[1], [0], [0], [1], [0, 0, 1, 1], [], []>} : vector<16x32xbf16>, vector<32x16xbf16>, vector<16x16xf32> -> vector<16x16xf32>
    %111 = arith.addf %110, %2 : vector<16x16xf32>
    %cst_42 = arith.constant dense<0xFF800000> : vector<16xf32>
    %112 = vector.multi_reduction <maximumf>, %111, %cst_42 [1] : vector<16x16xf32> to vector<16xf32>
    %113 = vector.shape_cast %112 : vector<16xf32> to vector<16x1xf32>
    %114 = vector.broadcast %113 : vector<16x1xf32> to vector<16x16xf32>
    %115 = arith.subf %111, %114 : vector<16x16xf32>
    %116 = math.exp %115 : vector<16x16xf32>
    %cst_43 = arith.constant dense<0.000000e+00> : vector<16xf32>
    %117 = vector.multi_reduction <add>, %116, %cst_43 [1] : vector<16x16xf32> to vector<16xf32>
    %118 = vector.shape_cast %117 : vector<16xf32> to vector<16x1xf32>
    %119 = tpu.reciprocal %118 {approx = true} : vector<16x1xf32> -> vector<16x1xf32>
    %120 = vector.broadcast %119 : vector<16x1xf32> to vector<16x16xf32>
    %121 = arith.mulf %116, %120 : vector<16x16xf32>
    %122 = arith.truncf %121 : vector<16x16xf32> to vector<16x16xbf16>
    %cst_44 = arith.constant dense<0.000000e+00> : vector<16x32xf32>
    %123 = tpu.matmul %122, %109, %cst_44 {dimension_numbers = #tpu.dot_dimension_numbers<[1], [0], [0], [1], [0, 0, 1, 1], [], []>} : vector<16x16xbf16>, vector<16x32xbf16>, vector<16x32xf32> -> vector<16x32xf32>
    %124 = vector.extract_strided_slice %75 {offsets = [0, 64], sizes = [16, 32], strides = [1, 1]} : vector<16x128xf32> to vector<16x32xf32>
    %125 = arith.truncf %124 : vector<16x32xf32> to vector<16x32xbf16>
    %126 = vector.extract_strided_slice %76 {offsets = [0, 64], sizes = [16, 32], strides = [1, 1]} : vector<16x128xf32> to vector<16x32xf32>
    %127 = tpu.transpose %126, [1, 0] : vector<16x32xf32> -> vector<32x16xf32>
    %128 = arith.truncf %127 : vector<32x16xf32> to vector<32x16xbf16>
    %129 = vector.extract_strided_slice %77 {offsets = [0, 64], sizes = [16, 32], strides = [1, 1]} : vector<16x128xf32> to vector<16x32xf32>
    %130 = arith.truncf %129 : vector<16x32xf32> to vector<16x32xbf16>
    %cst_45 = arith.constant dense<0.000000e+00> : vector<16x16xf32>
    %131 = tpu.matmul %125, %128, %cst_45 {dimension_numbers = #tpu.dot_dimension_numbers<[1], [0], [0], [1], [0, 0, 1, 1], [], []>} : vector<16x32xbf16>, vector<32x16xbf16>, vector<16x16xf32> -> vector<16x16xf32>
    %132 = arith.addf %131, %2 : vector<16x16xf32>
    %cst_46 = arith.constant dense<0xFF800000> : vector<16xf32>
    %133 = vector.multi_reduction <maximumf>, %132, %cst_46 [1] : vector<16x16xf32> to vector<16xf32>
    %134 = vector.shape_cast %133 : vector<16xf32> to vector<16x1xf32>
    %135 = vector.broadcast %134 : vector<16x1xf32> to vector<16x16xf32>
    %136 = arith.subf %132, %135 : vector<16x16xf32>
    %137 = math.exp %136 : vector<16x16xf32>
    %cst_47 = arith.constant dense<0.000000e+00> : vector<16xf32>
    %138 = vector.multi_reduction <add>, %137, %cst_47 [1] : vector<16x16xf32> to vector<16xf32>
    %139 = vector.shape_cast %138 : vector<16xf32> to vector<16x1xf32>
    %140 = tpu.reciprocal %139 {approx = true} : vector<16x1xf32> -> vector<16x1xf32>
    %141 = vector.broadcast %140 : vector<16x1xf32> to vector<16x16xf32>
    %142 = arith.mulf %137, %141 : vector<16x16xf32>
    %143 = arith.truncf %142 : vector<16x16xf32> to vector<16x16xbf16>
    %cst_48 = arith.constant dense<0.000000e+00> : vector<16x32xf32>
    %144 = tpu.matmul %143, %130, %cst_48 {dimension_numbers = #tpu.dot_dimension_numbers<[1], [0], [0], [1], [0, 0, 1, 1], [], []>} : vector<16x16xbf16>, vector<16x32xbf16>, vector<16x32xf32> -> vector<16x32xf32>
    %145 = vector.extract_strided_slice %75 {offsets = [0, 96], sizes = [16, 32], strides = [1, 1]} : vector<16x128xf32> to vector<16x32xf32>
    %146 = arith.truncf %145 : vector<16x32xf32> to vector<16x32xbf16>
    %147 = vector.extract_strided_slice %76 {offsets = [0, 96], sizes = [16, 32], strides = [1, 1]} : vector<16x128xf32> to vector<16x32xf32>
    %148 = tpu.transpose %147, [1, 0] : vector<16x32xf32> -> vector<32x16xf32>
    %149 = arith.truncf %148 : vector<32x16xf32> to vector<32x16xbf16>
    %150 = vector.extract_strided_slice %77 {offsets = [0, 96], sizes = [16, 32], strides = [1, 1]} : vector<16x128xf32> to vector<16x32xf32>
    %151 = arith.truncf %150 : vector<16x32xf32> to vector<16x32xbf16>
    %cst_49 = arith.constant dense<0.000000e+00> : vector<16x16xf32>
    %152 = tpu.matmul %146, %149, %cst_49 {dimension_numbers = #tpu.dot_dimension_numbers<[1], [0], [0], [1], [0, 0, 1, 1], [], []>} : vector<16x32xbf16>, vector<32x16xbf16>, vector<16x16xf32> -> vector<16x16xf32>
    %153 = arith.addf %152, %2 : vector<16x16xf32>
    %cst_50 = arith.constant dense<0xFF800000> : vector<16xf32>
    %154 = vector.multi_reduction <maximumf>, %153, %cst_50 [1] : vector<16x16xf32> to vector<16xf32>
    %155 = vector.shape_cast %154 : vector<16xf32> to vector<16x1xf32>
    %156 = vector.broadcast %155 : vector<16x1xf32> to vector<16x16xf32>
    %157 = arith.subf %153, %156 : vector<16x16xf32>
    %158 = math.exp %157 : vector<16x16xf32>
    %cst_51 = arith.constant dense<0.000000e+00> : vector<16xf32>
    %159 = vector.multi_reduction <add>, %158, %cst_51 [1] : vector<16x16xf32> to vector<16xf32>
    %160 = vector.shape_cast %159 : vector<16xf32> to vector<16x1xf32>
    %161 = tpu.reciprocal %160 {approx = true} : vector<16x1xf32> -> vector<16x1xf32>
    %162 = vector.broadcast %161 : vector<16x1xf32> to vector<16x16xf32>
    %163 = arith.mulf %158, %162 : vector<16x16xf32>
    %164 = arith.truncf %163 : vector<16x16xf32> to vector<16x16xbf16>
    %cst_52 = arith.constant dense<0.000000e+00> : vector<16x32xf32>
    %165 = tpu.matmul %164, %151, %cst_52 {dimension_numbers = #tpu.dot_dimension_numbers<[1], [0], [0], [1], [0, 0, 1, 1], [], []>} : vector<16x16xbf16>, vector<16x32xbf16>, vector<16x32xf32> -> vector<16x32xf32>
    %166 = tpu.concatenate %102, %123, %144, %165 in 1 : vector<16x32xf32>, vector<16x32xf32>, vector<16x32xf32>, vector<16x32xf32> -> vector<16x128xf32>
    %167 = arith.truncf %166 : vector<16x128xf32> to vector<16x128xbf16>
    %cst_53 = arith.constant dense<0.000000e+00> : vector<16x128xf32>
    %168 = tpu.matmul %167, %79, %cst_53 {dimension_numbers = #tpu.dot_dimension_numbers<[1], [0], [0], [1], [0, 0, 1, 1], [], []>} : vector<16x128xbf16>, vector<128x128xbf16>, vector<16x128xf32> -> vector<16x128xf32>
    %169 = vector.broadcast %81 : vector<1x128xf32> to vector<16x128xf32>
    %170 = arith.addf %168, %169 : vector<16x128xf32>
    %171 = arith.addf %38, %170 : vector<16x128xf32>
    %c0_54 = arith.constant 0 : index
    %c0_55 = arith.constant 0 : index
    %c0_56 = arith.constant 0 : index
    %172 = vector.load %arg18[%c0_54, %c0_55, %c0_56] : memref<2x2x128xf32, #tpu.memory_space<vmem>>, vector<1x2x128xf32>
    %173 = vector.shape_cast %172 : vector<1x2x128xf32> to vector<2x128xf32>
    %174 = vector.extract_strided_slice %173 {offsets = [0, 0], sizes = [1, 128], strides = [1, 1]} : vector<2x128xf32> to vector<1x128xf32>
    %175 = vector.extract_strided_slice %173 {offsets = [1, 0], sizes = [1, 128], strides = [1, 1]} : vector<2x128xf32> to vector<1x128xf32>
    %cst_57 = arith.constant dense<0.000000e+00> : vector<16xf32>
    %176 = vector.multi_reduction <add>, %171, %cst_57 [1] : vector<16x128xf32> to vector<16xf32>
    %177 = vector.shape_cast %176 : vector<16xf32> to vector<16x1xf32>
    %cst_58 = arith.constant 1.280000e+02 : f32
    %178 = vector.broadcast %cst_58 : f32 to vector<16x1xf32>
    %179 = arith.divf %177, %178 : vector<16x1xf32>
    %180 = vector.broadcast %179 : vector<16x1xf32> to vector<16x128xf32>
    %181 = arith.subf %171, %180 : vector<16x128xf32>
    %182 = vector.broadcast %179 : vector<16x1xf32> to vector<16x128xf32>
    %183 = arith.subf %171, %182 : vector<16x128xf32>
    %184 = arith.mulf %181, %183 : vector<16x128xf32>
    %cst_59 = arith.constant dense<0.000000e+00> : vector<16xf32>
    %185 = vector.multi_reduction <add>, %184, %cst_59 [1] : vector<16x128xf32> to vector<16xf32>
    %186 = vector.shape_cast %185 : vector<16xf32> to vector<16x1xf32>
    %cst_60 = arith.constant 1.280000e+02 : f32
    %187 = vector.broadcast %cst_60 : f32 to vector<16x1xf32>
    %188 = arith.divf %186, %187 : vector<16x1xf32>
    %189 = vector.broadcast %179 : vector<16x1xf32> to vector<16x128xf32>
    %190 = arith.subf %171, %189 : vector<16x128xf32>
    %cst_61 = arith.constant 9.99999974E-6 : f32
    %191 = vector.broadcast %cst_61 : f32 to vector<16x1xf32>
    %192 = arith.addf %188, %191 : vector<16x1xf32>
    %193 = math.rsqrt %192 : vector<16x1xf32>
    %194 = vector.broadcast %193 : vector<16x1xf32> to vector<16x128xf32>
    %195 = arith.mulf %190, %194 : vector<16x128xf32>
    %196 = vector.broadcast %174 : vector<1x128xf32> to vector<16x128xf32>
    %197 = arith.mulf %195, %196 : vector<16x128xf32>
    %198 = vector.broadcast %175 : vector<1x128xf32> to vector<16x128xf32>
    %199 = arith.addf %197, %198 : vector<16x128xf32>
    %c0_62 = arith.constant 0 : index
    %c0_63 = arith.constant 0 : index
    %c0_64 = arith.constant 0 : index
    %200 = vector.load %arg19[%c0_62, %c0_63, %c0_64] : memref<2x128x256xbf16, #tpu.memory_space<vmem>>, vector<1x128x256xbf16>
    %201 = vector.shape_cast %200 : vector<1x128x256xbf16> to vector<128x256xbf16>
    %c0_65 = arith.constant 0 : index
    %c0_66 = arith.constant 0 : index
    %c0_67 = arith.constant 0 : index
    %202 = vector.load %arg20[%c0_65, %c0_66, %c0_67] : memref<2x1x256xf32, #tpu.memory_space<vmem>>, vector<1x1x256xf32>
    %203 = vector.shape_cast %202 : vector<1x1x256xf32> to vector<1x256xf32>
    %204 = arith.truncf %199 : vector<16x128xf32> to vector<16x128xbf16>
    %cst_68 = arith.constant dense<0.000000e+00> : vector<16x256xf32>
    %205 = tpu.matmul %204, %201, %cst_68 {dimension_numbers = #tpu.dot_dimension_numbers<[1], [0], [0], [1], [0, 0, 1, 1], [], []>} : vector<16x128xbf16>, vector<128x256xbf16>, vector<16x256xf32> -> vector<16x256xf32>
    %206 = vector.broadcast %203 : vector<1x256xf32> to vector<16x256xf32>
    %207 = arith.addf %205, %206 : vector<16x256xf32>
    %cst_69 = arith.constant 5.000000e-01 : f32
    %208 = vector.broadcast %cst_69 : f32 to vector<16x256xf32>
    %209 = arith.mulf %208, %207 : vector<16x256xf32>
    %cst_70 = arith.constant 4.471500e-02 : f32
    %210 = vector.broadcast %cst_70 : f32 to vector<16x256xf32>
    %211 = arith.mulf %210, %207 : vector<16x256xf32>
    %212 = arith.mulf %211, %207 : vector<16x256xf32>
    %213 = arith.mulf %212, %207 : vector<16x256xf32>
    %214 = arith.addf %207, %213 : vector<16x256xf32>
    %cst_71 = arith.constant 0.797884583 : f32
    %215 = vector.broadcast %cst_71 : f32 to vector<16x256xf32>
    %216 = arith.mulf %215, %214 : vector<16x256xf32>
    %217 = math.tanh %216 : vector<16x256xf32>
    %cst_72 = arith.constant 1.000000e+00 : f32
    %218 = vector.broadcast %cst_72 : f32 to vector<16x256xf32>
    %219 = arith.addf %218, %217 : vector<16x256xf32>
    %220 = arith.mulf %209, %219 : vector<16x256xf32>
    %c0_73 = arith.constant 0 : index
    %c0_74 = arith.constant 0 : index
    %c0_75 = arith.constant 0 : index
    %221 = vector.load %arg21[%c0_73, %c0_74, %c0_75] : memref<2x256x128xbf16, #tpu.memory_space<vmem>>, vector<1x256x128xbf16>
    %222 = vector.shape_cast %221 : vector<1x256x128xbf16> to vector<256x128xbf16>
    %c0_76 = arith.constant 0 : index
    %c0_77 = arith.constant 0 : index
    %c0_78 = arith.constant 0 : index
    %223 = vector.load %arg22[%c0_76, %c0_77, %c0_78] : memref<2x1x128xf32, #tpu.memory_space<vmem>>, vector<1x1x128xf32>
    %224 = vector.shape_cast %223 : vector<1x1x128xf32> to vector<1x128xf32>
    %225 = arith.truncf %220 : vector<16x256xf32> to vector<16x256xbf16>
    %cst_79 = arith.constant dense<0.000000e+00> : vector<16x128xf32>
    %226 = tpu.matmul %225, %222, %cst_79 {dimension_numbers = #tpu.dot_dimension_numbers<[1], [0], [0], [1], [0, 0, 1, 1], [], []>} : vector<16x256xbf16>, vector<256x128xbf16>, vector<16x128xf32> -> vector<16x128xf32>
    %227 = vector.broadcast %224 : vector<1x128xf32> to vector<16x128xf32>
    %228 = arith.addf %226, %227 : vector<16x128xf32>
    %229 = arith.addf %171, %228 : vector<16x128xf32>
    %c1 = arith.constant 1 : index
    %c0_80 = arith.constant 0 : index
    %c0_81 = arith.constant 0 : index
    %230 = vector.load %arg13[%c1, %c0_80, %c0_81] : memref<2x2x128xf32, #tpu.memory_space<vmem>>, vector<1x2x128xf32>
    %231 = vector.shape_cast %230 : vector<1x2x128xf32> to vector<2x128xf32>
    %232 = vector.extract_strided_slice %231 {offsets = [0, 0], sizes = [1, 128], strides = [1, 1]} : vector<2x128xf32> to vector<1x128xf32>
    %233 = vector.extract_strided_slice %231 {offsets = [1, 0], sizes = [1, 128], strides = [1, 1]} : vector<2x128xf32> to vector<1x128xf32>
    %cst_82 = arith.constant dense<0.000000e+00> : vector<16xf32>
    %234 = vector.multi_reduction <add>, %229, %cst_82 [1] : vector<16x128xf32> to vector<16xf32>
    %235 = vector.shape_cast %234 : vector<16xf32> to vector<16x1xf32>
    %cst_83 = arith.constant 1.280000e+02 : f32
    %236 = vector.broadcast %cst_83 : f32 to vector<16x1xf32>
    %237 = arith.divf %235, %236 : vector<16x1xf32>
    %238 = vector.broadcast %237 : vector<16x1xf32> to vector<16x128xf32>
    %239 = arith.subf %229, %238 : vector<16x128xf32>
    %240 = vector.broadcast %237 : vector<16x1xf32> to vector<16x128xf32>
    %241 = arith.subf %229, %240 : vector<16x128xf32>
    %242 = arith.mulf %239, %241 : vector<16x128xf32>
    %cst_84 = arith.constant dense<0.000000e+00> : vector<16xf32>
    %243 = vector.multi_reduction <add>, %242, %cst_84 [1] : vector<16x128xf32> to vector<16xf32>
    %244 = vector.shape_cast %243 : vector<16xf32> to vector<16x1xf32>
    %cst_85 = arith.constant 1.280000e+02 : f32
    %245 = vector.broadcast %cst_85 : f32 to vector<16x1xf32>
    %246 = arith.divf %244, %245 : vector<16x1xf32>
    %247 = vector.broadcast %237 : vector<16x1xf32> to vector<16x128xf32>
    %248 = arith.subf %229, %247 : vector<16x128xf32>
    %cst_86 = arith.constant 9.99999974E-6 : f32
    %249 = vector.broadcast %cst_86 : f32 to vector<16x1xf32>
    %250 = arith.addf %246, %249 : vector<16x1xf32>
    %251 = math.rsqrt %250 : vector<16x1xf32>
    %252 = vector.broadcast %251 : vector<16x1xf32> to vector<16x128xf32>
    %253 = arith.mulf %248, %252 : vector<16x128xf32>
    %254 = vector.broadcast %232 : vector<1x128xf32> to vector<16x128xf32>
    %255 = arith.mulf %253, %254 : vector<16x128xf32>
    %256 = vector.broadcast %233 : vector<1x128xf32> to vector<16x128xf32>
    %257 = arith.addf %255, %256 : vector<16x128xf32>
    %c1_87 = arith.constant 1 : index
    %c0_88 = arith.constant 0 : index
    %c0_89 = arith.constant 0 : index
    %258 = vector.load %arg14[%c1_87, %c0_88, %c0_89] : memref<2x128x384xbf16, #tpu.memory_space<vmem>>, vector<1x128x384xbf16>
    %259 = vector.shape_cast %258 : vector<1x128x384xbf16> to vector<128x384xbf16>
    %c1_90 = arith.constant 1 : index
    %c0_91 = arith.constant 0 : index
    %c0_92 = arith.constant 0 : index
    %260 = vector.load %arg15[%c1_90, %c0_91, %c0_92] : memref<2x1x384xf32, #tpu.memory_space<vmem>>, vector<1x1x384xf32>
    %261 = vector.shape_cast %260 : vector<1x1x384xf32> to vector<1x384xf32>
    %262 = arith.truncf %257 : vector<16x128xf32> to vector<16x128xbf16>
    %cst_93 = arith.constant dense<0.000000e+00> : vector<16x384xf32>
    %263 = tpu.matmul %262, %259, %cst_93 {dimension_numbers = #tpu.dot_dimension_numbers<[1], [0], [0], [1], [0, 0, 1, 1], [], []>} : vector<16x128xbf16>, vector<128x384xbf16>, vector<16x384xf32> -> vector<16x384xf32>
    %264 = vector.broadcast %261 : vector<1x384xf32> to vector<16x384xf32>
    %265 = arith.addf %263, %264 : vector<16x384xf32>
    %266 = vector.extract_strided_slice %265 {offsets = [0, 0], sizes = [16, 128], strides = [1, 1]} : vector<16x384xf32> to vector<16x128xf32>
    %267 = vector.extract_strided_slice %265 {offsets = [0, 128], sizes = [16, 128], strides = [1, 1]} : vector<16x384xf32> to vector<16x128xf32>
    %268 = vector.extract_strided_slice %265 {offsets = [0, 256], sizes = [16, 128], strides = [1, 1]} : vector<16x384xf32> to vector<16x128xf32>
    %c1_94 = arith.constant 1 : index
    %c0_95 = arith.constant 0 : index
    %c0_96 = arith.constant 0 : index
    %269 = vector.load %arg16[%c1_94, %c0_95, %c0_96] : memref<2x128x128xbf16, #tpu.memory_space<vmem>>, vector<1x128x128xbf16>
    %270 = vector.shape_cast %269 : vector<1x128x128xbf16> to vector<128x128xbf16>
    %c1_97 = arith.constant 1 : index
    %c0_98 = arith.constant 0 : index
    %c0_99 = arith.constant 0 : index
    %271 = vector.load %arg17[%c1_97, %c0_98, %c0_99] : memref<2x1x128xf32, #tpu.memory_space<vmem>>, vector<1x1x128xf32>
    %272 = vector.shape_cast %271 : vector<1x1x128xf32> to vector<1x128xf32>
    %273 = vector.extract_strided_slice %266 {offsets = [0, 0], sizes = [16, 32], strides = [1, 1]} : vector<16x128xf32> to vector<16x32xf32>
    %274 = arith.truncf %273 : vector<16x32xf32> to vector<16x32xbf16>
    %275 = vector.extract_strided_slice %267 {offsets = [0, 0], sizes = [16, 32], strides = [1, 1]} : vector<16x128xf32> to vector<16x32xf32>
    %276 = tpu.transpose %275, [1, 0] : vector<16x32xf32> -> vector<32x16xf32>
    %277 = arith.truncf %276 : vector<32x16xf32> to vector<32x16xbf16>
    %278 = vector.extract_strided_slice %268 {offsets = [0, 0], sizes = [16, 32], strides = [1, 1]} : vector<16x128xf32> to vector<16x32xf32>
    %279 = arith.truncf %278 : vector<16x32xf32> to vector<16x32xbf16>
    %cst_100 = arith.constant dense<0.000000e+00> : vector<16x16xf32>
    %280 = tpu.matmul %274, %277, %cst_100 {dimension_numbers = #tpu.dot_dimension_numbers<[1], [0], [0], [1], [0, 0, 1, 1], [], []>} : vector<16x32xbf16>, vector<32x16xbf16>, vector<16x16xf32> -> vector<16x16xf32>
    %281 = arith.addf %280, %2 : vector<16x16xf32>
    %cst_101 = arith.constant dense<0xFF800000> : vector<16xf32>
    %282 = vector.multi_reduction <maximumf>, %281, %cst_101 [1] : vector<16x16xf32> to vector<16xf32>
    %283 = vector.shape_cast %282 : vector<16xf32> to vector<16x1xf32>
    %284 = vector.broadcast %283 : vector<16x1xf32> to vector<16x16xf32>
    %285 = arith.subf %281, %284 : vector<16x16xf32>
    %286 = math.exp %285 : vector<16x16xf32>
    %cst_102 = arith.constant dense<0.000000e+00> : vector<16xf32>
    %287 = vector.multi_reduction <add>, %286, %cst_102 [1] : vector<16x16xf32> to vector<16xf32>
    %288 = vector.shape_cast %287 : vector<16xf32> to vector<16x1xf32>
    %289 = tpu.reciprocal %288 {approx = true} : vector<16x1xf32> -> vector<16x1xf32>
    %290 = vector.broadcast %289 : vector<16x1xf32> to vector<16x16xf32>
    %291 = arith.mulf %286, %290 : vector<16x16xf32>
    %292 = arith.truncf %291 : vector<16x16xf32> to vector<16x16xbf16>
    %cst_103 = arith.constant dense<0.000000e+00> : vector<16x32xf32>
    %293 = tpu.matmul %292, %279, %cst_103 {dimension_numbers = #tpu.dot_dimension_numbers<[1], [0], [0], [1], [0, 0, 1, 1], [], []>} : vector<16x16xbf16>, vector<16x32xbf16>, vector<16x32xf32> -> vector<16x32xf32>
    %294 = vector.extract_strided_slice %266 {offsets = [0, 32], sizes = [16, 32], strides = [1, 1]} : vector<16x128xf32> to vector<16x32xf32>
    %295 = arith.truncf %294 : vector<16x32xf32> to vector<16x32xbf16>
    %296 = vector.extract_strided_slice %267 {offsets = [0, 32], sizes = [16, 32], strides = [1, 1]} : vector<16x128xf32> to vector<16x32xf32>
    %297 = tpu.transpose %296, [1, 0] : vector<16x32xf32> -> vector<32x16xf32>
    %298 = arith.truncf %297 : vector<32x16xf32> to vector<32x16xbf16>
    %299 = vector.extract_strided_slice %268 {offsets = [0, 32], sizes = [16, 32], strides = [1, 1]} : vector<16x128xf32> to vector<16x32xf32>
    %300 = arith.truncf %299 : vector<16x32xf32> to vector<16x32xbf16>
    %cst_104 = arith.constant dense<0.000000e+00> : vector<16x16xf32>
    %301 = tpu.matmul %295, %298, %cst_104 {dimension_numbers = #tpu.dot_dimension_numbers<[1], [0], [0], [1], [0, 0, 1, 1], [], []>} : vector<16x32xbf16>, vector<32x16xbf16>, vector<16x16xf32> -> vector<16x16xf32>
    %302 = arith.addf %301, %2 : vector<16x16xf32>
    %cst_105 = arith.constant dense<0xFF800000> : vector<16xf32>
    %303 = vector.multi_reduction <maximumf>, %302, %cst_105 [1] : vector<16x16xf32> to vector<16xf32>
    %304 = vector.shape_cast %303 : vector<16xf32> to vector<16x1xf32>
    %305 = vector.broadcast %304 : vector<16x1xf32> to vector<16x16xf32>
    %306 = arith.subf %302, %305 : vector<16x16xf32>
    %307 = math.exp %306 : vector<16x16xf32>
    %cst_106 = arith.constant dense<0.000000e+00> : vector<16xf32>
    %308 = vector.multi_reduction <add>, %307, %cst_106 [1] : vector<16x16xf32> to vector<16xf32>
    %309 = vector.shape_cast %308 : vector<16xf32> to vector<16x1xf32>
    %310 = tpu.reciprocal %309 {approx = true} : vector<16x1xf32> -> vector<16x1xf32>
    %311 = vector.broadcast %310 : vector<16x1xf32> to vector<16x16xf32>
    %312 = arith.mulf %307, %311 : vector<16x16xf32>
    %313 = arith.truncf %312 : vector<16x16xf32> to vector<16x16xbf16>
    %cst_107 = arith.constant dense<0.000000e+00> : vector<16x32xf32>
    %314 = tpu.matmul %313, %300, %cst_107 {dimension_numbers = #tpu.dot_dimension_numbers<[1], [0], [0], [1], [0, 0, 1, 1], [], []>} : vector<16x16xbf16>, vector<16x32xbf16>, vector<16x32xf32> -> vector<16x32xf32>
    %315 = vector.extract_strided_slice %266 {offsets = [0, 64], sizes = [16, 32], strides = [1, 1]} : vector<16x128xf32> to vector<16x32xf32>
    %316 = arith.truncf %315 : vector<16x32xf32> to vector<16x32xbf16>
    %317 = vector.extract_strided_slice %267 {offsets = [0, 64], sizes = [16, 32], strides = [1, 1]} : vector<16x128xf32> to vector<16x32xf32>
    %318 = tpu.transpose %317, [1, 0] : vector<16x32xf32> -> vector<32x16xf32>
    %319 = arith.truncf %318 : vector<32x16xf32> to vector<32x16xbf16>
    %320 = vector.extract_strided_slice %268 {offsets = [0, 64], sizes = [16, 32], strides = [1, 1]} : vector<16x128xf32> to vector<16x32xf32>
    %321 = arith.truncf %320 : vector<16x32xf32> to vector<16x32xbf16>
    %cst_108 = arith.constant dense<0.000000e+00> : vector<16x16xf32>
    %322 = tpu.matmul %316, %319, %cst_108 {dimension_numbers = #tpu.dot_dimension_numbers<[1], [0], [0], [1], [0, 0, 1, 1], [], []>} : vector<16x32xbf16>, vector<32x16xbf16>, vector<16x16xf32> -> vector<16x16xf32>
    %323 = arith.addf %322, %2 : vector<16x16xf32>
    %cst_109 = arith.constant dense<0xFF800000> : vector<16xf32>
    %324 = vector.multi_reduction <maximumf>, %323, %cst_109 [1] : vector<16x16xf32> to vector<16xf32>
    %325 = vector.shape_cast %324 : vector<16xf32> to vector<16x1xf32>
    %326 = vector.broadcast %325 : vector<16x1xf32> to vector<16x16xf32>
    %327 = arith.subf %323, %326 : vector<16x16xf32>
    %328 = math.exp %327 : vector<16x16xf32>
    %cst_110 = arith.constant dense<0.000000e+00> : vector<16xf32>
    %329 = vector.multi_reduction <add>, %328, %cst_110 [1] : vector<16x16xf32> to vector<16xf32>
    %330 = vector.shape_cast %329 : vector<16xf32> to vector<16x1xf32>
    %331 = tpu.reciprocal %330 {approx = true} : vector<16x1xf32> -> vector<16x1xf32>
    %332 = vector.broadcast %331 : vector<16x1xf32> to vector<16x16xf32>
    %333 = arith.mulf %328, %332 : vector<16x16xf32>
    %334 = arith.truncf %333 : vector<16x16xf32> to vector<16x16xbf16>
    %cst_111 = arith.constant dense<0.000000e+00> : vector<16x32xf32>
    %335 = tpu.matmul %334, %321, %cst_111 {dimension_numbers = #tpu.dot_dimension_numbers<[1], [0], [0], [1], [0, 0, 1, 1], [], []>} : vector<16x16xbf16>, vector<16x32xbf16>, vector<16x32xf32> -> vector<16x32xf32>
    %336 = vector.extract_strided_slice %266 {offsets = [0, 96], sizes = [16, 32], strides = [1, 1]} : vector<16x128xf32> to vector<16x32xf32>
    %337 = arith.truncf %336 : vector<16x32xf32> to vector<16x32xbf16>
    %338 = vector.extract_strided_slice %267 {offsets = [0, 96], sizes = [16, 32], strides = [1, 1]} : vector<16x128xf32> to vector<16x32xf32>
    %339 = tpu.transpose %338, [1, 0] : vector<16x32xf32> -> vector<32x16xf32>
    %340 = arith.truncf %339 : vector<32x16xf32> to vector<32x16xbf16>
    %341 = vector.extract_strided_slice %268 {offsets = [0, 96], sizes = [16, 32], strides = [1, 1]} : vector<16x128xf32> to vector<16x32xf32>
    %342 = arith.truncf %341 : vector<16x32xf32> to vector<16x32xbf16>
    %cst_112 = arith.constant dense<0.000000e+00> : vector<16x16xf32>
    %343 = tpu.matmul %337, %340, %cst_112 {dimension_numbers = #tpu.dot_dimension_numbers<[1], [0], [0], [1], [0, 0, 1, 1], [], []>} : vector<16x32xbf16>, vector<32x16xbf16>, vector<16x16xf32> -> vector<16x16xf32>
    %344 = arith.addf %343, %2 : vector<16x16xf32>
    %cst_113 = arith.constant dense<0xFF800000> : vector<16xf32>
    %345 = vector.multi_reduction <maximumf>, %344, %cst_113 [1] : vector<16x16xf32> to vector<16xf32>
    %346 = vector.shape_cast %345 : vector<16xf32> to vector<16x1xf32>
    %347 = vector.broadcast %346 : vector<16x1xf32> to vector<16x16xf32>
    %348 = arith.subf %344, %347 : vector<16x16xf32>
    %349 = math.exp %348 : vector<16x16xf32>
    %cst_114 = arith.constant dense<0.000000e+00> : vector<16xf32>
    %350 = vector.multi_reduction <add>, %349, %cst_114 [1] : vector<16x16xf32> to vector<16xf32>
    %351 = vector.shape_cast %350 : vector<16xf32> to vector<16x1xf32>
    %352 = tpu.reciprocal %351 {approx = true} : vector<16x1xf32> -> vector<16x1xf32>
    %353 = vector.broadcast %352 : vector<16x1xf32> to vector<16x16xf32>
    %354 = arith.mulf %349, %353 : vector<16x16xf32>
    %355 = arith.truncf %354 : vector<16x16xf32> to vector<16x16xbf16>
    %cst_115 = arith.constant dense<0.000000e+00> : vector<16x32xf32>
    %356 = tpu.matmul %355, %342, %cst_115 {dimension_numbers = #tpu.dot_dimension_numbers<[1], [0], [0], [1], [0, 0, 1, 1], [], []>} : vector<16x16xbf16>, vector<16x32xbf16>, vector<16x32xf32> -> vector<16x32xf32>
    %357 = tpu.concatenate %293, %314, %335, %356 in 1 : vector<16x32xf32>, vector<16x32xf32>, vector<16x32xf32>, vector<16x32xf32> -> vector<16x128xf32>
    %358 = arith.truncf %357 : vector<16x128xf32> to vector<16x128xbf16>
    %cst_116 = arith.constant dense<0.000000e+00> : vector<16x128xf32>
    %359 = tpu.matmul %358, %270, %cst_116 {dimension_numbers = #tpu.dot_dimension_numbers<[1], [0], [0], [1], [0, 0, 1, 1], [], []>} : vector<16x128xbf16>, vector<128x128xbf16>, vector<16x128xf32> -> vector<16x128xf32>
    %360 = vector.broadcast %272 : vector<1x128xf32> to vector<16x128xf32>
    %361 = arith.addf %359, %360 : vector<16x128xf32>
    %362 = arith.addf %229, %361 : vector<16x128xf32>
    %c1_117 = arith.constant 1 : index
    %c0_118 = arith.constant 0 : index
    %c0_119 = arith.constant 0 : index
    %363 = vector.load %arg18[%c1_117, %c0_118, %c0_119] : memref<2x2x128xf32, #tpu.memory_space<vmem>>, vector<1x2x128xf32>
    %364 = vector.shape_cast %363 : vector<1x2x128xf32> to vector<2x128xf32>
    %365 = vector.extract_strided_slice %364 {offsets = [0, 0], sizes = [1, 128], strides = [1, 1]} : vector<2x128xf32> to vector<1x128xf32>
    %366 = vector.extract_strided_slice %364 {offsets = [1, 0], sizes = [1, 128], strides = [1, 1]} : vector<2x128xf32> to vector<1x128xf32>
    %cst_120 = arith.constant dense<0.000000e+00> : vector<16xf32>
    %367 = vector.multi_reduction <add>, %362, %cst_120 [1] : vector<16x128xf32> to vector<16xf32>
    %368 = vector.shape_cast %367 : vector<16xf32> to vector<16x1xf32>
    %cst_121 = arith.constant 1.280000e+02 : f32
    %369 = vector.broadcast %cst_121 : f32 to vector<16x1xf32>
    %370 = arith.divf %368, %369 : vector<16x1xf32>
    %371 = vector.broadcast %370 : vector<16x1xf32> to vector<16x128xf32>
    %372 = arith.subf %362, %371 : vector<16x128xf32>
    %373 = vector.broadcast %370 : vector<16x1xf32> to vector<16x128xf32>
    %374 = arith.subf %362, %373 : vector<16x128xf32>
    %375 = arith.mulf %372, %374 : vector<16x128xf32>
    %cst_122 = arith.constant dense<0.000000e+00> : vector<16xf32>
    %376 = vector.multi_reduction <add>, %375, %cst_122 [1] : vector<16x128xf32> to vector<16xf32>
    %377 = vector.shape_cast %376 : vector<16xf32> to vector<16x1xf32>
    %cst_123 = arith.constant 1.280000e+02 : f32
    %378 = vector.broadcast %cst_123 : f32 to vector<16x1xf32>
    %379 = arith.divf %377, %378 : vector<16x1xf32>
    %380 = vector.broadcast %370 : vector<16x1xf32> to vector<16x128xf32>
    %381 = arith.subf %362, %380 : vector<16x128xf32>
    %cst_124 = arith.constant 9.99999974E-6 : f32
    %382 = vector.broadcast %cst_124 : f32 to vector<16x1xf32>
    %383 = arith.addf %379, %382 : vector<16x1xf32>
    %384 = math.rsqrt %383 : vector<16x1xf32>
    %385 = vector.broadcast %384 : vector<16x1xf32> to vector<16x128xf32>
    %386 = arith.mulf %381, %385 : vector<16x128xf32>
    %387 = vector.broadcast %365 : vector<1x128xf32> to vector<16x128xf32>
    %388 = arith.mulf %386, %387 : vector<16x128xf32>
    %389 = vector.broadcast %366 : vector<1x128xf32> to vector<16x128xf32>
    %390 = arith.addf %388, %389 : vector<16x128xf32>
    %c1_125 = arith.constant 1 : index
    %c0_126 = arith.constant 0 : index
    %c0_127 = arith.constant 0 : index
    %391 = vector.load %arg19[%c1_125, %c0_126, %c0_127] : memref<2x128x256xbf16, #tpu.memory_space<vmem>>, vector<1x128x256xbf16>
    %392 = vector.shape_cast %391 : vector<1x128x256xbf16> to vector<128x256xbf16>
    %c1_128 = arith.constant 1 : index
    %c0_129 = arith.constant 0 : index
    %c0_130 = arith.constant 0 : index
    %393 = vector.load %arg20[%c1_128, %c0_129, %c0_130] : memref<2x1x256xf32, #tpu.memory_space<vmem>>, vector<1x1x256xf32>
    %394 = vector.shape_cast %393 : vector<1x1x256xf32> to vector<1x256xf32>
    %395 = arith.truncf %390 : vector<16x128xf32> to vector<16x128xbf16>
    %cst_131 = arith.constant dense<0.000000e+00> : vector<16x256xf32>
    %396 = tpu.matmul %395, %392, %cst_131 {dimension_numbers = #tpu.dot_dimension_numbers<[1], [0], [0], [1], [0, 0, 1, 1], [], []>} : vector<16x128xbf16>, vector<128x256xbf16>, vector<16x256xf32> -> vector<16x256xf32>
    %397 = vector.broadcast %394 : vector<1x256xf32> to vector<16x256xf32>
    %398 = arith.addf %396, %397 : vector<16x256xf32>
    %cst_132 = arith.constant 5.000000e-01 : f32
    %399 = vector.broadcast %cst_132 : f32 to vector<16x256xf32>
    %400 = arith.mulf %399, %398 : vector<16x256xf32>
    %cst_133 = arith.constant 4.471500e-02 : f32
    %401 = vector.broadcast %cst_133 : f32 to vector<16x256xf32>
    %402 = arith.mulf %401, %398 : vector<16x256xf32>
    %403 = arith.mulf %402, %398 : vector<16x256xf32>
    %404 = arith.mulf %403, %398 : vector<16x256xf32>
    %405 = arith.addf %398, %404 : vector<16x256xf32>
    %cst_134 = arith.constant 0.797884583 : f32
    %406 = vector.broadcast %cst_134 : f32 to vector<16x256xf32>
    %407 = arith.mulf %406, %405 : vector<16x256xf32>
    %408 = math.tanh %407 : vector<16x256xf32>
    %cst_135 = arith.constant 1.000000e+00 : f32
    %409 = vector.broadcast %cst_135 : f32 to vector<16x256xf32>
    %410 = arith.addf %409, %408 : vector<16x256xf32>
    %411 = arith.mulf %400, %410 : vector<16x256xf32>
    %c1_136 = arith.constant 1 : index
    %c0_137 = arith.constant 0 : index
    %c0_138 = arith.constant 0 : index
    %412 = vector.load %arg21[%c1_136, %c0_137, %c0_138] : memref<2x256x128xbf16, #tpu.memory_space<vmem>>, vector<1x256x128xbf16>
    %413 = vector.shape_cast %412 : vector<1x256x128xbf16> to vector<256x128xbf16>
    %c1_139 = arith.constant 1 : index
    %c0_140 = arith.constant 0 : index
    %c0_141 = arith.constant 0 : index
    %414 = vector.load %arg22[%c1_139, %c0_140, %c0_141] : memref<2x1x128xf32, #tpu.memory_space<vmem>>, vector<1x1x128xf32>
    %415 = vector.shape_cast %414 : vector<1x1x128xf32> to vector<1x128xf32>
    %416 = arith.truncf %411 : vector<16x256xf32> to vector<16x256xbf16>
    %cst_142 = arith.constant dense<0.000000e+00> : vector<16x128xf32>
    %417 = tpu.matmul %416, %413, %cst_142 {dimension_numbers = #tpu.dot_dimension_numbers<[1], [0], [0], [1], [0, 0, 1, 1], [], []>} : vector<16x256xbf16>, vector<256x128xbf16>, vector<16x128xf32> -> vector<16x128xf32>
    %418 = vector.broadcast %415 : vector<1x128xf32> to vector<16x128xf32>
    %419 = arith.addf %417, %418 : vector<16x128xf32>
    %420 = arith.addf %362, %419 : vector<16x128xf32>
    %c0_143 = arith.constant 0 : index
    %c0_144 = arith.constant 0 : index
    %421 = vector.load %arg23[%c0_143, %c0_144] : memref<2x128xf32, #tpu.memory_space<vmem>>, vector<2x128xf32>
    %422 = vector.extract_strided_slice %421 {offsets = [0, 0], sizes = [1, 128], strides = [1, 1]} : vector<2x128xf32> to vector<1x128xf32>
    %423 = vector.extract_strided_slice %421 {offsets = [1, 0], sizes = [1, 128], strides = [1, 1]} : vector<2x128xf32> to vector<1x128xf32>
    %cst_145 = arith.constant dense<0.000000e+00> : vector<16xf32>
    %424 = vector.multi_reduction <add>, %420, %cst_145 [1] : vector<16x128xf32> to vector<16xf32>
    %425 = vector.shape_cast %424 : vector<16xf32> to vector<16x1xf32>
    %cst_146 = arith.constant 1.280000e+02 : f32
    %426 = vector.broadcast %cst_146 : f32 to vector<16x1xf32>
    %427 = arith.divf %425, %426 : vector<16x1xf32>
    %428 = vector.broadcast %427 : vector<16x1xf32> to vector<16x128xf32>
    %429 = arith.subf %420, %428 : vector<16x128xf32>
    %430 = vector.broadcast %427 : vector<16x1xf32> to vector<16x128xf32>
    %431 = arith.subf %420, %430 : vector<16x128xf32>
    %432 = arith.mulf %429, %431 : vector<16x128xf32>
    %cst_147 = arith.constant dense<0.000000e+00> : vector<16xf32>
    %433 = vector.multi_reduction <add>, %432, %cst_147 [1] : vector<16x128xf32> to vector<16xf32>
    %434 = vector.shape_cast %433 : vector<16xf32> to vector<16x1xf32>
    %cst_148 = arith.constant 1.280000e+02 : f32
    %435 = vector.broadcast %cst_148 : f32 to vector<16x1xf32>
    %436 = arith.divf %434, %435 : vector<16x1xf32>
    %437 = vector.broadcast %427 : vector<16x1xf32> to vector<16x128xf32>
    %438 = arith.subf %420, %437 : vector<16x128xf32>
    %cst_149 = arith.constant 9.99999974E-6 : f32
    %439 = vector.broadcast %cst_149 : f32 to vector<16x1xf32>
    %440 = arith.addf %436, %439 : vector<16x1xf32>
    %441 = math.rsqrt %440 : vector<16x1xf32>
    %442 = vector.broadcast %441 : vector<16x1xf32> to vector<16x128xf32>
    %443 = arith.mulf %438, %442 : vector<16x128xf32>
    %444 = vector.broadcast %422 : vector<1x128xf32> to vector<16x128xf32>
    %445 = arith.mulf %443, %444 : vector<16x128xf32>
    %446 = vector.broadcast %423 : vector<1x128xf32> to vector<16x128xf32>
    %447 = arith.addf %445, %446 : vector<16x128xf32>
    %448 = vector.shape_cast %447 : vector<16x128xf32> to vector<2x8x128xf32>
    %c0_150 = arith.constant 0 : index
    %c0_151 = arith.constant 0 : index
    %c0_152 = arith.constant 0 : index
    %449 = vector.load %arg7[%c0_150, %c0_151, %c0_152] : memref<2x8x1xf32, #tpu.memory_space<vmem>>, vector<2x8x1xf32>
    %450 = vector.broadcast %449 : vector<2x8x1xf32> to vector<2x8x128xf32>
    %451 = arith.mulf %448, %450 : vector<2x8x128xf32>
    %cst_153 = arith.constant dense<0.000000e+00> : vector<2x128xf32>
    %452 = vector.multi_reduction <add>, %451, %cst_153 [1] : vector<2x8x128xf32> to vector<2x128xf32>
    %c0_154 = arith.constant 0 : index
    %c0_155 = arith.constant 0 : index
    %453 = vector.load %arg8[%c0_154, %c0_155] : memref<2x1xf32, #tpu.memory_space<vmem>>, vector<2x1xf32>
    %454 = tpu.reciprocal %453 {approx = true} : vector<2x1xf32> -> vector<2x1xf32>
    %455 = vector.broadcast %454 : vector<2x1xf32> to vector<2x128xf32>
    %456 = arith.mulf %452, %455 : vector<2x128xf32>
    %c0_156 = arith.constant 0 : index
    %c0_157 = arith.constant 0 : index
    %457 = vector.load %arg24[%c0_156, %c0_157] : memref<128x128xbf16, #tpu.memory_space<vmem>>, vector<128x128xbf16>
    %c0_158 = arith.constant 0 : index
    %c0_159 = arith.constant 0 : index
    %458 = vector.load %arg25[%c0_158, %c0_159] : memref<1x128xf32, #tpu.memory_space<vmem>>, vector<1x128xf32>
    %459 = arith.truncf %447 : vector<16x128xf32> to vector<16x128xbf16>
    %cst_160 = arith.constant dense<0.000000e+00> : vector<16x128xf32>
    %460 = tpu.matmul %459, %457, %cst_160 {dimension_numbers = #tpu.dot_dimension_numbers<[1], [0], [0], [1], [0, 0, 1, 1], [], []>} : vector<16x128xbf16>, vector<128x128xbf16>, vector<16x128xf32> -> vector<16x128xf32>
    %461 = vector.broadcast %458 : vector<1x128xf32> to vector<16x128xf32>
    %462 = arith.addf %460, %461 : vector<16x128xf32>
    %cst_161 = arith.constant 5.000000e-01 : f32
    %463 = vector.broadcast %cst_161 : f32 to vector<16x128xf32>
    %464 = arith.mulf %463, %462 : vector<16x128xf32>
    %cst_162 = arith.constant 4.471500e-02 : f32
    %465 = vector.broadcast %cst_162 : f32 to vector<16x128xf32>
    %466 = arith.mulf %465, %462 : vector<16x128xf32>
    %467 = arith.mulf %466, %462 : vector<16x128xf32>
    %468 = arith.mulf %467, %462 : vector<16x128xf32>
    %469 = arith.addf %462, %468 : vector<16x128xf32>
    %cst_163 = arith.constant 0.797884583 : f32
    %470 = vector.broadcast %cst_163 : f32 to vector<16x128xf32>
    %471 = arith.mulf %470, %469 : vector<16x128xf32>
    %472 = math.tanh %471 : vector<16x128xf32>
    %cst_164 = arith.constant 1.000000e+00 : f32
    %473 = vector.broadcast %cst_164 : f32 to vector<16x128xf32>
    %474 = arith.addf %473, %472 : vector<16x128xf32>
    %475 = arith.mulf %464, %474 : vector<16x128xf32>
    %c0_165 = arith.constant 0 : index
    %c0_166 = arith.constant 0 : index
    %476 = vector.load %arg26[%c0_165, %c0_166] : memref<2x128xf32, #tpu.memory_space<vmem>>, vector<2x128xf32>
    %477 = vector.extract_strided_slice %476 {offsets = [0, 0], sizes = [1, 128], strides = [1, 1]} : vector<2x128xf32> to vector<1x128xf32>
    %478 = vector.extract_strided_slice %476 {offsets = [1, 0], sizes = [1, 128], strides = [1, 1]} : vector<2x128xf32> to vector<1x128xf32>
    %cst_167 = arith.constant dense<0.000000e+00> : vector<16xf32>
    %479 = vector.multi_reduction <add>, %475, %cst_167 [1] : vector<16x128xf32> to vector<16xf32>
    %480 = vector.shape_cast %479 : vector<16xf32> to vector<16x1xf32>
    %cst_168 = arith.constant 1.280000e+02 : f32
    %481 = vector.broadcast %cst_168 : f32 to vector<16x1xf32>
    %482 = arith.divf %480, %481 : vector<16x1xf32>
    %483 = vector.broadcast %482 : vector<16x1xf32> to vector<16x128xf32>
    %484 = arith.subf %475, %483 : vector<16x128xf32>
    %485 = vector.broadcast %482 : vector<16x1xf32> to vector<16x128xf32>
    %486 = arith.subf %475, %485 : vector<16x128xf32>
    %487 = arith.mulf %484, %486 : vector<16x128xf32>
    %cst_169 = arith.constant dense<0.000000e+00> : vector<16xf32>
    %488 = vector.multi_reduction <add>, %487, %cst_169 [1] : vector<16x128xf32> to vector<16xf32>
    %489 = vector.shape_cast %488 : vector<16xf32> to vector<16x1xf32>
    %cst_170 = arith.constant 1.280000e+02 : f32
    %490 = vector.broadcast %cst_170 : f32 to vector<16x1xf32>
    %491 = arith.divf %489, %490 : vector<16x1xf32>
    %492 = vector.broadcast %482 : vector<16x1xf32> to vector<16x128xf32>
    %493 = arith.subf %475, %492 : vector<16x128xf32>
    %cst_171 = arith.constant 9.99999974E-6 : f32
    %494 = vector.broadcast %cst_171 : f32 to vector<16x1xf32>
    %495 = arith.addf %491, %494 : vector<16x1xf32>
    %496 = math.rsqrt %495 : vector<16x1xf32>
    %497 = vector.broadcast %496 : vector<16x1xf32> to vector<16x128xf32>
    %498 = arith.mulf %493, %497 : vector<16x128xf32>
    %499 = vector.broadcast %477 : vector<1x128xf32> to vector<16x128xf32>
    %500 = arith.mulf %498, %499 : vector<16x128xf32>
    %501 = vector.broadcast %478 : vector<1x128xf32> to vector<16x128xf32>
    %502 = arith.addf %500, %501 : vector<16x128xf32>
    %503 = arith.truncf %502 : vector<16x128xf32> to vector<16x128xbf16>
    %cst_172 = arith.constant dense<0.000000e+00> : vector<16x512xf32>
    %504 = tpu.matmul %503, %3, %cst_172 {dimension_numbers = #tpu.dot_dimension_numbers<[1], [0], [0], [1], [0, 0, 1, 1], [], []>} : vector<16x128xbf16>, vector<128x512xbf16>, vector<16x512xf32> -> vector<16x512xf32>
    %505 = vector.broadcast %4 : vector<1x512xf32> to vector<16x512xf32>
    %506 = arith.addf %504, %505 : vector<16x512xf32>
    %c0_173 = arith.constant 0 : index
    %c0_174 = arith.constant 0 : index
    %507 = vector.load %arg3[%c0_173, %c0_174] : memref<16x1xi32, #tpu.memory_space<vmem>>, vector<16x1xi32>
    %cst_175 = arith.constant dense<0xFF800000> : vector<16xf32>
    %508 = vector.multi_reduction <maximumf>, %506, %cst_175 [1] : vector<16x512xf32> to vector<16xf32>
    %509 = vector.shape_cast %508 : vector<16xf32> to vector<16x1xf32>
    %510 = vector.broadcast %509 : vector<16x1xf32> to vector<16x512xf32>
    %511 = arith.subf %506, %510 : vector<16x512xf32>
    %512 = math.exp %511 : vector<16x512xf32>
    %cst_176 = arith.constant dense<0.000000e+00> : vector<16xf32>
    %513 = vector.multi_reduction <add>, %512, %cst_176 [1] : vector<16x512xf32> to vector<16xf32>
    %514 = vector.shape_cast %513 : vector<16xf32> to vector<16x1xf32>
    %515 = math.log %514 : vector<16x1xf32>
    %516 = tpu.iota {dimensions = array<i32: 1>} : vector<16x512xi32>
    %517 = vector.broadcast %507 : vector<16x1xi32> to vector<16x512xi32>
    %518 = arith.cmpi eq, %516, %517 : vector<16x512xi32>
    %cst_177 = arith.constant 0.000000e+00 : f32
    %519 = vector.broadcast %cst_177 : f32 to vector<16x512xf32>
    %520 = arith.select %518, %511, %519 : vector<16x512xi1>, vector<16x512xf32>
    %cst_178 = arith.constant dense<0.000000e+00> : vector<16xf32>
    %521 = vector.multi_reduction <add>, %520, %cst_178 [1] : vector<16x512xf32> to vector<16xf32>
    %522 = vector.shape_cast %521 : vector<16xf32> to vector<16x1xf32>
    %c-100_i32 = arith.constant -100 : i32
    %523 = vector.broadcast %c-100_i32 : i32 to vector<16x1xi32>
    %524 = arith.cmpi ne, %507, %523 : vector<16x1xi32>
    %525 = arith.extui %524 : vector<16x1xi1> to vector<16x1xi32>
    %526 = arith.sitofp %525 : vector<16x1xi32> to vector<16x1xf32>
    %527 = arith.subf %515, %522 : vector<16x1xf32>
    %528 = arith.mulf %527, %526 : vector<16x1xf32>
    %cst_179 = arith.constant dense<0.000000e+00> : vector<1xf32>
    %529 = vector.multi_reduction <add>, %528, %cst_179 [0] : vector<16x1xf32> to vector<1xf32>
    %530 = vector.shape_cast %529 : vector<1xf32> to vector<1x1xf32>
    %cst_180 = arith.constant dense<0.000000e+00> : vector<1xf32>
    %531 = vector.multi_reduction <add>, %526, %cst_180 [0] : vector<16x1xf32> to vector<1xf32>
    %532 = vector.shape_cast %531 : vector<1xf32> to vector<1x1xf32>
    %533 = tpu.reciprocal %532 {approx = true} : vector<1x1xf32> -> vector<1x1xf32>
    %534 = arith.mulf %530, %533 : vector<1x1xf32>
    %535 = vector.shape_cast %506 : vector<16x512xf32> to vector<2x8x512xf32>
    %c0_181 = arith.constant 0 : index
    %c0_182 = arith.constant 0 : index
    %c0_183 = arith.constant 0 : index
    %536 = vector.load %arg9[%c0_181, %c0_182, %c0_183] : memref<2x8x1xf32, #tpu.memory_space<vmem>>, vector<2x8x1xf32>
    %537 = vector.broadcast %536 : vector<2x8x1xf32> to vector<2x8x512xf32>
    %538 = arith.addf %535, %537 : vector<2x8x512xf32>
    %cst_184 = arith.constant dense<0xFF800000> : vector<2x512xf32>
    %539 = vector.multi_reduction <maximumf>, %538, %cst_184 [1] : vector<2x8x512xf32> to vector<2x512xf32>
    %cst_185 = arith.constant dense<0xFF800000> : vector<2xf32>
    %540 = vector.multi_reduction <maximumf>, %539, %cst_185 [1] : vector<2x512xf32> to vector<2xf32>
    %541 = vector.shape_cast %540 : vector<2xf32> to vector<2x1xf32>
    %542 = vector.broadcast %541 : vector<2x1xf32> to vector<2x512xf32>
    %543 = arith.subf %539, %542 : vector<2x512xf32>
    %544 = math.exp %543 : vector<2x512xf32>
    %cst_186 = arith.constant dense<0.000000e+00> : vector<2xf32>
    %545 = vector.multi_reduction <add>, %544, %cst_186 [1] : vector<2x512xf32> to vector<2xf32>
    %546 = vector.shape_cast %545 : vector<2xf32> to vector<2x1xf32>
    %547 = math.log %546 : vector<2x1xf32>
    %548 = vector.broadcast %547 : vector<2x1xf32> to vector<2x512xf32>
    %549 = arith.subf %543, %548 : vector<2x512xf32>
    %c0_187 = arith.constant 0 : index
    %c0_188 = arith.constant 0 : index
    %550 = vector.load %arg10[%c0_187, %c0_188] : memref<2x512xf32, #tpu.memory_space<vmem>>, vector<2x512xf32>
    %551 = arith.mulf %550, %549 : vector<2x512xf32>
    %cst_189 = arith.constant dense<0.000000e+00> : vector<2xf32>
    %552 = vector.multi_reduction <add>, %551, %cst_189 [1] : vector<2x512xf32> to vector<2xf32>
    %553 = vector.shape_cast %552 : vector<2xf32> to vector<2x1xf32>
    %cst_190 = arith.constant 0.000000e+00 : f32
    %554 = vector.broadcast %cst_190 : f32 to vector<2x1xf32>
    %555 = arith.subf %554, %553 : vector<2x1xf32>
    %cst_191 = arith.constant dense<0.000000e+00> : vector<1xf32>
    %556 = vector.multi_reduction <add>, %555, %cst_191 [0] : vector<2x1xf32> to vector<1xf32>
    %557 = vector.shape_cast %556 : vector<1xf32> to vector<1x1xf32>
    %cst_192 = arith.constant 5.000000e-01 : f32
    %558 = vector.broadcast %cst_192 : f32 to vector<1x1xf32>
    %559 = arith.mulf %557, %558 : vector<1x1xf32>
    %c0_193 = arith.constant 0 : index
    %c0_194 = arith.constant 0 : index
    %560 = vector.load %arg2[%c0_193, %c0_194] : memref<16x1xi32, #tpu.memory_space<vmem>>, vector<16x1xi32>
    %561 = tpu.iota {dimensions = array<i32: 1>} : vector<16x512xi32>
    %562 = vector.broadcast %560 : vector<16x1xi32> to vector<16x512xi32>
    %563 = arith.cmpi eq, %561, %562 : vector<16x512xi32>
    %564 = arith.extui %563 : vector<16x512xi1> to vector<16x512xi32>
    %565 = arith.sitofp %564 : vector<16x512xi32> to vector<16x512xf32>
    %566 = arith.truncf %565 : vector<16x512xf32> to vector<16x512xbf16>
    %cst_195 = arith.constant dense<0.000000e+00> : vector<16x128xf32>
    %567 = tpu.matmul %566, %1, %cst_195 {dimension_numbers = #tpu.dot_dimension_numbers<[1], [0], [0], [1], [0, 0, 1, 1], [], []>} : vector<16x512xbf16>, vector<512x128xbf16>, vector<16x128xf32> -> vector<16x128xf32>
    %568 = vector.extract_strided_slice %0 {offsets = [0, 0], sizes = [1, 128], strides = [1, 1]} : vector<2x128xf32> to vector<1x128xf32>
    %569 = vector.extract_strided_slice %0 {offsets = [1, 0], sizes = [1, 128], strides = [1, 1]} : vector<2x128xf32> to vector<1x128xf32>
    %cst_196 = arith.constant dense<0.000000e+00> : vector<16xf32>
    %570 = vector.multi_reduction <add>, %567, %cst_196 [1] : vector<16x128xf32> to vector<16xf32>
    %571 = vector.shape_cast %570 : vector<16xf32> to vector<16x1xf32>
    %cst_197 = arith.constant 1.280000e+02 : f32
    %572 = vector.broadcast %cst_197 : f32 to vector<16x1xf32>
    %573 = arith.divf %571, %572 : vector<16x1xf32>
    %574 = vector.broadcast %573 : vector<16x1xf32> to vector<16x128xf32>
    %575 = arith.subf %567, %574 : vector<16x128xf32>
    %576 = vector.broadcast %573 : vector<16x1xf32> to vector<16x128xf32>
    %577 = arith.subf %567, %576 : vector<16x128xf32>
    %578 = arith.mulf %575, %577 : vector<16x128xf32>
    %cst_198 = arith.constant dense<0.000000e+00> : vector<16xf32>
    %579 = vector.multi_reduction <add>, %578, %cst_198 [1] : vector<16x128xf32> to vector<16xf32>
    %580 = vector.shape_cast %579 : vector<16xf32> to vector<16x1xf32>
    %cst_199 = arith.constant 1.280000e+02 : f32
    %581 = vector.broadcast %cst_199 : f32 to vector<16x1xf32>
    %582 = arith.divf %580, %581 : vector<16x1xf32>
    %583 = vector.broadcast %573 : vector<16x1xf32> to vector<16x128xf32>
    %584 = arith.subf %567, %583 : vector<16x128xf32>
    %cst_200 = arith.constant 9.99999974E-6 : f32
    %585 = vector.broadcast %cst_200 : f32 to vector<16x1xf32>
    %586 = arith.addf %582, %585 : vector<16x1xf32>
    %587 = math.rsqrt %586 : vector<16x1xf32>
    %588 = vector.broadcast %587 : vector<16x1xf32> to vector<16x128xf32>
    %589 = arith.mulf %584, %588 : vector<16x128xf32>
    %590 = vector.broadcast %568 : vector<1x128xf32> to vector<16x128xf32>
    %591 = arith.mulf %589, %590 : vector<16x128xf32>
    %592 = vector.broadcast %569 : vector<1x128xf32> to vector<16x128xf32>
    %593 = arith.addf %591, %592 : vector<16x128xf32>
    %594 = vector.shape_cast %456 : vector<2x128xf32> to vector<2x1x128xf32>
    %595 = tpu.iota {dimensions = array<i32: 1>} : vector<2x8x1xi32>
    %c0_i32 = arith.constant 0 : i32
    %596 = vector.broadcast %c0_i32 : i32 to vector<2x8x1xi32>
    %597 = arith.cmpi eq, %595, %596 : vector<2x8x1xi32>
    %598 = arith.extui %597 : vector<2x8x1xi1> to vector<2x8x1xi32>
    %599 = arith.sitofp %598 : vector<2x8x1xi32> to vector<2x8x1xf32>
    %600 = vector.broadcast %599 : vector<2x8x1xf32> to vector<2x8x128xf32>
    %601 = vector.broadcast %594 : vector<2x1x128xf32> to vector<2x8x128xf32>
    %602 = arith.mulf %600, %601 : vector<2x8x128xf32>
    %cst_201 = arith.constant 1.000000e+00 : f32
    %603 = vector.broadcast %cst_201 : f32 to vector<2x8x1xf32>
    %604 = arith.subf %603, %599 : vector<2x8x1xf32>
    %605 = vector.shape_cast %593 : vector<16x128xf32> to vector<2x8x128xf32>
    %606 = vector.broadcast %604 : vector<2x8x1xf32> to vector<2x8x128xf32>
    %607 = arith.mulf %606, %605 : vector<2x8x128xf32>
    %608 = arith.addf %602, %607 : vector<2x8x128xf32>
    %609 = vector.shape_cast %608 : vector<2x8x128xf32> to vector<16x128xf32>
    %610 = vector.shape_cast %594 : vector<2x1x128xf32> to vector<2x1x128xf32>
    %611 = vector.broadcast %610 : vector<2x1x128xf32> to vector<2x8x128xf32>
    %612 = vector.shape_cast %611 : vector<2x8x128xf32> to vector<16x128xf32>
    %613 = vector.extract_strided_slice %0 {offsets = [0, 0], sizes = [1, 128], strides = [1, 1]} : vector<2x128xf32> to vector<1x128xf32>
    %614 = vector.extract_strided_slice %0 {offsets = [1, 0], sizes = [1, 128], strides = [1, 1]} : vector<2x128xf32> to vector<1x128xf32>
    %cst_202 = arith.constant dense<0.000000e+00> : vector<16xf32>
    %615 = vector.multi_reduction <add>, %612, %cst_202 [1] : vector<16x128xf32> to vector<16xf32>
    %616 = vector.shape_cast %615 : vector<16xf32> to vector<16x1xf32>
    %cst_203 = arith.constant 1.280000e+02 : f32
    %617 = vector.broadcast %cst_203 : f32 to vector<16x1xf32>
    %618 = arith.divf %616, %617 : vector<16x1xf32>
    %619 = vector.broadcast %618 : vector<16x1xf32> to vector<16x128xf32>
    %620 = arith.subf %612, %619 : vector<16x128xf32>
    %621 = vector.broadcast %618 : vector<16x1xf32> to vector<16x128xf32>
    %622 = arith.subf %612, %621 : vector<16x128xf32>
    %623 = arith.mulf %620, %622 : vector<16x128xf32>
    %cst_204 = arith.constant dense<0.000000e+00> : vector<16xf32>
    %624 = vector.multi_reduction <add>, %623, %cst_204 [1] : vector<16x128xf32> to vector<16xf32>
    %625 = vector.shape_cast %624 : vector<16xf32> to vector<16x1xf32>
    %cst_205 = arith.constant 1.280000e+02 : f32
    %626 = vector.broadcast %cst_205 : f32 to vector<16x1xf32>
    %627 = arith.divf %625, %626 : vector<16x1xf32>
    %628 = vector.broadcast %618 : vector<16x1xf32> to vector<16x128xf32>
    %629 = arith.subf %612, %628 : vector<16x128xf32>
    %cst_206 = arith.constant 9.99999974E-6 : f32
    %630 = vector.broadcast %cst_206 : f32 to vector<16x1xf32>
    %631 = arith.addf %627, %630 : vector<16x1xf32>
    %632 = math.rsqrt %631 : vector<16x1xf32>
    %633 = vector.broadcast %632 : vector<16x1xf32> to vector<16x128xf32>
    %634 = arith.mulf %629, %633 : vector<16x128xf32>
    %635 = vector.broadcast %613 : vector<1x128xf32> to vector<16x128xf32>
    %636 = arith.mulf %634, %635 : vector<16x128xf32>
    %637 = vector.broadcast %614 : vector<1x128xf32> to vector<16x128xf32>
    %638 = arith.addf %636, %637 : vector<16x128xf32>
    %c0_207 = arith.constant 0 : index
    %c0_208 = arith.constant 0 : index
    %639 = vector.load %arg29[%c0_207, %c0_208] : memref<128x128xbf16, #tpu.memory_space<vmem>>, vector<128x128xbf16>
    %c0_209 = arith.constant 0 : index
    %c0_210 = arith.constant 0 : index
    %640 = vector.load %arg30[%c0_209, %c0_210] : memref<1x128xf32, #tpu.memory_space<vmem>>, vector<1x128xf32>
    %641 = arith.truncf %638 : vector<16x128xf32> to vector<16x128xbf16>
    %cst_211 = arith.constant dense<0.000000e+00> : vector<16x128xf32>
    %642 = tpu.matmul %641, %639, %cst_211 {dimension_numbers = #tpu.dot_dimension_numbers<[1], [0], [0], [1], [0, 0, 1, 1], [], []>} : vector<16x128xbf16>, vector<128x128xbf16>, vector<16x128xf32> -> vector<16x128xf32>
    %643 = vector.broadcast %640 : vector<1x128xf32> to vector<16x128xf32>
    %644 = arith.addf %642, %643 : vector<16x128xf32>
    %c0_212 = arith.constant 0 : index
    %c0_213 = arith.constant 0 : index
    %645 = vector.load %arg31[%c0_212, %c0_213] : memref<128x256xbf16, #tpu.memory_space<vmem>>, vector<128x256xbf16>
    %c0_214 = arith.constant 0 : index
    %c0_215 = arith.constant 0 : index
    %646 = vector.load %arg32[%c0_214, %c0_215] : memref<1x256xf32, #tpu.memory_space<vmem>>, vector<1x256xf32>
    %647 = arith.truncf %609 : vector<16x128xf32> to vector<16x128xbf16>
    %cst_216 = arith.constant dense<0.000000e+00> : vector<16x256xf32>
    %648 = tpu.matmul %647, %645, %cst_216 {dimension_numbers = #tpu.dot_dimension_numbers<[1], [0], [0], [1], [0, 0, 1, 1], [], []>} : vector<16x128xbf16>, vector<128x256xbf16>, vector<16x256xf32> -> vector<16x256xf32>
    %649 = vector.broadcast %646 : vector<1x256xf32> to vector<16x256xf32>
    %650 = arith.addf %648, %649 : vector<16x256xf32>
    %651 = vector.extract_strided_slice %650 {offsets = [0, 0], sizes = [16, 128], strides = [1, 1]} : vector<16x256xf32> to vector<16x128xf32>
    %652 = vector.extract_strided_slice %650 {offsets = [0, 128], sizes = [16, 128], strides = [1, 1]} : vector<16x256xf32> to vector<16x128xf32>
    %c0_217 = arith.constant 0 : index
    %c0_218 = arith.constant 0 : index
    %653 = vector.load %arg6[%c0_217, %c0_218] : memref<16x16xf32, #tpu.memory_space<vmem>>, vector<16x16xf32>
    %c0_219 = arith.constant 0 : index
    %c0_220 = arith.constant 0 : index
    %654 = vector.load %arg33[%c0_219, %c0_220] : memref<128x128xbf16, #tpu.memory_space<vmem>>, vector<128x128xbf16>
    %c0_221 = arith.constant 0 : index
    %c0_222 = arith.constant 0 : index
    %655 = vector.load %arg34[%c0_221, %c0_222] : memref<1x128xf32, #tpu.memory_space<vmem>>, vector<1x128xf32>
    %656 = vector.extract_strided_slice %644 {offsets = [0, 0], sizes = [16, 32], strides = [1, 1]} : vector<16x128xf32> to vector<16x32xf32>
    %657 = arith.truncf %656 : vector<16x32xf32> to vector<16x32xbf16>
    %658 = vector.extract_strided_slice %651 {offsets = [0, 0], sizes = [16, 32], strides = [1, 1]} : vector<16x128xf32> to vector<16x32xf32>
    %659 = tpu.transpose %658, [1, 0] : vector<16x32xf32> -> vector<32x16xf32>
    %660 = arith.truncf %659 : vector<32x16xf32> to vector<32x16xbf16>
    %661 = vector.extract_strided_slice %652 {offsets = [0, 0], sizes = [16, 32], strides = [1, 1]} : vector<16x128xf32> to vector<16x32xf32>
    %662 = arith.truncf %661 : vector<16x32xf32> to vector<16x32xbf16>
    %cst_223 = arith.constant dense<0.000000e+00> : vector<16x16xf32>
    %663 = tpu.matmul %657, %660, %cst_223 {dimension_numbers = #tpu.dot_dimension_numbers<[1], [0], [0], [1], [0, 0, 1, 1], [], []>} : vector<16x32xbf16>, vector<32x16xbf16>, vector<16x16xf32> -> vector<16x16xf32>
    %664 = arith.addf %663, %653 : vector<16x16xf32>
    %cst_224 = arith.constant dense<0xFF800000> : vector<16xf32>
    %665 = vector.multi_reduction <maximumf>, %664, %cst_224 [1] : vector<16x16xf32> to vector<16xf32>
    %666 = vector.shape_cast %665 : vector<16xf32> to vector<16x1xf32>
    %667 = vector.broadcast %666 : vector<16x1xf32> to vector<16x16xf32>
    %668 = arith.subf %664, %667 : vector<16x16xf32>
    %669 = math.exp %668 : vector<16x16xf32>
    %cst_225 = arith.constant dense<0.000000e+00> : vector<16xf32>
    %670 = vector.multi_reduction <add>, %669, %cst_225 [1] : vector<16x16xf32> to vector<16xf32>
    %671 = vector.shape_cast %670 : vector<16xf32> to vector<16x1xf32>
    %672 = tpu.reciprocal %671 {approx = true} : vector<16x1xf32> -> vector<16x1xf32>
    %673 = vector.broadcast %672 : vector<16x1xf32> to vector<16x16xf32>
    %674 = arith.mulf %669, %673 : vector<16x16xf32>
    %675 = arith.truncf %674 : vector<16x16xf32> to vector<16x16xbf16>
    %cst_226 = arith.constant dense<0.000000e+00> : vector<16x32xf32>
    %676 = tpu.matmul %675, %662, %cst_226 {dimension_numbers = #tpu.dot_dimension_numbers<[1], [0], [0], [1], [0, 0, 1, 1], [], []>} : vector<16x16xbf16>, vector<16x32xbf16>, vector<16x32xf32> -> vector<16x32xf32>
    %677 = vector.extract_strided_slice %644 {offsets = [0, 32], sizes = [16, 32], strides = [1, 1]} : vector<16x128xf32> to vector<16x32xf32>
    %678 = arith.truncf %677 : vector<16x32xf32> to vector<16x32xbf16>
    %679 = vector.extract_strided_slice %651 {offsets = [0, 32], sizes = [16, 32], strides = [1, 1]} : vector<16x128xf32> to vector<16x32xf32>
    %680 = tpu.transpose %679, [1, 0] : vector<16x32xf32> -> vector<32x16xf32>
    %681 = arith.truncf %680 : vector<32x16xf32> to vector<32x16xbf16>
    %682 = vector.extract_strided_slice %652 {offsets = [0, 32], sizes = [16, 32], strides = [1, 1]} : vector<16x128xf32> to vector<16x32xf32>
    %683 = arith.truncf %682 : vector<16x32xf32> to vector<16x32xbf16>
    %cst_227 = arith.constant dense<0.000000e+00> : vector<16x16xf32>
    %684 = tpu.matmul %678, %681, %cst_227 {dimension_numbers = #tpu.dot_dimension_numbers<[1], [0], [0], [1], [0, 0, 1, 1], [], []>} : vector<16x32xbf16>, vector<32x16xbf16>, vector<16x16xf32> -> vector<16x16xf32>
    %685 = arith.addf %684, %653 : vector<16x16xf32>
    %cst_228 = arith.constant dense<0xFF800000> : vector<16xf32>
    %686 = vector.multi_reduction <maximumf>, %685, %cst_228 [1] : vector<16x16xf32> to vector<16xf32>
    %687 = vector.shape_cast %686 : vector<16xf32> to vector<16x1xf32>
    %688 = vector.broadcast %687 : vector<16x1xf32> to vector<16x16xf32>
    %689 = arith.subf %685, %688 : vector<16x16xf32>
    %690 = math.exp %689 : vector<16x16xf32>
    %cst_229 = arith.constant dense<0.000000e+00> : vector<16xf32>
    %691 = vector.multi_reduction <add>, %690, %cst_229 [1] : vector<16x16xf32> to vector<16xf32>
    %692 = vector.shape_cast %691 : vector<16xf32> to vector<16x1xf32>
    %693 = tpu.reciprocal %692 {approx = true} : vector<16x1xf32> -> vector<16x1xf32>
    %694 = vector.broadcast %693 : vector<16x1xf32> to vector<16x16xf32>
    %695 = arith.mulf %690, %694 : vector<16x16xf32>
    %696 = arith.truncf %695 : vector<16x16xf32> to vector<16x16xbf16>
    %cst_230 = arith.constant dense<0.000000e+00> : vector<16x32xf32>
    %697 = tpu.matmul %696, %683, %cst_230 {dimension_numbers = #tpu.dot_dimension_numbers<[1], [0], [0], [1], [0, 0, 1, 1], [], []>} : vector<16x16xbf16>, vector<16x32xbf16>, vector<16x32xf32> -> vector<16x32xf32>
    %698 = vector.extract_strided_slice %644 {offsets = [0, 64], sizes = [16, 32], strides = [1, 1]} : vector<16x128xf32> to vector<16x32xf32>
    %699 = arith.truncf %698 : vector<16x32xf32> to vector<16x32xbf16>
    %700 = vector.extract_strided_slice %651 {offsets = [0, 64], sizes = [16, 32], strides = [1, 1]} : vector<16x128xf32> to vector<16x32xf32>
    %701 = tpu.transpose %700, [1, 0] : vector<16x32xf32> -> vector<32x16xf32>
    %702 = arith.truncf %701 : vector<32x16xf32> to vector<32x16xbf16>
    %703 = vector.extract_strided_slice %652 {offsets = [0, 64], sizes = [16, 32], strides = [1, 1]} : vector<16x128xf32> to vector<16x32xf32>
    %704 = arith.truncf %703 : vector<16x32xf32> to vector<16x32xbf16>
    %cst_231 = arith.constant dense<0.000000e+00> : vector<16x16xf32>
    %705 = tpu.matmul %699, %702, %cst_231 {dimension_numbers = #tpu.dot_dimension_numbers<[1], [0], [0], [1], [0, 0, 1, 1], [], []>} : vector<16x32xbf16>, vector<32x16xbf16>, vector<16x16xf32> -> vector<16x16xf32>
    %706 = arith.addf %705, %653 : vector<16x16xf32>
    %cst_232 = arith.constant dense<0xFF800000> : vector<16xf32>
    %707 = vector.multi_reduction <maximumf>, %706, %cst_232 [1] : vector<16x16xf32> to vector<16xf32>
    %708 = vector.shape_cast %707 : vector<16xf32> to vector<16x1xf32>
    %709 = vector.broadcast %708 : vector<16x1xf32> to vector<16x16xf32>
    %710 = arith.subf %706, %709 : vector<16x16xf32>
    %711 = math.exp %710 : vector<16x16xf32>
    %cst_233 = arith.constant dense<0.000000e+00> : vector<16xf32>
    %712 = vector.multi_reduction <add>, %711, %cst_233 [1] : vector<16x16xf32> to vector<16xf32>
    %713 = vector.shape_cast %712 : vector<16xf32> to vector<16x1xf32>
    %714 = tpu.reciprocal %713 {approx = true} : vector<16x1xf32> -> vector<16x1xf32>
    %715 = vector.broadcast %714 : vector<16x1xf32> to vector<16x16xf32>
    %716 = arith.mulf %711, %715 : vector<16x16xf32>
    %717 = arith.truncf %716 : vector<16x16xf32> to vector<16x16xbf16>
    %cst_234 = arith.constant dense<0.000000e+00> : vector<16x32xf32>
    %718 = tpu.matmul %717, %704, %cst_234 {dimension_numbers = #tpu.dot_dimension_numbers<[1], [0], [0], [1], [0, 0, 1, 1], [], []>} : vector<16x16xbf16>, vector<16x32xbf16>, vector<16x32xf32> -> vector<16x32xf32>
    %719 = vector.extract_strided_slice %644 {offsets = [0, 96], sizes = [16, 32], strides = [1, 1]} : vector<16x128xf32> to vector<16x32xf32>
    %720 = arith.truncf %719 : vector<16x32xf32> to vector<16x32xbf16>
    %721 = vector.extract_strided_slice %651 {offsets = [0, 96], sizes = [16, 32], strides = [1, 1]} : vector<16x128xf32> to vector<16x32xf32>
    %722 = tpu.transpose %721, [1, 0] : vector<16x32xf32> -> vector<32x16xf32>
    %723 = arith.truncf %722 : vector<32x16xf32> to vector<32x16xbf16>
    %724 = vector.extract_strided_slice %652 {offsets = [0, 96], sizes = [16, 32], strides = [1, 1]} : vector<16x128xf32> to vector<16x32xf32>
    %725 = arith.truncf %724 : vector<16x32xf32> to vector<16x32xbf16>
    %cst_235 = arith.constant dense<0.000000e+00> : vector<16x16xf32>
    %726 = tpu.matmul %720, %723, %cst_235 {dimension_numbers = #tpu.dot_dimension_numbers<[1], [0], [0], [1], [0, 0, 1, 1], [], []>} : vector<16x32xbf16>, vector<32x16xbf16>, vector<16x16xf32> -> vector<16x16xf32>
    %727 = arith.addf %726, %653 : vector<16x16xf32>
    %cst_236 = arith.constant dense<0xFF800000> : vector<16xf32>
    %728 = vector.multi_reduction <maximumf>, %727, %cst_236 [1] : vector<16x16xf32> to vector<16xf32>
    %729 = vector.shape_cast %728 : vector<16xf32> to vector<16x1xf32>
    %730 = vector.broadcast %729 : vector<16x1xf32> to vector<16x16xf32>
    %731 = arith.subf %727, %730 : vector<16x16xf32>
    %732 = math.exp %731 : vector<16x16xf32>
    %cst_237 = arith.constant dense<0.000000e+00> : vector<16xf32>
    %733 = vector.multi_reduction <add>, %732, %cst_237 [1] : vector<16x16xf32> to vector<16xf32>
    %734 = vector.shape_cast %733 : vector<16xf32> to vector<16x1xf32>
    %735 = tpu.reciprocal %734 {approx = true} : vector<16x1xf32> -> vector<16x1xf32>
    %736 = vector.broadcast %735 : vector<16x1xf32> to vector<16x16xf32>
    %737 = arith.mulf %732, %736 : vector<16x16xf32>
    %738 = arith.truncf %737 : vector<16x16xf32> to vector<16x16xbf16>
    %cst_238 = arith.constant dense<0.000000e+00> : vector<16x32xf32>
    %739 = tpu.matmul %738, %725, %cst_238 {dimension_numbers = #tpu.dot_dimension_numbers<[1], [0], [0], [1], [0, 0, 1, 1], [], []>} : vector<16x16xbf16>, vector<16x32xbf16>, vector<16x32xf32> -> vector<16x32xf32>
    %740 = tpu.concatenate %676, %697, %718, %739 in 1 : vector<16x32xf32>, vector<16x32xf32>, vector<16x32xf32>, vector<16x32xf32> -> vector<16x128xf32>
    %741 = arith.truncf %740 : vector<16x128xf32> to vector<16x128xbf16>
    %cst_239 = arith.constant dense<0.000000e+00> : vector<16x128xf32>
    %742 = tpu.matmul %741, %654, %cst_239 {dimension_numbers = #tpu.dot_dimension_numbers<[1], [0], [0], [1], [0, 0, 1, 1], [], []>} : vector<16x128xbf16>, vector<128x128xbf16>, vector<16x128xf32> -> vector<16x128xf32>
    %743 = vector.broadcast %655 : vector<1x128xf32> to vector<16x128xf32>
    %744 = arith.addf %742, %743 : vector<16x128xf32>
    %745 = arith.addf %744, %638 : vector<16x128xf32>
    %c0_240 = arith.constant 0 : index
    %c0_241 = arith.constant 0 : index
    %746 = vector.load %arg35[%c0_240, %c0_241] : memref<2x128xf32, #tpu.memory_space<vmem>>, vector<2x128xf32>
    %747 = vector.extract_strided_slice %746 {offsets = [0, 0], sizes = [1, 128], strides = [1, 1]} : vector<2x128xf32> to vector<1x128xf32>
    %748 = vector.extract_strided_slice %746 {offsets = [1, 0], sizes = [1, 128], strides = [1, 1]} : vector<2x128xf32> to vector<1x128xf32>
    %cst_242 = arith.constant dense<0.000000e+00> : vector<16xf32>
    %749 = vector.multi_reduction <add>, %745, %cst_242 [1] : vector<16x128xf32> to vector<16xf32>
    %750 = vector.shape_cast %749 : vector<16xf32> to vector<16x1xf32>
    %cst_243 = arith.constant 1.280000e+02 : f32
    %751 = vector.broadcast %cst_243 : f32 to vector<16x1xf32>
    %752 = arith.divf %750, %751 : vector<16x1xf32>
    %753 = vector.broadcast %752 : vector<16x1xf32> to vector<16x128xf32>
    %754 = arith.subf %745, %753 : vector<16x128xf32>
    %755 = vector.broadcast %752 : vector<16x1xf32> to vector<16x128xf32>
    %756 = arith.subf %745, %755 : vector<16x128xf32>
    %757 = arith.mulf %754, %756 : vector<16x128xf32>
    %cst_244 = arith.constant dense<0.000000e+00> : vector<16xf32>
    %758 = vector.multi_reduction <add>, %757, %cst_244 [1] : vector<16x128xf32> to vector<16xf32>
    %759 = vector.shape_cast %758 : vector<16xf32> to vector<16x1xf32>
    %cst_245 = arith.constant 1.280000e+02 : f32
    %760 = vector.broadcast %cst_245 : f32 to vector<16x1xf32>
    %761 = arith.divf %759, %760 : vector<16x1xf32>
    %762 = vector.broadcast %752 : vector<16x1xf32> to vector<16x128xf32>
    %763 = arith.subf %745, %762 : vector<16x128xf32>
    %cst_246 = arith.constant 9.99999974E-6 : f32
    %764 = vector.broadcast %cst_246 : f32 to vector<16x1xf32>
    %765 = arith.addf %761, %764 : vector<16x1xf32>
    %766 = math.rsqrt %765 : vector<16x1xf32>
    %767 = vector.broadcast %766 : vector<16x1xf32> to vector<16x128xf32>
    %768 = arith.mulf %763, %767 : vector<16x128xf32>
    %769 = vector.broadcast %747 : vector<1x128xf32> to vector<16x128xf32>
    %770 = arith.mulf %768, %769 : vector<16x128xf32>
    %771 = vector.broadcast %748 : vector<1x128xf32> to vector<16x128xf32>
    %772 = arith.addf %770, %771 : vector<16x128xf32>
    %c0_247 = arith.constant 0 : index
    %c0_248 = arith.constant 0 : index
    %773 = vector.load %arg36[%c0_247, %c0_248] : memref<128x256xbf16, #tpu.memory_space<vmem>>, vector<128x256xbf16>
    %c0_249 = arith.constant 0 : index
    %c0_250 = arith.constant 0 : index
    %774 = vector.load %arg37[%c0_249, %c0_250] : memref<1x256xf32, #tpu.memory_space<vmem>>, vector<1x256xf32>
    %775 = arith.truncf %772 : vector<16x128xf32> to vector<16x128xbf16>
    %cst_251 = arith.constant dense<0.000000e+00> : vector<16x256xf32>
    %776 = tpu.matmul %775, %773, %cst_251 {dimension_numbers = #tpu.dot_dimension_numbers<[1], [0], [0], [1], [0, 0, 1, 1], [], []>} : vector<16x128xbf16>, vector<128x256xbf16>, vector<16x256xf32> -> vector<16x256xf32>
    %777 = vector.broadcast %774 : vector<1x256xf32> to vector<16x256xf32>
    %778 = arith.addf %776, %777 : vector<16x256xf32>
    %cst_252 = arith.constant 5.000000e-01 : f32
    %779 = vector.broadcast %cst_252 : f32 to vector<16x256xf32>
    %780 = arith.mulf %779, %778 : vector<16x256xf32>
    %cst_253 = arith.constant 4.471500e-02 : f32
    %781 = vector.broadcast %cst_253 : f32 to vector<16x256xf32>
    %782 = arith.mulf %781, %778 : vector<16x256xf32>
    %783 = arith.mulf %782, %778 : vector<16x256xf32>
    %784 = arith.mulf %783, %778 : vector<16x256xf32>
    %785 = arith.addf %778, %784 : vector<16x256xf32>
    %cst_254 = arith.constant 0.797884583 : f32
    %786 = vector.broadcast %cst_254 : f32 to vector<16x256xf32>
    %787 = arith.mulf %786, %785 : vector<16x256xf32>
    %788 = math.tanh %787 : vector<16x256xf32>
    %cst_255 = arith.constant 1.000000e+00 : f32
    %789 = vector.broadcast %cst_255 : f32 to vector<16x256xf32>
    %790 = arith.addf %789, %788 : vector<16x256xf32>
    %791 = arith.mulf %780, %790 : vector<16x256xf32>
    %c0_256 = arith.constant 0 : index
    %c0_257 = arith.constant 0 : index
    %792 = vector.load %arg38[%c0_256, %c0_257] : memref<256x128xbf16, #tpu.memory_space<vmem>>, vector<256x128xbf16>
    %c0_258 = arith.constant 0 : index
    %c0_259 = arith.constant 0 : index
    %793 = vector.load %arg39[%c0_258, %c0_259] : memref<1x128xf32, #tpu.memory_space<vmem>>, vector<1x128xf32>
    %794 = arith.truncf %791 : vector<16x256xf32> to vector<16x256xbf16>
    %cst_260 = arith.constant dense<0.000000e+00> : vector<16x128xf32>
    %795 = tpu.matmul %794, %792, %cst_260 {dimension_numbers = #tpu.dot_dimension_numbers<[1], [0], [0], [1], [0, 0, 1, 1], [], []>} : vector<16x256xbf16>, vector<256x128xbf16>, vector<16x128xf32> -> vector<16x128xf32>
    %796 = vector.broadcast %793 : vector<1x128xf32> to vector<16x128xf32>
    %797 = arith.addf %795, %796 : vector<16x128xf32>
    %798 = arith.addf %797, %772 : vector<16x128xf32>
    %c0_261 = arith.constant 0 : index
    %c0_262 = arith.constant 0 : index
    %799 = vector.load %arg40[%c0_261, %c0_262] : memref<2x128xf32, #tpu.memory_space<vmem>>, vector<2x128xf32>
    %800 = vector.extract_strided_slice %799 {offsets = [0, 0], sizes = [1, 128], strides = [1, 1]} : vector<2x128xf32> to vector<1x128xf32>
    %801 = vector.extract_strided_slice %799 {offsets = [1, 0], sizes = [1, 128], strides = [1, 1]} : vector<2x128xf32> to vector<1x128xf32>
    %cst_263 = arith.constant dense<0.000000e+00> : vector<16xf32>
    %802 = vector.multi_reduction <add>, %798, %cst_263 [1] : vector<16x128xf32> to vector<16xf32>
    %803 = vector.shape_cast %802 : vector<16xf32> to vector<16x1xf32>
    %cst_264 = arith.constant 1.280000e+02 : f32
    %804 = vector.broadcast %cst_264 : f32 to vector<16x1xf32>
    %805 = arith.divf %803, %804 : vector<16x1xf32>
    %806 = vector.broadcast %805 : vector<16x1xf32> to vector<16x128xf32>
    %807 = arith.subf %798, %806 : vector<16x128xf32>
    %808 = vector.broadcast %805 : vector<16x1xf32> to vector<16x128xf32>
    %809 = arith.subf %798, %808 : vector<16x128xf32>
    %810 = arith.mulf %807, %809 : vector<16x128xf32>
    %cst_265 = arith.constant dense<0.000000e+00> : vector<16xf32>
    %811 = vector.multi_reduction <add>, %810, %cst_265 [1] : vector<16x128xf32> to vector<16xf32>
    %812 = vector.shape_cast %811 : vector<16xf32> to vector<16x1xf32>
    %cst_266 = arith.constant 1.280000e+02 : f32
    %813 = vector.broadcast %cst_266 : f32 to vector<16x1xf32>
    %814 = arith.divf %812, %813 : vector<16x1xf32>
    %815 = vector.broadcast %805 : vector<16x1xf32> to vector<16x128xf32>
    %816 = arith.subf %798, %815 : vector<16x128xf32>
    %cst_267 = arith.constant 9.99999974E-6 : f32
    %817 = vector.broadcast %cst_267 : f32 to vector<16x1xf32>
    %818 = arith.addf %814, %817 : vector<16x1xf32>
    %819 = math.rsqrt %818 : vector<16x1xf32>
    %820 = vector.broadcast %819 : vector<16x1xf32> to vector<16x128xf32>
    %821 = arith.mulf %816, %820 : vector<16x128xf32>
    %822 = vector.broadcast %800 : vector<1x128xf32> to vector<16x128xf32>
    %823 = arith.mulf %821, %822 : vector<16x128xf32>
    %824 = vector.broadcast %801 : vector<1x128xf32> to vector<16x128xf32>
    %825 = arith.addf %823, %824 : vector<16x128xf32>
    %826 = arith.truncf %825 : vector<16x128xf32> to vector<16x128xbf16>
    %cst_268 = arith.constant dense<0.000000e+00> : vector<16x512xf32>
    %827 = tpu.matmul %826, %3, %cst_268 {dimension_numbers = #tpu.dot_dimension_numbers<[1], [0], [0], [1], [0, 0, 1, 1], [], []>} : vector<16x128xbf16>, vector<128x512xbf16>, vector<16x512xf32> -> vector<16x512xf32>
    %828 = vector.broadcast %4 : vector<1x512xf32> to vector<16x512xf32>
    %829 = arith.addf %827, %828 : vector<16x512xf32>
    %c0_269 = arith.constant 0 : index
    %c0_270 = arith.constant 0 : index
    %830 = vector.load %arg4[%c0_269, %c0_270] : memref<16x1xi32, #tpu.memory_space<vmem>>, vector<16x1xi32>
    %cst_271 = arith.constant dense<0xFF800000> : vector<16xf32>
    %831 = vector.multi_reduction <maximumf>, %829, %cst_271 [1] : vector<16x512xf32> to vector<16xf32>
    %832 = vector.shape_cast %831 : vector<16xf32> to vector<16x1xf32>
    %833 = vector.broadcast %832 : vector<16x1xf32> to vector<16x512xf32>
    %834 = arith.subf %829, %833 : vector<16x512xf32>
    %835 = math.exp %834 : vector<16x512xf32>
    %cst_272 = arith.constant dense<0.000000e+00> : vector<16xf32>
    %836 = vector.multi_reduction <add>, %835, %cst_272 [1] : vector<16x512xf32> to vector<16xf32>
    %837 = vector.shape_cast %836 : vector<16xf32> to vector<16x1xf32>
    %838 = math.log %837 : vector<16x1xf32>
    %839 = tpu.iota {dimensions = array<i32: 1>} : vector<16x512xi32>
    %840 = vector.broadcast %830 : vector<16x1xi32> to vector<16x512xi32>
    %841 = arith.cmpi eq, %839, %840 : vector<16x512xi32>
    %cst_273 = arith.constant 0.000000e+00 : f32
    %842 = vector.broadcast %cst_273 : f32 to vector<16x512xf32>
    %843 = arith.select %841, %834, %842 : vector<16x512xi1>, vector<16x512xf32>
    %cst_274 = arith.constant dense<0.000000e+00> : vector<16xf32>
    %844 = vector.multi_reduction <add>, %843, %cst_274 [1] : vector<16x512xf32> to vector<16xf32>
    %845 = vector.shape_cast %844 : vector<16xf32> to vector<16x1xf32>
    %c-100_i32_275 = arith.constant -100 : i32
    %846 = vector.broadcast %c-100_i32_275 : i32 to vector<16x1xi32>
    %847 = arith.cmpi ne, %830, %846 : vector<16x1xi32>
    %848 = arith.extui %847 : vector<16x1xi1> to vector<16x1xi32>
    %849 = arith.sitofp %848 : vector<16x1xi32> to vector<16x1xf32>
    %850 = arith.subf %838, %845 : vector<16x1xf32>
    %851 = arith.mulf %850, %849 : vector<16x1xf32>
    %cst_276 = arith.constant dense<0.000000e+00> : vector<1xf32>
    %852 = vector.multi_reduction <add>, %851, %cst_276 [0] : vector<16x1xf32> to vector<1xf32>
    %853 = vector.shape_cast %852 : vector<1xf32> to vector<1x1xf32>
    %cst_277 = arith.constant dense<0.000000e+00> : vector<1xf32>
    %854 = vector.multi_reduction <add>, %849, %cst_277 [0] : vector<16x1xf32> to vector<1xf32>
    %855 = vector.shape_cast %854 : vector<1xf32> to vector<1x1xf32>
    %856 = tpu.reciprocal %855 {approx = true} : vector<1x1xf32> -> vector<1x1xf32>
    %857 = arith.mulf %853, %856 : vector<1x1xf32>
    %cst_278 = arith.constant 1.000000e-01 : f32
    %858 = vector.broadcast %cst_278 : f32 to vector<1x1xf32>
    %859 = arith.mulf %858, %559 : vector<1x1xf32>
    %860 = arith.addf %857, %859 : vector<1x1xf32>
    %861 = arith.addf %860, %534 : vector<1x1xf32>
    %c0_279 = arith.constant 0 : index
    %c0_280 = arith.constant 0 : index
    %862 = vector.load %arg41[%c0_279, %c0_280] : memref<1x1xf32, #tpu.memory_space<vmem>>, vector<1x1xf32>
    tpu.vector_store %arg41[%c0_279, %c0_280], %861 {strides = array<i32>} : memref<1x1xf32, #tpu.memory_space<vmem>>, vector<1x1xf32>,
    return
  }
  func.func @transform_0(%arg0: i32) -> (i32, i32) {
    %c0_i32 = arith.constant 0 : i32
    %c0_i32_0 = arith.constant 0 : i32
    %c0_i32_1 = arith.constant 0 : i32
    return %c0_i32, %c0_i32_0 : i32, i32
  }
  func.func @transform_1(%arg0: i32) -> (i32, i32) {
    %c0_i32 = arith.constant 0 : i32
    %c0_i32_0 = arith.constant 0 : i32
    %c0_i32_1 = arith.constant 0 : i32
    return %c0_i32, %c0_i32_0 : i32, i32
  }
  func.func @transform_2(%arg0: i32) -> (i32, i32) {
    %c0_i32 = arith.constant 0 : i32
    %c0_i32_0 = arith.constant 0 : i32
    %c0_i32_1 = arith.constant 0 : i32
    return %c0_i32, %c0_i32_0 : i32, i32
  }
  func.func @transform_3(%arg0: i32) -> (i32, i32) {
    %c0_i32 = arith.constant 0 : i32
    %c0_i32_0 = arith.constant 0 : i32
    %c0_i32_1 = arith.constant 0 : i32
    return %c0_i32, %c0_i32_0 : i32, i32
  }
  func.func @transform_4(%arg0: i32) -> (i32, i32) {
    %c0_i32 = arith.constant 0 : i32
    %c0_i32_0 = arith.constant 0 : i32
    %c0_i32_1 = arith.constant 0 : i32
    return %c0_i32, %c0_i32_0 : i32, i32
  }
  func.func @transform_5(%arg0: i32) -> (i32, i32) {
    %c0_i32 = arith.constant 0 : i32
    %c0_i32_0 = arith.constant 0 : i32
    %c0_i32_1 = arith.constant 0 : i32
    return %c0_i32, %c0_i32_0 : i32, i32
  }
  func.func @transform_6(%arg0: i32) -> (i32, i32, i32) {
    %c0_i32 = arith.constant 0 : i32
    %c0_i32_0 = arith.constant 0 : i32
    %c0_i32_1 = arith.constant 0 : i32
    %c0_i32_2 = arith.constant 0 : i32
    return %c0_i32, %c0_i32_0, %c0_i32_1 : i32, i32, i32
  }
  func.func @transform_7(%arg0: i32) -> (i32, i32) {
    %c0_i32 = arith.constant 0 : i32
    %c0_i32_0 = arith.constant 0 : i32
    %c0_i32_1 = arith.constant 0 : i32
    return %c0_i32, %c0_i32_0 : i32, i32
  }
  func.func @transform_8(%arg0: i32) -> (i32, i32, i32) {
    %c0_i32 = arith.constant 0 : i32
    %c0_i32_0 = arith.constant 0 : i32
    %c0_i32_1 = arith.constant 0 : i32
    %c0_i32_2 = arith.constant 0 : i32
    return %c0_i32, %c0_i32_0, %c0_i32_1 : i32, i32, i32
  }
  func.func @transform_9(%arg0: i32) -> (i32, i32) {
    %c0_i32 = arith.constant 0 : i32
    %c0_i32_0 = arith.constant 0 : i32
    %c0_i32_1 = arith.constant 0 : i32
    return %c0_i32, %c0_i32_0 : i32, i32
  }
  func.func @transform_10(%arg0: i32) -> (i32, i32) {
    %c0_i32 = arith.constant 0 : i32
    %c0_i32_0 = arith.constant 0 : i32
    %c0_i32_1 = arith.constant 0 : i32
    return %c0_i32, %c0_i32_0 : i32, i32
  }
  func.func @transform_11(%arg0: i32) -> (i32, i32) {
    %c0_i32 = arith.constant 0 : i32
    %c0_i32_0 = arith.constant 0 : i32
    %c0_i32_1 = arith.constant 0 : i32
    return %c0_i32, %c0_i32_0 : i32, i32
  }
  func.func @transform_12(%arg0: i32) -> (i32, i32, i32) {
    %c0_i32 = arith.constant 0 : i32
    %c0_i32_0 = arith.constant 0 : i32
    %c0_i32_1 = arith.constant 0 : i32
    %c0_i32_2 = arith.constant 0 : i32
    return %c0_i32, %c0_i32_0, %c0_i32_1 : i32, i32, i32
  }
  func.func @transform_13(%arg0: i32) -> (i32, i32, i32) {
    %c0_i32 = arith.constant 0 : i32
    %c0_i32_0 = arith.constant 0 : i32
    %c0_i32_1 = arith.constant 0 : i32
    %c0_i32_2 = arith.constant 0 : i32
    return %c0_i32, %c0_i32_0, %c0_i32_1 : i32, i32, i32
  }
  func.func @transform_14(%arg0: i32) -> (i32, i32, i32) {
    %c0_i32 = arith.constant 0 : i32
    %c0_i32_0 = arith.constant 0 : i32
    %c0_i32_1 = arith.constant 0 : i32
    %c0_i32_2 = arith.constant 0 : i32
    return %c0_i32, %c0_i32_0, %c0_i32_1 : i32, i32, i32
  }
  func.func @transform_15(%arg0: i32) -> (i32, i32, i32) {
    %c0_i32 = arith.constant 0 : i32
    %c0_i32_0 = arith.constant 0 : i32
    %c0_i32_1 = arith.constant 0 : i32
    %c0_i32_2 = arith.constant 0 : i32
    return %c0_i32, %c0_i32_0, %c0_i32_1 : i32, i32, i32
  }
  func.func @transform_16(%arg0: i32) -> (i32, i32, i32) {
    %c0_i32 = arith.constant 0 : i32
    %c0_i32_0 = arith.constant 0 : i32
    %c0_i32_1 = arith.constant 0 : i32
    %c0_i32_2 = arith.constant 0 : i32
    return %c0_i32, %c0_i32_0, %c0_i32_1 : i32, i32, i32
  }
  func.func @transform_17(%arg0: i32) -> (i32, i32, i32) {
    %c0_i32 = arith.constant 0 : i32
    %c0_i32_0 = arith.constant 0 : i32
    %c0_i32_1 = arith.constant 0 : i32
    %c0_i32_2 = arith.constant 0 : i32
    return %c0_i32, %c0_i32_0, %c0_i32_1 : i32, i32, i32
  }
  func.func @transform_18(%arg0: i32) -> (i32, i32, i32) {
    %c0_i32 = arith.constant 0 : i32
    %c0_i32_0 = arith.constant 0 : i32
    %c0_i32_1 = arith.constant 0 : i32
    %c0_i32_2 = arith.constant 0 : i32
    return %c0_i32, %c0_i32_0, %c0_i32_1 : i32, i32, i32
  }
  func.func @transform_19(%arg0: i32) -> (i32, i32, i32) {
    %c0_i32 = arith.constant 0 : i32
    %c0_i32_0 = arith.constant 0 : i32
    %c0_i32_1 = arith.constant 0 : i32
    %c0_i32_2 = arith.constant 0 : i32
    return %c0_i32, %c0_i32_0, %c0_i32_1 : i32, i32, i32
  }
  func.func @transform_20(%arg0: i32) -> (i32, i32, i32) {
    %c0_i32 = arith.constant 0 : i32
    %c0_i32_0 = arith.constant 0 : i32
    %c0_i32_1 = arith.constant 0 : i32
    %c0_i32_2 = arith.constant 0 : i32
    return %c0_i32, %c0_i32_0, %c0_i32_1 : i32, i32, i32
  }
  func.func @transform_21(%arg0: i32) -> (i32, i32, i32) {
    %c0_i32 = arith.constant 0 : i32
    %c0_i32_0 = arith.constant 0 : i32
    %c0_i32_1 = arith.constant 0 : i32
    %c0_i32_2 = arith.constant 0 : i32
    return %c0_i32, %c0_i32_0, %c0_i32_1 : i32, i32, i32
  }
  func.func @transform_22(%arg0: i32) -> (i32, i32) {
    %c0_i32 = arith.constant 0 : i32
    %c0_i32_0 = arith.constant 0 : i32
    %c0_i32_1 = arith.constant 0 : i32
    return %c0_i32, %c0_i32_0 : i32, i32
  }
  func.func @transform_23(%arg0: i32) -> (i32, i32) {
    %c0_i32 = arith.constant 0 : i32
    %c0_i32_0 = arith.constant 0 : i32
    %c0_i32_1 = arith.constant 0 : i32
    return %c0_i32, %c0_i32_0 : i32, i32
  }
  func.func @transform_24(%arg0: i32) -> (i32, i32) {
    %c0_i32 = arith.constant 0 : i32
    %c0_i32_0 = arith.constant 0 : i32
    %c0_i32_1 = arith.constant 0 : i32
    return %c0_i32, %c0_i32_0 : i32, i32
  }
  func.func @transform_25(%arg0: i32) -> (i32, i32) {
    %c0_i32 = arith.constant 0 : i32
    %c0_i32_0 = arith.constant 0 : i32
    %c0_i32_1 = arith.constant 0 : i32
    return %c0_i32, %c0_i32_0 : i32, i32
  }
  func.func @transform_26(%arg0: i32) -> (i32, i32) {
    %c0_i32 = arith.constant 0 : i32
    %c0_i32_0 = arith.constant 0 : i32
    %c0_i32_1 = arith.constant 0 : i32
    return %c0_i32, %c0_i32_0 : i32, i32
  }
  func.func @transform_27(%arg0: i32) -> (i32, i32) {
    %c0_i32 = arith.constant 0 : i32
    %c0_i32_0 = arith.constant 0 : i32
    %c0_i32_1 = arith.constant 0 : i32
    return %c0_i32, %c0_i32_0 : i32, i32
  }
  func.func @transform_28(%arg0: i32) -> (i32, i32) {
    %c0_i32 = arith.constant 0 : i32
    %c0_i32_0 = arith.constant 0 : i32
    %c0_i32_1 = arith.constant 0 : i32
    return %c0_i32, %c0_i32_0 : i32, i32
  }
  func.func @transform_29(%arg0: i32) -> (i32, i32) {
    %c0_i32 = arith.constant 0 : i32
    %c0_i32_0 = arith.constant 0 : i32
    %c0_i32_1 = arith.constant 0 : i32
    return %c0_i32, %c0_i32_0 : i32, i32
  }
  func.func @transform_30(%arg0: i32) -> (i32, i32) {
    %c0_i32 = arith.constant 0 : i32
    %c0_i32_0 = arith.constant 0 : i32
    %c0_i32_1 = arith.constant 0 : i32
    return %c0_i32, %c0_i32_0 : i32, i32
  }
  func.func @transform_31(%arg0: i32) -> (i32, i32) {
    %c0_i32 = arith.constant 0 : i32
    %c0_i32_0 = arith.constant 0 : i32
    %c0_i32_1 = arith.constant 0 : i32
    return %c0_i32, %c0_i32_0 : i32, i32
  }
  func.func @transform_32(%arg0: i32) -> (i32, i32) {
    %c0_i32 = arith.constant 0 : i32
    %c0_i32_0 = arith.constant 0 : i32
    %c0_i32_1 = arith.constant 0 : i32
    return %c0_i32, %c0_i32_0 : i32, i32
  }
  func.func @transform_33(%arg0: i32) -> (i32, i32) {
    %c0_i32 = arith.constant 0 : i32
    %c0_i32_0 = arith.constant 0 : i32
    %c0_i32_1 = arith.constant 0 : i32
    return %c0_i32, %c0_i32_0 : i32, i32
  }
  func.func @transform_34(%arg0: i32) -> (i32, i32) {
    %c0_i32 = arith.constant 0 : i32
    %c0_i32_0 = arith.constant 0 : i32
    %c0_i32_1 = arith.constant 0 : i32
    return %c0_i32, %c0_i32_0 : i32, i32
  }
  func.func @transform_35(%arg0: i32) -> (i32, i32) {
    %c0_i32 = arith.constant 0 : i32
    %c0_i32_0 = arith.constant 0 : i32
    %c0_i32_1 = arith.constant 0 : i32
    return %c0_i32, %c0_i32_0 : i32, i32
  }
  func.func @transform_36(%arg0: i32) -> (i32, i32) {
    %c0_i32 = arith.constant 0 : i32
    %c0_i32_0 = arith.constant 0 : i32
    %c0_i32_1 = arith.constant 0 : i32
    return %c0_i32, %c0_i32_0 : i32, i32
  }
  func.func @transform_37(%arg0: i32) -> (i32, i32) {
    %c0_i32 = arith.constant 0 : i32
    %c0_i32_0 = arith.constant 0 : i32
    %c0_i32_1 = arith.constant 0 : i32
    return %c0_i32, %c0_i32_0 : i32, i32
  }
  func.func @transform_38(%arg0: i32) -> (i32, i32) {
    %c0_i32 = arith.constant 0 : i32
    %c0_i32_0 = arith.constant 0 : i32
    %c0_i32_1 = arith.constant 0 : i32
    return %c0_i32, %c0_i32_0 : i32, i32
  }
  func.func @transform_39(%arg0: i32) -> (i32, i32) {
    %c0_i32 = arith.constant 0 : i32
    %c0_i32_0 = arith.constant 0 : i32
    %c0_i32_1 = arith.constant 0 : i32
    return %c0_i32, %c0_i32_0 : i32, i32
  }
  func.func @transform_40(%arg0: i32) -> (i32, i32) {
    %c0_i32 = arith.constant 0 : i32
    %c0_i32_0 = arith.constant 0 : i32
    %c0_i32_1 = arith.constant 0 : i32
    return %c0_i32, %c0_i32_0 : i32, i32
  }
}

</mosaic_0001>

<bundles_post_ra>
// kernel: eq.8
= control target key start
LH: loop header
LB: loop body
LE: loop exit
PB: predicated region body
PF: predicated region fallthrough
CT: control target
= control target key end

     0   :  { %vm7_vm0 = vcmask 64512   ;;  %vm13_vm1 = vcmask 130112   ;;  %s39_s0 = inlined_call_operand.vmem [shape: s32[2,8], index: 0, kind: input, shape index: {}]   ;;  %s40_s1 = inlined_call_operand.vmem [shape: s32[16], index: 1, kind: output, shape index: {}]  }
   0x1   :  { %v4_v0 = vld [vmem:[%s39_s0] sm:$0x3]  ;;  %s22_s0 = smov 8  }
   0x2   :  { %5 = vst [vmem:[#allocation1] sm:$0x3] %v4_v0 }
   0x9   :  { %v10_v1 = vld [vmem:[#allocation1 + $0x1] sm:$0x1]   ;;  %v6_v2 = vld [vmem:[#allocation1] sm:$0x1]  }
   0xa   :  { %11 = vrot.lane.b32.xlu0 %v10_v1, %s22_s0  ;;  %8 = vst.msk [vmem:[#allocation0] sm:$0x1] %vm7_vm0, %v6_v2  }
  0x7c   :  { %v12_v3 = vpop.permute.xlu0 %11  }
  0x7d   :  { %14 = vst.msk [vmem:[#allocation0] sm:$0x1] %vm13_vm1, %v12_v3  }
  0x84   :  { %v18_v4 = vld [vmem:[#allocation0] sm:$0x1] }
  0x85   :  { %20 = vst [vmem:[%s40_s1] sm:$0x1] %v18_v4 }

// kernel: dupmae_forward.1
= control target key start
LH: loop header
LB: loop body
LE: loop exit
PB: predicated region body
PF: predicated region fallthrough
CT: control target
= control target key end

     0   :  { %s8950_s6 = smov 1   ;;  %s8951_s10 = smov 2   ;;  %s10313_s0 = inlined_call_operand.smem [shape: u32[41], index: -1, kind: input, shape index: {}] }
   0x1   :  { %s9036_s5 = sld [smem:[%s10313_s0]]   ;;  %s8952_s14 = smov 3  }
   0x2   :  { %s9041_s9 = sld [smem:[%s10313_s0 + %s8950_s6]]   ;;  %s8953_s18 = smov 4  }
   0x3   :  { %s9046_s13 = sld [smem:[%s10313_s0 + %s8951_s10]]   ;;  %s8954_s22 = smov 5  }
   0x4   :  { %s9051_s17 = sld [smem:[%s10313_s0 + %s8952_s14]]   ;;  %s8955_s26 = smov 6  }
   0x5   :  { %s9056_s21 = sld [smem:[%s10313_s0 + %s8953_s18]]   ;;  %s8956_s30 = smov 7  }
   0x6   :  { %s9061_s25 = sld [smem:[%s10313_s0 + %s8954_s22]]   ;;  %s8957_s4 = smov 8  }
   0x7   :  { %10332 = sst [smem:[#allocation48_spill]] %s9036_s5  ;;  %s8958_s10 = smov 9  }
   0x8   :  { %10333 = sst [smem:[#allocation49_spill]] %s9041_s9  ;;  %s8959_s15 = smov 10  }
   0x9   :  { %10334 = sst [smem:[#allocation50_spill]] %s9046_s13  ;;  %s8960_s20 = smov 11  }
   0xa   :  { %10335 = sst [smem:[#allocation51_spill]] %s9051_s17  ;;  %s8962_s1 = smov 13  }
   0xb   :  { %10336 = sst [smem:[#allocation52_spill]] %s9056_s21  ;;  %s8963_s7 = smov 14  }
   0xc   :  { %10337 = sst [smem:[#allocation53_spill]] %s9061_s25  ;;  %s8965_s22 = smov 16  }
   0xd   :  { %s9066_s29 = sld [smem:[%s10313_s0 + %s8955_s26]]   ;;  %s8961_s26 = smov 12  }
   0xe   :  { %s9071_s3 = sld [smem:[%s10313_s0 + %s8956_s30]]   ;;  %s8966_s28 = smov 17  }
   0xf   :  { %s9076_s8 = sld [smem:[%s10313_s0 + %s8957_s4]]  }
  0x10   :  { %s9081_s14 = sld [smem:[%s10313_s0 + %s8958_s10]]  }
  0x11   :  { %s9086_s19 = sld [smem:[%s10313_s0 + %s8959_s15]]   ;;  %s8964_s15 = smov 15  }
  0x12   :  { %s9091_s24 = sld [smem:[%s10313_s0 + %s8960_s20]]  }
  0x13   :  { %10338 = sst [smem:[#allocation54_spill]] %s9066_s29 }
  0x14   :  { %10339 = sst [smem:[#allocation55_spill]] %s9071_s3 }
  0x15   :  { %10340 = sst [smem:[#allocation56_spill]] %s9076_s8 }
  0x16   :  { %10341 = sst [smem:[#allocation57_spill]] %s9081_s14 }
  0x17   :  { %s9096_s30 = sld [smem:[%s10313_s0 + %s8961_s26]]  }
  0x18   :  { %s9101_s6 = sld [smem:[%s10313_s0 + %s8962_s1]]  }
  0x19   :  { %s9106_s12 = sld [smem:[%s10313_s0 + %s8963_s7]]   ;;  %s8967_s7 = smov 18  }
  0x1a   :  { %s9111_s20 = sld [smem:[%s10313_s0 + %s8964_s15]]   ;;  %s8968_s15 = smov 19  }
  0x1b   :  { %s9116_s27 = sld [smem:[%s10313_s0 + %s8965_s22]]   ;;  %s8969_s22 = smov 20  }
  0x1c   :  { %s9121_s4 = sld [smem:[%s10313_s0 + %s8966_s28]]   ;;  %s8970_s28 = smov 21  }
  0x1d   :  { %s9126_s17 = sld [smem:[%s10313_s0 + %s8967_s7]]   ;;  %s8971_s7 = smov 22  }
  0x1e   :  { %s9131_s14 = sld [smem:[%s10313_s0 + %s8968_s15]]   ;;  %s8972_s15 = smov 23  }
  0x1f   :  { %10342 = sst [smem:[#allocation58_spill]] %s9106_s12 }
  0x20   :  { %10343 = sst [smem:[#allocation59_spill]] %s9111_s20 }
  0x21   :  { %10344 = sst [smem:[#allocation60_spill]] %s9116_s27 }
  0x22   :  { %s9136_s13 = sld [smem:[%s10313_s0 + %s8969_s22]]   ;;  %s8973_s22 = smov 24  }
  0x23   :  { %s9141_s8 = sld [smem:[%s10313_s0 + %s8970_s28]]   ;;  %s8974_s28 = smov 25  }
  0x24   :  { %10345 = sst [smem:[#allocation61_spill]] %s9131_s14 }
  0x25   :  { %s9146_s25 = sld [smem:[%s10313_s0 + %s8971_s7]]   ;;  %s8975_s7 = smov 26  }
  0x26   :  { %s9151_s29 = sld [smem:[%s10313_s0 + %s8972_s15]]   ;;  %s8976_s15 = smov 27  }
  0x27   :  { %s9156_s9 = sld [smem:[%s10313_s0 + %s8973_s22]]   ;;  %s8977_s22 = smov 28  }
  0x28   :  { %s9161_s3 = sld [smem:[%s10313_s0 + %s8974_s28]]   ;;  %s8978_s28 = smov 29  }
  0x29   :  { %10346 = sst [smem:[#allocation62_spill]] %s9141_s8 }
  0x2a   :  { %s9166_s8 = sld [smem:[%s10313_s0 + %s8975_s7]]   ;;  %s8979_s7 = smov 30  }
  0x2b   :  { %s9171_s14 = sld [smem:[%s10313_s0 + %s8976_s15]]   ;;  %s8980_s15 = smov 31  }
  0x2c   :  { %s9176_s27 = sld [smem:[%s10313_s0 + %s8977_s22]]   ;;  %s8981_s22 = smov 32  }
  0x2d   :  { %s9181_s20 = sld [smem:[%s10313_s0 + %s8978_s28]]   ;;  %s8982_s28 = smov 33  }
  0x2e   :  { %10347 = sst [smem:[#allocation63_spill]] %s9161_s3 }
  0x2f   :  { %s9186_s21 = sld [smem:[%s10313_s0 + %s8979_s7]]   ;;  %s8983_s7 = smov 34  }
  0x30   :  { %s9191_s12 = sld [smem:[%s10313_s0 + %s8980_s15]]   ;;  %s8984_s15 = smov 35  }
  0x31   :  { %10348 = sst [smem:[#allocation64_spill]] %s9171_s14 }
  0x32   :  { %s9196_s5 = sld [smem:[%s10313_s0 + %s8981_s22]]   ;;  %s8985_s22 = smov 36  }
  0x33   :  { %10349 = sst [smem:[#allocation65_spill]] %s9181_s20 }
  0x34   :  { %s9201_s20 = sld [smem:[%s10313_s0 + %s8982_s28]]   ;;  %s8986_s28 = smov 37  }
  0x35   :  { %10350 = sst [smem:[#allocation66_spill]] %s9186_s21 }
  0x36   :  { %10351 = sst [smem:[#allocation67_spill]] %s9191_s12 }
  0x37   :  { %s9206_s21 = sld [smem:[%s10313_s0 + %s8983_s7]]   ;;  %s8987_s7 = smov 38  }
  0x38   :  { %s9211_s12 = sld [smem:[%s10313_s0 + %s8984_s15]]   ;;  %s8988_s15 = smov 39  }
  0x39   :  { %s9216_s14 = sld [smem:[%s10313_s0 + %s8985_s22]]   ;;  %s8989_s22 = smov 40  }
  0x3a   :  { %10352 = sst [smem:[#allocation68_spill]] %s9201_s20 }
  0x3b   :  { %s9221_s20 = sld [smem:[%s10313_s0 + %s8986_s28]]  }
  0x3c   :  { %s9231_s3 = sld [smem:[%s10313_s0 + %s8988_s15]]  }
  0x3d   :  { %10353 = sst [smem:[#allocation69_spill]] %s9206_s21 }
  0x3e   :  { %s9226_s21 = sld [smem:[%s10313_s0 + %s8987_s7]]  }
  0x3f   :  { %10354 = sst [smem:[#allocation70_spill]] %s9216_s14 }
  0x40   :  { %s9236_s14 = sld [smem:[%s10313_s0 + %s8989_s22]]  }
  0x41   :  { %86 = vsyncpa [#allocation3], 0 }
  0x42   :  { %87 = vsyncpa [#allocation6], 0 }
  0x43   :  { %88 = vsyncpa [#allocation9], 0 }
  0x44   :  { %89 = vsyncpa [#allocation12], 0 }
  0x45   :  { %90 = vsyncpa [#allocation15], 0 }
  0x46   :  { %91 = vsyncpa [#allocation18], 0 }
  0x47   :  { %92 = vsyncpa [#allocation21], 0 }
  0x48   :  { %93 = vsyncpa [#allocation24], 0 }
  0x49   :  { %94 = vsyncpa [#allocation27], 0 }
  0x4a   :  { %95 = vsyncpa [#allocation30], 0 }
  0x4b   :  { %96 = vsyncpa [#allocation33], 0 }
  0x4c   :  { %97 = vsyncpa [#allocation4], 0  ;;  %s8990_s28 = smov [#allocation5]   ;;  %s8991_s2 = smov [#allocation8]  }
  0x4d   :  { %s136_s1 = sshll.u32 %s8990_s28, 4  ;;  %s157_s0 = sshll.u32 %s8991_s2, 4  ;;  %s137_s1 = int_to_ptr.vmem [resolvable:$true] %s136_s1  ;;  %s9238_s0 = int_to_ptr.vmem [resolvable:$true] %s157_s0 }
  0x4e   :  { %s8442_s7 = scalar_lea.hbm %s9091_s24, 32 }
  0x4f   :  { %p8443_p0 = scmp.ne.s32.totalorder %s9091_s24, %s8442_s7  ;;  %p8446_p1 = scmp.lt.u32.totalorder %s8442_s7, %s9091_s24 }
  0x51   :  { %p8448_p2 = pnand %p8446_p1, %p8443_p0 }
  0x53   :  { %8451 = shalt.err (!%p8448_p2)
}
  0x54   :  { %s8452_s10 = scalar_lea.vmem %s137_s1, 32  ;;  %p8457_p4 = scmp.lt.s32.totalorder %s137_s1, %s137_s1 }
  0x55   :  { %p8453_p3 = scmp.ne.s32.totalorder %s137_s1, %s8452_s10  ;;  %p8458_p5 = scmp.lt.s32.totalorder %s8452_s10, %s8452_s10 }
  0x57   :  { %p8459_p6 = por %p8458_p5, %p8457_p4 }
  0x59   :  { %p8460_p7 = pnand %p8459_p6, %p8453_p3 }
  0x5b   :  { %8463 = shalt.err (!%p8460_p7)
}
  0x5c   :  { %139 = dma.hbm_to_vmem [thread:$0]  %s9091_s24, 32, %s137_s1, [#allocation6]  }
  0x5d   :  { %s8464_s11 = scalar_lea.hbm %s9101_s6, 6144 }
  0x5e   :  { %p8465_p8 = scmp.ne.s32.totalorder %s9101_s6, %s8464_s11  ;;  %p8468_p9 = scmp.lt.u32.totalorder %s8464_s11, %s9101_s6 }
  0x60   :  { %p8470_p10 = pnand %p8468_p9, %p8465_p8 }
  0x62   :  { %8473 = shalt.err (!%p8470_p10)
}
  0x63   :  { %s8474_s15 = scalar_lea.vmem %s9238_s0, 6144  ;;  %p8479_p12 = scmp.lt.s32.totalorder %s9238_s0, %s9238_s0 }
  0x64   :  { %p8475_p11 = scmp.ne.s32.totalorder %s9238_s0, %s8474_s15  ;;  %p8480_p13 = scmp.lt.s32.totalorder %s8474_s15, %s8474_s15 }
  0x66   :  { %p8481_p0 = por %p8480_p13, %p8479_p12 }
  0x68   :  { %p8482_p1 = pnand %p8481_p0, %p8475_p11 }
  0x6a   :  { %8485 = shalt.err (!%p8482_p1)
}
  0x6b   :  { %s8992_s16 = smov 192   ;;  %s8993_s24 = smov 12  }
  0x6c   :  { %163 = dma.hbm_to_vmem [thread:$0]  %s9101_s6, 6144, %s9238_s0, [#allocation9], %s8992_s16, %s8992_s16, %s8993_s24  }
  0x6d   :  { %s8994_s18 = smov [#allocation11]   ;;  %s8486_s23 = scalar_lea.hbm %s9126_s17, 4096 }
  0x6e   :  { %s187_s22 = sshll.u32 %s8994_s18, 4  ;;  %p8487_p2 = scmp.ne.s32.totalorder %s9126_s17, %s8486_s23  ;;  %s188_s22 = int_to_ptr.vmem [resolvable:$true] %s187_s22 }
  0x6f   :  { %p8490_p3 = scmp.lt.u32.totalorder %s8486_s23, %s9126_s17 }
  0x71   :  { %p8492_p4 = pnand %p8490_p3, %p8487_p2 }
  0x73   :  { %8495 = shalt.err (!%p8492_p4)
}
  0x74   :  { %s8496_s26 = scalar_lea.vmem %s188_s22, 4096  ;;  %p8501_p6 = scmp.lt.s32.totalorder %s188_s22, %s188_s22 }
  0x75   :  { %p8497_p5 = scmp.ne.s32.totalorder %s188_s22, %s8496_s26  ;;  %p8502_p7 = scmp.lt.s32.totalorder %s8496_s26, %s8496_s26 }
  0x77   :  { %p8503_p8 = por %p8502_p7, %p8501_p6 }
  0x79   :  { %p8504_p9 = pnand %p8503_p8, %p8497_p5 }
  0x7b   :  { %8507 = shalt.err (!%p8504_p9)
}
  0x7c   :  { %s8995_s28 = smov 128   ;;  %s8996_s6 = smov 8  }
  0x7d   :  { %193 = dma.hbm_to_vmem [thread:$0]  %s9126_s17, 4096, %s188_s22, [#allocation12], %s8995_s28, %s8995_s28, %s8996_s6  }
  0x7e   :  { %s8997_s1 = smov [#allocation14]   ;;  %s8998_s0 = smov [#allocation17]  }
  0x7f   :  { %s216_s2 = sshll.u32 %s8997_s1, 4  ;;  %s238_s7 = sshll.u32 %s8998_s0, 4  ;;  %s217_s2 = int_to_ptr.vmem [resolvable:$true] %s216_s2  ;;  %s239_s7 = int_to_ptr.vmem [resolvable:$true] %s238_s7 }
  0x80   :  { %s8508_s10 = scalar_lea.hbm %s9146_s25, 32 }
  0x81   :  { %p8509_p10 = scmp.ne.s32.totalorder %s9146_s25, %s8508_s10  ;;  %p8512_p11 = scmp.lt.u32.totalorder %s8508_s10, %s9146_s25 }
  0x83   :  { %p8514_p12 = pnand %p8512_p11, %p8509_p10 }
  0x85   :  { %8517 = shalt.err (!%p8514_p12)
}
  0x86   :  { %s8518_s11 = scalar_lea.vmem %s217_s2, 32  ;;  %p8523_p0 = scmp.lt.s32.totalorder %s217_s2, %s217_s2 }
  0x87   :  { %p8519_p13 = scmp.ne.s32.totalorder %s217_s2, %s8518_s11  ;;  %p8524_p1 = scmp.lt.s32.totalorder %s8518_s11, %s8518_s11 }
  0x89   :  { %p8525_p2 = por %p8524_p1, %p8523_p0 }
  0x8b   :  { %p8526_p3 = pnand %p8525_p2, %p8519_p13 }
  0x8d   :  { %8529 = shalt.err (!%p8526_p3)
}
  0x8e   :  { %219 = dma.hbm_to_vmem [thread:$0]  %s9146_s25, 32, %s217_s2, [#allocation15]  }
  0x8f   :  { %s8530_s17 = scalar_lea.hbm %s9156_s9, 16 }
  0x90   :  { %p8531_p4 = scmp.ne.s32.totalorder %s9156_s9, %s8530_s17  ;;  %p8534_p5 = scmp.lt.u32.totalorder %s8530_s17, %s9156_s9 }
  0x92   :  { %p8536_p6 = pnand %p8534_p5, %p8531_p4 }
  0x94   :  { %8539 = shalt.err (!%p8536_p6)
}
  0x95   :  { %s8540_s15 = scalar_lea.vmem %s239_s7, 16  ;;  %s8544_s16 = scalar_lea.vmem %s239_s7, 32 }
  0x96   :  { %p8541_p7 = scmp.ne.s32.totalorder %s239_s7, %s8540_s15  ;;  %p8545_p8 = scmp.lt.s32.totalorder %s239_s7, %s239_s7 }
  0x97   :  { %p8546_p9 = scmp.lt.s32.totalorder %s8544_s16, %s8540_s15 }
  0x99   :  { %p8547_p10 = por %p8546_p9, %p8545_p8 }
  0x9b   :  { %p8548_p11 = pnand %p8547_p10, %p8541_p7 }
  0x9d   :  { %8551 = shalt.err (!%p8548_p11)
}
  0x9e   :  { %241 = dma.hbm_to_vmem [thread:$0]  %s9156_s9, 16, %s239_s7, [#allocation18]  }
  0x9f   :  { %s8999_s25 = smov [#allocation20]   ;;  %s8552_s18 = scalar_lea.hbm %s9166_s8, 4096 }
  0xa0   :  { %s257_s24 = sshll.u32 %s8999_s25, 4  ;;  %p8553_p12 = scmp.ne.s32.totalorder %s9166_s8, %s8552_s18  ;;  %s258_s24 = int_to_ptr.vmem [resolvable:$true] %s257_s24 }
  0xa1   :  { %p8556_p13 = scmp.lt.u32.totalorder %s8552_s18, %s9166_s8 }
  0xa3   :  { %p8558_p0 = pnand %p8556_p13, %p8553_p12 }
  0xa5   :  { %8561 = shalt.err (!%p8558_p0)
}
  0xa6   :  { %s8562_s22 = scalar_lea.vmem %s258_s24, 4096  ;;  %p8567_p2 = scmp.lt.s32.totalorder %s258_s24, %s258_s24 }
  0xa7   :  { %p8563_p1 = scmp.ne.s32.totalorder %s258_s24, %s8562_s22  ;;  %p8568_p3 = scmp.lt.s32.totalorder %s8562_s22, %s8562_s22 }
  0xa9   :  { %p8569_p4 = por %p8568_p3, %p8567_p2 }
  0xab   :  { %p8570_p5 = pnand %p8569_p4, %p8563_p1 }
  0xad   :  { %8573 = shalt.err (!%p8570_p5)
}
  0xae   :  { %s9000_s23 = smov 256   ;;  %s9001_s9 = smov 16  }
  0xaf   :  { %263 = dma.hbm_to_vmem [thread:$0]  %s9166_s8, 4096, %s258_s24, [#allocation21], %s9000_s23, %s9000_s23, %s9001_s9  }
  0xb0   :  { %s9002_s26 = smov [#allocation23]   ;;  %s9003_s2 = smov [#allocation26]  }
  0xb1   :  { %s279_s1 = sshll.u32 %s9002_s26, 4  ;;  %s305_s0 = sshll.u32 %s9003_s2, 4  ;;  %s280_s1 = int_to_ptr.vmem [resolvable:$true] %s279_s1  ;;  %s9272_s0 = int_to_ptr.vmem [resolvable:$true] %s305_s0 }
  0xb2   :  { %s8574_s7 = scalar_lea.hbm %s9176_s27, 1024 }
  0xb3   :  { %p8575_p6 = scmp.ne.s32.totalorder %s9176_s27, %s8574_s7  ;;  %p8578_p7 = scmp.lt.u32.totalorder %s8574_s7, %s9176_s27 }
  0xb5   :  { %p8580_p8 = pnand %p8578_p7, %p8575_p6 }
  0xb7   :  { %8583 = shalt.err (!%p8580_p8)
}
  0xb8   :  { %s8584_s10 = scalar_lea.vmem %s280_s1, 1024  ;;  %p8589_p10 = scmp.lt.s32.totalorder %s280_s1, %s280_s1 }
  0xb9   :  { %p8585_p9 = scmp.ne.s32.totalorder %s280_s1, %s8584_s10  ;;  %p8590_p11 = scmp.lt.s32.totalorder %s8584_s10, %s8584_s10 }
  0xbb   :  { %p8591_p12 = por %p8590_p11, %p8589_p10 }
  0xbd   :  { %p8592_p13 = pnand %p8591_p12, %p8585_p9 }
  0xbf   :  { %8595 = shalt.err (!%p8592_p13)
}
  0xc0   :  { %s9004_s8 = smov 64   ;;  %s9005_s11 = smov 4  }
  0xc1   :  { %285 = dma.hbm_to_vmem [thread:$0]  %s9176_s27, 1024, %s280_s1, [#allocation24], %s9004_s8, %s9004_s8, %s9005_s11  }
  0xc2   :  { %s8596_s17 = scalar_lea.hbm %s9196_s5, 1024 }
  0xc3   :  { %p8597_p0 = scmp.ne.s32.totalorder %s9196_s5, %s8596_s17  ;;  %p8600_p1 = scmp.lt.u32.totalorder %s8596_s17, %s9196_s5 }
  0xc5   :  { %p8602_p2 = pnand %p8600_p1, %p8597_p0 }
  0xc7   :  { %8605 = shalt.err (!%p8602_p2)
}
  0xc8   :  { %s8606_s15 = scalar_lea.vmem %s9272_s0, 1024  ;;  %p8611_p4 = scmp.lt.s32.totalorder %s9272_s0, %s9272_s0 }
  0xc9   :  { %p8607_p3 = scmp.ne.s32.totalorder %s9272_s0, %s8606_s15  ;;  %p8612_p5 = scmp.lt.s32.totalorder %s8606_s15, %s8606_s15 }
  0xcb   :  { %p8613_p6 = por %p8612_p5, %p8611_p4 }
  0xcd   :  { %p8614_p7 = pnand %p8613_p6, %p8607_p3 }
  0xcf   :  { %8617 = shalt.err (!%p8614_p7)
}
  0xd0   :  { %311 = dma.hbm_to_vmem [thread:$0]  %s9196_s5, 1024, %s9272_s0, [#allocation27], %s9004_s8, %s9004_s8, %s9005_s11  }
  0xd1   :  { %s9006_s27 = smov [#allocation29]   ;;  %s9007_s25 = smov [#allocation32]  }
  0xd2   :  { %s329_s16 = sshll.u32 %s9006_s27, 4  ;;  %s356_s24 = sshll.u32 %s9007_s25, 4  ;;  %s330_s16 = int_to_ptr.vmem [resolvable:$true] %s329_s16  ;;  %s357_s24 = int_to_ptr.vmem [resolvable:$true] %s356_s24 }
  0xd3   :  { %s8618_s18 = scalar_lea.hbm %s9211_s12, 2048 }
  0xd4   :  { %p8619_p8 = scmp.ne.s32.totalorder %s9211_s12, %s8618_s18  ;;  %p8622_p9 = scmp.lt.u32.totalorder %s8618_s18, %s9211_s12 }
  0xd6   :  { %p8624_p10 = pnand %p8622_p9, %p8619_p8 }
  0xd8   :  { %8627 = shalt.err (!%p8624_p10)
}
  0xd9   :  { %s8628_s22 = scalar_lea.vmem %s330_s16, 2048  ;;  %p8633_p12 = scmp.lt.s32.totalorder %s330_s16, %s330_s16 }
  0xda   :  { %p8629_p11 = scmp.ne.s32.totalorder %s330_s16, %s8628_s22  ;;  %p8634_p13 = scmp.lt.s32.totalorder %s8628_s22, %s8628_s22 }
  0xdc   :  { %p8635_p0 = por %p8634_p13, %p8633_p12 }
  0xde   :  { %p8636_p1 = pnand %p8635_p0, %p8629_p11 }
  0xe0   :  { %8639 = shalt.err (!%p8636_p1)
}
  0xe1   :  { %335 = dma.hbm_to_vmem [thread:$0]  %s9211_s12, 2048, %s330_s16, [#allocation30], %s8995_s28, %s8995_s28, %s8996_s6  }
  0xe2   :  { %s8640_s5 = scalar_lea.hbm %s9226_s21, 16 }
  0xe3   :  { %p8641_p2 = scmp.ne.s32.totalorder %s9226_s21, %s8640_s5  ;;  %p8644_p3 = scmp.lt.u32.totalorder %s8640_s5, %s9226_s21 }
  0xe5   :  { %p8646_p4 = pnand %p8644_p3, %p8641_p2 }
  0xe7   :  { %8649 = shalt.err (!%p8646_p4)
}
  0xe8   :  { %s8650_s23 = scalar_lea.vmem %s357_s24, 16  ;;  %s8654_s9 = scalar_lea.vmem %s357_s24, 32 }
  0xe9   :  { %p8651_p5 = scmp.ne.s32.totalorder %s357_s24, %s8650_s23  ;;  %p8655_p6 = scmp.lt.s32.totalorder %s357_s24, %s357_s24 }
  0xea   :  { %p8656_p7 = scmp.lt.s32.totalorder %s8654_s9, %s8650_s23 }
  0xec   :  { %p8657_p8 = por %p8656_p7, %p8655_p6 }
  0xee   :  { %p8658_p9 = pnand %p8657_p8, %p8651_p5 }
  0xf0   :  { %8661 = shalt.err (!%p8658_p9)
}
  0xf1   :  { %359 = dma.hbm_to_vmem [thread:$0]  %s9226_s21, 16, %s357_s24, [#allocation33]  }
  0xf2   :  { %s9008_s26 = smov [#allocation2]   ;;  %s9009_s28 = smov [#allocation7]  }
  0xf3   :  { %s123_s12 = sshll.u32 %s9008_s26, 4  ;;  %s145_s6 = sshll.u32 %s9009_s28, 4  ;;  %s124_s12 = int_to_ptr.vmem [resolvable:$true] %s123_s12  ;;  %s9304_s6 = int_to_ptr.vmem [resolvable:$true] %s145_s6 }
  0xf4   :  { %s8662_s1 = scalar_lea.hbm %s9086_s19, 4096 }
  0xf5   :  { %p8663_p10 = scmp.ne.s32.totalorder %s9086_s19, %s8662_s1  ;;  %p8666_p11 = scmp.lt.u32.totalorder %s8662_s1, %s9086_s19 }
  0xf7   :  { %p8668_p12 = pnand %p8666_p11, %p8663_p10 }
  0xf9   :  { %8671 = shalt.err (!%p8668_p12)
}
  0xfa   :  { %s8672_s2 = scalar_lea.vmem %s124_s12, 4096  ;;  %p8677_p0 = scmp.lt.s32.totalorder %s124_s12, %s124_s12 }
  0xfb   :  { %p8673_p13 = scmp.ne.s32.totalorder %s124_s12, %s8672_s2  ;;  %p8678_p1 = scmp.lt.s32.totalorder %s8672_s2, %s8672_s2 }
  0xfd   :  { %p8679_p2 = por %p8678_p1, %p8677_p0 }
  0xff   :  { %p8680_p3 = pnand %p8679_p2, %p8673_p13 }
 0x101   :  { %8683 = shalt.err (!%p8680_p3)
}
 0x102   :  { %129 = dma.hbm_to_vmem [thread:$0]  %s9086_s19, 4096, %s124_s12, [#allocation3], %s9004_s8, %s9004_s8, %s9005_s11  }
 0x103   :  { %s8684_s21 = scalar_lea.hbm %s9096_s30, 64 }
 0x104   :  { %p8685_p4 = scmp.ne.s32.totalorder %s9096_s30, %s8684_s21  ;;  %p8688_p5 = scmp.lt.u32.totalorder %s8684_s21, %s9096_s30 }
 0x106   :  { %p8690_p6 = pnand %p8688_p5, %p8685_p4 }
 0x108   :  { %8693 = shalt.err (!%p8690_p6)
}
 0x109   :  { %s8694_s0 = scalar_lea.vmem %s9304_s6, 64  ;;  %p8699_p8 = scmp.lt.s32.totalorder %s9304_s6, %s9304_s6 }
 0x10a   :  { %p8695_p7 = scmp.ne.s32.totalorder %s9304_s6, %s8694_s0  ;;  %p8700_p9 = scmp.lt.s32.totalorder %s8694_s0, %s8694_s0 }
 0x10c   :  { %p8701_p10 = por %p8700_p9, %p8699_p8 }
 0x10e   :  { %p8702_p11 = pnand %p8701_p10, %p8695_p7 }
 0x110   :  { %8705 = shalt.err (!%p8702_p11)
}
 0x111   :  { %s9010_s7 = smov 32   ;;  %s9011_s19 = smov 2  }
 0x112   :  { %151 = dma.hbm_to_vmem [thread:$0]  %s9096_s30, 64, %s9304_s6, [#allocation6], %s9010_s7, %s9010_s7, %s9011_s19  }
 0x113   :  { %s9012_s10 = smov [#allocation10]   ;;  %s9013_s15 = smov [#allocation13]  }
 0x114   :  { %s175_s17 = sshll.u32 %s9012_s10, 4  ;;  %s201_s27 = sshll.u32 %s9013_s15, 4  ;;  %s176_s17 = int_to_ptr.vmem [resolvable:$true] %s175_s17  ;;  %s9324_s27 = int_to_ptr.vmem [resolvable:$true] %s201_s27 }
 0x115   :  { %s8706_s16 = scalar_lea.hbm %s9121_s4, 64 }
 0x116   :  { %p8707_p12 = scmp.ne.s32.totalorder %s9121_s4, %s8706_s16  ;;  %p8710_p13 = scmp.lt.u32.totalorder %s8706_s16, %s9121_s4 }
 0x118   :  { %p8712_p0 = pnand %p8710_p13, %p8707_p12 }
 0x11a   :  { %8715 = shalt.err (!%p8712_p0)
}
 0x11b   :  { %s8716_s25 = scalar_lea.vmem %s176_s17, 64  ;;  %p8721_p2 = scmp.lt.s32.totalorder %s176_s17, %s176_s17 }
 0x11c   :  { %p8717_p1 = scmp.ne.s32.totalorder %s176_s17, %s8716_s25  ;;  %p8722_p3 = scmp.lt.s32.totalorder %s8716_s25, %s8716_s25 }
 0x11e   :  { %p8723_p4 = por %p8722_p3, %p8721_p2 }
 0x120   :  { %p8724_p5 = pnand %p8723_p4, %p8717_p1 }
 0x122   :  { %8727 = shalt.err (!%p8724_p5)
}
 0x123   :  { %181 = dma.hbm_to_vmem [thread:$0]  %s9121_s4, 64, %s176_s17, [#allocation9], %s9010_s7, %s9010_s7, %s9011_s19  }
 0x124   :  { %s8728_s30 = scalar_lea.hbm %s9136_s13, 4096 }
 0x125   :  { %p8729_p6 = scmp.ne.s32.totalorder %s9136_s13, %s8728_s30  ;;  %p8732_p7 = scmp.lt.u32.totalorder %s8728_s30, %s9136_s13 }
 0x127   :  { %p8734_p8 = pnand %p8732_p7, %p8729_p6 }
 0x129   :  { %8737 = shalt.err (!%p8734_p8)
}
 0x12a   :  { %s8738_s24 = scalar_lea.vmem %s9324_s27, 4096  ;;  %p8743_p10 = scmp.lt.s32.totalorder %s9324_s27, %s9324_s27 }
 0x12b   :  { %p8739_p9 = scmp.ne.s32.totalorder %s9324_s27, %s8738_s24  ;;  %p8744_p11 = scmp.lt.s32.totalorder %s8738_s24, %s8738_s24 }
 0x12d   :  { %p8745_p12 = por %p8744_p11, %p8743_p10 }
 0x12f   :  { %p8746_p13 = pnand %p8745_p12, %p8739_p9 }
 0x131   :  { %8749 = shalt.err (!%p8746_p13)
}
 0x132   :  { %207 = dma.hbm_to_vmem [thread:$0]  %s9136_s13, 4096, %s9324_s27, [#allocation12], %s9004_s8, %s9004_s8, %s9005_s11  }
 0x133   :  { %s9014_s4 = smov [#allocation16]   ;;  %s9015_s22 = smov [#allocation19]  }
 0x134   :  { %s225_s18 = sshll.u32 %s9014_s4, 4  ;;  %s248_s5 = sshll.u32 %s9015_s22, 4  ;;  %s226_s18 = int_to_ptr.vmem [resolvable:$true] %s225_s18  ;;  %s249_s5 = int_to_ptr.vmem [resolvable:$true] %s248_s5 }
 0x135   :  { %s8750_s23 = scalar_lea.hbm %s9151_s29, 1024 }
 0x136   :  { %p8751_p0 = scmp.ne.s32.totalorder %s9151_s29, %s8750_s23  ;;  %p8754_p1 = scmp.lt.u32.totalorder %s8750_s23, %s9151_s29 }
 0x138   :  { %p8756_p2 = pnand %p8754_p1, %p8751_p0 }
 0x13a   :  { %8759 = shalt.err (!%p8756_p2)
}
 0x13b   :  { %s8760_s9 = scalar_lea.vmem %s226_s18, 1024  ;;  %p8765_p4 = scmp.lt.s32.totalorder %s226_s18, %s226_s18 }
 0x13c   :  { %p8761_p3 = scmp.ne.s32.totalorder %s226_s18, %s8760_s9  ;;  %p8766_p5 = scmp.lt.s32.totalorder %s8760_s9, %s8760_s9 }
 0x13e   :  { %p8767_p6 = por %p8766_p5, %p8765_p4 }
 0x140   :  { %p8768_p7 = pnand %p8767_p6, %p8761_p3 }
 0x142   :  { %8771 = shalt.err (!%p8768_p7)
}
 0x143   :  { %s10355_s13 = sld [smem:[#allocation63_spill]] }
 0x144   :  { %231 = dma.hbm_to_vmem [thread:$0]  %s9151_s29, 1024, %s226_s18, [#allocation15], %s9004_s8, %s9004_s8, %s9005_s11  }
 0x149   :  { %s8772_s26 = scalar_lea.hbm %s10355_s13, 32 }
 0x14a   :  { %p8773_p8 = scmp.ne.s32.totalorder %s10355_s13, %s8772_s26  ;;  %p8776_p9 = scmp.lt.u32.totalorder %s8772_s26, %s10355_s13 }
 0x14c   :  { %p8778_p10 = pnand %p8776_p9, %p8773_p8 }
 0x14e   :  { %8781 = shalt.err (!%p8778_p10)
}
 0x14f   :  { %s8782_s12 = scalar_lea.vmem %s249_s5, 32  ;;  %p8787_p12 = scmp.lt.s32.totalorder %s249_s5, %s249_s5 }
 0x150   :  { %p8783_p11 = scmp.ne.s32.totalorder %s249_s5, %s8782_s12  ;;  %p8788_p13 = scmp.lt.s32.totalorder %s8782_s12, %s8782_s12 }
 0x152   :  { %p8789_p0 = por %p8788_p13, %p8787_p12 }
 0x154   :  { %p8790_p1 = pnand %p8789_p0, %p8783_p11 }
 0x156   :  { %8793 = shalt.err (!%p8790_p1)
}
 0x157   :  { %s10356_s28 = sld [smem:[#allocation64_spill]]  ;;  %s9016_s6 = smov [#allocation22]  }
 0x158   :  { %251 = dma.hbm_to_vmem [thread:$0]  %s10355_s13, 32, %s249_s5, [#allocation18]  }
 0x159   :  { %s270_s1 = sshll.u32 %s9016_s6, 4  ;;  %s9017_s29 = smov [#allocation25]   ;;  %s271_s1 = int_to_ptr.vmem [resolvable:$true] %s270_s1 }
 0x15a   :  { %s292_s2 = sshll.u32 %s9017_s29, 4  ;;  %s293_s2 = int_to_ptr.vmem [resolvable:$true] %s292_s2 }
 0x15d   :  { %s8794_s21 = scalar_lea.hbm %s10356_s28, 64 }
 0x15e   :  { %p8795_p2 = scmp.ne.s32.totalorder %s10356_s28, %s8794_s21  ;;  %p8798_p3 = scmp.lt.u32.totalorder %s8794_s21, %s10356_s28 }
 0x160   :  { %p8800_p4 = pnand %p8798_p3, %p8795_p2 }
 0x162   :  { %8803 = shalt.err (!%p8800_p4)
}
 0x163   :  { %s8804_s0 = scalar_lea.vmem %s271_s1, 64  ;;  %p8809_p6 = scmp.lt.s32.totalorder %s271_s1, %s271_s1 }
 0x164   :  { %p8805_p5 = scmp.ne.s32.totalorder %s271_s1, %s8804_s0  ;;  %p8810_p7 = scmp.lt.s32.totalorder %s8804_s0, %s8804_s0 }
 0x166   :  { %p8811_p8 = por %p8810_p7, %p8809_p6 }
 0x168   :  { %p8812_p9 = pnand %p8811_p8, %p8805_p5 }
 0x16a   :  { %8815 = shalt.err (!%p8812_p9)
}
 0x16b   :  { %s10357_s19 = sld [smem:[#allocation65_spill]] }
 0x16c   :  { %273 = dma.hbm_to_vmem [thread:$0]  %s10356_s28, 64, %s271_s1, [#allocation21]  }
 0x171   :  { %s8816_s10 = scalar_lea.hbm %s10357_s19, 16 }
 0x172   :  { %p8817_p10 = scmp.ne.s32.totalorder %s10357_s19, %s8816_s10  ;;  %p8820_p11 = scmp.lt.u32.totalorder %s8816_s10, %s10357_s19 }
 0x174   :  { %p8822_p12 = pnand %p8820_p11, %p8817_p10 }
 0x176   :  { %8825 = shalt.err (!%p8822_p12)
}
 0x177   :  { %s8826_s17 = scalar_lea.vmem %s293_s2, 16  ;;  %s8830_s15 = scalar_lea.vmem %s293_s2, 32 }
 0x178   :  { %p8827_p13 = scmp.ne.s32.totalorder %s293_s2, %s8826_s17  ;;  %p8831_p0 = scmp.lt.s32.totalorder %s293_s2, %s293_s2 }
 0x179   :  { %p8832_p1 = scmp.lt.s32.totalorder %s8830_s15, %s8826_s17 }
 0x17b   :  { %p8833_p2 = por %p8832_p1, %p8831_p0 }
 0x17d   :  { %p8834_p3 = pnand %p8833_p2, %p8827_p13 }
 0x17f   :  { %8837 = shalt.err (!%p8834_p3)
}
 0x180   :  { %s10358_s27 = sld [smem:[#allocation68_spill]]  ;;  %s9018_s16 = smov [#allocation28]  }
 0x181   :  { %295 = dma.hbm_to_vmem [thread:$0]  %s10357_s19, 16, %s293_s2, [#allocation24]  }
 0x182   :  { %s318_s25 = sshll.u32 %s9018_s16, 4  ;;  %s9019_s30 = smov [#allocation31]   ;;  %s319_s25 = int_to_ptr.vmem [resolvable:$true] %s318_s25 }
 0x183   :  { %s343_s24 = sshll.u32 %s9019_s30, 4  ;;  %s9363_s24 = int_to_ptr.vmem [resolvable:$true] %s343_s24 }
 0x186   :  { %s8838_s4 = scalar_lea.hbm %s10358_s27, 16 }
 0x187   :  { %p8839_p4 = scmp.ne.s32.totalorder %s10358_s27, %s8838_s4  ;;  %p8842_p5 = scmp.lt.u32.totalorder %s8838_s4, %s10358_s27 }
 0x189   :  { %p8844_p6 = pnand %p8842_p5, %p8839_p4 }
 0x18b   :  { %8847 = shalt.err (!%p8844_p6)
}
 0x18c   :  { %s8848_s18 = scalar_lea.vmem %s319_s25, 16  ;;  %s8852_s22 = scalar_lea.vmem %s319_s25, 32 }
 0x18d   :  { %p8849_p7 = scmp.ne.s32.totalorder %s319_s25, %s8848_s18  ;;  %p8853_p8 = scmp.lt.s32.totalorder %s319_s25, %s319_s25 }
 0x18e   :  { %p8854_p9 = scmp.lt.s32.totalorder %s8852_s22, %s8848_s18 }
 0x190   :  { %p8855_p10 = por %p8854_p9, %p8853_p8 }
 0x192   :  { %p8856_p11 = pnand %p8855_p10, %p8849_p7 }
 0x194   :  { %8859 = shalt.err (!%p8856_p11)
}
 0x195   :  { %321 = dma.hbm_to_vmem [thread:$0]  %s10358_s27, 16, %s319_s25, [#allocation27]  }
 0x196   :  { %s8860_s5 = scalar_lea.hbm %s9221_s20, 2048 }
 0x197   :  { %p8861_p12 = scmp.ne.s32.totalorder %s9221_s20, %s8860_s5  ;;  %p8864_p13 = scmp.lt.u32.totalorder %s8860_s5, %s9221_s20 }
 0x199   :  { %p8866_p0 = pnand %p8864_p13, %p8861_p12 }
 0x19b   :  { %8869 = shalt.err (!%p8866_p0)
}
 0x19c   :  { %s8870_s23 = scalar_lea.vmem %s9363_s24, 2048  ;;  %p8875_p2 = scmp.lt.s32.totalorder %s9363_s24, %s9363_s24 }
 0x19d   :  { %p8871_p1 = scmp.ne.s32.totalorder %s9363_s24, %s8870_s23  ;;  %p8876_p3 = scmp.lt.s32.totalorder %s8870_s23, %s8870_s23 }
 0x19f   :  { %p8877_p4 = por %p8876_p3, %p8875_p2 }
 0x1a1   :  { %p8878_p5 = pnand %p8877_p4, %p8871_p1 }
 0x1a3   :  { %8881 = shalt.err (!%p8878_p5)
}
 0x1a4   :  { %349 = dma.hbm_to_vmem [thread:$0]  %s9221_s20, 2048, %s9363_s24, [#allocation30], %s9004_s8, %s9004_s8, %s9005_s11  }
 0x1a5   :  { %s9020_s9 = smov [#allocation34]   ;;  %s8882_s26 = scalar_lea.hbm %s9231_s3, 32 }
 0x1a6   :  { %s366_s13 = sshll.u32 %s9020_s9, 4  ;;  %p8883_p6 = scmp.ne.s32.totalorder %s9231_s3, %s8882_s26  ;;  %s367_s13 = int_to_ptr.vmem [resolvable:$true] %s366_s13 }
 0x1a7   :  { %p8886_p7 = scmp.lt.u32.totalorder %s8882_s26, %s9231_s3 }
 0x1a9   :  { %p8888_p8 = pnand %p8886_p7, %p8883_p6 }
 0x1ab   :  { %8891 = shalt.err (!%p8888_p8)
}
 0x1ac   :  { %s8892_s12 = scalar_lea.vmem %s367_s13, 32  ;;  %p8897_p10 = scmp.lt.s32.totalorder %s367_s13, %s367_s13 }
 0x1ad   :  { %p8893_p9 = scmp.ne.s32.totalorder %s367_s13, %s8892_s12  ;;  %p8898_p11 = scmp.lt.s32.totalorder %s8892_s12, %s8892_s12 }
 0x1af   :  { %p8899_p12 = por %p8898_p11, %p8897_p10 }
 0x1b1   :  { %p8900_p13 = pnand %p8899_p12, %p8893_p9 }
 0x1b3   :  { %8903 = shalt.err (!%p8900_p13)
}
 0x1b4   :  { %369 = dma.hbm_to_vmem [thread:$0]  %s9231_s3, 32, %s367_s13, [#allocation33]  }
 0x1b5   :  { %8926 = dma.done.wait [#allocation3], 4096  }
 0x1b6   :  { %8927 = vsyncadd [#allocation3], 4294963200 }
 0x1b7   :  { %8928 = dma.done.wait [#allocation6], 96  }
 0x1b8   :  { %8929 = vsyncadd [#allocation6], 4294967200 }
 0x1b9   :  { %8930 = dma.done.wait [#allocation9], 6208  }
 0x1ba   :  { %8931 = vsyncadd [#allocation9], 4294961088 }
 0x1bb   :  { %8932 = dma.done.wait [#allocation12], 8192  }
 0x1bc   :  { %8933 = vsyncadd [#allocation12], 4294959104 }
 0x1bd   :  { %8934 = dma.done.wait [#allocation15], 1056  }
 0x1be   :  { %8935 = vsyncadd [#allocation15], 4294966240 }
 0x1bf   :  { %8936 = dma.done.wait [#allocation18], 48  }
 0x1c0   :  { %8937 = vsyncadd [#allocation18], 4294967248 }
 0x1c1   :  { %8938 = dma.done.wait [#allocation21], 4160  }
 0x1c2   :  { %8939 = vsyncadd [#allocation21], 4294963136 }
 0x1c3   :  { %8940 = dma.done.wait [#allocation24], 1040  }
 0x1c4   :  { %8941 = vsyncadd [#allocation24], 4294966256 }
 0x1c5   :  { %8942 = dma.done.wait [#allocation27], 1040  }
 0x1c6   :  { %8943 = vsyncadd [#allocation27], 4294966256 }
 0x1c7   :  { %8944 = dma.done.wait [#allocation30], 4096  }
 0x1c8   :  { %8945 = vsyncadd [#allocation30], 4294963200 }
 0x1c9   :  { %8946 = dma.done.wait [#allocation33], 48  }
 0x1ca   :  { %8947 = vsyncadd [#allocation33], 4294967248  ;;  %s10359_s3 = sld [smem:[#allocation48_spill]]  ;;  %v9021_v0 = vmov 0   ;;  %v7816_v3 = vld [vmem:[#allocation2 + $0x40] sm:$0xff]   ;;  %v7820_v7 = vld [vmem:[#allocation2 + $0x48] sm:$0xff]   ;;  %v536_v35 = vlaneseq }
 0x1cb   :  { %7652 = vset.pattern.permute.xlu0 %v9021_v0  ;;  %v7817_v4 = vld [vmem:[#allocation2 + $0xc0] sm:$0xff]   ;;  %6989 = vmatprep.subr.bf16.mxu0 %v7816_v3  ;;  %v7821_v8 = vld [vmem:[#allocation2 + $0xc8] sm:$0xff]   ;;  %v7824_v11 = vld [vmem:[#allocation2 + $0x50] sm:$0xff]   ;;  %v9022_v42 = vmov 1.0|1.0   ;;  %vm9024_vm12 = vmmov 0  }
 0x1cc   :  { %v7818_v5 = vld [vmem:[#allocation2] sm:$0xff]   ;;  %7011 = vmatprep.subr.bf16.mxu1 %v7817_v4  ;;  %v7822_v9 = vld [vmem:[#allocation2 + $0x8] sm:$0xff]   ;;  %v7825_v12 = vld [vmem:[#allocation2 + $0xd0] sm:$0xff]   ;;  %v9388_v36 = vand.u32 127, %v536_v35  ;;  %s10360_s20 = sld [smem:[#allocation58_spill]]  ;;  %s10361_s11 = sld [smem:[#allocation52_spill]] }
 0x1cd   :  { %v7819_v6 = vld [vmem:[#allocation2 + $0x80] sm:$0xff]   ;;  %6990 = vmatpush3.bf16.msra.mxu0 %v7818_v5  ;;  %v7823_v10 = vld [vmem:[#allocation2 + $0x88] sm:$0xff]   ;;  %v7826_v13 = vld [vmem:[#allocation2 + $0x10] sm:$0xff]   ;;  %vm1234_vm13 = vcmask 261120   ;;  %vm1279_vm14 = vcmask 130048   ;;  %s9025_s28 = smov 96  }
 0x1ce   :  { %7012 = vmatpush3.bf16.msra.mxu1 %v7819_v6  ;;  %6991 = vmatprep.subr.bf16.mxu0 %v7820_v7  ;;  %v7827_v14 = vld [vmem:[#allocation2 + $0x90] sm:$0xff]   ;;  %v7828_v15 = vld [vmem:[#allocation2 + $0x58] sm:$0xff]   ;;  %v7832_v19 = vld [vmem:[#allocation2 + $0x60] sm:$0xff]   ;;  %v9391_v38 = vadd.s32 128, %v9388_v36  ;;  %v9394_v39 = vadd.s32 384, %v9388_v36  ;;  %v9397_v41 = vadd.s32 256, %v9388_v36 }
 0x1cf   :  { %7013 = vmatprep.subr.bf16.mxu1 %v7821_v8  ;;  %v7829_v16 = vld [vmem:[#allocation2 + $0xd8] sm:$0xff]   ;;  %v7833_v20 = vld [vmem:[#allocation2 + $0xe0] sm:$0xff]   ;;  %v7836_v23 = vld [vmem:[#allocation2 + $0x68] sm:$0xff]   ;;  %v9412_v7 = vshrl.u32 %v536_v35, 7  ;;  %s10362_s6 = sld [smem:[#allocation59_spill]]  ;;  %s10363_s1 = sld [smem:[#allocation60_spill]] }
 0x1d0   :  { %v534_v1 = vld [vmem:[%s10359_s3] sm:$0xff]  ;;  %v535_v2 = vld [vmem:[%s10359_s3 + $0x8] sm:$0xff]  ;;  %v7830_v17 = vld [vmem:[#allocation2 + $0x18] sm:$0xff]   ;;  %vm1845_vm15 = vcmask 523264   ;;  %s10364_s29 = sld [smem:[#allocation61_spill]]  ;;  %s10365_s2 = sld [smem:[#allocation62_spill]] }
 0x1d1   :  { %542 = vperm.xlu0 %7652, %v534_v1   ;;  %6992 = vmatpush3.bf16.msra.mxu0 %v7822_v9  ;;  %v7831_v18 = vld [vmem:[#allocation2 + $0x98] sm:$0xff]   ;;  %v7834_v21 = vld [vmem:[#allocation2 + $0x20] sm:$0xff]   ;;  %v7837_v24 = vld [vmem:[#allocation2 + $0xe8] sm:$0xff]   ;;  %v9415_v9 = vsub.s32 0, %v9412_v7  ;;  %s10366_s21 = sld [smem:[#allocation55_spill]]  ;;  %s10367_s0 = sld [smem:[#allocation49_spill]] }
 0x1d2   :  { %7014 = vmatpush3.bf16.msra.mxu1 %v7823_v10  ;;  %6993 = vmatprep.subr.bf16.mxu0 %v7824_v11  ;;  %v7835_v22 = vld [vmem:[#allocation2 + $0xa0] sm:$0xff]   ;;  %v7838_v25 = vld [vmem:[#allocation2 + $0x28] sm:$0xff]   ;;  %v7840_v27 = vld [vmem:[#allocation2 + $0x70] sm:$0xff]   ;;  %v9418_v11 = vsub.s32 1, %v9412_v7  ;;  %s10368_s19 = sld [smem:[#allocation54_spill]]  ;;  %s10369_s10 = sld [smem:[#allocation66_spill]] }
 0x1d3   :  { %7015 = vmatprep.subr.bf16.mxu1 %v7825_v12  ;;  %v7839_v26 = vld [vmem:[#allocation2 + $0xa8] sm:$0xff]   ;;  %v7841_v28 = vld [vmem:[#allocation2 + $0xf0] sm:$0xff]   ;;  %v7844_v31 = vld [vmem:[#allocation2 + $0x78] sm:$0xff]   ;;  %s10370_s17 = sld [smem:[#allocation67_spill]]  ;;  %s10371_s15 = sld [smem:[#allocation53_spill]] }
 0x1d4   :  { %v7842_v29 = vld [vmem:[#allocation2 + $0x30] sm:$0xff]   ;;  %v7845_v32 = vld [vmem:[#allocation2 + $0xf8] sm:$0xff]   ;;  %v434_v10 = vld [vmem:[#allocation5] sm:$0x3]  ;;  %s10374_s27 = sld [smem:[#allocation56_spill]]  ;;  %s10375_s16 = sld [smem:[#allocation50_spill]] }
 0x1d5   :  { %545 = vperm.xlu0 %7652, %v535_v2   ;;  %6994 = vmatpush3.bf16.msra.mxu0 %v7826_v13  ;;  %v7843_v30 = vld [vmem:[#allocation2 + $0xb0] sm:$0xff]   ;;  %v7846_v33 = vld [vmem:[#allocation2 + $0x38] sm:$0xff]   ;;  %v9421_v12 = vrot.slane %v434_v10, %v9415_v9  ;;  %s10376_s25 = sld [smem:[#allocation57_spill]]  ;;  %s10377_s30 = sld [smem:[#allocation51_spill]] }
 0x1d6   :  { %7016 = vmatpush3.bf16.msra.mxu1 %v7827_v14  ;;  %6995 = vmatprep.subr.bf16.mxu0 %v7828_v15  ;;  %v7847_v34 = vld [vmem:[#allocation2 + $0xb8] sm:$0xff]   ;;  %v9424_v15 = vrot.slane %v434_v10, %v9418_v11  ;;  %s9027_s24 = smov [#allocation35]  }
 0x1d7   :  { %7017 = vmatprep.subr.bf16.mxu1 %v7829_v16  ;;  %s6577_s4 = sshll.u32 %s9027_s24, 4  ;;  %s6578_s4 = int_to_ptr.vmem [resolvable:$true] %s6577_s4 }
 0x1d8   :  { %s8904_s18 = scalar_lea.vmem %s6578_s4, 16  ;;  %s8908_s22 = scalar_lea.vmem %s6578_s4, 32 }
 0x1d9   :  { %6996 = vmatpush3.bf16.msra.mxu0 %v7830_v17  ;;  %p8905_p0 = scmp.ne.s32.totalorder %s6578_s4, %s8904_s18  ;;  %p8909_p1 = scmp.lt.s32.totalorder %s6578_s4, %s6578_s4 }
 0x1da   :  { %7018 = vmatpush3.bf16.msra.mxu1 %v7831_v18  ;;  %6997 = vmatprep.subr.bf16.mxu0 %v7832_v19  ;;  %p8910_p2 = scmp.lt.s32.totalorder %s8908_s22, %s8904_s18 }
 0x1db   :  { %7019 = vmatprep.subr.bf16.mxu1 %v7833_v20 }
 0x1dc   :  { %p8911_p3 = por %p8910_p2, %p8909_p1 }
 0x1dd   :  { %6998 = vmatpush3.bf16.msra.mxu0 %v7834_v21 }
 0x1de   :  { %7020 = vmatpush3.bf16.msra.mxu1 %v7835_v22  ;;  %6999 = vmatprep.subr.bf16.mxu0 %v7836_v23  ;;  %v7848_v22 = vld [vmem:[#allocation8] ss:$12 sps:$4 sm:$0xff]   ;;  %v7850_v23 = vld [vmem:[#allocation8 + $0x4] ss:$12 sps:$4 sm:$0xff]   ;;  %p8912_p4 = pnand %p8911_p3, %p8905_p0 }
 0x1df   :  { %7021 = vmatprep.subr.bf16.mxu1 %v7837_v24  ;;  %v9023_v24 = vmov 0.0  }
 0x1e1   :  { %7000 = vmatpush3.bf16.msra.mxu0 %v7838_v25  ;;  %v7851_v25 = vld [vmem:[#allocation8 + $0x8] ss:$12 sps:$4 sm:$0xff]  }
 0x1e2   :  { %7022 = vmatpush3.bf16.msra.mxu1 %v7839_v26  ;;  %7001 = vmatprep.subr.bf16.mxu0 %v7840_v27  ;;  %v7854_v26 = vld [vmem:[#allocation8 + $0x1c] ss:$12 sps:$4 sm:$0xff]   ;;  %v7852_v27 = vld [vmem:[#allocation8 + $0x18] ss:$12 sps:$4 sm:$0xff]  }
 0x1e3   :  { %7023 = vmatprep.subr.bf16.mxu1 %v7841_v28 }
 0x1e5   :  { %7002 = vmatpush3.bf16.msra.mxu0 %v7842_v29 }
 0x1e6   :  { %7024 = vmatpush3.bf16.msra.mxu1 %v7843_v30  ;;  %7003 = vmatprep.subr.bf16.mxu0 %v7844_v31 }
 0x1e7   :  { %7025 = vmatprep.subr.bf16.mxu1 %v7845_v32 }
 0x1e9   :  { %7004 = vmatpush3.bf16.msra.mxu0 %v7846_v33 }
 0x1ea   :  { %7026 = vmatpush3.bf16.msra.mxu1 %v7847_v34  ;;  %1097 = vmatprep.subr.bf16.mxu0 %v7850_v23  ;;  %v9468_v23 = vsub.s32 2, %v9412_v7 }
 0x1eb   :  { %7266 = vmatprep.subr.bf16.mxu1 %v9023_v24 }
 0x250   :  { %v543_v37 = vpop.permute.xlu0 %542 }
 0x251   :  { %vm548_vm0 = vcmp.eq.s32.totalorder %v9391_v38, %v543_v37  ;;  %vm550_vm5 = vcmp.eq.s32.totalorder %v9394_v39, %v543_v37  ;;  %vm547_vm8 = vcmp.eq.s32.totalorder %v9388_v36, %v543_v37  ;;  %vm549_vm10 = vcmp.eq.s32.totalorder %v9397_v41, %v543_v37  ;;  %v7855_v37 = vld [vmem:[#allocation8 + $0x20] ss:$12 sps:$4 sm:$0xff]  }
 0x254   :  { %v546_v40 = vpop.permute.xlu0 %545 }
 0x255   :  { %vm552_vm1 = vcmp.eq.s32.totalorder %v9391_v38, %v546_v40  ;;  %vm554_vm2 = vcmp.eq.s32.totalorder %v9394_v39, %v546_v40  ;;  %vm551_vm3 = vcmp.eq.s32.totalorder %v9388_v36, %v546_v40  ;;  %vm553_vm6 = vcmp.eq.s32.totalorder %v9397_v41, %v546_v40  ;;  %v7858_v40 = vld [vmem:[#allocation8 + $0x34] ss:$12 sps:$4 sm:$0xff]  }
 0x256   :  { %vm6676_vm4 = vmpackc.low %vm552_vm1, %vm548_vm0  ;;  %vm1848_vm0 = vcmask 785408  }
 0x257   :  { %6677 = vmatprep.mubr.msk.bf16.mxu0 %vm6676_vm4, %v9022_v42  ;;  %vm6680_vm7 = vmpackc.low %vm554_vm2, %vm550_vm5 }
 0x258   :  { %6681 = vmatprep.mubr.msk.bf16.mxu1 %vm6680_vm7, %v9022_v42  ;;  %vm6678_vm9 = vmpackc.low %vm551_vm3, %vm547_vm8 }
 0x259   :  { %6679 = vmatmul.mubr.msk.bf16.vlgmr.msra.gmra.mrb[0].mxu0 %vm6678_vm9, %v9022_v42  ;;  %vm6682_vm11 = vmpackc.low %vm553_vm6, %vm549_vm10 }
 0x25a   :  { %6683 = vmatmul.mubr.msk.bf16.vlgmr.msra.gmra.mrb[0].mxu1 %vm6682_vm11, %v9022_v42  ;;  %1129 = vmatprep.mubr.bf16.mxu0 %v9021_v0 }
 0x25b   :  { %1098 = vmatpush1.bf16.msra.mxu0 %v7848_v22  ;;  %7267 = vmatpush3.bf16.msra.mxu1 %v7851_v25  ;;  %v951_v22 = vld [vmem:[%s10360_s20] sm:$0x7] }
 0x25c   :  { %1099 = vmatprep.subr.bf16.mxu0 %v7854_v26  ;;  %7268 = vmatprep.subr.bf16.mxu1 %v9023_v24  ;;  %v961_v25 = vrot.slane %v951_v22, %v9418_v11  ;;  %v957_v26 = vrot.slane %v951_v22, %v9415_v9 }
 0x25d   :  { %7282 = vmatprep.mubr.msk.bf16.mxu1 %vm9024_vm12, %v9023_v24 }
 0x25f   :  { %1100 = vmatpush1.bf16.msra.mxu0 %v7852_v27  ;;  %7269 = vmatpush3.bf16.msra.mxu1 %v7855_v37  ;;  %v965_v27 = vrot.slane %v951_v22, %v9468_v23 }
 0x260   :  { %7270 = vmatprep.subr.bf16.mxu1 %v9023_v24  ;;  %1101 = vmatprep.subr.bf16.mxu0 %v7858_v40 }
 0x32c   :  { %v7005_v43 = vpop.f32.mrb[0].mxu0 }
 0x32d   :  { %v7027_v44 = vpop.f32.mrb[0].mxu1  ;;  %v7006_v45 = vpop.f32.mrb[1].mxu0 }
 0x32e   :  { %v7007_v46 = vadd.f32 %v7006_v45, %v7005_v43  ;;  %v7028_v47 = vpop.f32.mrb[1].mxu1  ;;  %v7008_v48 = vpop.f32.mrb[2].mxu0  ;;  %v7856_v43 = vld [vmem:[#allocation8 + $0x30] ss:$12 sps:$4 sm:$0xff]   ;;  %v7862_v45 = vld [vmem:[#allocation8 + $0x4c] ss:$12 sps:$4 sm:$0xff]  }
 0x32f   :  { %v7029_v49 = vadd.f32 %v7028_v47, %v7027_v44  ;;  %v7030_v50 = vpop.f32.mrb[2].mxu1  ;;  %v7009_v51 = vpop.f32.mrb[3].mxu0  ;;  %v7859_v44 = vld [vmem:[#allocation8 + $0x38] ss:$12 sps:$4 sm:$0xff]   ;;  %1102 = vmatpush1.bf16.msra.mxu0 %v7856_v43  ;;  %v7863_v47 = vld [vmem:[#allocation8 + $0x50] ss:$12 sps:$4 sm:$0xff]  }
 0x330   :  { %v7010_v52 = vadd.f32 %v7009_v51, %v7008_v48  ;;  %v7031_v53 = vpop.f32.mrb[3].mxu1  ;;  %7271 = vmatpush3.bf16.msra.mxu1 %v7859_v44  ;;  %1103 = vmatprep.subr.bf16.mxu0 %v7862_v45  ;;  %v7866_v48 = vld [vmem:[#allocation8 + $0x64] ss:$12 sps:$4 sm:$0xff]   ;;  %v7870_v51 = vld [vmem:[#allocation8 + $0x7c] ss:$12 sps:$4 sm:$0xff]  }
 0x331   :  { %v7032_v54 = vadd.f32 %v7031_v53, %v7030_v50  ;;  %v843_v55 = vadd.f32 %v7029_v49, %v7007_v46  ;;  %7272 = vmatprep.subr.bf16.mxu1 %v9023_v24  ;;  %v7860_v46 = vld [vmem:[#allocation8 + $0x48] ss:$12 sps:$4 sm:$0xff]   ;;  %v7864_v49 = vld [vmem:[#allocation8 + $0x60] ss:$12 sps:$4 sm:$0xff]  }
 0x332   :  { %v7867_v50 = vld [vmem:[#allocation8 + $0x68] ss:$12 sps:$4 sm:$0xff]   ;;  %v7871_v53 = vld [vmem:[#allocation8 + $0x80] ss:$12 sps:$4 sm:$0xff]  }
 0x333   :  { %849 = vadd.xlane.f32.xlu1 %v843_v55  ;;  %v846_v56 = vadd.f32 %v7032_v54, %v7010_v52  ;;  %1104 = vmatpush1.bf16.msra.mxu0 %v7860_v46  ;;  %v7868_v52 = vld [vmem:[#allocation8 + $0x78] ss:$12 sps:$4 sm:$0xff]   ;;  %v7874_v54 = vld [vmem:[#allocation8 + $0x94] ss:$12 sps:$4 sm:$0xff]  }
 0x334   :  { %7273 = vmatpush3.bf16.msra.mxu1 %v7863_v47  ;;  %1105 = vmatprep.subr.bf16.mxu0 %v7866_v48 }
 0x335   :  { %7274 = vmatprep.subr.bf16.mxu1 %v9023_v24 }
 0x337   :  { %851 = vadd.xlane.f32.xlu1 %v846_v56  ;;  %1106 = vmatpush1.bf16.msra.mxu0 %v7864_v49 }
 0x338   :  { %7275 = vmatpush3.bf16.msra.mxu1 %v7867_v50  ;;  %1107 = vmatprep.subr.bf16.mxu0 %v7870_v51 }
 0x339   :  { %7276 = vmatprep.subr.bf16.mxu1 %v9023_v24 }
 0x33b   :  { %1108 = vmatpush1.bf16.msra.mxu0 %v7868_v52 }
 0x33c   :  { %7277 = vmatpush3.bf16.msra.mxu1 %v7871_v53  ;;  %1109 = vmatprep.subr.bf16.mxu0 %v7874_v54 }
 0x33d   :  { %7278 = vmatprep.subr.bf16.mxu1 %v9023_v24 }
 0x3c0   :  { %v850_v57 = vpop.xlane.xlu1 %849 }
 0x3c1   :  { %v854_v58 = vmul.f32 0.0078125, %v850_v57  ;;  %v7878_v57 = vld [vmem:[#allocation8 + $0xac] ss:$12 sps:$4 sm:$0xff]  }
 0x3c3   :  { %v856_v59 = vsub.f32 %v843_v55, %v854_v58  ;;  %v7872_v55 = vld [vmem:[#allocation8 + $0x90] ss:$12 sps:$4 sm:$0xff]   ;;  %v7876_v58 = vld [vmem:[#allocation8 + $0xa8] ss:$12 sps:$4 sm:$0xff]  }
 0x3c4   :  { %v852_v60 = vpop.xlane.xlu1 %851  ;;  %1110 = vmatpush1.bf16.msra.mxu0 %v7872_v55 }
 0x3c5   :  { %v855_v61 = vmul.f32 0.0078125, %v852_v60  ;;  %v858_v62 = vmul.f32 %v856_v59, %v856_v59  ;;  %1111 = vmatprep.subr.bf16.mxu0 %v7878_v57 }
 0x3c7   :  { %860 = vadd.xlane.f32.xlu0 %v858_v62  ;;  %v857_v63 = vsub.f32 %v846_v56, %v855_v61  ;;  %v7875_v56 = vld [vmem:[#allocation8 + $0x98] ss:$12 sps:$4 sm:$0xff]  }
 0x3c8   :  { %7279 = vmatpush3.bf16.msra.mxu1 %v7875_v56  ;;  %1112 = vmatpush1.bf16.msra.mxu0 %v7876_v58  ;;  %v9483_v56 = vld [vmem:[%s10361_s11] sm:$0xff]  ;;  %v9486_v58 = vld [vmem:[%s10361_s11 + $0x8] sm:$0xff] }
 0x3c9   :  { %v859_v1 = vmul.f32 %v857_v63, %v857_v63  ;;  %7280 = vmatprep.subr.bf16.mxu1 %v9023_v24  ;;  %7314 = vmatprep.subr.bf16.mxu0 %v9023_v24 }
 0x3cb   :  { %862 = vadd.xlane.f32.xlu1 %v859_v1 }
 0x454   :  { %v861_v2 = vpop.xlane.xlu0 %860 }
 0x455   :  { %v864_v3 = vmul.f32 0.0078125, %v861_v2 }
 0x457   :  { %v866_v4 = vadd.f32 1e-05, %v864_v3  ;;  %v884_v3 = vld [vmem:[#allocation7] sm:$0x3] }
 0x458   :  { %v863_v5 = vpop.xlane.xlu1 %862 }
 0x459   :  { %8144 = vrsqrt.f32 %v866_v4  ;;  %v865_v6 = vmul.f32 0.0078125, %v863_v5 }
 0x45b   :  { %v867_v8 = vadd.f32 1e-05, %v865_v6  ;;  %v910_v6 = vrot.slane %v884_v3, %v9415_v9 }
 0x45d   :  { %8146 = vrsqrt.f32 %v867_v8 }
 0x463   :  { %v8145_v13 = vpop.eup %8144 }
 0x464   :  { %v870_v14 = vmul.f32 %v8145_v13, %v856_v59  ;;  %v7879_v59 = vld [vmem:[#allocation8 + $0xb0] ss:$12 sps:$4 sm:$0xff]  }
 0x465   :  { %7281 = vmatpush3.bf16.msra.mxu1 %v7879_v59 }
 0x466   :  { %v876_v16 = vmul.f32 %v9421_v12, %v870_v14  ;;  %7286 = vmatprep.subr.bf16.mxu1 %v9023_v24  ;;  %v916_v14 = vrot.slane %v884_v3, %v9418_v11 }
 0x467   :  { %v8147_v17 = vpop.eup %8146 }
 0x468   :  { %v9428_v18 = vadd.f32 %v9424_v15, %v876_v16  ;;  %v871_v19 = vmul.f32 %v8147_v17, %v857_v63 }
 0x46a   :  { %885 = vadd.xlane.f32.xlu1 %v9428_v18  ;;  %v877_v20 = vmul.f32 %v9421_v12, %v871_v19 }
 0x46c   :  { %v9433_v21 = vadd.f32 %v9424_v15, %v877_v20 }
 0x46e   :  { %887 = vadd.xlane.f32.xlu1 %v9433_v21 }
 0x4f7   :  { %v886_v28 = vpop.xlane.xlu1 %885 }
 0x4f8   :  { %v889_v29 = vmul.f32 0.0078125, %v886_v28 }
 0x4fa   :  { %v9439_v30 = vsub.f32 %v9428_v18, %v889_v29 }
 0x4fb   :  { %v888_v31 = vpop.xlane.xlu1 %887 }
 0x4fc   :  { %v890_v32 = vmul.f32 0.0078125, %v888_v31  ;;  %v893_v33 = vmul.f32 %v9439_v30, %v9439_v30 }
 0x4fe   :  { %895 = vadd.xlane.f32.xlu1 %v893_v33  ;;  %v9444_v34 = vsub.f32 %v9433_v21, %v890_v32 }
 0x500   :  { %v894_v35 = vmul.f32 %v9444_v34, %v9444_v34 }
 0x502   :  { %897 = vadd.xlane.f32.xlu1 %v894_v35 }
 0x58b   :  { %v896_v60 = vpop.xlane.xlu1 %895 }
 0x58c   :  { %v899_v61 = vmul.f32 0.0078125, %v896_v60 }
 0x58e   :  { %v901_v62 = vadd.f32 1e-05, %v899_v61 }
 0x58f   :  { %v898_v63 = vpop.xlane.xlu1 %897 }
 0x590   :  { %8148 = vrsqrt.f32 %v901_v62  ;;  %v900_v1 = vmul.f32 0.0078125, %v898_v63 }
 0x592   :  { %v902_v2 = vadd.f32 1e-05, %v900_v1 }
 0x594   :  { %8150 = vrsqrt.f32 %v902_v2 }
 0x59a   :  { %v8149_v4 = vpop.eup %8148 }
 0x59b   :  { %v905_v5 = vmul.f32 %v8149_v4, %v9439_v30 }
 0x59d   :  { %v911_v13 = vmul.f32 %v910_v6, %v905_v5 }
 0x59e   :  { %v8151_v8 = vpop.eup %8150 }
 0x59f   :  { %v906_v10 = vmul.f32 %v8151_v8, %v9444_v34  ;;  %v917_v17 = vadd.f32 %v916_v14, %v911_v13 }
 0x5a1   :  { %v912_v16 = vmul.f32 %v910_v6, %v906_v10 }
 0x5a3   :  { %v918_v19 = vadd.f32 %v916_v14, %v912_v16 }
 0x5a5   :  { %v952_v20 = vpack.c.bf16 %v918_v19, %v917_v17 }
 0x5a7   :  { %1130 = vmatmul.mubr.bf16.vlgmr.msra.gmra.mrb[4].mxu0 %v952_v20  ;;  %7283 = vmatmul.mubr.bf16.vlgmr.msra.gmra.mrb[4].mxu1 %v952_v20 }
 0x5a8   :  { %7290 = vmatprep.mubr.msk.bf16.mxu1 %vm9024_vm12, %v9023_v24  ;;  %7318 = vmatprep.mubr.msk.bf16.mxu0 %vm9024_vm12, %v9023_v24 }
 0x67a   :  { %v1131_v28 = vpop.f32.mrb[4].mxu0  ;;  %v1174_v29 = vpop.f32.mrb[4].mxu1 }
 0x67b   :  { %v1133_v30 = vpop.f32.mrb[5].mxu0  ;;  %v7284_v31 = vpop.f32.mrb[5].mxu1  ;;  %v1132_v35 = vadd.f32 %v1131_v28, %v957_v26  ;;  %v1175_v37 = vadd.f32 %v1174_v29, %v965_v27 }
 0x67c   :  { %v1134_v32 = vadd.f32 %v1133_v30, %v961_v25  ;;  %v1135_v33 = vpop.f32.mrb[6].mxu0  ;;  %v1177_v34 = vpop.f32.mrb[6].mxu1 }
 0x67d   :  { %v1136_v40 = vadd.f32 %v1135_v33, %v957_v26  ;;  %v1178_v43 = vadd.f32 %v1177_v34, %v965_v27  ;;  %v1137_v44 = vpop.f32.mrb[7].mxu0  ;;  %v7285_v45 = vpop.f32.mrb[7].mxu1 }
 0x67e   :  { %v1138_v46 = vadd.f32 %v1137_v44, %v961_v25  ;;  %1199 = vxpose.xlu1.b32.start [1/2] (short) (narrow) %v1134_v32, 32 }
 0x67f   :  { %v1198_v47 = vpack.c.bf16 %v1136_v40, %v1132_v35  ;;  %v9473_v48 = vpack.c.bf16 %v1178_v43, %v1175_v37 }
 0x680   :  { %v7653_v49 = vpack.i.bf16 %v1138_v46, %v1134_v32 }
 0x682   :  { %1200 = vxpose.xlu1.b32.end [2/2] (short) (narrow) %v1138_v46, 32 }
 0x6fe   :  { %v1215_v50 = vpop.trf.xlu1 }
 0x702   :  { %v1216_v51 = vpop.trf.xlu1 }
 0x703   :  { %v1231_v52 = vpack.c.bf16 %v1216_v51, %v1215_v50 }
 0x705   :  { %7287 = vmatpush3.bf16.msra.mxu1 %v1231_v52 }
 0x706   :  { %v1217_v53 = vpop.trf.xlu1  ;;  %7288 = vmatprep.subr.bf16.mxu1 %v9023_v24 }
 0x70a   :  { %v1218_v54 = vpop.trf.xlu1 }
 0x70b   :  { %v1232_v55 = vpack.c.bf16 %v1218_v54, %v1217_v53 }
 0x70d   :  { %7289 = vmatpush3.bf16.msra.mxu1 %v1232_v55 }
 0x70e   :  { %7294 = vmatprep.subr.bf16.mxu1 %v9023_v24 }
 0x710   :  { %7291 = vmatmul.mubr.msk.bf16.vlgmr.msra.gmra.mrb[8].mxu1 %vm1234_vm13, %v1198_v47 }
 0x711   :  { %7295 = vmatpush3.bf16.msra.mxu1 %v9473_v48  ;;  %7296 = vmatprep.mubr.msk.bf16.mxu1 %vm9024_vm12, %v9023_v24 }
 0x712   :  { %7300 = vmatprep.subr.bf16.mxu1 %v9023_v24 }
 0x7e3   :  { %v1272_v57 = vpop.f32.mrb[8].mxu1 }
 0x7e4   :  { %v1273_v59 = vadd.f32 %v1272_v57, %v9483_v56  ;;  %v7292_v60 = vpop.f32.mrb[9].mxu1 }
 0x7e5   :  { %v1275_v61 = vpop.f32.mrb[10].mxu1 }
 0x7e6   :  { %v1276_v62 = vadd.f32 %v1275_v61, %v9486_v58  ;;  %v7293_v63 = vpop.f32.mrb[11].mxu1  ;;  %v1280_v1 = vsel %vm1279_vm14, %v1273_v59, -inf }
 0x7e7   :  { %1281 = vmax.xlane.f32.xlu0 %v1280_v1 }
 0x7e8   :  { %v1283_v2 = vsel %vm1279_vm14, %v1276_v62, -inf }
 0x7eb   :  { %1284 = vmax.xlane.f32.xlu0 %v1283_v2 }
 0x801   :  { %7654 = vrot.lane.b32.xlu0 %v7653_v49, %s9025_s28 }
 0x805   :  { %7659 = vrot.lane.b32.xlu0 %v7653_v49, %s9004_s8 }
 0x809   :  { %7664 = vrot.lane.b32.xlu0 %v7653_v49, %s9010_s7 }
 0x80d   :  { %1390 = vrot.lane.b32.xlu0 %v1198_v47, %s9025_s28 }
 0x811   :  { %1547 = vrot.lane.b32.xlu0 %v1198_v47, %s9004_s8 }
 0x874   :  { %v1282_v3 = vpop.xlane.xlu0 %1281 }
 0x875   :  { %v1286_v4 = vsub.f32 %v1273_v59, %v1282_v3 }
 0x877   :  { %v1288_v5 = vmul.f32 1.442695, %v1286_v4 }
 0x878   :  { %v1285_v6 = vpop.xlane.xlu0 %1284 }
 0x879   :  { %8152 = vpow2.f32 %v1288_v5  ;;  %v1287_v8 = vsub.f32 %v1276_v62, %v1285_v6 }
 0x87b   :  { %v1290_v10 = vmul.f32 1.442695, %v1287_v8 }
 0x87c   :  { %v7655_v19 = vpop.permute.xlu0 %7654 }
 0x87d   :  { %8154 = vpow2.f32 %v1290_v10  ;;  %v7656_v27 = vunpack.i.l.bf16 %v7655_v19  ;;  %v7657_v31 = vunpack.i.h.bf16 %v7655_v19 }
 0x880   :  { %v7660_v20 = vpop.permute.xlu0 %7659 }
 0x881   :  { %v7661_v25 = vunpack.i.l.bf16 %v7660_v20  ;;  %v7662_v28 = vunpack.i.h.bf16 %v7660_v20 }
 0x883   :  { %v8153_v13 = vpop.eup %8152  ;;  %v7668_v29 = vpack.i.bf16 %v7661_v25, %v7656_v27  ;;  %v7670_v32 = vpack.i.bf16 %v7662_v28, %v7657_v31 }
 0x884   :  { %v1292_v14 = vsel %vm1279_vm14, %v8153_v13, 0.0  ;;  %v7665_v22 = vpop.permute.xlu0 %7664 }
 0x885   :  { %1293 = vadd.xlane.f32.xlu0 %v1292_v14  ;;  %v7666_v26 = vunpack.i.l.bf16 %v7665_v22  ;;  %v7667_v30 = vunpack.i.h.bf16 %v7665_v22 }
 0x887   :  { %v8155_v16 = vpop.eup %8154 }
 0x888   :  { %v1295_v17 = vsel %vm1279_vm14, %v8155_v16, 0.0  ;;  %v1391_v33 = vpop.permute.xlu0 %1390 }
 0x889   :  { %1296 = vadd.xlane.f32.xlu1 %v1295_v17 }
 0x88c   :  { %v1548_v34 = vpop.permute.xlu0 %1547 }
 0x89b   :  { %1703 = vrot.lane.b32.xlu0 %v1198_v47, %s9010_s7 }
 0x8b9   :  { %1669 = vxpose.xlu0.b32.start [1/2] (short) (narrow) %v7666_v26, 32 }
 0x8bc   :  { %7669 = vxpose.xlu1.b32.start [1/2] (short) (narrow) %v7668_v29, 32 }
 0x8bd   :  { %1670 = vxpose.xlu0.b32.end [2/2] (short) (narrow) %v7667_v30, 32 }
 0x8c0   :  { %7671 = vxpose.xlu1.b32.end [2/2] (short) (narrow) %v7670_v32, 32 }
 0x912   :  { %v1294_v35 = vpop.xlane.xlu0 %1293 }
 0x913   :  { %8156 = vrcp.f32 %v1294_v35 }
 0x916   :  { %v1297_v37 = vpop.xlane.xlu1 %1296  ;;  %v1704_v47 = vpop.permute.xlu0 %1703 }
 0x917   :  { %8158 = vrcp.f32 %v1297_v37 }
 0x91d   :  { %v8157_v40 = vpop.eup %8156 }
 0x91e   :  { %v1300_v44 = vmul.f32 %v8157_v40, %v8153_v13 }
 0x921   :  { %v8159_v43 = vpop.eup %8158 }
 0x922   :  { %v1301_v45 = vmul.f32 %v8159_v43, %v8155_v16 }
 0x924   :  { %v1302_v46 = vpack.c.bf16 %v1301_v45, %v1300_v44 }
 0x926   :  { %7297 = vmatmul.mubr.msk.bf16.vlgmr.msra.gmra.mrb[12].mxu1 %vm1279_vm14, %v1302_v46 }
 0x927   :  { %7304 = vmatprep.mubr.msk.bf16.mxu1 %vm9024_vm12, %v9023_v24 }
 0x939   :  { %v1685_v50 = vpop.trf.xlu0 }
 0x93c   :  { %v7672_v49 = vpop.trf.xlu1 }
 0x93d   :  { %v7676_v51 = vunpack.i.h.bf16 %v7672_v49  ;;  %v7673_v52 = vunpack.i.l.bf16 %v7672_v49  ;;  %v1686_v61 = vpop.trf.xlu0 }
 0x93e   :  { %v1701_v8 = vpack.c.bf16 %v1686_v61, %v1685_v50 }
 0x940   :  { %v7677_v53 = vpop.trf.xlu1 }
 0x941   :  { %v7681_v54 = vunpack.i.h.bf16 %v7677_v53  ;;  %v7678_v55 = vunpack.i.l.bf16 %v7677_v53  ;;  %v1687_v4 = vpop.trf.xlu0 }
 0x943   :  { %v1387_v57 = vpack.c.bf16 %v7678_v55, %v7673_v52  ;;  %v1545_v59 = vpack.c.bf16 %v7681_v54, %v7676_v51 }
 0x944   :  { %v7682_v60 = vpop.trf.xlu1 }
 0x945   :  { %7301 = vmatpush3.bf16.msra.mxu1 %v1387_v57  ;;  %7315 = vmatpush3.bf16.msra.mxu0 %v1545_v59  ;;  %v7686_v62 = vunpack.i.h.bf16 %v7682_v60  ;;  %v7683_v63 = vunpack.i.l.bf16 %v7682_v60  ;;  %v1688_v10 = vpop.trf.xlu0 }
 0x946   :  { %7302 = vmatprep.subr.bf16.mxu1 %v9023_v24  ;;  %7316 = vmatprep.subr.bf16.mxu0 %v9023_v24  ;;  %v1702_v13 = vpack.c.bf16 %v1688_v10, %v1687_v4 }
 0x948   :  { %v7687_v1 = vpop.trf.xlu1 }
 0x949   :  { %v7691_v2 = vunpack.i.h.bf16 %v7687_v1  ;;  %v7688_v3 = vunpack.i.l.bf16 %v7687_v1 }
 0x94b   :  { %v1388_v5 = vpack.c.bf16 %v7688_v3, %v7683_v63  ;;  %v1546_v6 = vpack.c.bf16 %v7691_v2, %v7686_v62 }
 0x94d   :  { %7303 = vmatpush3.bf16.msra.mxu1 %v1388_v5  ;;  %7317 = vmatpush3.bf16.msra.mxu0 %v1546_v6 }
 0x94e   :  { %7328 = vmatprep.subr.bf16.mxu0 %v9023_v24  ;;  %7308 = vmatprep.subr.bf16.mxu1 %v9023_v24 }
 0x950   :  { %7305 = vmatmul.mubr.msk.bf16.vlgmr.msra.gmra.mrb[16].mxu1 %vm1234_vm13, %v1391_v33  ;;  %7319 = vmatmul.mubr.msk.bf16.vlgmr.msra.gmra.mrb[8].mxu0 %vm1234_vm13, %v1548_v34 }
 0x951   :  { %7329 = vmatpush3.bf16.msra.mxu0 %v1701_v8  ;;  %7332 = vmatprep.mubr.msk.bf16.mxu0 %vm9024_vm12, %v9023_v24 }
 0x952   :  { %7330 = vmatprep.subr.bf16.mxu0 %v9023_v24  ;;  %7310 = vmatprep.mubr.msk.bf16.mxu1 %vm9024_vm12, %v9023_v24 }
 0x955   :  { %7331 = vmatpush3.bf16.msra.mxu0 %v1702_v13 }
 0x956   :  { %7342 = vmatprep.subr.bf16.mxu0 %v9023_v24 }
 0x958   :  { %7333 = vmatmul.mubr.msk.bf16.vlgmr.msra.gmra.mrb[12].mxu0 %vm1234_vm13, %v1704_v47 }
 0x959   :  { %7358 = vmatprep.mubr.msk.bf16.mxu0 %vm9024_vm12, %v9023_v24 }
 0x9f9   :  { %v9518_v14 = vpop.f32.mrb[12].mxu1 }
 0x9fa   :  { %v7298_v16 = vpop.f32.mrb[13].mxu1 }
 0x9fb   :  { %v9520_v17 = vpop.f32.mrb[14].mxu1 }
 0x9fc   :  { %v7299_v19 = vpop.f32.mrb[15].mxu1 }
 0xa23   :  { %v1429_v20 = vpop.f32.mrb[16].mxu1  ;;  %v1586_v22 = vpop.f32.mrb[8].mxu0 }
 0xa24   :  { %v1430_v25 = vadd.f32 %v1429_v20, %v9483_v56  ;;  %v7306_v26 = vpop.f32.mrb[17].mxu1  ;;  %v7320_v27 = vpop.f32.mrb[9].mxu0  ;;  %v1587_v30 = vadd.f32 %v1586_v22, %v9483_v56 }
 0xa25   :  { %v1432_v28 = vpop.f32.mrb[18].mxu1  ;;  %v1589_v29 = vpop.f32.mrb[10].mxu0 }
 0xa26   :  { %v1433_v31 = vadd.f32 %v1432_v28, %v9486_v58  ;;  %v7307_v32 = vpop.f32.mrb[19].mxu1  ;;  %v7321_v33 = vpop.f32.mrb[11].mxu0  ;;  %v1436_v34 = vsel %vm1279_vm14, %v1430_v25, -inf  ;;  %v1590_v37 = vadd.f32 %v1589_v29, %v9486_v58  ;;  %v1593_v40 = vsel %vm1279_vm14, %v1587_v30, -inf }
 0xa27   :  { %1437 = vmax.xlane.f32.xlu0 %v1436_v34 }
 0xa28   :  { %v1439_v35 = vsel %vm1279_vm14, %v1433_v31, -inf  ;;  %v1596_v50 = vsel %vm1279_vm14, %v1590_v37, -inf }
 0xa29   :  { %1440 = vmax.xlane.f32.xlu1 %v1439_v35 }
 0xa2b   :  { %v1742_v43 = vpop.f32.mrb[12].mxu0  ;;  %1594 = vmax.xlane.f32.xlu0 %v1593_v40 }
 0xa2c   :  { %v1743_v44 = vadd.f32 %v1742_v43, %v9483_v56  ;;  %v7334_v45 = vpop.f32.mrb[13].mxu0 }
 0xa2d   :  { %v1745_v46 = vpop.f32.mrb[14].mxu0 }
 0xa2e   :  { %v1746_v47 = vadd.f32 %v1745_v46, %v9486_v58  ;;  %v7335_v49 = vpop.f32.mrb[15].mxu0  ;;  %v1749_v51 = vsel %vm1279_vm14, %v1743_v44, -inf }
 0xa2f   :  { %1597 = vmax.xlane.f32.xlu0 %v1596_v50  ;;  %1750 = vmax.xlane.f32.xlu1 %v1749_v51 }
 0xa30   :  { %v1752_v52 = vsel %vm1279_vm14, %v1746_v47, -inf }
 0xa33   :  { %1753 = vmax.xlane.f32.xlu0 %v1752_v52 }
 0xab4   :  { %v1438_v53 = vpop.xlane.xlu0 %1437 }
 0xab5   :  { %v1442_v60 = vsub.f32 %v1430_v25, %v1438_v53 }
 0xab6   :  { %v1441_v54 = vpop.xlane.xlu1 %1440 }
 0xab7   :  { %v1443_v59 = vsub.f32 %v1433_v31, %v1441_v54  ;;  %v1444_v4 = vmul.f32 1.442695, %v1442_v60 }
 0xab8   :  { %v1595_v55 = vpop.xlane.xlu0 %1594 }
 0xab9   :  { %v1599_v57 = vsub.f32 %v1587_v30, %v1595_v55  ;;  %v1446_v1 = vmul.f32 1.442695, %v1443_v59 }
 0xabb   :  { %v1601_v56 = vmul.f32 1.442695, %v1599_v57 }
 0xabc   :  { %v1598_v61 = vpop.xlane.xlu0 %1597  ;;  %v1751_v62 = vpop.xlane.xlu1 %1750 }
 0xabd   :  { %8160 = vpow2.f32 %v1601_v56  ;;  %v1600_v58 = vsub.f32 %v1590_v37, %v1598_v61  ;;  %v1755_v63 = vsub.f32 %v1743_v44, %v1751_v62  ;;  %v7880_v61 = vld [vmem:[%s10362_s6] sm:$0xff]   ;;  %v7881_v62 = vld [vmem:[%s10362_s6 + $0x8] sm:$0xff]  }
 0xabe   :  { %7343 = vmatpush3.bf16.msra.mxu0 %v7880_v61  ;;  %v7890_v61 = vld [vmem:[#allocation11 + $0x4] ss:$8 sps:$4 sm:$0xff]  }
 0xabf   :  { %v1603_v2 = vmul.f32 1.442695, %v1600_v58  ;;  %v1757_v3 = vmul.f32 1.442695, %v1755_v63  ;;  %7344 = vmatprep.subr.bf16.mxu0 %v9023_v24  ;;  %v7882_v58 = vld [vmem:[%s10362_s6 + $0x10] sm:$0xff]   ;;  %v7883_v63 = vld [vmem:[%s10362_s6 + $0x18] sm:$0xff]  }
 0xac0   :  { %v1754_v5 = vpop.xlane.xlu0 %1753 }
 0xac1   :  { %8162 = vpow2.f32 %v1603_v2  ;;  %v1756_v6 = vsub.f32 %v1746_v47, %v1754_v5 }
 0xac2   :  { %8164 = vpow2.f32 %v1757_v3  ;;  %7345 = vmatpush3.bf16.msra.mxu0 %v7881_v62  ;;  %v7893_v62 = vld [vmem:[#allocation11 + $0x14] ss:$8 sps:$4 sm:$0xff]  }
 0xac3   :  { %8166 = vpow2.f32 %v1446_v1  ;;  %v1759_v8 = vmul.f32 1.442695, %v1756_v6  ;;  %7346 = vmatprep.subr.bf16.mxu0 %v9023_v24  ;;  %v7884_v1 = vld [vmem:[%s10362_s6 + $0x20] sm:$0xff]  }
 0xac4   :  { %8168 = vpow2.f32 %v1444_v4  ;;  %v7885_v4 = vld [vmem:[%s10362_s6 + $0x28] sm:$0xff]  }
 0xac5   :  { %8170 = vpow2.f32 %v1759_v8 }
 0xac6   :  { %7347 = vmatpush3.bf16.msra.mxu0 %v7882_v58  ;;  %v7891_v58 = vld [vmem:[#allocation11 + $0x10] ss:$8 sps:$4 sm:$0xff]  }
 0xac7   :  { %v8161_v10 = vpop.eup %8160  ;;  %7348 = vmatprep.subr.bf16.mxu0 %v9023_v24 }
 0xac8   :  { %v1605_v13 = vsel %vm1279_vm14, %v8161_v10, 0.0 }
 0xac9   :  { %1606 = vadd.xlane.f32.xlu1 %v1605_v13 }
 0xaca   :  { %7349 = vmatpush3.bf16.msra.mxu0 %v7883_v63 }
 0xacb   :  { %v8163_v16 = vpop.eup %8162  ;;  %7350 = vmatprep.subr.bf16.mxu0 %v9023_v24 }
 0xacc   :  { %v8165_v19 = vpop.eup %8164  ;;  %v1608_v20 = vsel %vm1279_vm14, %v8163_v16, 0.0 }
 0xacd   :  { %v8167_v22 = vpop.eup %8166  ;;  %1609 = vadd.xlane.f32.xlu0 %v1608_v20  ;;  %v1761_v25 = vsel %vm1279_vm14, %v8165_v19, 0.0 }
 0xace   :  { %v8169_v26 = vpop.eup %8168  ;;  %1762 = vadd.xlane.f32.xlu1 %v1761_v25  ;;  %v1451_v27 = vsel %vm1279_vm14, %v8167_v22, 0.0  ;;  %7351 = vmatpush3.bf16.msra.mxu0 %v7884_v1 }
 0xacf   :  { %v8171_v28 = vpop.eup %8170  ;;  %v1448_v29 = vsel %vm1279_vm14, %v8169_v26, 0.0  ;;  %7352 = vmatprep.subr.bf16.mxu0 %v9023_v24 }
 0xad0   :  { %v1764_v30 = vsel %vm1279_vm14, %v8171_v28, 0.0 }
 0xad1   :  { %1452 = vadd.xlane.f32.xlu0 %v1451_v27 }
 0xad2   :  { %1449 = vadd.xlane.f32.xlu1 %v1448_v29  ;;  %7353 = vmatpush3.bf16.msra.mxu0 %v7885_v4 }
 0xad3   :  { %7354 = vmatprep.subr.bf16.mxu0 %v9023_v24 }
 0xad5   :  { %1765 = vadd.xlane.f32.xlu0 %v1764_v30 }
 0xae3   :  { %1460 = vrot.lane.b32.xlu1 %v9473_v48, %s9025_s28 }
 0xae7   :  { %1772 = vrot.lane.b32.xlu1 %v9473_v48, %s9010_s7 }
 0xaeb   :  { %1616 = vrot.lane.b32.xlu0 %v9473_v48, %s9004_s8 }
 0xb56   :  { %v1607_v31 = vpop.xlane.xlu1 %1606 }
 0xb5a   :  { %v1610_v32 = vpop.xlane.xlu0 %1609 }
 0xb5b   :  { %v1763_v33 = vpop.xlane.xlu1 %1762 }
 0xb5e   :  { %v1453_v34 = vpop.xlane.xlu0 %1452 }
 0xb5f   :  { %8172 = vrcp.f32 %v1453_v34  ;;  %v1450_v35 = vpop.xlane.xlu1 %1449 }
 0xb60   :  { %8174 = vrcp.f32 %v1450_v35 }
 0xb61   :  { %8176 = vrcp.f32 %v1610_v32 }
 0xb62   :  { %8178 = vrcp.f32 %v1607_v31  ;;  %v1766_v43 = vpop.xlane.xlu0 %1765 }
 0xb63   :  { %v1461_v37 = vpop.permute.xlu1 %1460  ;;  %8180 = vrcp.f32 %v1766_v43 }
 0xb64   :  { %7309 = vmatpush3.bf16.msra.mxu1 %v1461_v37  ;;  %8182 = vrcp.f32 %v1763_v33 }
 0xb65   :  { %7322 = vmatprep.subr.bf16.mxu1 %v9023_v24 }
 0xb66   :  { %v1617_v49 = vpop.permute.xlu0 %1616 }
 0xb67   :  { %v1773_v55 = vpop.permute.xlu1 %1772 }
 0xb69   :  { %v8173_v40 = vpop.eup %8172 }
 0xb6a   :  { %v8175_v44 = vpop.eup %8174  ;;  %v1457_v45 = vmul.f32 %v8173_v40, %v8167_v22 }
 0xb6b   :  { %v1456_v46 = vmul.f32 %v8175_v44, %v8169_v26  ;;  %v8177_v47 = vpop.eup %8176 }
 0xb6c   :  { %v8179_v50 = vpop.eup %8178  ;;  %v1614_v51 = vmul.f32 %v8177_v47, %v8163_v16 }
 0xb6d   :  { %v1458_v48 = vpack.c.bf16 %v1457_v45, %v1456_v46  ;;  %v1613_v52 = vmul.f32 %v8179_v50, %v8161_v10  ;;  %v8181_v54 = vpop.eup %8180  ;;  %v7886_v10 = vld [vmem:[%s10362_s6 + $0x30] sm:$0xff]  }
 0xb6e   :  { %v8183_v57 = vpop.eup %8182  ;;  %v1770_v59 = vmul.f32 %v8181_v54, %v8171_v28  ;;  %7355 = vmatpush3.bf16.msra.mxu0 %v7886_v10  ;;  %v7899_v10 = vld [vmem:[#allocation11 + $0x34] ss:$8 sps:$4 sm:$0xff]  }
 0xb6f   :  { %7311 = vmatmul.mubr.msk.bf16.vlgmr.msra.gmra.mrb[20].mxu1 %vm1279_vm14, %v1458_v48  ;;  %v1615_v53 = vpack.c.bf16 %v1614_v51, %v1613_v52  ;;  %v1769_v56 = vmul.f32 %v8183_v57, %v8165_v19  ;;  %7356 = vmatprep.subr.bf16.mxu0 %v9023_v24  ;;  %v7887_v19 = vld [vmem:[%s10362_s6 + $0x38] sm:$0xff]   ;;  %v6716_v52 = vld [vmem:[%s10363_s1] ss:$0 sm:$0xff] }
 0xb70   :  { %7323 = vmatpush3.bf16.msra.mxu1 %v1617_v49  ;;  %7324 = vmatprep.mubr.msk.bf16.mxu1 %vm9024_vm12, %v9023_v24 }
 0xb71   :  { %7336 = vmatprep.subr.bf16.mxu1 %v9023_v24  ;;  %v1771_v60 = vpack.c.bf16 %v1770_v59, %v1769_v56 }
 0xb72   :  { %7357 = vmatpush3.bf16.msra.mxu0 %v7887_v19  ;;  %v7900_v19 = vld [vmem:[#allocation11 + $0x40] ss:$8 sps:$4 sm:$0xff]  }
 0xb77   :  { %7325 = vmatmul.mubr.msk.bf16.vlgmr.msra.gmra.mrb[24].mxu1 %vm1279_vm14, %v1615_v53 }
 0xb78   :  { %7337 = vmatpush3.bf16.msra.mxu1 %v1773_v55  ;;  %7338 = vmatprep.mubr.msk.bf16.mxu1 %vm9024_vm12, %v9023_v24 }
 0xb79   :  { %2093 = vmatprep.subr.bf16.mxu1 %v7890_v61  ;;  %v7920_v61 = vld [vmem:[#allocation13 + $0x60] sm:$0xff]  }
 0xb7f   :  { %7339 = vmatmul.mubr.msk.bf16.vlgmr.msra.gmra.mrb[28].mxu1 %vm1279_vm14, %v1771_v60  ;;  %v7888_v60 = vld [vmem:[#allocation11] ss:$8 sps:$4 sm:$0xff]  }
 0xb80   :  { %2125 = vmatprep.mubr.bf16.mxu1 %v9021_v0  ;;  %2094 = vmatpush1.bf16.msra.mxu1 %v7888_v60  ;;  %v7919_v60 = vld [vmem:[#allocation13 + $0x18] sm:$0xff]  }
 0xb81   :  { %2095 = vmatprep.subr.bf16.mxu1 %v7893_v62  ;;  %v7921_v62 = vld [vmem:[#allocation13 + $0x20] sm:$0xff]  }
 0xb84   :  { %2096 = vmatpush1.bf16.msra.mxu1 %v7891_v58  ;;  %v7922_v58 = vld [vmem:[#allocation13 + $0x68] sm:$0xff]  }
 0xc42   :  { %v1500_v2 = vpop.f32.mrb[20].mxu1 }
 0xc43   :  { %v7312_v3 = vpop.f32.mrb[21].mxu1 }
 0xc44   :  { %v1503_v5 = vpop.f32.mrb[22].mxu1 }
 0xc45   :  { %v7692_v6 = vpack.i.bf16 %v1503_v5, %v1500_v2  ;;  %v7313_v8 = vpop.f32.mrb[23].mxu1 }
 0xc46   :  { %v7894_v8 = vld [vmem:[#allocation11 + $0x20] ss:$8 sps:$4 sm:$0xff]  }
 0xc47   :  { %7693 = vrot.lane.b32.xlu1 %v7692_v6, %s9010_s7  ;;  %v7896_v6 = vld [vmem:[#allocation11 + $0x24] ss:$8 sps:$4 sm:$0xff]  }
 0xc48   :  { %2097 = vmatprep.subr.bf16.mxu1 %v7896_v6 }
 0xc49   :  { %2098 = vmatpush1.bf16.msra.mxu1 %v7894_v8 }
 0xc4a   :  { %v1656_v13 = vpop.f32.mrb[24].mxu1  ;;  %2099 = vmatprep.subr.bf16.mxu1 %v7899_v10 }
 0xc4b   :  { %v7326_v16 = vpop.f32.mrb[25].mxu1 }
 0xc4c   :  { %v1659_v20 = vpop.f32.mrb[26].mxu1  ;;  %v7902_v16 = vld [vmem:[#allocation11 + $0x44] ss:$8 sps:$4 sm:$0xff]  }
 0xc4d   :  { %v7697_v22 = vpack.i.bf16 %v1659_v20, %v1656_v13  ;;  %v7327_v25 = vpop.f32.mrb[27].mxu1  ;;  %v7897_v13 = vld [vmem:[#allocation11 + $0x30] ss:$8 sps:$4 sm:$0xff]   ;;  %v7905_v20 = vld [vmem:[#allocation11 + $0x54] ss:$8 sps:$4 sm:$0xff]  }
 0xc4e   :  { %2100 = vmatpush1.bf16.msra.mxu1 %v7897_v13  ;;  %v7908_v25 = vld [vmem:[#allocation11 + $0x64] ss:$8 sps:$4 sm:$0xff]  }
 0xc4f   :  { %7698 = vrot.lane.b32.xlu0 %v7697_v22, %s9004_s8  ;;  %2101 = vmatprep.subr.bf16.mxu1 %v7902_v16  ;;  %v7903_v22 = vld [vmem:[#allocation11 + $0x50] ss:$8 sps:$4 sm:$0xff]  }
 0xc52   :  { %v1812_v26 = vpop.f32.mrb[28].mxu1  ;;  %2102 = vmatpush1.bf16.msra.mxu1 %v7900_v19 }
 0xc53   :  { %v7340_v27 = vpop.f32.mrb[29].mxu1  ;;  %2103 = vmatprep.subr.bf16.mxu1 %v7905_v20 }
 0xc54   :  { %v1815_v28 = vpop.f32.mrb[30].mxu1  ;;  %v7911_v27 = vld [vmem:[#allocation11 + $0x74] ss:$8 sps:$4 sm:$0xff]  }
 0xc55   :  { %v7702_v29 = vpack.i.bf16 %v1815_v28, %v1812_v26  ;;  %v7341_v30 = vpop.f32.mrb[31].mxu1  ;;  %v7906_v26 = vld [vmem:[#allocation11 + $0x60] ss:$8 sps:$4 sm:$0xff]   ;;  %v7909_v28 = vld [vmem:[#allocation11 + $0x70] ss:$8 sps:$4 sm:$0xff]  }
 0xc56   :  { %2104 = vmatpush1.bf16.msra.mxu1 %v7903_v22 }
 0xc57   :  { %7703 = vrot.lane.b32.xlu1 %v7702_v29, %s9025_s28  ;;  %2105 = vmatprep.subr.bf16.mxu1 %v7908_v25 }
 0xc5a   :  { %2106 = vmatpush1.bf16.msra.mxu1 %v7906_v26 }
 0xc5b   :  { %2107 = vmatprep.subr.bf16.mxu1 %v7911_v27 }
 0xc5e   :  { %2108 = vmatpush1.bf16.msra.mxu1 %v7909_v28 }
 0xcb9   :  { %v7694_v31 = vpop.permute.xlu1 %7693 }
 0xcba   :  { %v7696_v33 = vunpack.i.h.bf16 %v7694_v31  ;;  %v7695_v34 = vunpack.i.l.bf16 %v7694_v31 }
 0xcbc   :  { %v1844_v43 = vsel %vm1234_vm13, %v9520_v17, %v7696_v33  ;;  %v1843_v44 = vsel %vm1234_vm13, %v9518_v14, %v7695_v34 }
 0xcc1   :  { %v7699_v32 = vpop.permute.xlu0 %7698 }
 0xcc2   :  { %v7701_v35 = vunpack.i.h.bf16 %v7699_v32  ;;  %v7700_v37 = vunpack.i.l.bf16 %v7699_v32 }
 0xcc4   :  { %v1847_v48 = vsel %vm1845_vm15, %v1844_v43, %v7701_v35  ;;  %v1846_v47 = vsel %vm1845_vm15, %v1843_v44, %v7700_v37  ;;  %v1949_v35 = vld [vmem:[#allocation10] sm:$0x3] }
 0xcc5   :  { %v1975_v43 = vrot.slane %v1949_v35, %v9415_v9 }
 0xcc9   :  { %v7704_v40 = vpop.permute.xlu1 %7703 }
 0xcca   :  { %v7706_v45 = vunpack.i.h.bf16 %v7704_v40  ;;  %v7705_v46 = vunpack.i.l.bf16 %v7704_v40 }
 0xccc   :  { %v1850_v49 = vsel %vm1848_vm0, %v1847_v48, %v7706_v45  ;;  %v1849_v50 = vsel %vm1848_vm0, %v1846_v47, %v7705_v46  ;;  %v1981_v48 = vrot.slane %v1949_v35, %v9418_v11 }
 0xccd   :  { %v1851_v51 = vpack.c.bf16 %v1850_v49, %v1849_v50 }
 0xccf   :  { %7359 = vmatmul.mubr.bf16.vlgmr.msra.gmra.mrb[16].mxu0 %v1851_v51 }
 0xda2   :  { %v1940_v53 = vpop.f32.mrb[16].mxu0 }
 0xda3   :  { %v1941_v54 = vadd.f32 %v6716_v52, %v1940_v53  ;;  %v7360_v55 = vpop.f32.mrb[17].mxu0  ;;  %v7913_v53 = vld [vmem:[#allocation13] sm:$0xff]  }
 0xda4   :  { %v1943_v17 = vpop.f32.mrb[18].mxu0  ;;  %v7915_v55 = vld [vmem:[#allocation13 + $0x8] sm:$0xff]  }
 0xda5   :  { %v9584_v57 = vadd.f32 %v1941_v54, %v9428_v18  ;;  %v1944_v14 = vadd.f32 %v6716_v52, %v1943_v17  ;;  %v7361_v59 = vpop.f32.mrb[19].mxu0  ;;  %v7912_v52 = vld [vmem:[#allocation13 + $0x40] sm:$0xff]   ;;  %v7914_v54 = vld [vmem:[#allocation13 + $0x48] sm:$0xff]   ;;  %v7916_v17 = vld [vmem:[#allocation13 + $0x50] sm:$0xff]  }
 0xda6   :  { %7071 = vmatprep.subr.bf16.mxu0 %v7912_v52  ;;  %v7918_v59 = vld [vmem:[#allocation13 + $0x58] sm:$0xff]  }
 0xda7   :  { %v9587_v56 = vadd.f32 %v1944_v14, %v9433_v21  ;;  %1950 = vadd.xlane.f32.xlu0 %v9584_v57  ;;  %7072 = vmatpush3.bf16.msra.mxu0 %v7913_v53  ;;  %v7917_v14 = vld [vmem:[#allocation13 + $0x10] sm:$0xff]  }
 0xda8   :  { %7073 = vmatprep.subr.bf16.mxu0 %v7914_v54 }
 0xda9   :  { %1952 = vadd.xlane.f32.xlu1 %v9587_v56 }
 0xdab   :  { %7074 = vmatpush3.bf16.msra.mxu0 %v7915_v55 }
 0xdac   :  { %7075 = vmatprep.subr.bf16.mxu0 %v7916_v17 }
 0xdaf   :  { %7076 = vmatpush3.bf16.msra.mxu0 %v7917_v14 }
 0xdb0   :  { %7077 = vmatprep.subr.bf16.mxu0 %v7918_v59 }
 0xdb3   :  { %7078 = vmatpush3.bf16.msra.mxu0 %v7919_v60 }
 0xdb4   :  { %7079 = vmatprep.subr.bf16.mxu0 %v7920_v61 }
 0xdb7   :  { %7080 = vmatpush3.bf16.msra.mxu0 %v7921_v62 }
 0xdb8   :  { %7081 = vmatprep.subr.bf16.mxu0 %v7922_v58 }
 0xe34   :  { %v1951_v63 = vpop.xlane.xlu0 %1950 }
 0xe35   :  { %v1954_v18 = vmul.f32 0.0078125, %v1951_v63  ;;  %v7923_v63 = vld [vmem:[#allocation13 + $0x28] sm:$0xff]  }
 0xe36   :  { %v1953_v1 = vpop.xlane.xlu1 %1952  ;;  %7082 = vmatpush3.bf16.msra.mxu0 %v7923_v63 }
 0xe37   :  { %v1956_v2 = vsub.f32 %v9584_v57, %v1954_v18  ;;  %v1955_v3 = vmul.f32 0.0078125, %v1953_v1  ;;  %v7924_v18 = vld [vmem:[#allocation13 + $0x70] sm:$0xff]  }
 0xe38   :  { %v7925_v1 = vld [vmem:[#allocation13 + $0x30] sm:$0xff]   ;;  %7083 = vmatprep.subr.bf16.mxu0 %v7924_v18 }
 0xe39   :  { %v1958_v21 = vmul.f32 %v1956_v2, %v1956_v2  ;;  %v1957_v4 = vsub.f32 %v9587_v56, %v1955_v3  ;;  %v7927_v3 = vld [vmem:[#allocation13 + $0x38] sm:$0xff]  }
 0xe3a   :  { %7084 = vmatpush3.bf16.msra.mxu0 %v7925_v1 }
 0xe3b   :  { %1960 = vadd.xlane.f32.xlu0 %v1958_v21  ;;  %v1959_v5 = vmul.f32 %v1957_v4, %v1957_v4  ;;  %v2000_v21 = vld [vmem:[%s10364_s29] sm:$0x3] }
 0xe3f   :  { %1962 = vadd.xlane.f32.xlu0 %v1959_v5  ;;  %v2010_v5 = vrot.slane %v2000_v21, %v9418_v11 }
 0xec8   :  { %v1961_v29 = vpop.xlane.xlu0 %1960 }
 0xec9   :  { %v1964_v30 = vmul.f32 0.0078125, %v1961_v29 }
 0xecb   :  { %v1966_v31 = vadd.f32 1e-05, %v1964_v30 }
 0xecc   :  { %v1963_v32 = vpop.xlane.xlu0 %1962 }
 0xecd   :  { %8184 = vrsqrt.f32 %v1966_v31  ;;  %v1965_v33 = vmul.f32 0.0078125, %v1963_v32 }
 0xecf   :  { %v1967_v34 = vadd.f32 1e-05, %v1965_v33 }
 0xed1   :  { %8186 = vrsqrt.f32 %v1967_v34 }
 0xed7   :  { %v8185_v37 = vpop.eup %8184 }
 0xed8   :  { %v1970_v40 = vmul.f32 %v8185_v37, %v1956_v2  ;;  %v7926_v2 = vld [vmem:[#allocation13 + $0x78] sm:$0xff]  }
 0xed9   :  { %7085 = vmatprep.subr.bf16.mxu0 %v7926_v2 }
 0xeda   :  { %v1976_v46 = vmul.f32 %v1975_v43, %v1970_v40  ;;  %7086 = vmatpush3.bf16.msra.mxu0 %v7927_v3 }
 0xedb   :  { %v8187_v44 = vpop.eup %8186  ;;  %7362 = vmatprep.subr.bf16.mxu0 %v9023_v24 }
 0xedc   :  { %v1971_v45 = vmul.f32 %v8187_v44, %v1957_v4  ;;  %v1982_v49 = vadd.f32 %v1981_v48, %v1976_v46  ;;  %v2006_v4 = vrot.slane %v2000_v21, %v9415_v9 }
 0xede   :  { %v1977_v47 = vmul.f32 %v1975_v43, %v1971_v45 }
 0xee0   :  { %v1983_v50 = vadd.f32 %v1981_v48, %v1977_v47 }
 0xee2   :  { %v2001_v51 = vpack.c.bf16 %v1983_v50, %v1982_v49 }
 0xee4   :  { %2126 = vmatmul.mubr.bf16.vlgmr.msra.gmra.mrb[32].mxu1 %v2001_v51 }
 0xee5   :  { %2600 = vmatprep.mubr.bf16.mxu1 %v9021_v0 }
 0xfb7   :  { %v2127_v6 = vpop.f32.mrb[32].mxu1 }
 0xfb8   :  { %v2128_v8 = vadd.f32 %v2127_v6, %v2006_v4  ;;  %v2129_v10 = vpop.f32.mrb[33].mxu1 }
 0xfb9   :  { %v2130_v13 = vadd.f32 %v2129_v10, %v2010_v5  ;;  %v2131_v16 = vpop.f32.mrb[34].mxu1 }
 0xfba   :  { %v2140_v19 = vmul.f32 0.044715, %v2128_v8  ;;  %v2132_v20 = vadd.f32 %v2131_v16, %v2006_v4  ;;  %v2133_v22 = vpop.f32.mrb[35].mxu1  ;;  %v2136_v17 = vmul.f32 0.5, %v2128_v8  ;;  %v6741_v4 = vld [vmem:[%s10365_s2] ss:$0 sm:$0xff] }
 0xfbb   :  { %v2141_v25 = vmul.f32 0.044715, %v2130_v13  ;;  %v2134_v26 = vadd.f32 %v2133_v22, %v2010_v5  ;;  %v2137_v60 = vmul.f32 0.5, %v2130_v13 }
 0xfbc   :  { %v2144_v27 = vmul.f32 %v2140_v19, %v2128_v8  ;;  %v2142_v28 = vmul.f32 0.044715, %v2132_v20  ;;  %v2138_v14 = vmul.f32 0.5, %v2132_v20 }
 0xfbd   :  { %v2145_v29 = vmul.f32 %v2141_v25, %v2130_v13  ;;  %v2143_v30 = vmul.f32 0.044715, %v2134_v26  ;;  %v2139_v61 = vmul.f32 0.5, %v2134_v26  ;;  %v7928_v25 = vld [vmem:[#allocation8 + $0xc0] ss:$12 sps:$4 sm:$0xff]  }
 0xfbe   :  { %v2148_v31 = vmul.f32 %v2144_v27, %v2128_v8  ;;  %v2146_v32 = vmul.f32 %v2142_v28, %v2132_v20  ;;  %v7931_v27 = vld [vmem:[#allocation8 + $0xc8] ss:$12 sps:$4 sm:$0xff]  }
 0xfbf   :  { %v2149_v33 = vmul.f32 %v2145_v29, %v2130_v13  ;;  %v2147_v34 = vmul.f32 %v2143_v30, %v2134_v26  ;;  %v7934_v28 = vld [vmem:[#allocation8 + $0xdc] ss:$12 sps:$4 sm:$0xff]   ;;  %v7935_v29 = vld [vmem:[#allocation8 + $0xe0] ss:$12 sps:$4 sm:$0xff]   ;;  %v7932_v30 = vld [vmem:[#allocation8 + $0xd8] ss:$12 sps:$4 sm:$0xff]  }
 0xfc0   :  { %v2152_v35 = vadd.f32 %v2148_v31, %v2128_v8  ;;  %v2150_v37 = vmul.f32 %v2146_v32, %v2132_v20 }
 0xfc1   :  { %v2151_v40 = vmul.f32 %v2147_v34, %v2134_v26  ;;  %v2153_v43 = vadd.f32 %v2149_v33, %v2130_v13 }
 0xfc2   :  { %v2156_v44 = vmul.f32 0.7978846, %v2152_v35  ;;  %v2154_v45 = vadd.f32 %v2150_v37, %v2132_v20 }
 0xfc3   :  { %v2155_v46 = vadd.f32 %v2151_v40, %v2134_v26  ;;  %v2157_v48 = vmul.f32 0.7978846, %v2153_v43  ;;  %v7930_v26 = vld [vmem:[#allocation8 + $0xc4] ss:$12 sps:$4 sm:$0xff]   ;;  %v7938_v40 = vld [vmem:[#allocation8 + $0xf4] ss:$12 sps:$4 sm:$0xff]  }
 0xfc4   :  { %8188 = vtanh.f32 %v2156_v44  ;;  %v2158_v47 = vmul.f32 0.7978846, %v2154_v45  ;;  %2568 = vmatprep.subr.bf16.mxu1 %v7930_v26  ;;  %v7936_v43 = vld [vmem:[#allocation8 + $0xf0] ss:$12 sps:$4 sm:$0xff]   ;;  %v7939_v44 = vld [vmem:[#allocation8 + $0xf8] ss:$12 sps:$4 sm:$0xff]  }
 0xfc5   :  { %v2159_v49 = vmul.f32 0.7978846, %v2155_v46  ;;  %8190 = vtanh.f32 %v2157_v48  ;;  %2569 = vmatpush1.bf16.msra.mxu1 %v7928_v25  ;;  %v7942_v45 = vld [vmem:[#allocation8 + $0x10c] ss:$12 sps:$4 sm:$0xff]   ;;  %v7940_v46 = vld [vmem:[#allocation8 + $0x108] ss:$12 sps:$4 sm:$0xff]  }
 0xfc6   :  { %8192 = vtanh.f32 %v2158_v47  ;;  %2570 = vmatprep.subr.bf16.mxu1 %v7934_v28  ;;  %v7943_v48 = vld [vmem:[#allocation8 + $0x110] ss:$12 sps:$4 sm:$0xff]  }
 0xfc7   :  { %8194 = vtanh.f32 %v2159_v49  ;;  %v7946_v47 = vld [vmem:[#allocation8 + $0x124] ss:$12 sps:$4 sm:$0xff]   ;;  %v7944_v49 = vld [vmem:[#allocation8 + $0x120] ss:$12 sps:$4 sm:$0xff]   ;;  %v6758_v26 = vld [vmem:[%s10360_s20 + $0x3] sm:$0x7] }
 0xfc8   :  { %v2428_v28 = vrot.slane %v6758_v26, %v9415_v9 }
 0xfc9   :  { %2571 = vmatpush1.bf16.msra.mxu1 %v7932_v30 }
 0xfca   :  { %2572 = vmatprep.subr.bf16.mxu1 %v7938_v40 }
 0xfcd   :  { %2573 = vmatpush1.bf16.msra.mxu1 %v7936_v43 }
 0xfce   :  { %v8189_v50 = vpop.eup %8188  ;;  %2574 = vmatprep.subr.bf16.mxu1 %v7942_v45 }
 0xfcf   :  { %v8191_v51 = vpop.eup %8190  ;;  %v2164_v52 = vadd.f32 1.0, %v8189_v50  ;;  %v7947_v50 = vld [vmem:[#allocation8 + $0x128] ss:$12 sps:$4 sm:$0xff]  }
 0xfd0   :  { %v8193_v53 = vpop.eup %8192  ;;  %v2165_v54 = vadd.f32 1.0, %v8191_v51  ;;  %v7950_v51 = vld [vmem:[#allocation8 + $0x13c] ss:$12 sps:$4 sm:$0xff]  }
 0xfd1   :  { %v8195_v55 = vpop.eup %8194  ;;  %v2166_v59 = vadd.f32 1.0, %v8193_v53  ;;  %v2168_v58 = vmul.f32 %v2164_v52, %v2136_v17  ;;  %2575 = vmatpush1.bf16.msra.mxu1 %v7940_v46  ;;  %v7948_v52 = vld [vmem:[#allocation8 + $0x138] ss:$12 sps:$4 sm:$0xff]   ;;  %v7951_v53 = vld [vmem:[#allocation8 + $0x140] ss:$12 sps:$4 sm:$0xff]  }
 0xfd2   :  { %v2167_v62 = vadd.f32 1.0, %v8195_v55  ;;  %v2169_v18 = vmul.f32 %v2165_v54, %v2137_v60  ;;  %2576 = vmatprep.subr.bf16.mxu1 %v7946_v47  ;;  %v7954_v54 = vld [vmem:[#allocation8 + $0x154] ss:$12 sps:$4 sm:$0xff]   ;;  %v7952_v55 = vld [vmem:[#allocation8 + $0x150] ss:$12 sps:$4 sm:$0xff]  }
 0xfd3   :  { %v2170_v63 = vmul.f32 %v2166_v59, %v2138_v14  ;;  %v7955_v17 = vld [vmem:[#allocation8 + $0x158] ss:$12 sps:$4 sm:$0xff]   ;;  %v7956_v59 = vld [vmem:[#allocation8 + $0x168] ss:$12 sps:$4 sm:$0xff]   ;;  %v7959_v60 = vld [vmem:[#allocation8 + $0x170] ss:$12 sps:$4 sm:$0xff]  }
 0xfd4   :  { %v2171_v1 = vmul.f32 %v2167_v62, %v2139_v61  ;;  %v7958_v14 = vld [vmem:[#allocation8 + $0x16c] ss:$12 sps:$4 sm:$0xff]  }
 0xfd5   :  { %v2205_v2 = vpack.c.bf16 %v2170_v63, %v2168_v58  ;;  %2577 = vmatpush1.bf16.msra.mxu1 %v7944_v49 }
 0xfd6   :  { %v2206_v3 = vpack.c.bf16 %v2171_v1, %v2169_v18  ;;  %2578 = vmatprep.subr.bf16.mxu1 %v7950_v51 }
 0xfd8   :  { %2341 = vmatprep.mubr.bf16.mxu0 %v2206_v3 }
 0xfd9   :  { %2342 = vmatmul.mubr.bf16.vlgmr.msra.gmra.mrb[20].mxu0 %v2205_v2  ;;  %2579 = vmatpush1.bf16.msra.mxu1 %v7948_v52  ;;  %v2353_v2 = vld [vmem:[#allocation7 + $0x2] sm:$0x3] }
 0xfda   :  { %7378 = vmatprep.mubr.msk.bf16.mxu0 %vm9024_vm12, %v9023_v24  ;;  %7363 = vmatpush3.bf16.msra.mxu0 %v7931_v27  ;;  %v2379_v3 = vrot.slane %v2353_v2, %v9415_v9  ;;  %v2432_v27 = vrot.slane %v6758_v26, %v9418_v11 }
 0xfdb   :  { %7364 = vmatprep.subr.bf16.mxu0 %v9023_v24  ;;  %2580 = vmatprep.subr.bf16.mxu1 %v7954_v54 }
 0xfdd   :  { %2581 = vmatpush1.bf16.msra.mxu1 %v7952_v55 }
 0xfde   :  { %7365 = vmatpush3.bf16.msra.mxu0 %v7935_v29  ;;  %2582 = vmatprep.subr.bf16.mxu1 %v7958_v14  ;;  %v2436_v29 = vrot.slane %v6758_v26, %v9468_v23  ;;  %v9642_v14 = vld [vmem:[%s10361_s11] sm:$0xff] }
 0xfdf   :  { %7366 = vmatprep.subr.bf16.mxu0 %v9023_v24 }
 0xfe1   :  { %2583 = vmatpush1.bf16.msra.mxu1 %v7956_v59 }
 0xfe2   :  { %7367 = vmatpush3.bf16.msra.mxu0 %v7939_v44  ;;  %7382 = vmatprep.subr.bf16.mxu1 %v9023_v24 }
 0xfe3   :  { %7368 = vmatprep.subr.bf16.mxu0 %v9023_v24 }
 0xfe6   :  { %7369 = vmatpush3.bf16.msra.mxu0 %v7943_v48 }
 0xfe7   :  { %7370 = vmatprep.subr.bf16.mxu0 %v9023_v24 }
 0xfea   :  { %7371 = vmatpush3.bf16.msra.mxu0 %v7947_v50 }
 0xfeb   :  { %7372 = vmatprep.subr.bf16.mxu0 %v9023_v24 }
 0xfee   :  { %7373 = vmatpush3.bf16.msra.mxu0 %v7951_v53 }
 0xfef   :  { %7374 = vmatprep.subr.bf16.mxu0 %v9023_v24 }
 0xff2   :  { %7375 = vmatpush3.bf16.msra.mxu0 %v7955_v17 }
 0xff3   :  { %7376 = vmatprep.subr.bf16.mxu0 %v9023_v24 }
 0xff6   :  { %7377 = vmatpush3.bf16.msra.mxu0 %v7959_v60 }
 0xff7   :  { %7410 = vmatprep.subr.bf16.mxu0 %v9023_v24 }
0x10ac   :  { %v7087_v21 = vpop.f32.mrb[20].mxu0 }
0x10ad   :  { %v7088_v5 = vpop.f32.mrb[21].mxu0 }
0x10ae   :  { %v7089_v6 = vadd.f32 %v7088_v5, %v7087_v21  ;;  %v7090_v8 = vpop.f32.mrb[22].mxu0 }
0x10af   :  { %v7091_v10 = vpop.f32.mrb[23].mxu0 }
0x10b0   :  { %v2344_v13 = vadd.f32 %v7089_v6, %v6741_v4  ;;  %v7092_v16 = vadd.f32 %v7091_v10, %v7090_v8  ;;  %v2385_v10 = vrot.slane %v2353_v2, %v9418_v11 }
0x10b2   :  { %v2347_v19 = vadd.f32 %v7092_v16, %v6741_v4  ;;  %v9604_v20 = vadd.f32 %v2344_v13, %v9584_v57 }
0x10b4   :  { %2354 = vadd.xlane.f32.xlu1 %v9604_v20  ;;  %v9608_v22 = vadd.f32 %v2347_v19, %v9587_v56 }
0x10b6   :  { %2356 = vadd.xlane.f32.xlu0 %v9608_v22 }
0x1141   :  { %v2355_v57 = vpop.xlane.xlu1 %2354 }
0x1142   :  { %v2358_v56 = vmul.f32 0.0078125, %v2355_v57 }
0x1143   :  { %v2357_v31 = vpop.xlane.xlu0 %2356 }
0x1144   :  { %v2359_v32 = vmul.f32 0.0078125, %v2357_v31  ;;  %v2360_v33 = vsub.f32 %v9604_v20, %v2358_v56 }
0x1146   :  { %v2362_v34 = vmul.f32 %v2360_v33, %v2360_v33  ;;  %v2361_v35 = vsub.f32 %v9608_v22, %v2359_v32 }
0x1148   :  { %2364 = vadd.xlane.f32.xlu1 %v2362_v34  ;;  %v2363_v37 = vmul.f32 %v2361_v35, %v2361_v35 }
0x114a   :  { %2366 = vadd.xlane.f32.xlu0 %v2363_v37 }
0x11d5   :  { %v2365_v61 = vpop.xlane.xlu1 %2364 }
0x11d6   :  { %v2368_v62 = vmul.f32 0.0078125, %v2365_v61 }
0x11d7   :  { %v2367_v58 = vpop.xlane.xlu0 %2366 }
0x11d8   :  { %v2370_v63 = vadd.f32 1e-05, %v2368_v62  ;;  %v2369_v18 = vmul.f32 0.0078125, %v2367_v58  ;;  %v9646_v62 = vld [vmem:[%s10361_s11 + $0x8] sm:$0xff] }
0x11da   :  { %8196 = vrsqrt.f32 %v2370_v63  ;;  %v2371_v1 = vadd.f32 1e-05, %v2369_v18 }
0x11dc   :  { %8198 = vrsqrt.f32 %v2371_v1 }
0x11e4   :  { %v8197_v21 = vpop.eup %8196 }
0x11e5   :  { %v2374_v4 = vmul.f32 %v8197_v21, %v2360_v33 }
0x11e6   :  { %v8199_v5 = vpop.eup %8198 }
0x11e7   :  { %v2375_v6 = vmul.f32 %v8199_v5, %v2361_v35  ;;  %v2380_v8 = vmul.f32 %v2379_v3, %v2374_v4 }
0x11e9   :  { %v2381_v13 = vmul.f32 %v2379_v3, %v2375_v6  ;;  %v2386_v16 = vadd.f32 %v2385_v10, %v2380_v8 }
0x11eb   :  { %v2387_v19 = vadd.f32 %v2385_v10, %v2381_v13 }
0x11ed   :  { %v2423_v25 = vpack.c.bf16 %v2387_v19, %v2386_v16 }
0x11ef   :  { %2601 = vmatmul.mubr.bf16.vlgmr.msra.gmra.mrb[36].mxu1 %v2423_v25  ;;  %7379 = vmatmul.mubr.bf16.vlgmr.msra.gmra.mrb[24].mxu0 %v2423_v25 }
0x11f0   :  { %7386 = vmatprep.mubr.msk.bf16.mxu1 %vm9024_vm12, %v9023_v24  ;;  %7414 = vmatprep.mubr.msk.bf16.mxu0 %vm9024_vm12, %v9023_v24 }
0x12c2   :  { %v2602_v30 = vpop.f32.mrb[36].mxu1  ;;  %v2645_v57 = vpop.f32.mrb[24].mxu0 }
0x12c3   :  { %v2604_v56 = vpop.f32.mrb[37].mxu1  ;;  %v7380_v31 = vpop.f32.mrb[25].mxu0  ;;  %v2603_v35 = vadd.f32 %v2602_v30, %v2428_v28  ;;  %v2646_v37 = vadd.f32 %v2645_v57, %v2436_v29 }
0x12c4   :  { %v2605_v32 = vadd.f32 %v2604_v56, %v2432_v27  ;;  %v2606_v33 = vpop.f32.mrb[38].mxu1  ;;  %v2648_v34 = vpop.f32.mrb[26].mxu0 }
0x12c5   :  { %v2607_v40 = vadd.f32 %v2606_v33, %v2428_v28  ;;  %v2649_v43 = vadd.f32 %v2648_v34, %v2436_v29  ;;  %v2608_v44 = vpop.f32.mrb[39].mxu1  ;;  %v7381_v45 = vpop.f32.mrb[27].mxu0 }
0x12c6   :  { %v2609_v46 = vadd.f32 %v2608_v44, %v2432_v27  ;;  %2672 = vxpose.xlu1.b32.start [1/2] (short) (narrow) %v2605_v32, 32 }
0x12c7   :  { %v2671_v48 = vpack.c.bf16 %v2607_v40, %v2603_v35  ;;  %v9632_v47 = vpack.c.bf16 %v2649_v43, %v2646_v37 }
0x12c8   :  { %v7707_v49 = vpack.i.bf16 %v2609_v46, %v2605_v32 }
0x12ca   :  { %2673 = vxpose.xlu1.b32.end [2/2] (short) (narrow) %v2609_v46, 32 }
0x1346   :  { %v2688_v50 = vpop.trf.xlu1 }
0x134a   :  { %v2689_v51 = vpop.trf.xlu1 }
0x134b   :  { %v2704_v52 = vpack.c.bf16 %v2689_v51, %v2688_v50 }
0x134d   :  { %7383 = vmatpush3.bf16.msra.mxu1 %v2704_v52 }
0x134e   :  { %v2690_v53 = vpop.trf.xlu1  ;;  %7384 = vmatprep.subr.bf16.mxu1 %v9023_v24 }
0x1352   :  { %v2691_v54 = vpop.trf.xlu1 }
0x1353   :  { %v2705_v55 = vpack.c.bf16 %v2691_v54, %v2690_v53 }
0x1355   :  { %7385 = vmatpush3.bf16.msra.mxu1 %v2705_v55 }
0x1356   :  { %7390 = vmatprep.subr.bf16.mxu1 %v9023_v24 }
0x1358   :  { %7387 = vmatmul.mubr.msk.bf16.vlgmr.msra.gmra.mrb[40].mxu1 %vm1234_vm13, %v2671_v48 }
0x1359   :  { %7391 = vmatpush3.bf16.msra.mxu1 %v9632_v47  ;;  %7392 = vmatprep.mubr.msk.bf16.mxu1 %vm9024_vm12, %v9023_v24 }
0x135a   :  { %7396 = vmatprep.subr.bf16.mxu1 %v9023_v24 }
0x142b   :  { %v2744_v17 = vpop.f32.mrb[40].mxu1 }
0x142c   :  { %v2745_v59 = vadd.f32 %v9642_v14, %v2744_v17  ;;  %v7388_v60 = vpop.f32.mrb[41].mxu1 }
0x142d   :  { %v2747_v61 = vpop.f32.mrb[42].mxu1 }
0x142e   :  { %v2748_v58 = vadd.f32 %v9646_v62, %v2747_v61  ;;  %v7389_v63 = vpop.f32.mrb[43].mxu1  ;;  %v2751_v18 = vsel %vm1279_vm14, %v2745_v59, -inf }
0x142f   :  { %2752 = vmax.xlane.f32.xlu0 %v2751_v18 }
0x1430   :  { %v2754_v1 = vsel %vm1279_vm14, %v2748_v58, -inf }
0x1433   :  { %2755 = vmax.xlane.f32.xlu0 %v2754_v1 }
0x1449   :  { %7708 = vrot.lane.b32.xlu0 %v7707_v49, %s9025_s28 }
0x144d   :  { %7713 = vrot.lane.b32.xlu0 %v7707_v49, %s9004_s8 }
0x1451   :  { %7718 = vrot.lane.b32.xlu0 %v7707_v49, %s9010_s7 }
0x1455   :  { %2861 = vrot.lane.b32.xlu0 %v2671_v48, %s9025_s28 }
0x1459   :  { %3018 = vrot.lane.b32.xlu0 %v2671_v48, %s9004_s8 }
0x14bc   :  { %v2753_v2 = vpop.xlane.xlu0 %2752 }
0x14bd   :  { %v2757_v3 = vsub.f32 %v2745_v59, %v2753_v2 }
0x14bf   :  { %v2759_v21 = vmul.f32 1.442695, %v2757_v3 }
0x14c0   :  { %v2756_v4 = vpop.xlane.xlu0 %2755 }
0x14c1   :  { %8200 = vpow2.f32 %v2759_v21  ;;  %v2758_v5 = vsub.f32 %v2748_v58, %v2756_v4 }
0x14c3   :  { %v2761_v6 = vmul.f32 1.442695, %v2758_v5 }
0x14c4   :  { %v7709_v19 = vpop.permute.xlu0 %7708 }
0x14c5   :  { %8202 = vpow2.f32 %v2761_v6  ;;  %v7710_v27 = vunpack.i.l.bf16 %v7709_v19  ;;  %v7711_v30 = vunpack.i.h.bf16 %v7709_v19 }
0x14c8   :  { %v7714_v25 = vpop.permute.xlu0 %7713 }
0x14c9   :  { %v7715_v26 = vunpack.i.l.bf16 %v7714_v25  ;;  %v7716_v28 = vunpack.i.h.bf16 %v7714_v25 }
0x14cb   :  { %v8201_v8 = vpop.eup %8200  ;;  %v7722_v29 = vpack.i.bf16 %v7715_v26, %v7710_v27  ;;  %v7724_v57 = vpack.i.bf16 %v7716_v28, %v7711_v30 }
0x14cc   :  { %v2763_v10 = vsel %vm1279_vm14, %v8201_v8, 0.0  ;;  %v7719_v56 = vpop.permute.xlu0 %7718 }
0x14cd   :  { %2764 = vadd.xlane.f32.xlu0 %v2763_v10  ;;  %v7720_v31 = vunpack.i.l.bf16 %v7719_v56  ;;  %v7721_v32 = vunpack.i.h.bf16 %v7719_v56 }
0x14cf   :  { %v8203_v13 = vpop.eup %8202 }
0x14d0   :  { %v2766_v16 = vsel %vm1279_vm14, %v8203_v13, 0.0  ;;  %v2862_v33 = vpop.permute.xlu0 %2861 }
0x14d1   :  { %2767 = vadd.xlane.f32.xlu1 %v2766_v16 }
0x14d4   :  { %v3019_v34 = vpop.permute.xlu0 %3018 }
0x14e2   :  { %3174 = vrot.lane.b32.xlu1 %v2671_v48, %s9010_s7 }
0x14fa   :  { %7723 = vxpose.xlu0.b32.start [1/2] (short) (narrow) %v7722_v29, 32 }
0x14fe   :  { %7725 = vxpose.xlu0.b32.end [2/2] (short) (narrow) %v7724_v57, 32 }
0x150b   :  { %3140 = vxpose.xlu1.b32.start [1/2] (short) (narrow) %v7720_v31, 32 }
0x150f   :  { %3141 = vxpose.xlu1.b32.end [2/2] (short) (narrow) %v7721_v32, 32 }
0x152d   :  { %7761 = vset.pattern.permute.xlu1 %v9021_v0 }
0x155a   :  { %v2765_v35 = vpop.xlane.xlu0 %2764 }
0x155b   :  { %8204 = vrcp.f32 %v2765_v35 }
0x155e   :  { %v2768_v37 = vpop.xlane.xlu1 %2767 }
0x155f   :  { %8206 = vrcp.f32 %v2768_v37 }
0x1562   :  { %v3175_v58 = vpop.permute.xlu1 %3174 }
0x1565   :  { %v8205_v40 = vpop.eup %8204 }
0x1566   :  { %v2771_v44 = vmul.f32 %v8205_v40, %v8201_v8 }
0x1569   :  { %v8207_v43 = vpop.eup %8206 }
0x156a   :  { %v2772_v45 = vmul.f32 %v8207_v43, %v8203_v13 }
0x156c   :  { %v2773_v46 = vpack.c.bf16 %v2772_v45, %v2771_v44 }
0x156e   :  { %7393 = vmatmul.mubr.msk.bf16.vlgmr.msra.gmra.mrb[44].mxu1 %vm1279_vm14, %v2773_v46 }
0x156f   :  { %7400 = vmatprep.mubr.msk.bf16.mxu1 %vm9024_vm12, %v9023_v24 }
0x157a   :  { %v7726_v48 = vpop.trf.xlu0 }
0x157b   :  { %v7730_v49 = vunpack.i.h.bf16 %v7726_v48  ;;  %v7727_v50 = vunpack.i.l.bf16 %v7726_v48 }
0x157e   :  { %v7731_v51 = vpop.trf.xlu0 }
0x157f   :  { %v7735_v52 = vunpack.i.h.bf16 %v7731_v51  ;;  %v7732_v53 = vunpack.i.l.bf16 %v7731_v51 }
0x1581   :  { %v2858_v54 = vpack.c.bf16 %v7732_v53, %v7727_v50  ;;  %v3016_v55 = vpack.c.bf16 %v7735_v52, %v7730_v49 }
0x1582   :  { %v7736_v17 = vpop.trf.xlu0 }
0x1583   :  { %7397 = vmatpush3.bf16.msra.mxu1 %v2858_v54  ;;  %7411 = vmatpush3.bf16.msra.mxu0 %v3016_v55  ;;  %v7740_v59 = vunpack.i.h.bf16 %v7736_v17  ;;  %v7737_v60 = vunpack.i.l.bf16 %v7736_v17 }
0x1584   :  { %7398 = vmatprep.subr.bf16.mxu1 %v9023_v24  ;;  %7412 = vmatprep.subr.bf16.mxu0 %v9023_v24 }
0x1586   :  { %v7741_v61 = vpop.trf.xlu0 }
0x1587   :  { %v7745_v63 = vunpack.i.h.bf16 %v7741_v61  ;;  %v7742_v18 = vunpack.i.l.bf16 %v7741_v61 }
0x1589   :  { %v2859_v1 = vpack.c.bf16 %v7742_v18, %v7737_v60  ;;  %v3017_v2 = vpack.c.bf16 %v7745_v63, %v7740_v59 }
0x158b   :  { %v3156_v3 = vpop.trf.xlu1  ;;  %7399 = vmatpush3.bf16.msra.mxu1 %v2859_v1  ;;  %7413 = vmatpush3.bf16.msra.mxu0 %v3017_v2 }
0x158c   :  { %7424 = vmatprep.subr.bf16.mxu0 %v9023_v24  ;;  %7404 = vmatprep.subr.bf16.mxu1 %v9023_v24 }
0x158e   :  { %7401 = vmatmul.mubr.msk.bf16.vlgmr.msra.gmra.mrb[48].mxu1 %vm1234_vm13, %v2862_v33  ;;  %7415 = vmatmul.mubr.msk.bf16.vlgmr.msra.gmra.mrb[28].mxu0 %vm1234_vm13, %v3019_v34 }
0x158f   :  { %v3157_v21 = vpop.trf.xlu1  ;;  %7428 = vmatprep.mubr.msk.bf16.mxu0 %vm9024_vm12, %v9023_v24  ;;  %7406 = vmatprep.mubr.msk.bf16.mxu1 %vm9024_vm12, %v9023_v24 }
0x1590   :  { %v3172_v4 = vpack.c.bf16 %v3157_v21, %v3156_v3 }
0x1592   :  { %7425 = vmatpush3.bf16.msra.mxu0 %v3172_v4 }
0x1593   :  { %v3158_v5 = vpop.trf.xlu1  ;;  %7426 = vmatprep.subr.bf16.mxu0 %v9023_v24 }
0x1597   :  { %v3159_v6 = vpop.trf.xlu1 }
0x1598   :  { %v3173_v8 = vpack.c.bf16 %v3159_v6, %v3158_v5 }
0x159a   :  { %7427 = vmatpush3.bf16.msra.mxu0 %v3173_v8 }
0x159b   :  { %7438 = vmatprep.subr.bf16.mxu0 %v9023_v24 }
0x159d   :  { %7429 = vmatmul.mubr.msk.bf16.vlgmr.msra.gmra.mrb[32].mxu0 %vm1234_vm13, %v3175_v58 }
0x159e   :  { %7454 = vmatprep.mubr.msk.bf16.mxu0 %vm9024_vm12, %v9023_v24 }
0x1641   :  { %v9678_v10 = vpop.f32.mrb[44].mxu1 }
0x1642   :  { %v7394_v13 = vpop.f32.mrb[45].mxu1 }
0x1643   :  { %v9680_v16 = vpop.f32.mrb[46].mxu1 }
0x1644   :  { %v7395_v19 = vpop.f32.mrb[47].mxu1 }
0x1661   :  { %v2900_v25 = vpop.f32.mrb[48].mxu1  ;;  %v3057_v26 = vpop.f32.mrb[28].mxu0 }
0x1662   :  { %v2901_v27 = vadd.f32 %v9642_v14, %v2900_v25  ;;  %v7402_v28 = vpop.f32.mrb[49].mxu1  ;;  %v7416_v29 = vpop.f32.mrb[29].mxu0  ;;  %v3058_v56 = vadd.f32 %v9642_v14, %v3057_v26 }
0x1663   :  { %v2903_v30 = vpop.f32.mrb[50].mxu1  ;;  %v3060_v57 = vpop.f32.mrb[30].mxu0 }
0x1664   :  { %v2904_v31 = vadd.f32 %v9646_v62, %v2903_v30  ;;  %v7403_v32 = vpop.f32.mrb[51].mxu1  ;;  %v7417_v33 = vpop.f32.mrb[31].mxu0  ;;  %v2907_v34 = vsel %vm1279_vm14, %v2901_v27, -inf  ;;  %v3061_v37 = vadd.f32 %v9646_v62, %v3060_v57  ;;  %v3064_v40 = vsel %vm1279_vm14, %v3058_v56, -inf }
0x1665   :  { %2908 = vmax.xlane.f32.xlu0 %v2907_v34 }
0x1666   :  { %v2910_v35 = vsel %vm1279_vm14, %v2904_v31, -inf  ;;  %v3067_v43 = vsel %vm1279_vm14, %v3061_v37, -inf }
0x1667   :  { %2911 = vmax.xlane.f32.xlu1 %v2910_v35 }
0x1669   :  { %3065 = vmax.xlane.f32.xlu0 %v3064_v40 }
0x166d   :  { %3068 = vmax.xlane.f32.xlu0 %v3067_v43 }
0x1670   :  { %v3213_v44 = vpop.f32.mrb[32].mxu0 }
0x1671   :  { %v3214_v45 = vadd.f32 %v9642_v14, %v3213_v44  ;;  %v7430_v46 = vpop.f32.mrb[33].mxu0 }
0x1672   :  { %v3216_v48 = vpop.f32.mrb[34].mxu0 }
0x1673   :  { %v3217_v49 = vadd.f32 %v9646_v62, %v3216_v48  ;;  %v7431_v50 = vpop.f32.mrb[35].mxu0  ;;  %v3220_v51 = vsel %vm1279_vm14, %v3214_v45, -inf }
0x1674   :  { %3221 = vmax.xlane.f32.xlu0 %v3220_v51 }
0x1675   :  { %v3223_v52 = vsel %vm1279_vm14, %v3217_v49, -inf }
0x1678   :  { %3224 = vmax.xlane.f32.xlu0 %v3223_v52 }
0x16f2   :  { %v2909_v53 = vpop.xlane.xlu0 %2908 }
0x16f3   :  { %v2913_v17 = vsub.f32 %v2901_v27, %v2909_v53 }
0x16f4   :  { %v2912_v60 = vpop.xlane.xlu1 %2911 }
0x16f5   :  { %v2915_v58 = vmul.f32 1.442695, %v2913_v17  ;;  %v2914_v63 = vsub.f32 %v2904_v31, %v2912_v60 }
0x16f6   :  { %v3066_v54 = vpop.xlane.xlu0 %3065 }
0x16f7   :  { %v3070_v55 = vsub.f32 %v3058_v56, %v3066_v54  ;;  %v2917_v62 = vmul.f32 1.442695, %v2914_v63  ;;  %v7962_v63 = vld [vmem:[%s10362_s6 + $0x50] sm:$0xff]  }
0x16f9   :  { %v3072_v59 = vmul.f32 1.442695, %v3070_v55 }
0x16fa   :  { %v3069_v61 = vpop.xlane.xlu0 %3068 }
0x16fb   :  { %8208 = vpow2.f32 %v3072_v59  ;;  %v3071_v14 = vsub.f32 %v3061_v37, %v3069_v61 }
0x16fd   :  { %v3074_v18 = vmul.f32 1.442695, %v3071_v14  ;;  %v7960_v14 = vld [vmem:[%s10362_s6 + $0x40] sm:$0xff]  }
0x16fe   :  { %7439 = vmatpush3.bf16.msra.mxu0 %v7960_v14  ;;  %v7970_v14 = vld [vmem:[#allocation11 + $0x84] ss:$8 sps:$4 sm:$0xff]  }
0x16ff   :  { %8210 = vpow2.f32 %v3074_v18  ;;  %7440 = vmatprep.subr.bf16.mxu0 %v9023_v24  ;;  %v7963_v18 = vld [vmem:[%s10362_s6 + $0x58] sm:$0xff]  }
0x1700   :  { %8212 = vpow2.f32 %v2915_v58  ;;  %v7961_v58 = vld [vmem:[%s10362_s6 + $0x48] sm:$0xff]  }
0x1701   :  { %v3222_v1 = vpop.xlane.xlu0 %3221  ;;  %8214 = vpow2.f32 %v2917_v62  ;;  %v7964_v62 = vld [vmem:[%s10362_s6 + $0x60] sm:$0xff]  }
0x1702   :  { %v3226_v2 = vsub.f32 %v3214_v45, %v3222_v1  ;;  %7441 = vmatpush3.bf16.msra.mxu0 %v7961_v58  ;;  %v7973_v58 = vld [vmem:[#allocation11 + $0x94] ss:$8 sps:$4 sm:$0xff]  }
0x1703   :  { %7442 = vmatprep.subr.bf16.mxu0 %v9023_v24 }
0x1704   :  { %v3228_v3 = vmul.f32 1.442695, %v3226_v2 }
0x1705   :  { %v8209_v21 = vpop.eup %8208  ;;  %v3225_v4 = vpop.xlane.xlu0 %3224 }
0x1706   :  { %8216 = vpow2.f32 %v3228_v3  ;;  %v3227_v5 = vsub.f32 %v3217_v49, %v3225_v4  ;;  %v3076_v6 = vsel %vm1279_vm14, %v8209_v21, 0.0  ;;  %7443 = vmatpush3.bf16.msra.mxu0 %v7962_v63  ;;  %v7965_v3 = vld [vmem:[%s10362_s6 + $0x68] sm:$0xff]   ;;  %v7971_v63 = vld [vmem:[#allocation11 + $0x90] ss:$8 sps:$4 sm:$0xff]  }
0x1707   :  { %3077 = vadd.xlane.f32.xlu0 %v3076_v6  ;;  %7444 = vmatprep.subr.bf16.mxu0 %v9023_v24  ;;  %v7966_v6 = vld [vmem:[%s10362_s6 + $0x70] sm:$0xff]  }
0x1708   :  { %v3230_v8 = vmul.f32 1.442695, %v3227_v5 }
0x1709   :  { %v8211_v13 = vpop.eup %8210 }
0x170a   :  { %8218 = vpow2.f32 %v3230_v8  ;;  %v3079_v19 = vsel %vm1279_vm14, %v8211_v13, 0.0  ;;  %v8213_v25 = vpop.eup %8212  ;;  %7445 = vmatpush3.bf16.msra.mxu0 %v7963_v18 }
0x170b   :  { %3080 = vadd.xlane.f32.xlu0 %v3079_v19  ;;  %v2919_v26 = vsel %vm1279_vm14, %v8213_v25, 0.0  ;;  %v8215_v27 = vpop.eup %8214  ;;  %7446 = vmatprep.subr.bf16.mxu0 %v9023_v24  ;;  %v7967_v19 = vld [vmem:[%s10362_s6 + $0x78] sm:$0xff]  }
0x170c   :  { %v2922_v30 = vsel %vm1279_vm14, %v8215_v27, 0.0 }
0x170e   :  { %7447 = vmatpush3.bf16.msra.mxu0 %v7964_v62 }
0x170f   :  { %2920 = vadd.xlane.f32.xlu0 %v2919_v26  ;;  %7448 = vmatprep.subr.bf16.mxu0 %v9023_v24 }
0x1710   :  { %v8217_v28 = vpop.eup %8216 }
0x1711   :  { %v3232_v29 = vsel %vm1279_vm14, %v8217_v28, 0.0 }
0x1712   :  { %3233 = vadd.xlane.f32.xlu1 %v3232_v29  ;;  %7449 = vmatpush3.bf16.msra.mxu0 %v7965_v3 }
0x1713   :  { %2923 = vadd.xlane.f32.xlu0 %v2922_v30  ;;  %7450 = vmatprep.subr.bf16.mxu0 %v9023_v24 }
0x1714   :  { %v8219_v57 = vpop.eup %8218 }
0x1715   :  { %v3235_v56 = vsel %vm1279_vm14, %v8219_v57, 0.0 }
0x1716   :  { %7451 = vmatpush3.bf16.msra.mxu0 %v7966_v6  ;;  %v7979_v6 = vld [vmem:[#allocation11 + $0xb4] ss:$8 sps:$4 sm:$0xff]  }
0x1717   :  { %3236 = vadd.xlane.f32.xlu0 %v3235_v56  ;;  %7452 = vmatprep.subr.bf16.mxu0 %v9023_v24 }
0x171a   :  { %7453 = vmatpush3.bf16.msra.mxu0 %v7967_v19  ;;  %v7980_v19 = vld [vmem:[#allocation11 + $0xc0] ss:$8 sps:$4 sm:$0xff]  }
0x1723   :  { %2931 = vrot.lane.b32.xlu1 %v9632_v47, %s9025_s28 }
0x1727   :  { %3243 = vrot.lane.b32.xlu1 %v9632_v47, %s9010_s7 }
0x172d   :  { %3087 = vrot.lane.b32.xlu0 %v9632_v47, %s9004_s8 }
0x1794   :  { %v3078_v31 = vpop.xlane.xlu0 %3077 }
0x1798   :  { %v3081_v32 = vpop.xlane.xlu0 %3080 }
0x179c   :  { %v2921_v33 = vpop.xlane.xlu0 %2920 }
0x179d   :  { %8220 = vrcp.f32 %v2921_v33 }
0x179f   :  { %v3234_v34 = vpop.xlane.xlu1 %3233 }
0x17a0   :  { %v2924_v35 = vpop.xlane.xlu0 %2923 }
0x17a1   :  { %8222 = vrcp.f32 %v2924_v35 }
0x17a2   :  { %8224 = vrcp.f32 %v3081_v32 }
0x17a3   :  { %v2932_v37 = vpop.permute.xlu1 %2931  ;;  %8226 = vrcp.f32 %v3078_v31 }
0x17a4   :  { %7405 = vmatpush3.bf16.msra.mxu1 %v2932_v37  ;;  %v3237_v43 = vpop.xlane.xlu0 %3236 }
0x17a5   :  { %7418 = vmatprep.subr.bf16.mxu1 %v9023_v24  ;;  %8228 = vrcp.f32 %v3237_v43 }
0x17a6   :  { %8230 = vrcp.f32 %v3234_v34 }
0x17a7   :  { %v8221_v40 = vpop.eup %8220  ;;  %v3244_v55 = vpop.permute.xlu1 %3243 }
0x17a8   :  { %v2927_v45 = vmul.f32 %v8221_v40, %v8213_v25  ;;  %v3088_v49 = vpop.permute.xlu0 %3087 }
0x17ab   :  { %v8223_v44 = vpop.eup %8222 }
0x17ac   :  { %v2928_v46 = vmul.f32 %v8223_v44, %v8215_v27  ;;  %v8225_v48 = vpop.eup %8224 }
0x17ad   :  { %v8227_v50 = vpop.eup %8226  ;;  %v3085_v51 = vmul.f32 %v8225_v48, %v8211_v13 }
0x17ae   :  { %v2929_v47 = vpack.c.bf16 %v2928_v46, %v2927_v45  ;;  %v3084_v52 = vmul.f32 %v8227_v50, %v8209_v21 }
0x17af   :  { %v8229_v54 = vpop.eup %8228 }
0x17b0   :  { %7407 = vmatmul.mubr.msk.bf16.vlgmr.msra.gmra.mrb[52].mxu1 %vm1279_vm14, %v2929_v47  ;;  %v3086_v53 = vpack.c.bf16 %v3085_v51, %v3084_v52  ;;  %v8231_v17 = vpop.eup %8230  ;;  %v3241_v59 = vmul.f32 %v8229_v54, %v8219_v57  ;;  %v6808_v52 = vld [vmem:[%s10363_s1 + $0x1] ss:$0 sm:$0xff] }
0x17b1   :  { %7419 = vmatpush3.bf16.msra.mxu1 %v3088_v49  ;;  %7420 = vmatprep.mubr.msk.bf16.mxu1 %vm9024_vm12, %v9023_v24  ;;  %v3240_v60 = vmul.f32 %v8231_v17, %v8217_v28 }
0x17b2   :  { %7432 = vmatprep.subr.bf16.mxu1 %v9023_v24 }
0x17b3   :  { %v3242_v61 = vpack.c.bf16 %v3241_v59, %v3240_v60 }
0x17b8   :  { %7421 = vmatmul.mubr.msk.bf16.vlgmr.msra.gmra.mrb[56].mxu1 %vm1279_vm14, %v3086_v53 }
0x17b9   :  { %7433 = vmatpush3.bf16.msra.mxu1 %v3244_v55  ;;  %7434 = vmatprep.mubr.msk.bf16.mxu1 %vm9024_vm12, %v9023_v24 }
0x17ba   :  { %3565 = vmatprep.subr.bf16.mxu1 %v7970_v14  ;;  %v8000_v14 = vld [vmem:[#allocation13 + $0xe0] sm:$0xff]  }
0x17c0   :  { %7435 = vmatmul.mubr.msk.bf16.vlgmr.msra.gmra.mrb[60].mxu1 %vm1279_vm14, %v3242_v61  ;;  %v7968_v61 = vld [vmem:[#allocation11 + $0x80] ss:$8 sps:$4 sm:$0xff]  }
0x17c1   :  { %3597 = vmatprep.mubr.bf16.mxu1 %v9021_v0  ;;  %3566 = vmatpush1.bf16.msra.mxu1 %v7968_v61  ;;  %v7999_v61 = vld [vmem:[#allocation13 + $0x98] sm:$0xff]  }
0x17c2   :  { %3567 = vmatprep.subr.bf16.mxu1 %v7973_v58  ;;  %v8001_v58 = vld [vmem:[#allocation13 + $0xa0] sm:$0xff]  }
0x17c5   :  { %3568 = vmatpush1.bf16.msra.mxu1 %v7971_v63  ;;  %v8002_v63 = vld [vmem:[#allocation13 + $0xe8] sm:$0xff]  }
0x1883   :  { %v2971_v1 = vpop.f32.mrb[52].mxu1 }
0x1884   :  { %v7408_v2 = vpop.f32.mrb[53].mxu1 }
0x1885   :  { %v2974_v21 = vpop.f32.mrb[54].mxu1 }
0x1886   :  { %v7746_v4 = vpack.i.bf16 %v2974_v21, %v2971_v1  ;;  %v7409_v5 = vpop.f32.mrb[55].mxu1 }
0x1887   :  { %v7974_v5 = vld [vmem:[#allocation11 + $0xa0] ss:$8 sps:$4 sm:$0xff]  }
0x1888   :  { %7747 = vrot.lane.b32.xlu1 %v7746_v4, %s9010_s7  ;;  %v7976_v4 = vld [vmem:[#allocation11 + $0xa4] ss:$8 sps:$4 sm:$0xff]  }
0x1889   :  { %3569 = vmatprep.subr.bf16.mxu1 %v7976_v4 }
0x188a   :  { %3570 = vmatpush1.bf16.msra.mxu1 %v7974_v5 }
0x188b   :  { %v3127_v8 = vpop.f32.mrb[56].mxu1  ;;  %3571 = vmatprep.subr.bf16.mxu1 %v7979_v6 }
0x188c   :  { %v7422_v13 = vpop.f32.mrb[57].mxu1 }
0x188d   :  { %v3130_v25 = vpop.f32.mrb[58].mxu1  ;;  %v7982_v13 = vld [vmem:[#allocation11 + $0xc4] ss:$8 sps:$4 sm:$0xff]  }
0x188e   :  { %v7751_v26 = vpack.i.bf16 %v3130_v25, %v3127_v8  ;;  %v7423_v27 = vpop.f32.mrb[59].mxu1  ;;  %v7977_v8 = vld [vmem:[#allocation11 + $0xb0] ss:$8 sps:$4 sm:$0xff]   ;;  %v7985_v25 = vld [vmem:[#allocation11 + $0xd4] ss:$8 sps:$4 sm:$0xff]  }
0x188f   :  { %3572 = vmatpush1.bf16.msra.mxu1 %v7977_v8  ;;  %v7988_v27 = vld [vmem:[#allocation11 + $0xe4] ss:$8 sps:$4 sm:$0xff]  }
0x1890   :  { %7752 = vrot.lane.b32.xlu1 %v7751_v26, %s9004_s8  ;;  %3573 = vmatprep.subr.bf16.mxu1 %v7982_v13  ;;  %v7983_v26 = vld [vmem:[#allocation11 + $0xd0] ss:$8 sps:$4 sm:$0xff]  }
0x1893   :  { %v3283_v28 = vpop.f32.mrb[60].mxu1  ;;  %3574 = vmatpush1.bf16.msra.mxu1 %v7980_v19 }
0x1894   :  { %v7436_v29 = vpop.f32.mrb[61].mxu1  ;;  %3575 = vmatprep.subr.bf16.mxu1 %v7985_v25 }
0x1895   :  { %v3286_v30 = vpop.f32.mrb[62].mxu1  ;;  %v7991_v29 = vld [vmem:[#allocation11 + $0xf4] ss:$8 sps:$4 sm:$0xff]  }
0x1896   :  { %v7756_v57 = vpack.i.bf16 %v3286_v30, %v3283_v28  ;;  %v7437_v56 = vpop.f32.mrb[63].mxu1  ;;  %v7986_v28 = vld [vmem:[#allocation11 + $0xe0] ss:$8 sps:$4 sm:$0xff]   ;;  %v7989_v30 = vld [vmem:[#allocation11 + $0xf0] ss:$8 sps:$4 sm:$0xff]  }
0x1897   :  { %3576 = vmatpush1.bf16.msra.mxu1 %v7983_v26 }
0x1898   :  { %7757 = vrot.lane.b32.xlu0 %v7756_v57, %s9025_s28  ;;  %3577 = vmatprep.subr.bf16.mxu1 %v7988_v27 }
0x189b   :  { %3578 = vmatpush1.bf16.msra.mxu1 %v7986_v28 }
0x189c   :  { %3579 = vmatprep.subr.bf16.mxu1 %v7991_v29 }
0x189f   :  { %3580 = vmatpush1.bf16.msra.mxu1 %v7989_v30 }
0x18a0   :  { %7458 = vmatprep.subr.bf16.mxu1 %v9023_v24 }
0x18fa   :  { %v7748_v31 = vpop.permute.xlu1 %7747 }
0x18fb   :  { %v7750_v33 = vunpack.i.h.bf16 %v7748_v31  ;;  %v7749_v34 = vunpack.i.l.bf16 %v7748_v31 }
0x18fd   :  { %v3315_v43 = vsel %vm1234_vm13, %v9680_v16, %v7750_v33  ;;  %v3314_v44 = vsel %vm1234_vm13, %v9678_v10, %v7749_v34 }
0x1902   :  { %v7753_v32 = vpop.permute.xlu1 %7752 }
0x1903   :  { %v7755_v35 = vunpack.i.h.bf16 %v7753_v32  ;;  %v7754_v37 = vunpack.i.l.bf16 %v7753_v32 }
0x1905   :  { %v3317_v47 = vsel %vm1845_vm15, %v3315_v43, %v7755_v35  ;;  %v3316_v48 = vsel %vm1845_vm15, %v3314_v44, %v7754_v37  ;;  %v3419_v35 = vld [vmem:[#allocation10 + $0x2] sm:$0x3] }
0x1906   :  { %v3445_v43 = vrot.slane %v3419_v35, %v9415_v9 }
0x190a   :  { %v7758_v40 = vpop.permute.xlu0 %7757 }
0x190b   :  { %v7760_v45 = vunpack.i.h.bf16 %v7758_v40  ;;  %v7759_v46 = vunpack.i.l.bf16 %v7758_v40 }
0x190d   :  { %v3319_v49 = vsel %vm1848_vm0, %v3317_v47, %v7760_v45  ;;  %v3318_v50 = vsel %vm1848_vm0, %v3316_v48, %v7759_v46  ;;  %v3451_v47 = vrot.slane %v3419_v35, %v9418_v11 }
0x190e   :  { %v3320_v51 = vpack.c.bf16 %v3319_v49, %v3318_v50 }
0x1910   :  { %7455 = vmatmul.mubr.bf16.vlgmr.msra.gmra.mrb[36].mxu0 %v3320_v51 }
0x19e3   :  { %v3409_v53 = vpop.f32.mrb[36].mxu0 }
0x19e4   :  { %v3410_v54 = vadd.f32 %v6808_v52, %v3409_v53  ;;  %v7456_v55 = vpop.f32.mrb[37].mxu0  ;;  %v7993_v53 = vld [vmem:[#allocation13 + $0x80] sm:$0xff]  }
0x19e5   :  { %v3412_v16 = vpop.f32.mrb[38].mxu0  ;;  %v7995_v55 = vld [vmem:[#allocation13 + $0x88] sm:$0xff]  }
0x19e6   :  { %v9744_v17 = vadd.f32 %v3410_v54, %v9604_v20  ;;  %v3413_v10 = vadd.f32 %v6808_v52, %v3412_v16  ;;  %v7457_v59 = vpop.f32.mrb[39].mxu0  ;;  %v7992_v52 = vld [vmem:[#allocation13 + $0xc0] sm:$0xff]   ;;  %v7994_v54 = vld [vmem:[#allocation13 + $0xc8] sm:$0xff]   ;;  %v7996_v16 = vld [vmem:[#allocation13 + $0xd0] sm:$0xff]  }
0x19e7   :  { %7131 = vmatprep.subr.bf16.mxu0 %v7992_v52  ;;  %v7998_v59 = vld [vmem:[#allocation13 + $0xd8] sm:$0xff]  }
0x19e8   :  { %v9747_v60 = vadd.f32 %v3413_v10, %v9608_v22  ;;  %3420 = vadd.xlane.f32.xlu1 %v9744_v17  ;;  %7132 = vmatpush3.bf16.msra.mxu0 %v7993_v53  ;;  %v7997_v10 = vld [vmem:[#allocation13 + $0x90] sm:$0xff]  }
0x19e9   :  { %7133 = vmatprep.subr.bf16.mxu0 %v7994_v54 }
0x19ea   :  { %3422 = vadd.xlane.f32.xlu0 %v9747_v60 }
0x19ec   :  { %7134 = vmatpush3.bf16.msra.mxu0 %v7995_v55 }
0x19ed   :  { %7135 = vmatprep.subr.bf16.mxu0 %v7996_v16 }
0x19f0   :  { %7136 = vmatpush3.bf16.msra.mxu0 %v7997_v10 }
0x19f1   :  { %7137 = vmatprep.subr.bf16.mxu0 %v7998_v59 }
0x19f4   :  { %7138 = vmatpush3.bf16.msra.mxu0 %v7999_v61 }
0x19f5   :  { %7139 = vmatprep.subr.bf16.mxu0 %v8000_v14 }
0x19f8   :  { %7140 = vmatpush3.bf16.msra.mxu0 %v8001_v58 }
0x19f9   :  { %7141 = vmatprep.subr.bf16.mxu0 %v8002_v63 }
0x1a75   :  { %v3421_v18 = vpop.xlane.xlu1 %3420 }
0x1a76   :  { %v3424_v20 = vmul.f32 0.0078125, %v3421_v18  ;;  %v8003_v18 = vld [vmem:[#allocation13 + $0xa8] sm:$0xff]  }
0x1a77   :  { %v3423_v62 = vpop.xlane.xlu0 %3422  ;;  %7142 = vmatpush3.bf16.msra.mxu0 %v8003_v18 }
0x1a78   :  { %v3426_v1 = vsub.f32 %v9744_v17, %v3424_v20  ;;  %v3425_v2 = vmul.f32 0.0078125, %v3423_v62  ;;  %v8004_v20 = vld [vmem:[#allocation13 + $0xf0] sm:$0xff]  }
0x1a79   :  { %v8005_v62 = vld [vmem:[#allocation13 + $0xb0] sm:$0xff]   ;;  %7143 = vmatprep.subr.bf16.mxu0 %v8004_v20 }
0x1a7a   :  { %v3427_v22 = vsub.f32 %v9747_v60, %v3425_v2  ;;  %v3428_v3 = vmul.f32 %v3426_v1, %v3426_v1  ;;  %v8007_v2 = vld [vmem:[#allocation13 + $0xb8] sm:$0xff]  }
0x1a7b   :  { %7144 = vmatpush3.bf16.msra.mxu0 %v8005_v62 }
0x1a7c   :  { %3430 = vadd.xlane.f32.xlu0 %v3428_v3  ;;  %v3429_v21 = vmul.f32 %v3427_v22, %v3427_v22 }
0x1a80   :  { %3432 = vadd.xlane.f32.xlu0 %v3429_v21 }
0x1b09   :  { %v3431_v57 = vpop.xlane.xlu0 %3430 }
0x1b0a   :  { %v3434_v56 = vmul.f32 0.0078125, %v3431_v57 }
0x1b0c   :  { %v3436_v31 = vadd.f32 1e-05, %v3434_v56 }
0x1b0d   :  { %v3433_v32 = vpop.xlane.xlu0 %3432 }
0x1b0e   :  { %8232 = vrsqrt.f32 %v3436_v31  ;;  %v3435_v33 = vmul.f32 0.0078125, %v3433_v32 }
0x1b10   :  { %v3437_v34 = vadd.f32 1e-05, %v3435_v33 }
0x1b12   :  { %8234 = vrsqrt.f32 %v3437_v34 }
0x1b18   :  { %v8233_v37 = vpop.eup %8232 }
0x1b19   :  { %v3440_v40 = vmul.f32 %v8233_v37, %v3426_v1  ;;  %v8006_v1 = vld [vmem:[#allocation13 + $0xf8] sm:$0xff]  }
0x1b1a   :  { %7145 = vmatprep.subr.bf16.mxu0 %v8006_v1 }
0x1b1b   :  { %v3446_v46 = vmul.f32 %v3445_v43, %v3440_v40  ;;  %7146 = vmatpush3.bf16.msra.mxu0 %v8007_v2 }
0x1b1c   :  { %v8235_v44 = vpop.eup %8234 }
0x1b1d   :  { %v3441_v45 = vmul.f32 %v8235_v44, %v3427_v22  ;;  %v3452_v49 = vadd.f32 %v3451_v47, %v3446_v46  ;;  %v6817_v22 = vld [vmem:[%s10364_s29 + $0x2] sm:$0x3] }
0x1b1e   :  { %v3478_v3 = vrot.slane %v6817_v22, %v9415_v9  ;;  %v3482_v21 = vrot.slane %v6817_v22, %v9418_v11 }
0x1b1f   :  { %v3447_v48 = vmul.f32 %v3445_v43, %v3441_v45 }
0x1b21   :  { %v3453_v50 = vadd.f32 %v3451_v47, %v3447_v48 }
0x1b23   :  { %v3473_v51 = vpack.c.bf16 %v3453_v50, %v3452_v49 }
0x1b25   :  { %3598 = vmatmul.mubr.bf16.vlgmr.msra.gmra.mrb[64].mxu1 %v3473_v51 }
0x1b26   :  { %7474 = vmatprep.mubr.msk.bf16.mxu1 %vm9024_vm12, %v9023_v24 }
0x1bf8   :  { %v3599_v4 = vpop.f32.mrb[64].mxu1 }
0x1bf9   :  { %v3600_v5 = vadd.f32 %v3599_v4, %v3478_v3  ;;  %v3601_v6 = vpop.f32.mrb[65].mxu1 }
0x1bfa   :  { %v3602_v8 = vadd.f32 %v3601_v6, %v3482_v21  ;;  %v3603_v13 = vpop.f32.mrb[66].mxu1 }
0x1bfb   :  { %v3612_v19 = vmul.f32 0.044715, %v3600_v5  ;;  %v3604_v25 = vadd.f32 %v3603_v13, %v3478_v3  ;;  %v3605_v26 = vpop.f32.mrb[67].mxu1  ;;  %v3608_v16 = vmul.f32 0.5, %v3600_v5  ;;  %v6835_v3 = vld [vmem:[%s10365_s2 + $0x1] ss:$0 sm:$0xff] }
0x1bfc   :  { %v3613_v27 = vmul.f32 0.044715, %v3602_v8  ;;  %v3606_v28 = vadd.f32 %v3605_v26, %v3482_v21  ;;  %v3609_v61 = vmul.f32 0.5, %v3602_v8 }
0x1bfd   :  { %v3616_v29 = vmul.f32 %v3612_v19, %v3600_v5  ;;  %v3614_v30 = vmul.f32 0.044715, %v3604_v25  ;;  %v3610_v10 = vmul.f32 0.5, %v3604_v25 }
0x1bfe   :  { %v3617_v57 = vmul.f32 %v3613_v27, %v3602_v8  ;;  %v3615_v56 = vmul.f32 0.044715, %v3606_v28  ;;  %v3611_v14 = vmul.f32 0.5, %v3606_v28  ;;  %v8008_v27 = vld [vmem:[#allocation16] sm:$0xff]  }
0x1bff   :  { %v3620_v31 = vmul.f32 %v3616_v29, %v3600_v5  ;;  %v3618_v32 = vmul.f32 %v3614_v30, %v3604_v25  ;;  %7459 = vmatpush3.bf16.msra.mxu1 %v8008_v27 }
0x1c00   :  { %v3621_v33 = vmul.f32 %v3617_v57, %v3602_v8  ;;  %v3619_v34 = vmul.f32 %v3615_v56, %v3606_v28  ;;  %7460 = vmatprep.subr.bf16.mxu1 %v9023_v24 }
0x1c01   :  { %v3624_v35 = vadd.f32 %v3620_v31, %v3600_v5  ;;  %v3622_v37 = vmul.f32 %v3618_v32, %v3604_v25 }
0x1c02   :  { %v3623_v40 = vmul.f32 %v3619_v34, %v3606_v28  ;;  %v3625_v43 = vadd.f32 %v3621_v33, %v3602_v8  ;;  %v8011_v34 = vld [vmem:[#allocation16 + $0x18] sm:$0xff]  }
0x1c03   :  { %v3628_v44 = vmul.f32 0.7978846, %v3624_v35  ;;  %v3626_v45 = vadd.f32 %v3622_v37, %v3604_v25  ;;  %v8012_v35 = vld [vmem:[#allocation16 + $0x20] sm:$0xff]   ;;  %v8013_v37 = vld [vmem:[#allocation16 + $0x28] sm:$0xff]  }
0x1c04   :  { %v3627_v46 = vadd.f32 %v3623_v40, %v3606_v28  ;;  %v3629_v47 = vmul.f32 0.7978846, %v3625_v43  ;;  %v8009_v28 = vld [vmem:[#allocation16 + $0x8] sm:$0xff]   ;;  %v8014_v40 = vld [vmem:[#allocation16 + $0x30] sm:$0xff]   ;;  %v8015_v43 = vld [vmem:[#allocation16 + $0x38] sm:$0xff]  }
0x1c05   :  { %8236 = vtanh.f32 %v3628_v44  ;;  %v3630_v48 = vmul.f32 0.7978846, %v3626_v45  ;;  %7461 = vmatpush3.bf16.msra.mxu1 %v8009_v28 }
0x1c06   :  { %v3631_v49 = vmul.f32 0.7978846, %v3627_v46  ;;  %8238 = vtanh.f32 %v3629_v47  ;;  %7462 = vmatprep.subr.bf16.mxu1 %v9023_v24 }
0x1c07   :  { %8240 = vtanh.f32 %v3630_v48 }
0x1c08   :  { %8242 = vtanh.f32 %v3631_v49 }
0x1c0f   :  { %v8237_v50 = vpop.eup %8236 }
0x1c10   :  { %v8239_v51 = vpop.eup %8238  ;;  %v3636_v52 = vadd.f32 1.0, %v8237_v50  ;;  %v3826_v50 = vld [vmem:[#allocation14] sm:$0x3] }
0x1c11   :  { %v8241_v53 = vpop.eup %8240  ;;  %v3637_v54 = vadd.f32 1.0, %v8239_v51  ;;  %v3852_v51 = vrot.slane %v3826_v50, %v9415_v9 }
0x1c12   :  { %v8243_v55 = vpop.eup %8242  ;;  %v3638_v59 = vadd.f32 1.0, %v8241_v53  ;;  %v3640_v63 = vmul.f32 %v3636_v52, %v3608_v16 }
0x1c13   :  { %v3639_v58 = vadd.f32 1.0, %v8243_v55  ;;  %v3641_v20 = vmul.f32 %v3637_v54, %v3609_v61 }
0x1c14   :  { %v3642_v18 = vmul.f32 %v3638_v59, %v3610_v10  ;;  %v3858_v10 = vrot.slane %v3826_v50, %v9418_v11 }
0x1c15   :  { %v3643_v62 = vmul.f32 %v3639_v58, %v3611_v14 }
0x1c16   :  { %v3679_v1 = vpack.c.bf16 %v3642_v18, %v3640_v63  ;;  %v6852_v63 = vld [vmem:[#allocation17] ss:$0 sm:$0xff] }
0x1c17   :  { %v3680_v2 = vpack.c.bf16 %v3643_v62, %v3641_v20 }
0x1c19   :  { %3815 = vmatprep.mubr.bf16.mxu0 %v3680_v2 }
0x1c1a   :  { %3816 = vmatmul.mubr.bf16.vlgmr.msra.gmra.mrb[40].mxu0 %v3679_v1 }
0x1c1b   :  { %4278 = vmatprep.mubr.bf16.mxu0 %v9021_v0 }
0x1ced   :  { %v7147_v22 = vpop.f32.mrb[40].mxu0 }
0x1cee   :  { %v7148_v21 = vpop.f32.mrb[41].mxu0 }
0x1cef   :  { %v7149_v4 = vadd.f32 %v7148_v21, %v7147_v22  ;;  %v7150_v5 = vpop.f32.mrb[42].mxu0 }
0x1cf0   :  { %v7151_v6 = vpop.f32.mrb[43].mxu0 }
0x1cf1   :  { %v3818_v13 = vadd.f32 %v7149_v4, %v6835_v3  ;;  %v7152_v8 = vadd.f32 %v7151_v6, %v7150_v5 }
0x1cf3   :  { %v3821_v19 = vadd.f32 %v7152_v8, %v6835_v3  ;;  %v3824_v25 = vadd.f32 %v3818_v13, %v9744_v17 }
0x1cf5   :  { %3827 = vadd.xlane.f32.xlu1 %v3824_v25  ;;  %v3825_v26 = vadd.f32 %v3821_v19, %v9747_v60  ;;  %v8010_v60 = vld [vmem:[#allocation16 + $0x10] sm:$0xff]  }
0x1cf6   :  { %7463 = vmatpush3.bf16.msra.mxu1 %v8010_v60  ;;  %v8019_v60 = vld [vmem:[#allocation20 + $0x8] ss:$16 sps:$4 sm:$0xff]  }
0x1cf7   :  { %3829 = vadd.xlane.f32.xlu0 %v3825_v26  ;;  %7464 = vmatprep.subr.bf16.mxu1 %v9023_v24 }
0x1cfa   :  { %7465 = vmatpush3.bf16.msra.mxu1 %v8011_v34  ;;  %v8021_v34 = vld [vmem:[#allocation20 + $0xc] ss:$16 sps:$4 sm:$0xff]  }
0x1cfb   :  { %7466 = vmatprep.subr.bf16.mxu1 %v9023_v24 }
0x1cfe   :  { %7467 = vmatpush3.bf16.msra.mxu1 %v8012_v35  ;;  %v8024_v35 = vld [vmem:[#allocation20 + $0x24] ss:$16 sps:$4 sm:$0xff]  }
0x1cff   :  { %7468 = vmatprep.subr.bf16.mxu1 %v9023_v24 }
0x1d02   :  { %7469 = vmatpush3.bf16.msra.mxu1 %v8013_v37  ;;  %v8027_v37 = vld [vmem:[#allocation20 + $0x2c] ss:$16 sps:$4 sm:$0xff]  }
0x1d03   :  { %7470 = vmatprep.subr.bf16.mxu1 %v9023_v24 }
0x1d06   :  { %7471 = vmatpush3.bf16.msra.mxu1 %v8014_v40  ;;  %v8022_v40 = vld [vmem:[#allocation20 + $0x20] ss:$16 sps:$4 sm:$0xff]  }
0x1d07   :  { %7472 = vmatprep.subr.bf16.mxu1 %v9023_v24 }
0x1d0a   :  { %7473 = vmatpush3.bf16.msra.mxu1 %v8015_v43  ;;  %v8025_v43 = vld [vmem:[#allocation20 + $0x28] ss:$16 sps:$4 sm:$0xff]  }
0x1d0b   :  { %4289 = vmatprep.subr.bf16.mxu1 %v8021_v34 }
0x1d82   :  { %v3828_v29 = vpop.xlane.xlu1 %3827 }
0x1d83   :  { %v3831_v30 = vmul.f32 0.0078125, %v3828_v29 }
0x1d84   :  { %v3830_v57 = vpop.xlane.xlu0 %3829 }
0x1d85   :  { %v3833_v56 = vsub.f32 %v3824_v25, %v3831_v30  ;;  %v3832_v31 = vmul.f32 0.0078125, %v3830_v57 }
0x1d87   :  { %v3834_v32 = vsub.f32 %v3825_v26, %v3832_v31  ;;  %v3835_v33 = vmul.f32 %v3833_v56, %v3833_v56 }
0x1d89   :  { %3837 = vadd.xlane.f32.xlu1 %v3835_v33  ;;  %v3836_v17 = vmul.f32 %v3834_v32, %v3834_v32  ;;  %v8016_v33 = vld [vmem:[#allocation20] ss:$16 sps:$4 sm:$0xff]  }
0x1d8b   :  { %3839 = vadd.xlane.f32.xlu0 %v3836_v17  ;;  %v8018_v17 = vld [vmem:[#allocation20 + $0x4] ss:$16 sps:$4 sm:$0xff]  }
0x1d8c   :  { %4246 = vmatprep.subr.bf16.mxu0 %v8018_v17 }
0x1d8d   :  { %4247 = vmatpush1.bf16.msra.mxu0 %v8016_v33 }
0x1d8e   :  { %4248 = vmatprep.subr.bf16.mxu0 %v8024_v35 }
0x1d91   :  { %4249 = vmatpush1.bf16.msra.mxu0 %v8022_v40 }
0x1e16   :  { %v3838_v44 = vpop.xlane.xlu1 %3837 }
0x1e17   :  { %v3841_v45 = vmul.f32 0.0078125, %v3838_v44 }
0x1e18   :  { %v3840_v46 = vpop.xlane.xlu0 %3839 }
0x1e19   :  { %v3843_v47 = vadd.f32 1e-05, %v3841_v45  ;;  %v3842_v48 = vmul.f32 0.0078125, %v3840_v46 }
0x1e1b   :  { %8244 = vrsqrt.f32 %v3843_v47  ;;  %v3844_v49 = vadd.f32 1e-05, %v3842_v48 }
0x1e1d   :  { %8246 = vrsqrt.f32 %v3844_v49 }
0x1e25   :  { %v8245_v52 = vpop.eup %8244 }
0x1e26   :  { %v3847_v53 = vmul.f32 %v8245_v52, %v3833_v56  ;;  %v3887_v52 = vld [vmem:[%s10366_s21] sm:$0x3] }
0x1e27   :  { %v8247_v54 = vpop.eup %8246 }
0x1e28   :  { %v3848_v55 = vmul.f32 %v8247_v54, %v3834_v32  ;;  %v3853_v16 = vmul.f32 %v3852_v51, %v3847_v53  ;;  %v8030_v53 = vld [vmem:[#allocation20 + $0x44] ss:$16 sps:$4 sm:$0xff]   ;;  %v8033_v54 = vld [vmem:[#allocation20 + $0x4c] ss:$16 sps:$4 sm:$0xff]  }
0x1e29   :  { %4250 = vmatprep.subr.bf16.mxu0 %v8030_v53 }
0x1e2a   :  { %v3854_v59 = vmul.f32 %v3852_v51, %v3848_v55  ;;  %v9774_v61 = vadd.f32 %v3858_v10, %v3853_v16  ;;  %v4708_v55 = vld [vmem:[%s10367_s0] sm:$0xff] }
0x1e2b   :  { %v8028_v16 = vld [vmem:[#allocation20 + $0x40] ss:$16 sps:$4 sm:$0xff]  }
0x1e2c   :  { %v9776_v14 = vadd.f32 %v3858_v10, %v3854_v59  ;;  %v8031_v10 = vld [vmem:[#allocation20 + $0x48] ss:$16 sps:$4 sm:$0xff]   ;;  %4251 = vmatpush1.bf16.msra.mxu0 %v8028_v16  ;;  %v8036_v59 = vld [vmem:[#allocation20 + $0x64] ss:$16 sps:$4 sm:$0xff]  }
0x1e2d   :  { %4252 = vmatprep.subr.bf16.mxu0 %v8036_v59  ;;  %v8381_v16 = vld [vmem:[#allocation2 + $0x80] sm:$0xff]   ;;  %v8383_v59 = vld [vmem:[#allocation2 + $0xc8] sm:$0xff]  }
0x1e2e   :  { %v3915_v58 = vpack.c.bf16 %v9776_v14, %v9774_v61 }
0x1e30   :  { %7475 = vmatmul.mubr.bf16.vlgmr.msra.gmra.mrb[68].mxu1 %v3915_v58  ;;  %v8039_v58 = vld [vmem:[#allocation20 + $0x6c] ss:$16 sps:$4 sm:$0xff]  }
0x1e31   :  { %4321 = vmatprep.mubr.bf16.mxu1 %v9021_v0  ;;  %4290 = vmatpush1.bf16.msra.mxu1 %v8019_v60 }
0x1e32   :  { %4291 = vmatprep.subr.bf16.mxu1 %v8027_v37  ;;  %v4029_v37 = vld [vmem:[#allocation19] sm:$0x3] }
0x1e33   :  { %v4055_v40 = vrot.slane %v4029_v37, %v9415_v9 }
0x1e35   :  { %4292 = vmatpush1.bf16.msra.mxu1 %v8025_v43 }
0x1e36   :  { %4293 = vmatprep.subr.bf16.mxu1 %v8033_v54 }
0x1e39   :  { %4294 = vmatpush1.bf16.msra.mxu1 %v8031_v10  ;;  %v8382_v10 = vld [vmem:[#allocation2 + $0x48] sm:$0xff]  }
0x1e3a   :  { %4295 = vmatprep.subr.bf16.mxu1 %v8039_v58  ;;  %v8384_v58 = vld [vmem:[#allocation2 + $0x8] sm:$0xff]  }
0x1f03   :  { %v4004_v18 = vpop.f32.mrb[68].mxu1 }
0x1f04   :  { %v4005_v20 = vadd.f32 %v6852_v63, %v4004_v18  ;;  %v7476_v62 = vpop.f32.mrb[69].mxu1  ;;  %v8034_v18 = vld [vmem:[#allocation20 + $0x60] ss:$16 sps:$4 sm:$0xff]  }
0x1f05   :  { %v4007_v1 = vpop.f32.mrb[70].mxu1  ;;  %4253 = vmatpush1.bf16.msra.mxu0 %v8034_v18  ;;  %v4709_v62 = vld [vmem:[%s10367_s0 + $0x8] sm:$0xff]  ;;  %v8386_v18 = vld [vmem:[#allocation2 + $0x50] sm:$0xff]  }
0x1f06   :  { %v4013_v2 = vmul.f32 0.044715, %v4005_v20  ;;  %v4008_v22 = vadd.f32 %v6852_v63, %v4007_v1  ;;  %v7477_v3 = vpop.f32.mrb[71].mxu1  ;;  %v4011_v28 = vmul.f32 0.5, %v4005_v20  ;;  %v3861_v63 = vld [vmem:[%s10368_s19] sm:$0xff] }
0x1f07   :  { %v8042_v1 = vld [vmem:[#allocation20 + $0x84] ss:$16 sps:$4 sm:$0xff]   ;;  %v8040_v3 = vld [vmem:[#allocation20 + $0x80] ss:$16 sps:$4 sm:$0xff]  }
0x1f08   :  { %v4014_v21 = vmul.f32 0.044715, %v4008_v22  ;;  %v4015_v4 = vmul.f32 %v4013_v2, %v4005_v20  ;;  %v4012_v56 = vmul.f32 0.5, %v4008_v22  ;;  %v8045_v2 = vld [vmem:[#allocation20 + $0x8c] ss:$16 sps:$4 sm:$0xff]   ;;  %4254 = vmatprep.subr.bf16.mxu0 %v8042_v1  ;;  %v8389_v1 = vld [vmem:[#allocation2 + $0x90] sm:$0xff]  }
0x1f09   :  { %4255 = vmatpush1.bf16.msra.mxu0 %v8040_v3  ;;  %v8392_v3 = vld [vmem:[#allocation2 + $0x18] sm:$0xff]  }
0x1f0a   :  { %v4016_v5 = vmul.f32 %v4014_v21, %v4008_v22  ;;  %v4017_v6 = vmul.f32 %v4015_v4, %v4005_v20  ;;  %v8043_v21 = vld [vmem:[#allocation20 + $0x88] ss:$16 sps:$4 sm:$0xff]   ;;  %v8048_v4 = vld [vmem:[#allocation20 + $0xa4] ss:$16 sps:$4 sm:$0xff]  }
0x1f0b   :  { %4256 = vmatprep.subr.bf16.mxu0 %v8048_v4  ;;  %v8394_v4 = vld [vmem:[#allocation2 + $0x60] sm:$0xff]  }
0x1f0c   :  { %v4019_v13 = vadd.f32 %v4017_v6, %v4005_v20  ;;  %v4018_v8 = vmul.f32 %v4016_v5, %v4008_v22  ;;  %v8037_v20 = vld [vmem:[#allocation20 + $0x68] ss:$16 sps:$4 sm:$0xff]   ;;  %v8051_v5 = vld [vmem:[#allocation20 + $0xac] ss:$16 sps:$4 sm:$0xff]  }
0x1f0d   :  { %4296 = vmatpush1.bf16.msra.mxu1 %v8037_v20  ;;  %v8387_v20 = vld [vmem:[#allocation2 + $0xd0] sm:$0xff]  }
0x1f0e   :  { %v4021_v19 = vmul.f32 0.7978846, %v4019_v13  ;;  %v4020_v25 = vadd.f32 %v4018_v8, %v4008_v22  ;;  %v3862_v22 = vld [vmem:[%s10368_s19 + $0x8] sm:$0xff]  ;;  %4297 = vmatprep.subr.bf16.mxu1 %v8045_v2  ;;  %v8046_v13 = vld [vmem:[#allocation20 + $0xa0] ss:$16 sps:$4 sm:$0xff]   ;;  %v8390_v2 = vld [vmem:[#allocation2 + $0x58] sm:$0xff]  }
0x1f0f   :  { %v8049_v8 = vld [vmem:[#allocation20 + $0xa8] ss:$16 sps:$4 sm:$0xff]   ;;  %4257 = vmatpush1.bf16.msra.mxu0 %v8046_v13  ;;  %v8397_v13 = vld [vmem:[#allocation2 + $0xa0] sm:$0xff]  }
0x1f10   :  { %8248 = vtanh.f32 %v4021_v19  ;;  %v4022_v26 = vmul.f32 0.7978846, %v4020_v25  ;;  %v8054_v19 = vld [vmem:[#allocation20 + $0xc4] ss:$16 sps:$4 sm:$0xff]   ;;  %v8057_v25 = vld [vmem:[#allocation20 + $0xcc] ss:$16 sps:$4 sm:$0xff]  }
0x1f11   :  { %4298 = vmatpush1.bf16.msra.mxu1 %v8043_v21  ;;  %4258 = vmatprep.subr.bf16.mxu0 %v8054_v19  ;;  %v8393_v21 = vld [vmem:[#allocation2 + $0x98] sm:$0xff]   ;;  %v8399_v19 = vld [vmem:[#allocation2 + $0xe8] sm:$0xff]  }
0x1f12   :  { %8250 = vtanh.f32 %v4022_v26  ;;  %4299 = vmatprep.subr.bf16.mxu1 %v8051_v5  ;;  %v8052_v26 = vld [vmem:[#allocation20 + $0xc0] ss:$16 sps:$4 sm:$0xff]  }
0x1f13   :  { %8252 = vrcp.f32 %v3887_v52  ;;  %4259 = vmatpush1.bf16.msra.mxu0 %v8052_v26  ;;  %v8395_v5 = vld [vmem:[#allocation2 + $0xe0] sm:$0xff]   ;;  %v8401_v26 = vld [vmem:[#allocation2 + $0xa8] sm:$0xff]  }
0x1f15   :  { %4300 = vmatpush1.bf16.msra.mxu1 %v8049_v8  ;;  %v8398_v8 = vld [vmem:[#allocation2 + $0x68] sm:$0xff]  }
0x1f16   :  { %4301 = vmatprep.subr.bf16.mxu1 %v8057_v25  ;;  %v8400_v25 = vld [vmem:[#allocation2 + $0x28] sm:$0xff]  }
0x1f1a   :  { %v8249_v27 = vpop.eup %8248 }
0x1f1b   :  { %v4025_v29 = vadd.f32 1.0, %v8249_v27  ;;  %v8055_v27 = vld [vmem:[#allocation20 + $0xc8] ss:$16 sps:$4 sm:$0xff]  }
0x1f1c   :  { %v8251_v30 = vpop.eup %8250  ;;  %4302 = vmatpush1.bf16.msra.mxu1 %v8055_v27  ;;  %v8402_v27 = vld [vmem:[#allocation2 + $0x70] sm:$0xff]  }
0x1f1d   :  { %v4027_v57 = vmul.f32 %v4025_v29, %v4011_v28  ;;  %v4026_v31 = vadd.f32 1.0, %v8251_v30  ;;  %v8253_v6 = vpop.eup %8252  ;;  %v8060_v28 = vld [vmem:[#allocation20 + $0xe4] ss:$16 sps:$4 sm:$0xff]   ;;  %v8063_v29 = vld [vmem:[#allocation20 + $0xec] ss:$16 sps:$4 sm:$0xff]  }
0x1f1e   :  { %v8058_v30 = vld [vmem:[#allocation20 + $0xe0] ss:$16 sps:$4 sm:$0xff]   ;;  %4260 = vmatprep.subr.bf16.mxu0 %v8060_v28  ;;  %4303 = vmatprep.subr.bf16.mxu1 %v8063_v29 }
0x1f1f   :  { %4030 = vadd.xlane.f32.xlu1 %v4027_v57  ;;  %v4028_v32 = vmul.f32 %v4026_v31, %v4012_v56  ;;  %4261 = vmatpush1.bf16.msra.mxu0 %v8058_v30  ;;  %v8378_v56 = vld [vmem:[#allocation2 + $0x40] sm:$0xff]   ;;  %v8403_v28 = vld [vmem:[#allocation2 + $0xf0] sm:$0xff]  }
0x1f20   :  { %7162 = vmatprep.subr.bf16.mxu0 %v8378_v56  ;;  %v8379_v31 = vld [vmem:[#allocation2 + $0xc0] sm:$0xff]   ;;  %v8404_v29 = vld [vmem:[#allocation2 + $0x30] sm:$0xff]   ;;  %v8407_v56 = vld [vmem:[#allocation2 + $0xf8] sm:$0xff]  }
0x1f21   :  { %4032 = vadd.xlane.f32.xlu0 %v4028_v32  ;;  %v8405_v30 = vld [vmem:[#allocation2 + $0xb0] sm:$0xff]  }
0x1fac   :  { %v4031_v44 = vpop.xlane.xlu1 %4030 }
0x1fad   :  { %v4034_v45 = vmul.f32 0.0078125, %v4031_v44 }
0x1fae   :  { %v4033_v46 = vpop.xlane.xlu0 %4032 }
0x1faf   :  { %v9781_v47 = vsub.f32 %v4027_v57, %v4034_v45  ;;  %v4035_v48 = vmul.f32 0.0078125, %v4033_v46  ;;  %v8061_v57 = vld [vmem:[#allocation20 + $0xe8] ss:$16 sps:$4 sm:$0xff]  }
0x1fb0   :  { %4304 = vmatpush1.bf16.msra.mxu1 %v8061_v57  ;;  %v8406_v57 = vld [vmem:[#allocation2 + $0x78] sm:$0xff]  }
0x1fb1   :  { %v9783_v49 = vsub.f32 %v4028_v32, %v4035_v48  ;;  %v4038_v50 = vmul.f32 %v9781_v47, %v9781_v47  ;;  %7184 = vmatprep.subr.bf16.mxu1 %v8379_v31  ;;  %v8408_v31 = vld [vmem:[#allocation2 + $0x38] sm:$0xff]  }
0x1fb3   :  { %4040 = vadd.xlane.f32.xlu1 %v4038_v50  ;;  %v4039_v51 = vmul.f32 %v9783_v49, %v9783_v49  ;;  %v4061_v50 = vrot.slane %v4029_v37, %v9418_v11 }
0x1fb5   :  { %4042 = vadd.xlane.f32.xlu0 %v4039_v51 }
0x1fc4   :  { %4711 = vperm.xlu1 %7761, %v4708_v55  }
0x1fc8   :  { %3865 = vperm.xlu1 %7761, %v3861_v63   ;;  %v8385_v63 = vld [vmem:[#allocation2 + $0x88] sm:$0xff]  }
0x1fcb   :  { %4714 = vperm.xlu0 %7652, %v4709_v62   ;;  %v8388_v62 = vld [vmem:[#allocation2 + $0x10] sm:$0xff]  }
0x1fcc   :  { %3870 = vperm.xlu1 %7761, %v3862_v22   ;;  %v8391_v22 = vld [vmem:[#allocation2 + $0xd8] sm:$0xff]  }
0x1fd0   :  { %3891 = vperm.xlu1 %7761, %v8253_v6   ;;  %v8396_v6 = vld [vmem:[#allocation2 + $0x20] sm:$0xff]  }
0x2040   :  { %v4041_v32 = vpop.xlane.xlu1 %4040 }
0x2041   :  { %v4044_v33 = vmul.f32 0.0078125, %v4041_v32  ;;  %v8409_v32 = vld [vmem:[#allocation2 + $0xb8] sm:$0xff]  }
0x2042   :  { %v4043_v17 = vpop.xlane.xlu0 %4042 }
0x2043   :  { %v4046_v60 = vadd.f32 1e-05, %v4044_v33  ;;  %v4045_v34 = vmul.f32 0.0078125, %v4043_v17 }
0x2044   :  { %v9800_v53 = vpop.permute.xlu1 %4711 }
0x2045   :  { %8254 = vrsqrt.f32 %v4046_v60  ;;  %v4047_v35 = vadd.f32 1e-05, %v4045_v34  ;;  %vm4717_vm1 = vcmp.eq.s32.totalorder %v9391_v38, %v9800_v53  ;;  %vm4719_vm3 = vcmp.eq.s32.totalorder %v9394_v39, %v9800_v53 }
0x2046   :  { %vm4716_vm7 = vcmp.eq.s32.totalorder %v9388_v36, %v9800_v53  ;;  %vm4718_vm9 = vcmp.eq.s32.totalorder %v9397_v41, %v9800_v53 }
0x2047   :  { %8256 = vrsqrt.f32 %v4047_v35 }
0x2048   :  { %v3866_v33 = vpop.permute.xlu1 %3865 }
0x204a   :  { %v9798_v51 = vpop.permute.xlu0 %4714 }
0x204b   :  { %vm4721_vm2 = vcmp.eq.s32.totalorder %v9391_v38, %v9798_v51  ;;  %vm4723_vm4 = vcmp.eq.s32.totalorder %v9394_v39, %v9798_v51  ;;  %vm4720_vm8 = vcmp.eq.s32.totalorder %v9388_v36, %v9798_v51  ;;  %vm4722_vm10 = vcmp.eq.s32.totalorder %v9397_v41, %v9798_v51 }
0x204c   :  { %vm6903_vm5 = vmpackc.low %vm4721_vm2, %vm4717_vm1  ;;  %vm4854_vm2 = vcmp.eq.s32.totalorder %v9412_v7, 0 }
0x204d   :  { %vm6907_vm6 = vmpackc.low %vm4723_vm4, %vm4719_vm3  ;;  %vm4530_vm3 = vcmask 1041408  }
0x204e   :  { %vm6905_vm11 = vmpackc.low %vm4720_vm8, %vm4716_vm7 }
0x204f   :  { %v8255_v43 = vpop.eup %8254  ;;  %vm6909_vm1 = vmpackc.low %vm4722_vm10, %vm4718_vm9  ;;  %vm4424_vm10 = vcmask 7168  }
0x2050   :  { %v4050_v44 = vmul.f32 %v8255_v43, %v9781_v47 }
0x2051   :  { %v8257_v45 = vpop.eup %8256 }
0x2052   :  { %v4051_v46 = vmul.f32 %v8257_v45, %v9783_v49  ;;  %v4056_v48 = vmul.f32 %v4055_v40, %v4050_v44  ;;  %v8380_v49 = vld [vmem:[#allocation2] sm:$0xff]   ;;  %v3873_v44 = vmul.f32 %v3866_v33, %v9774_v61  ;;  %v3871_v45 = vpop.permute.xlu1 %3870 }
0x2054   :  { %v4057_v52 = vmul.f32 %v4055_v40, %v4051_v46  ;;  %v4062_v54 = vadd.f32 %v4061_v50, %v4056_v48  ;;  %v3875_v46 = vrot.slane %v3873_v44, 4  ;;  %v3874_v48 = vmul.f32 %v3871_v45, %v9776_v14 }
0x2056   :  { %v4063_v55 = vadd.f32 %v4061_v50, %v4057_v52  ;;  %v3876_v50 = vadd.f32 %v3875_v46, %v3873_v44  ;;  %v3881_v51 = vrot.slane %v3874_v48, 4 }
0x2058   :  { %v4064_v47 = vpack.c.bf16 %v4063_v55, %v4062_v54  ;;  %v3877_v52 = vrot.slane %v3876_v50, 2  ;;  %v3882_v53 = vadd.f32 %v3881_v51, %v3874_v48 }
0x205a   :  { %4279 = vmatmul.mubr.bf16.vlgmr.msra.gmra.mrb[44].mxu0 %v4064_v47  ;;  %4322 = vmatmul.mubr.bf16.vlgmr.msra.gmra.mrb[72].mxu1 %v4064_v47  ;;  %v3878_v54 = vadd.f32 %v3877_v52, %v3876_v50  ;;  %v3883_v55 = vrot.slane %v3882_v53, 2 }
0x205b   :  { %7163 = vmatpush3.bf16.msra.mxu0 %v8380_v49  ;;  %7185 = vmatpush3.bf16.msra.mxu1 %v8381_v16 }
0x205c   :  { %6904 = vmatprep.mubr.msk.bf16.mxu0 %vm6903_vm5, %v9022_v42  ;;  %6908 = vmatprep.mubr.msk.bf16.mxu1 %vm6907_vm6, %v9022_v42  ;;  %v3879_v47 = vrot.slane %v3878_v54, 1  ;;  %v3884_v49 = vadd.f32 %v3883_v55, %v3882_v53  ;;  %v8067_v55 = vld [vmem:[#allocation23] sm:$0xff]  }
0x205d   :  { %7164 = vmatprep.subr.bf16.mxu0 %v8382_v10  ;;  %7186 = vmatprep.subr.bf16.mxu1 %v8383_v59  ;;  %v3892_v10 = vpop.permute.xlu1 %3891 }
0x205e   :  { %v3880_v16 = vadd.f32 %v3879_v47, %v3878_v54  ;;  %v3885_v59 = vrot.slane %v3884_v49, 1  ;;  %v3893_v14 = vrot.slane %v3892_v10, 1  ;;  %v8070_v47 = vld [vmem:[%s10369_s10 + $0x14] ss:$8 sps:$4 sm:$0xff]  }
0x205f   :  { %7165 = vmatpush3.bf16.msra.mxu0 %v8384_v58  ;;  %7187 = vmatpush3.bf16.msra.mxu1 %v8385_v63 }
0x2060   :  { %7166 = vmatprep.subr.bf16.mxu0 %v8386_v18  ;;  %7188 = vmatprep.subr.bf16.mxu1 %v8387_v20 }
0x2063   :  { %7167 = vmatpush3.bf16.msra.mxu0 %v8388_v62  ;;  %7189 = vmatpush3.bf16.msra.mxu1 %v8389_v1 }
0x2064   :  { %7168 = vmatprep.subr.bf16.mxu0 %v8390_v2  ;;  %7190 = vmatprep.subr.bf16.mxu1 %v8391_v22  ;;  %v3896_v22 = vmul.f32 %v3892_v10, %v3880_v16  ;;  %v8071_v16 = vld [vmem:[#allocation23 + $0x8] sm:$0xff]   ;;  %v8074_v10 = vld [vmem:[%s10369_s10 + $0x24] ss:$8 sps:$4 sm:$0xff]  }
0x2067   :  { %7169 = vmatpush3.bf16.msra.mxu0 %v8392_v3  ;;  %7191 = vmatpush3.bf16.msra.mxu1 %v8393_v21 }
0x2068   :  { %7170 = vmatprep.subr.bf16.mxu0 %v8394_v4  ;;  %7192 = vmatprep.subr.bf16.mxu1 %v8395_v5  ;;  %v3886_v4 = vadd.f32 %v3885_v59, %v3884_v49  ;;  %v8068_v49 = vld [vmem:[%s10369_s10 + $0x10] ss:$8 sps:$4 sm:$0xff]   ;;  %v8072_v59 = vld [vmem:[%s10369_s10 + $0x20] ss:$8 sps:$4 sm:$0xff]  }
0x206b   :  { %7171 = vmatpush3.bf16.msra.mxu0 %v8396_v6  ;;  %7193 = vmatpush3.bf16.msra.mxu1 %v8397_v13 }
0x206c   :  { %7172 = vmatprep.subr.bf16.mxu0 %v8398_v8  ;;  %7194 = vmatprep.subr.bf16.mxu1 %v8399_v19  ;;  %v3897_v19 = vmul.f32 %v3893_v14, %v3886_v4  ;;  %v8084_v14 = vld [vmem:[%s10369_s10 + $0x50] ss:$8 sps:$4 sm:$0xff]   ;;  %v8091_v4 = vld [vmem:[#allocation23 + $0x30] sm:$0xff]  }
0x206f   :  { %7173 = vmatpush3.bf16.msra.mxu0 %v8400_v25  ;;  %7195 = vmatpush3.bf16.msra.mxu1 %v8401_v26  ;;  %v9845_v25 = vrot.slane %v3896_v22, %v9415_v9  ;;  %v9849_v26 = vrot.slane %v3897_v19, %v9415_v9  ;;  %v8087_v22 = vld [vmem:[#allocation23 + $0x28] sm:$0xff]  }
0x2070   :  { %7174 = vmatprep.subr.bf16.mxu0 %v8402_v27  ;;  %7196 = vmatprep.subr.bf16.mxu1 %v8403_v28  ;;  %v8064_v27 = vld [vmem:[%s10369_s10] ss:$8 sps:$4 sm:$0xff]   ;;  %v8066_v28 = vld [vmem:[%s10369_s10 + $0x4] ss:$8 sps:$4 sm:$0xff]  }
0x2073   :  { %7175 = vmatpush3.bf16.msra.mxu0 %v8404_v29  ;;  %7197 = vmatpush3.bf16.msra.mxu1 %v8405_v30 }
0x2074   :  { %7176 = vmatprep.subr.bf16.mxu0 %v8406_v57  ;;  %7198 = vmatprep.subr.bf16.mxu1 %v8407_v56 }
0x2077   :  { %7177 = vmatpush3.bf16.msra.mxu0 %v8408_v31  ;;  %7199 = vmatpush3.bf16.msra.mxu1 %v8409_v32 }
0x2078   :  { %7478 = vmatprep.subr.bf16.mxu0 %v9023_v24  ;;  %5120 = vmatprep.subr.bf16.mxu1 %v8066_v28 }
0x207a   :  { %6906 = vmatmul.mubr.msk.bf16.vlgmr.msra.gmra.mrb[48].mxu0 %vm6905_vm11, %v9022_v42  ;;  %6910 = vmatmul.mubr.msk.bf16.vlgmr.msra.gmra.mrb[76].mxu1 %vm6909_vm1, %v9022_v42  ;;  %vm4660_vm11 = vcmask 1043459   ;;  %vm4662_vm1 = vcmask 1045509  }
0x207b   :  { %5152 = vmatprep.mubr.bf16.mxu1 %v9021_v0  ;;  %7494 = vmatprep.mubr.msk.bf16.mxu0 %vm9024_vm12, %v9023_v24 }
0x207c   :  { %5121 = vmatpush1.bf16.msra.mxu1 %v8064_v27  ;;  %7479 = vmatpush3.bf16.msra.mxu0 %v8067_v55 }
0x207d   :  { %5122 = vmatprep.subr.bf16.mxu1 %v8070_v47  ;;  %7480 = vmatprep.subr.bf16.mxu0 %v9023_v24 }
0x2080   :  { %5123 = vmatpush1.bf16.msra.mxu1 %v8068_v49  ;;  %7481 = vmatpush3.bf16.msra.mxu0 %v8071_v16 }
0x2081   :  { %5124 = vmatprep.subr.bf16.mxu1 %v8074_v10  ;;  %7482 = vmatprep.subr.bf16.mxu0 %v9023_v24 }
0x2084   :  { %5125 = vmatpush1.bf16.msra.mxu1 %v8072_v59 }
0x212d   :  { %v9826_v17 = vpop.f32.mrb[44].mxu0  ;;  %v9828_v60 = vpop.f32.mrb[72].mxu1 }
0x212e   :  { %v9830_v34 = vpop.f32.mrb[45].mxu0  ;;  %v9832_v35 = vpop.f32.mrb[73].mxu1 }
0x212f   :  { %v9834_v37 = vpop.f32.mrb[46].mxu0  ;;  %v9836_v40 = vpop.f32.mrb[74].mxu1 }
0x2130   :  { %v9838_v43 = vpop.f32.mrb[47].mxu0  ;;  %v9840_v42 = vpop.f32.mrb[75].mxu1 }
0x214d   :  { %v7178_v58 = vpop.f32.mrb[48].mxu0  ;;  %v7200_v63 = vpop.f32.mrb[76].mxu1 }
0x214e   :  { %v7179_v18 = vpop.f32.mrb[49].mxu0  ;;  %v7201_v20 = vpop.f32.mrb[77].mxu1 }
0x214f   :  { %v7180_v61 = vadd.f32 %v7179_v18, %v7178_v58  ;;  %v7202_v62 = vadd.f32 %v7201_v20, %v7200_v63  ;;  %v7181_v1 = vpop.f32.mrb[50].mxu0  ;;  %v7203_v2 = vpop.f32.mrb[78].mxu1  ;;  %v8075_v58 = vld [vmem:[#allocation23 + $0x10] sm:$0xff]   ;;  %v8078_v63 = vld [vmem:[%s10369_s10 + $0x34] ss:$8 sps:$4 sm:$0xff]   ;;  %v8079_v20 = vld [vmem:[#allocation23 + $0x18] sm:$0xff]  }
0x2150   :  { %v7182_v3 = vpop.f32.mrb[51].mxu0  ;;  %v7204_v21 = vpop.f32.mrb[79].mxu1  ;;  %7483 = vmatpush3.bf16.msra.mxu0 %v8075_v58  ;;  %v8076_v18 = vld [vmem:[%s10369_s10 + $0x30] ss:$8 sps:$4 sm:$0xff]   ;;  %5126 = vmatprep.subr.bf16.mxu1 %v8078_v63 }
0x2151   :  { %v4820_v5 = vadd.f32 %v7202_v62, %v7180_v61  ;;  %v7183_v6 = vadd.f32 %v7182_v3, %v7181_v1  ;;  %v7205_v13 = vadd.f32 %v7204_v21, %v7203_v2  ;;  %7484 = vmatprep.subr.bf16.mxu0 %v9023_v24  ;;  %5127 = vmatpush1.bf16.msra.mxu1 %v8076_v18  ;;  %v8082_v61 = vld [vmem:[%s10369_s10 + $0x44] ss:$8 sps:$4 sm:$0xff]   ;;  %v8080_v62 = vld [vmem:[%s10369_s10 + $0x40] ss:$8 sps:$4 sm:$0xff]   ;;  %v8083_v1 = vld [vmem:[#allocation23 + $0x20] sm:$0xff]  }
0x2152   :  { %5128 = vmatprep.subr.bf16.mxu1 %v8082_v61  ;;  %v8086_v2 = vld [vmem:[%s10369_s10 + $0x54] ss:$8 sps:$4 sm:$0xff]   ;;  %v8090_v3 = vld [vmem:[%s10369_s10 + $0x64] ss:$8 sps:$4 sm:$0xff]   ;;  %v8088_v21 = vld [vmem:[%s10369_s10 + $0x60] ss:$8 sps:$4 sm:$0xff]  }
0x2153   :  { %v4823_v8 = vadd.f32 %v7205_v13, %v7183_v6  ;;  %4826 = vadd.xlane.f32.xlu0 %v4820_v5  ;;  %v8092_v6 = vld [vmem:[%s10369_s10 + $0x70] ss:$8 sps:$4 sm:$0xff]  }
0x2154   :  { %7485 = vmatpush3.bf16.msra.mxu0 %v8079_v20  ;;  %v8095_v13 = vld [vmem:[#allocation23 + $0x38] sm:$0xff]  }
0x2155   :  { %4828 = vadd.xlane.f32.xlu1 %v4823_v8  ;;  %7486 = vmatprep.subr.bf16.mxu0 %v9023_v24 }
0x2156   :  { %5129 = vmatpush1.bf16.msra.mxu1 %v8080_v62 }
0x2157   :  { %4872 = vadd.xlane.f32.xlu0 %v9845_v25  ;;  %5130 = vmatprep.subr.bf16.mxu1 %v8086_v2 }
0x2158   :  { %7487 = vmatpush3.bf16.msra.mxu0 %v8083_v1 }
0x2159   :  { %7488 = vmatprep.subr.bf16.mxu0 %v9023_v24 }
0x215a   :  { %5131 = vmatpush1.bf16.msra.mxu1 %v8084_v14 }
0x215b   :  { %4874 = vadd.xlane.f32.xlu0 %v9849_v26  ;;  %5132 = vmatprep.subr.bf16.mxu1 %v8090_v3 }
0x215c   :  { %7489 = vmatpush3.bf16.msra.mxu0 %v8087_v22 }
0x215d   :  { %7490 = vmatprep.subr.bf16.mxu0 %v9023_v24 }
0x215e   :  { %5133 = vmatpush1.bf16.msra.mxu1 %v8088_v21 }
0x2160   :  { %7491 = vmatpush3.bf16.msra.mxu0 %v8091_v4 }
0x2161   :  { %7492 = vmatprep.subr.bf16.mxu0 %v9023_v24 }
0x2164   :  { %7493 = vmatpush3.bf16.msra.mxu0 %v8095_v13 }
0x2165   :  { %7498 = vmatprep.subr.bf16.mxu0 %v9023_v24 }
0x21e0   :  { %v4827_v29 = vpop.xlane.xlu0 %4826 }
0x21e1   :  { %v4830_v30 = vmul.f32 0.0078125, %v4827_v29 }
0x21e2   :  { %v4829_v57 = vpop.xlane.xlu1 %4828 }
0x21e3   :  { %v9854_v56 = vsub.f32 %v4820_v5, %v4830_v30  ;;  %v4831_v31 = vmul.f32 0.0078125, %v4829_v57  ;;  %v8094_v5 = vld [vmem:[%s10369_s10 + $0x74] ss:$8 sps:$4 sm:$0xff]  }
0x21e4   :  { %v4873_v32 = vpop.xlane.xlu0 %4872  ;;  %5134 = vmatprep.subr.bf16.mxu1 %v8094_v5 }
0x21e5   :  { %v9856_v33 = vsub.f32 %v4823_v8, %v4831_v31  ;;  %v4876_v44 = vmul.f32 0.0078125, %v4873_v32  ;;  %v4834_v45 = vmul.f32 %v9854_v56, %v9854_v56  ;;  %5135 = vmatpush1.bf16.msra.mxu1 %v8092_v6 }
0x21e6   :  { %7506 = vmatprep.subr.bf16.mxu1 %v9023_v24 }
0x21e7   :  { %v9861_v46 = vsub.f32 %v9845_v25, %v4876_v44  ;;  %4836 = vadd.xlane.f32.xlu0 %v4834_v45  ;;  %v4835_v48 = vmul.f32 %v9856_v33, %v9856_v33 }
0x21e8   :  { %v4875_v50 = vpop.xlane.xlu0 %4874 }
0x21e9   :  { %v4877_v51 = vmul.f32 0.0078125, %v4875_v50  ;;  %4838 = vadd.xlane.f32.xlu1 %v4835_v48  ;;  %v4880_v52 = vmul.f32 %v9861_v46, %v9861_v46 }
0x21eb   :  { %v9868_v53 = vsub.f32 %v9849_v26, %v4877_v51  ;;  %4882 = vadd.xlane.f32.xlu0 %v4880_v52 }
0x21ed   :  { %v4881_v54 = vmul.f32 %v9868_v53, %v9868_v53 }
0x21ef   :  { %4884 = vadd.xlane.f32.xlu1 %v4881_v54  ;;  %v6911_v54 = vsel %vm4854_vm2, 1.0, %v9023_v24  ;;  %vm4664_vm2 = vcmask 1047559  }
0x21f0   :  { %v4867_v55 = vsub.f32 1.0, %v6911_v54  ;;  %v4866_v61 = vmul.f32 %v6911_v54, %v9849_v26  ;;  %v5027_v26 = vld [vmem:[%s10370_s17] sm:$0x3] }
0x21f1   :  { %v5037_v4 = vrot.slane %v5027_v26, %v9418_v11 }
0x2274   :  { %v4837_v8 = vpop.xlane.xlu0 %4836 }
0x2275   :  { %v4840_v19 = vmul.f32 0.0078125, %v4837_v8 }
0x2276   :  { %v4839_v27 = vpop.xlane.xlu1 %4838 }
0x2277   :  { %v4842_v28 = vadd.f32 1e-05, %v4840_v19  ;;  %v4841_v29 = vmul.f32 0.0078125, %v4839_v27 }
0x2278   :  { %v4883_v30 = vpop.xlane.xlu0 %4882 }
0x2279   :  { %8258 = vrsqrt.f32 %v4842_v28  ;;  %v4843_v57 = vadd.f32 1e-05, %v4841_v29  ;;  %v4886_v31 = vmul.f32 0.0078125, %v4883_v30 }
0x227b   :  { %8260 = vrsqrt.f32 %v4843_v57  ;;  %v4888_v32 = vadd.f32 1e-05, %v4886_v31 }
0x227c   :  { %v4885_v44 = vpop.xlane.xlu1 %4884 }
0x227d   :  { %8262 = vrsqrt.f32 %v4888_v32  ;;  %v4887_v45 = vmul.f32 0.0078125, %v4885_v44 }
0x227f   :  { %v4889_v48 = vadd.f32 1e-05, %v4887_v45 }
0x2281   :  { %8264 = vrsqrt.f32 %v4889_v48 }
0x2283   :  { %v8259_v50 = vpop.eup %8258 }
0x2284   :  { %v4846_v51 = vmul.f32 %v8259_v50, %v9854_v56  ;;  %v4865_v56 = vmul.f32 %v6911_v54, %v9845_v25 }
0x2285   :  { %v8261_v52 = vpop.eup %8260 }
0x2286   :  { %v4848_v47 = vmul.f32 %v4846_v51, %v9421_v12  ;;  %v4847_v49 = vmul.f32 %v8261_v52, %v9856_v33 }
0x2287   :  { %v8263_v16 = vpop.eup %8262 }
0x2288   :  { %v4849_v10 = vmul.f32 %v4847_v49, %v9421_v12  ;;  %v4892_v59 = vmul.f32 %v8263_v16, %v9861_v46  ;;  %v4850_v58 = vadd.f32 %v4848_v47, %v9424_v15 }
0x228a   :  { %v4851_v63 = vadd.f32 %v4849_v10, %v9424_v15  ;;  %v4868_v18 = vmul.f32 %v4867_v55, %v4850_v58  ;;  %v4894_v33 = vmul.f32 %v4892_v59, %v9421_v12 }
0x228b   :  { %v8265_v20 = vpop.eup %8264 }
0x228c   :  { %v4893_v62 = vmul.f32 %v8265_v20, %v9868_v53  ;;  %v4869_v1 = vmul.f32 %v4867_v55, %v4851_v63  ;;  %v4870_v2 = vadd.f32 %v4868_v18, %v4865_v56  ;;  %v9910_v3 = vadd.f32 %v4894_v33, %v9424_v15 }
0x228e   :  { %v4871_v14 = vadd.f32 %v4869_v1, %v4866_v61  ;;  %v4895_v46 = vmul.f32 %v4893_v62, %v9421_v12  ;;  %v5033_v12 = vrot.slane %v5027_v26, %v9415_v9 }
0x2290   :  { %v5028_v22 = vpack.c.bf16 %v4871_v14, %v4870_v2  ;;  %v9913_v21 = vadd.f32 %v4895_v46, %v9424_v15  ;;  %v6912_v15 = vld [vmem:[#allocation25] ss:$0 sm:$0xff] }
0x2292   :  { %5153 = vmatmul.mubr.bf16.vlgmr.msra.gmra.mrb[80].mxu1 %v5028_v22  ;;  %v4915_v25 = vpack.c.bf16 %v9913_v21, %v9910_v3 }
0x2293   :  { %7508 = vmatprep.mubr.msk.bf16.mxu1 %vm9024_vm12, %v9023_v24 }
0x2294   :  { %7495 = vmatmul.mubr.bf16.vlgmr.msra.gmra.mrb[52].mxu0 %v4915_v25 }
0x2295   :  { %7502 = vmatprep.mubr.msk.bf16.mxu0 %vm9024_vm12, %v9023_v24 }
0x2365   :  { %v5154_v53 = vpop.f32.mrb[80].mxu1 }
0x2366   :  { %v5156_v5 = vpop.f32.mrb[81].mxu1  ;;  %v5155_v8 = vadd.f32 %v5154_v53, %v5033_v12 }
0x2367   :  { %v5004_v6 = vpop.f32.mrb[52].mxu0  ;;  %v5158_v13 = vpop.f32.mrb[82].mxu1  ;;  %v5157_v29 = vadd.f32 %v5156_v5, %v5037_v4 }
0x2368   :  { %v5159_v19 = vadd.f32 %v5158_v13, %v5033_v12  ;;  %v7496_v27 = vpop.f32.mrb[53].mxu0  ;;  %v5160_v28 = vpop.f32.mrb[83].mxu1  ;;  %v5005_v31 = vadd.f32 %v6912_v15, %v5004_v6 }
0x2369   :  { %v5161_v30 = vadd.f32 %v5160_v28, %v5037_v4  ;;  %v5007_v57 = vpop.f32.mrb[54].mxu0 }
0x236a   :  { %v5008_v32 = vadd.f32 %v6912_v15, %v5007_v57  ;;  %v7497_v44 = vpop.f32.mrb[55].mxu0  ;;  %v7767_v45 = vpack.i.bf16 %v5159_v19, %v5155_v8 }
0x236b   :  { %v9924_v48 = vpack.c.bf16 %v5161_v30, %v5157_v29 }
0x236c   :  { %v5182_v50 = vpack.c.bf16 %v5008_v32, %v5005_v31  ;;  %7768 = vrot.lane.b32.xlu1 %v7767_v45, %s9004_s8  ;;  %7763 = vrot.lane.b32.xlu0 %v7767_v45, %s9025_s28 }
0x236d   :  { %7507 = vmatpush3.bf16.msra.mxu1 %v9924_v48 }
0x236e   :  { %7520 = vmatprep.subr.bf16.mxu1 %v9023_v24 }
0x2370   :  { %5372 = vrot.lane.b32.xlu1 %v5182_v50, %s9025_s28 }
0x2374   :  { %7773 = vrot.lane.b32.xlu1 %v7767_v45, %s9010_s7 }
0x2378   :  { %5529 = vrot.lane.b32.xlu1 %v5182_v50, %s9004_s8 }
0x237c   :  { %5685 = vrot.lane.b32.xlu1 %v5182_v50, %s9010_s7 }
0x23de   :  { %v7769_v51 = vpop.permute.xlu1 %7768  ;;  %v7764_v52 = vpop.permute.xlu0 %7763 }
0x23df   :  { %v7770_v54 = vunpack.i.l.bf16 %v7769_v51  ;;  %v7765_v55 = vunpack.i.l.bf16 %v7764_v52  ;;  %v7766_v47 = vunpack.i.h.bf16 %v7764_v52  ;;  %v7771_v16 = vunpack.i.h.bf16 %v7769_v51  ;;  %v5164_v52 = vld [vmem:[%s10371_s15 + $0x8] sm:$0xff] }
0x23e1   :  { %v7777_v49 = vpack.i.bf16 %v7765_v55, %v5155_v8  ;;  %5495 = vxpose.xlu1.b32.start [1/2] (short) (narrow) %v7770_v54, 32  ;;  %v7779_v10 = vpack.i.bf16 %v7766_v47, %v5159_v19 }
0x23e2   :  { %v5373_v59 = vpop.permute.xlu1 %5372 }
0x23e3   :  { %7778 = vxpose.xlu0.b32.start [1/2] (short) (narrow) %v7777_v49, 32 }
0x23e5   :  { %5496 = vxpose.xlu1.b32.end [2/2] (short) (narrow) %v7771_v16, 32 }
0x23e6   :  { %v7774_v58 = vpop.permute.xlu1 %7773 }
0x23e7   :  { %7780 = vxpose.xlu0.b32.end [2/2] (short) (narrow) %v7779_v10, 32  ;;  %v7775_v63 = vunpack.i.l.bf16 %v7774_v58  ;;  %v7776_v18 = vunpack.i.h.bf16 %v7774_v58 }
0x23ea   :  { %v5530_v20 = vpop.permute.xlu1 %5529 }
0x23ee   :  { %v5686_v33 = vpop.permute.xlu1 %5685 }
0x23f0   :  { %5651 = vxpose.xlu0.b32.start [1/2] (short) (narrow) %v7775_v63, 32 }
0x23f4   :  { %5652 = vxpose.xlu0.b32.end [2/2] (short) (narrow) %v7776_v18, 32 }
0x2461   :  { %v5511_v46 = vpop.trf.xlu1 }
0x2463   :  { %v7781_v56 = vpop.trf.xlu0 }
0x2464   :  { %v7782_v62 = vunpack.i.l.bf16 %v7781_v56  ;;  %v7785_v15 = vunpack.i.h.bf16 %v7781_v56 }
0x2465   :  { %v5512_v4 = vpop.trf.xlu1 }
0x2466   :  { %v5527_v29 = vpack.c.bf16 %v5512_v4, %v5511_v46 }
0x2467   :  { %v7786_v61 = vpop.trf.xlu0 }
0x2468   :  { %v7787_v1 = vunpack.i.l.bf16 %v7786_v61  ;;  %v7790_v12 = vunpack.i.h.bf16 %v7786_v61 }
0x2469   :  { %v5513_v19 = vpop.trf.xlu1 }
0x246a   :  { %v5215_v2 = vpack.c.bf16 %v7787_v1, %v7782_v62  ;;  %v5369_v13 = vpack.c.bf16 %v7790_v12, %v7785_v15 }
0x246b   :  { %v7791_v14 = vpop.trf.xlu0 }
0x246c   :  { %7499 = vmatpush3.bf16.msra.mxu0 %v5215_v2  ;;  %v7792_v25 = vunpack.i.l.bf16 %v7791_v14  ;;  %v7795_v8 = vunpack.i.h.bf16 %v7791_v14 }
0x246d   :  { %7500 = vmatprep.subr.bf16.mxu0 %v9023_v24  ;;  %v5514_v30 = vpop.trf.xlu1 }
0x246e   :  { %v5528_v31 = vpack.c.bf16 %v5514_v30, %v5513_v19 }
0x246f   :  { %v7796_v22 = vpop.trf.xlu0 }
0x2470   :  { %v7797_v26 = vunpack.i.l.bf16 %v7796_v22  ;;  %v7800_v6 = vunpack.i.h.bf16 %v7796_v22 }
0x2472   :  { %v5216_v53 = vpack.c.bf16 %v7797_v26, %v7792_v25  ;;  %v5370_v28 = vpack.c.bf16 %v7800_v6, %v7795_v8 }
0x2473   :  { %v5667_v5 = vpop.trf.xlu0 }
0x2474   :  { %7501 = vmatpush3.bf16.msra.mxu0 %v5216_v53 }
0x2475   :  { %7512 = vmatprep.subr.bf16.mxu0 %v9023_v24 }
0x2477   :  { %7503 = vmatmul.mubr.msk.bf16.vlgmr.msra.gmra.mrb[56].mxu0 %vm1234_vm13, %v5182_v50  ;;  %v5668_v27 = vpop.trf.xlu0  ;;  %v5163_v50 = vld [vmem:[%s10371_s15] sm:$0xff] }
0x2478   :  { %7513 = vmatpush3.bf16.msra.mxu0 %v5369_v13  ;;  %7516 = vmatprep.mubr.msk.bf16.mxu0 %vm9024_vm12, %v9023_v24  ;;  %v5683_v32 = vpack.c.bf16 %v5668_v27, %v5667_v5 }
0x2479   :  { %7514 = vmatprep.subr.bf16.mxu0 %v9023_v24 }
0x247b   :  { %v5669_v57 = vpop.trf.xlu0 }
0x247c   :  { %7515 = vmatpush3.bf16.msra.mxu0 %v5370_v28 }
0x247d   :  { %7526 = vmatprep.subr.bf16.mxu0 %v9023_v24 }
0x247f   :  { %7517 = vmatmul.mubr.msk.bf16.vlgmr.msra.gmra.mrb[60].mxu0 %vm1234_vm13, %v5373_v59  ;;  %v5670_v44 = vpop.trf.xlu0 }
0x2480   :  { %7527 = vmatpush3.bf16.msra.mxu0 %v5527_v29  ;;  %7530 = vmatprep.mubr.msk.bf16.mxu0 %vm9024_vm12, %v9023_v24  ;;  %v5684_v45 = vpack.c.bf16 %v5670_v44, %v5669_v57 }
0x2481   :  { %7528 = vmatprep.subr.bf16.mxu0 %v9023_v24 }
0x2484   :  { %7529 = vmatpush3.bf16.msra.mxu0 %v5528_v31 }
0x2485   :  { %7540 = vmatprep.subr.bf16.mxu0 %v9023_v24 }
0x2487   :  { %7531 = vmatmul.mubr.msk.bf16.vlgmr.msra.gmra.mrb[64].mxu0 %vm1234_vm13, %v5530_v20 }
0x2488   :  { %7541 = vmatpush3.bf16.msra.mxu0 %v5683_v32  ;;  %7544 = vmatprep.mubr.msk.bf16.mxu0 %vm9024_vm12, %v9023_v24 }
0x2489   :  { %7542 = vmatprep.subr.bf16.mxu0 %v9023_v24 }
0x248c   :  { %7543 = vmatpush3.bf16.msra.mxu0 %v5684_v45 }
0x248d   :  { %7554 = vmatprep.subr.bf16.mxu0 %v9023_v24 }
0x248f   :  { %7545 = vmatmul.mubr.msk.bf16.vlgmr.msra.gmra.mrb[68].mxu0 %vm1234_vm13, %v5686_v33 }
0x2490   :  { %7570 = vmatprep.mubr.msk.bf16.mxu0 %vm9024_vm12, %v9023_v24 }
0x254a   :  { %v5255_v51 = vpop.f32.mrb[56].mxu0 }
0x254b   :  { %v5256_v54 = vadd.f32 %v5255_v51, %v5163_v50  ;;  %v7504_v55 = vpop.f32.mrb[57].mxu0 }
0x254c   :  { %v5258_v47 = vpop.f32.mrb[58].mxu0 }
0x254d   :  { %v5259_v49 = vadd.f32 %v5258_v47, %v5164_v52  ;;  %v7505_v16 = vpop.f32.mrb[59].mxu0  ;;  %v5262_v10 = vsel %vm1279_vm14, %v5256_v54, -inf }
0x254e   :  { %5263 = vmax.xlane.f32.xlu0 %v5262_v10 }
0x254f   :  { %v5265_v59 = vsel %vm1279_vm14, %v5259_v49, -inf }
0x2550   :  { %5266 = vmax.xlane.f32.xlu1 %v5265_v59 }
0x2552   :  { %v5411_v58 = vpop.f32.mrb[60].mxu0 }
0x2553   :  { %v5412_v63 = vadd.f32 %v5411_v58, %v5163_v50  ;;  %v7518_v18 = vpop.f32.mrb[61].mxu0 }
0x2554   :  { %v5414_v20 = vpop.f32.mrb[62].mxu0 }
0x2555   :  { %v5415_v56 = vadd.f32 %v5414_v20, %v5164_v52  ;;  %v7519_v61 = vpop.f32.mrb[63].mxu0  ;;  %v5418_v62 = vsel %vm1279_vm14, %v5412_v63, -inf }
0x2556   :  { %5419 = vmax.xlane.f32.xlu0 %v5418_v62 }
0x2557   :  { %v5421_v1 = vsel %vm1279_vm14, %v5415_v56, -inf }
0x2558   :  { %5422 = vmax.xlane.f32.xlu1 %v5421_v1 }
0x255a   :  { %v5568_v33 = vpop.f32.mrb[64].mxu0 }
0x255b   :  { %v5569_v2 = vadd.f32 %v5568_v33, %v5163_v50  ;;  %v7532_v14 = vpop.f32.mrb[65].mxu0 }
0x255c   :  { %v5571_v46 = vpop.f32.mrb[66].mxu0 }
0x255d   :  { %v5572_v22 = vadd.f32 %v5571_v46, %v5164_v52  ;;  %v7533_v25 = vpop.f32.mrb[67].mxu0  ;;  %v5575_v26 = vsel %vm1279_vm14, %v5569_v2, -inf }
0x255e   :  { %5576 = vmax.xlane.f32.xlu0 %v5575_v26 }
0x255f   :  { %v5578_v12 = vsel %vm1279_vm14, %v5572_v22, -inf }
0x2560   :  { %5579 = vmax.xlane.f32.xlu1 %v5578_v12 }
0x2562   :  { %v5724_v53 = vpop.f32.mrb[68].mxu0 }
0x2563   :  { %v5725_v4 = vadd.f32 %v5724_v53, %v5163_v50  ;;  %v7546_v5 = vpop.f32.mrb[69].mxu0 }
0x2564   :  { %v5727_v15 = vpop.f32.mrb[70].mxu0 }
0x2565   :  { %v5728_v6 = vadd.f32 %v5727_v15, %v5164_v52  ;;  %v7547_v13 = vpop.f32.mrb[71].mxu0  ;;  %v5731_v8 = vsel %vm1279_vm14, %v5725_v4, -inf }
0x2566   :  { %5732 = vmax.xlane.f32.xlu0 %v5731_v8 }
0x2567   :  { %v5734_v19 = vsel %vm1279_vm14, %v5728_v6, -inf }
0x2568   :  { %5735 = vmax.xlane.f32.xlu1 %v5734_v19 }
0x25db   :  { %v5264_v27 = vpop.xlane.xlu0 %5263 }
0x25dc   :  { %v5268_v28 = vsub.f32 %v5256_v54, %v5264_v27 }
0x25dd   :  { %v5267_v29 = vpop.xlane.xlu1 %5266 }
0x25de   :  { %v5270_v30 = vmul.f32 1.442695, %v5268_v28  ;;  %v5269_v57 = vsub.f32 %v5259_v49, %v5267_v29 }
0x25e0   :  { %8266 = vpow2.f32 %v5270_v30  ;;  %v5272_v31 = vmul.f32 1.442695, %v5269_v57 }
0x25e2   :  { %8268 = vpow2.f32 %v5272_v31 }
0x25e3   :  { %v5420_v32 = vpop.xlane.xlu0 %5419 }
0x25e4   :  { %v5424_v44 = vsub.f32 %v5412_v63, %v5420_v32 }
0x25e5   :  { %v5423_v45 = vpop.xlane.xlu1 %5422 }
0x25e6   :  { %v5426_v50 = vmul.f32 1.442695, %v5424_v44  ;;  %v5425_v51 = vsub.f32 %v5415_v56, %v5423_v45 }
0x25e8   :  { %8270 = vpow2.f32 %v5426_v50  ;;  %v5428_v52 = vmul.f32 1.442695, %v5425_v51 }
0x25ea   :  { %v8267_v55 = vpop.eup %8266  ;;  %8272 = vpow2.f32 %v5428_v52 }
0x25eb   :  { %v5577_v47 = vpop.xlane.xlu0 %5576  ;;  %v5274_v16 = vsel %vm1279_vm14, %v8267_v55, 0.0 }
0x25ec   :  { %v8269_v10 = vpop.eup %8268  ;;  %v5581_v54 = vsub.f32 %v5569_v2, %v5577_v47  ;;  %5275 = vadd.xlane.f32.xlu0 %v5274_v16 }
0x25ed   :  { %v5580_v59 = vpop.xlane.xlu1 %5579  ;;  %v5277_v49 = vsel %vm1279_vm14, %v8269_v10, 0.0 }
0x25ee   :  { %v5583_v58 = vmul.f32 1.442695, %v5581_v54  ;;  %v5582_v18 = vsub.f32 %v5572_v22, %v5580_v59  ;;  %5278 = vadd.xlane.f32.xlu1 %v5277_v49 }
0x25f0   :  { %8274 = vpow2.f32 %v5583_v58  ;;  %v5585_v63 = vmul.f32 1.442695, %v5582_v18 }
0x25f2   :  { %v8271_v20 = vpop.eup %8270  ;;  %8276 = vpow2.f32 %v5585_v63 }
0x25f3   :  { %v5733_v56 = vpop.xlane.xlu0 %5732  ;;  %v5430_v61 = vsel %vm1279_vm14, %v8271_v20, 0.0 }
0x25f4   :  { %v8273_v62 = vpop.eup %8272  ;;  %v5737_v1 = vsub.f32 %v5725_v4, %v5733_v56  ;;  %5431 = vadd.xlane.f32.xlu0 %v5430_v61 }
0x25f5   :  { %v5433_v33 = vsel %vm1279_vm14, %v8273_v62, 0.0  ;;  %v5736_v53 = vpop.xlane.xlu1 %5735 }
0x25f6   :  { %v5739_v2 = vmul.f32 1.442695, %v5737_v1  ;;  %5434 = vadd.xlane.f32.xlu1 %v5433_v33  ;;  %v5738_v4 = vsub.f32 %v5728_v6, %v5736_v53  ;;  %v8096_v53 = vld [vmem:[#allocation26] sm:$0xff]  }
0x25f7   :  { %7555 = vmatpush3.bf16.msra.mxu0 %v8096_v53 }
0x25f8   :  { %8278 = vpow2.f32 %v5739_v2  ;;  %v5741_v5 = vmul.f32 1.442695, %v5738_v4  ;;  %7556 = vmatprep.subr.bf16.mxu0 %v9023_v24 }
0x25fa   :  { %v8275_v14 = vpop.eup %8274  ;;  %8280 = vpow2.f32 %v5741_v5 }
0x25fb   :  { %v5587_v46 = vsel %vm1279_vm14, %v8275_v14, 0.0 }
0x25fc   :  { %v8277_v22 = vpop.eup %8276  ;;  %5588 = vadd.xlane.f32.xlu0 %v5587_v46 }
0x25fd   :  { %v5590_v25 = vsel %vm1279_vm14, %v8277_v22, 0.0 }
0x25fe   :  { %5591 = vadd.xlane.f32.xlu1 %v5590_v25 }
0x2602   :  { %v8279_v26 = vpop.eup %8278 }
0x2603   :  { %v5743_v12 = vsel %vm1279_vm14, %v8279_v26, 0.0 }
0x2604   :  { %5744 = vadd.xlane.f32.xlu0 %v5743_v12  ;;  %v8281_v15 = vpop.eup %8280 }
0x2605   :  { %v5746_v13 = vsel %vm1279_vm14, %v8281_v15, 0.0 }
0x260f   :  { %5598 = vrot.lane.b32.xlu1 %v9924_v48, %s9004_s8 }
0x261a   :  { %5442 = vrot.lane.b32.xlu0 %v9924_v48, %s9025_s28 }
0x2633   :  { %5747 = vadd.xlane.f32.xlu1 %v5746_v13  ;;  %v8097_v13 = vld [vmem:[#allocation26 + $0x8] sm:$0xff]  }
0x2634   :  { %7557 = vmatpush3.bf16.msra.mxu0 %v8097_v13  ;;  %v8109_v13 = vld [vmem:[#allocation29 + $0x14] ss:$8 sps:$4 sm:$0xff]  }
0x2635   :  { %7558 = vmatprep.subr.bf16.mxu0 %v9023_v24 }
0x2644   :  { %5754 = vrot.lane.b32.xlu1 %v9924_v48, %s9010_s7 }
0x2679   :  { %v5276_v8 = vpop.xlane.xlu0 %5275 }
0x267a   :  { %8282 = vrcp.f32 %v5276_v8 }
0x267b   :  { %v5279_v19 = vpop.xlane.xlu1 %5278 }
0x267c   :  { %8284 = vrcp.f32 %v5279_v19 }
0x2681   :  { %v5432_v29 = vpop.xlane.xlu0 %5431 }
0x2683   :  { %v5435_v27 = vpop.xlane.xlu1 %5434 }
0x2684   :  { %v8283_v28 = vpop.eup %8282  ;;  %8286 = vrcp.f32 %v5435_v27 }
0x2685   :  { %v5282_v57 = vmul.f32 %v8283_v28, %v8267_v55  ;;  %8288 = vrcp.f32 %v5432_v29  ;;  %v8099_v29 = vld [vmem:[#allocation26 + $0x18] sm:$0xff]  }
0x2686   :  { %v8285_v30 = vpop.eup %8284 }
0x2687   :  { %v5283_v6 = vmul.f32 %v8285_v30, %v8269_v10  ;;  %v8100_v30 = vld [vmem:[#allocation26 + $0x20] sm:$0xff]  }
0x2689   :  { %v5284_v31 = vpack.c.bf16 %v5283_v6, %v5282_v57  ;;  %v5589_v48 = vpop.xlane.xlu0 %5588  ;;  %v8101_v57 = vld [vmem:[#allocation26 + $0x28] sm:$0xff]   ;;  %v8102_v6 = vld [vmem:[#allocation26 + $0x30] sm:$0xff]  }
0x268b   :  { %7509 = vmatmul.mubr.msk.bf16.vlgmr.msra.gmra.mrb[84].mxu1 %vm1279_vm14, %v5284_v31  ;;  %v5592_v32 = vpop.xlane.xlu1 %5591  ;;  %v8103_v31 = vld [vmem:[#allocation26 + $0x38] sm:$0xff]  }
0x268c   :  { %7522 = vmatprep.mubr.msk.bf16.mxu1 %vm9024_vm12, %v9023_v24  ;;  %8290 = vrcp.f32 %v5592_v32 }
0x268d   :  { %8292 = vrcp.f32 %v5589_v48 }
0x268e   :  { %v8287_v44 = vpop.eup %8286 }
0x268f   :  { %v8289_v50 = vpop.eup %8288  ;;  %v5439_v51 = vmul.f32 %v8287_v44, %v8273_v62  ;;  %v5599_v10 = vpop.permute.xlu1 %5598 }
0x2690   :  { %v5438_v52 = vmul.f32 %v8289_v50, %v8271_v20 }
0x2691   :  { %v5745_v45 = vpop.xlane.xlu0 %5744 }
0x2692   :  { %v5440_v55 = vpack.c.bf16 %v5439_v51, %v5438_v52  ;;  %8294 = vrcp.f32 %v5745_v45 }
0x2695   :  { %v5443_v47 = vpop.permute.xlu0 %5442 }
0x2696   :  { %7521 = vmatpush3.bf16.msra.mxu1 %v5443_v47  ;;  %v8291_v16 = vpop.eup %8290 }
0x2697   :  { %7534 = vmatprep.subr.bf16.mxu1 %v9023_v24  ;;  %v8293_v54 = vpop.eup %8292  ;;  %v5596_v59 = vmul.f32 %v8291_v16, %v8277_v22 }
0x2698   :  { %v5595_v49 = vmul.f32 %v8293_v54, %v8275_v14 }
0x2699   :  { %7523 = vmatmul.mubr.msk.bf16.vlgmr.msra.gmra.mrb[88].mxu1 %vm1279_vm14, %v5440_v55 }
0x269a   :  { %7535 = vmatpush3.bf16.msra.mxu1 %v5599_v10  ;;  %7536 = vmatprep.mubr.msk.bf16.mxu1 %vm9024_vm12, %v9023_v24  ;;  %v5597_v58 = vpack.c.bf16 %v5596_v59, %v5595_v49 }
0x269b   :  { %7548 = vmatprep.subr.bf16.mxu1 %v9023_v24 }
0x269c   :  { %v8295_v20 = vpop.eup %8294 }
0x269d   :  { %v5751_v61 = vmul.f32 %v8295_v20, %v8279_v26 }
0x26a1   :  { %7537 = vmatmul.mubr.msk.bf16.vlgmr.msra.gmra.mrb[92].mxu1 %vm1279_vm14, %v5597_v58 }
0x26a2   :  { %7550 = vmatprep.mubr.msk.bf16.mxu1 %vm9024_vm12, %v9023_v24 }
0x26c0   :  { %v5748_v18 = vpop.xlane.xlu1 %5747 }
0x26c1   :  { %8296 = vrcp.f32 %v5748_v18 }
0x26c4   :  { %v5755_v63 = vpop.permute.xlu1 %5754 }
0x26c5   :  { %7549 = vmatpush3.bf16.msra.mxu1 %v5755_v63 }
0x26cb   :  { %v8297_v56 = vpop.eup %8296 }
0x26cc   :  { %v5752_v62 = vmul.f32 %v8297_v56, %v8281_v15  ;;  %v8098_v15 = vld [vmem:[#allocation26 + $0x10] sm:$0xff]  }
0x26cd   :  { %7559 = vmatpush3.bf16.msra.mxu0 %v8098_v15 }
0x26ce   :  { %v5753_v1 = vpack.c.bf16 %v5752_v62, %v5751_v61  ;;  %7560 = vmatprep.subr.bf16.mxu0 %v9023_v24 }
0x26d0   :  { %7551 = vmatmul.mubr.msk.bf16.vlgmr.msra.gmra.mrb[96].mxu1 %vm1279_vm14, %v5753_v1  ;;  %v6945_v1 = vld [vmem:[#allocation28] ss:$0 sm:$0xff] }
0x26d1   :  { %6105 = vmatprep.mubr.bf16.mxu1 %v9021_v0  ;;  %7561 = vmatpush3.bf16.msra.mxu0 %v8099_v29 }
0x26d2   :  { %7562 = vmatprep.subr.bf16.mxu0 %v9023_v24 }
0x26d5   :  { %7563 = vmatpush3.bf16.msra.mxu0 %v8100_v30 }
0x26d6   :  { %7564 = vmatprep.subr.bf16.mxu0 %v9023_v24 }
0x26d9   :  { %7565 = vmatpush3.bf16.msra.mxu0 %v8101_v57  ;;  %v8110_v57 = vld [vmem:[#allocation29 + $0x20] ss:$8 sps:$4 sm:$0xff]  }
0x26da   :  { %7566 = vmatprep.subr.bf16.mxu0 %v9023_v24 }
0x26dd   :  { %7567 = vmatpush3.bf16.msra.mxu0 %v8102_v6  ;;  %v8115_v6 = vld [vmem:[#allocation29 + $0x34] ss:$8 sps:$4 sm:$0xff]  }
0x26de   :  { %7568 = vmatprep.subr.bf16.mxu0 %v9023_v24 }
0x26e1   :  { %7569 = vmatpush3.bf16.msra.mxu0 %v8103_v31  ;;  %v8113_v31 = vld [vmem:[#allocation29 + $0x30] ss:$8 sps:$4 sm:$0xff]  }
0x275e   :  { %v5322_v33 = vpop.f32.mrb[84].mxu1 }
0x275f   :  { %v7510_v2 = vpop.f32.mrb[85].mxu1 }
0x2760   :  { %v5325_v14 = vpop.f32.mrb[86].mxu1 }
0x2761   :  { %v7511_v46 = vpop.f32.mrb[87].mxu1 }
0x276c   :  { %v5482_v22 = vpop.f32.mrb[88].mxu1 }
0x276d   :  { %v7524_v25 = vpop.f32.mrb[89].mxu1 }
0x276e   :  { %v5485_v12 = vpop.f32.mrb[90].mxu1 }
0x276f   :  { %v7801_v4 = vpack.i.bf16 %v5485_v12, %v5482_v22  ;;  %v7525_v5 = vpop.f32.mrb[91].mxu1 }
0x2770   :  { %v8106_v5 = vld [vmem:[#allocation29 + $0x4] ss:$8 sps:$4 sm:$0xff]  }
0x2771   :  { %7802 = vrot.lane.b32.xlu0 %v7801_v4, %s9010_s7  ;;  %v8104_v4 = vld [vmem:[#allocation29] ss:$8 sps:$4 sm:$0xff]   ;;  %6073 = vmatprep.subr.bf16.mxu1 %v8106_v5  ;;  %s10373_s7 = sld [smem:[#allocation70_spill]] }
0x2772   :  { %6074 = vmatpush1.bf16.msra.mxu1 %v8104_v4  ;;  %v8414_v4 = vld [vmem:[#allocation20 + $0x44] ss:$16 sps:$4 sm:$0xff]   ;;  %v8415_v5 = vld [vmem:[#allocation20 + $0x40] ss:$16 sps:$4 sm:$0xff]  }
0x2773   :  { %6075 = vmatprep.subr.bf16.mxu1 %v8109_v13  ;;  %v8416_v13 = vld [vmem:[#allocation20 + $0x64] ss:$16 sps:$4 sm:$0xff]  }
0x2774   :  { %v5638_v26 = vpop.f32.mrb[92].mxu1 }
0x2775   :  { %v7538_v8 = vpop.f32.mrb[93].mxu1 }
0x2776   :  { %v5641_v19 = vpop.f32.mrb[94].mxu1 }
0x2777   :  { %v7806_v27 = vpack.i.bf16 %v5641_v19, %v5638_v26  ;;  %v7539_v28 = vpop.f32.mrb[95].mxu1  ;;  %v8107_v26 = vld [vmem:[#allocation29 + $0x10] ss:$8 sps:$4 sm:$0xff]  }
0x2778   :  { %6076 = vmatpush1.bf16.msra.mxu1 %v8107_v26  ;;  %v8417_v26 = vld [vmem:[#allocation20 + $0x60] ss:$16 sps:$4 sm:$0xff]  }
0x2779   :  { %7807 = vrot.lane.b32.xlu1 %v7806_v27, %s9004_s8  ;;  %s10372_s8 = sld [smem:[#allocation69_spill]] }
0x27a3   :  { %v5794_v32 = vpop.f32.mrb[96].mxu1 }
0x27a4   :  { %v7552_v48 = vpop.f32.mrb[97].mxu1 }
0x27a5   :  { %v5797_v44 = vpop.f32.mrb[98].mxu1  ;;  %v8116_v48 = vld [vmem:[#allocation29 + $0x40] ss:$8 sps:$4 sm:$0xff]  }
0x27a6   :  { %v7811_v45 = vpack.i.bf16 %v5797_v44, %v5794_v32  ;;  %v7553_v50 = vpop.f32.mrb[99].mxu1  ;;  %v8118_v32 = vld [vmem:[#allocation29 + $0x44] ss:$8 sps:$4 sm:$0xff]   ;;  %v8121_v44 = vld [vmem:[#allocation29 + $0x54] ss:$8 sps:$4 sm:$0xff]  }
0x27a7   :  { %v8122_v50 = vld [vmem:[#allocation29 + $0x60] ss:$8 sps:$4 sm:$0xff]  }
0x27a8   :  { %7812 = vrot.lane.b32.xlu0 %v7811_v45, %s9025_s28  ;;  %v8119_v45 = vld [vmem:[#allocation29 + $0x50] ss:$8 sps:$4 sm:$0xff]  }
0x27e3   :  { %v7803_v51 = vpop.permute.xlu0 %7802 }
0x27e4   :  { %v7805_v47 = vunpack.i.h.bf16 %v7803_v51  ;;  %v7804_v55 = vunpack.i.l.bf16 %v7803_v51  ;;  %v8124_v51 = vld [vmem:[#allocation29 + $0x64] ss:$8 sps:$4 sm:$0xff]  }
0x27e6   :  { %v5826_v59 = vsel %vm1234_vm13, %v5325_v14, %v7805_v47  ;;  %v5825_v49 = vsel %vm1234_vm13, %v5322_v33, %v7804_v55  ;;  %v8125_v47 = vld [vmem:[#allocation29 + $0x70] ss:$8 sps:$4 sm:$0xff]   ;;  %v8410_v55 = vld [vmem:[#allocation20 + $0x4] ss:$16 sps:$4 sm:$0xff]  }
0x27eb   :  { %v7808_v52 = vpop.permute.xlu1 %7807 }
0x27ec   :  { %v7810_v16 = vunpack.i.h.bf16 %v7808_v52  ;;  %v7809_v10 = vunpack.i.l.bf16 %v7808_v52  ;;  %v8127_v52 = vld [vmem:[#allocation29 + $0x74] ss:$8 sps:$4 sm:$0xff]  }
0x27ee   :  { %v5828_v63 = vsel %vm1845_vm15, %v5826_v59, %v7810_v16  ;;  %v5827_v20 = vsel %vm1845_vm15, %v5825_v49, %v7809_v10 }
0x281a   :  { %v7813_v54 = vpop.permute.xlu0 %7812 }
0x281b   :  { %v7815_v58 = vunpack.i.h.bf16 %v7813_v54  ;;  %v7814_v18 = vunpack.i.l.bf16 %v7813_v54 }
0x281d   :  { %v5829_v56 = vsel %vm1848_vm0, %v5827_v20, %v7814_v18  ;;  %v5830_v61 = vsel %vm1848_vm0, %v5828_v63, %v7815_v58  ;;  %v5929_v18 = vld [vmem:[%s10372_s8] sm:$0x3]  ;;  %vm4521_vm0 = vcmask 1041409  }
0x281e   :  { %v5831_v62 = vpack.c.bf16 %v5830_v61, %v5829_v56  ;;  %v5955_v63 = vrot.slane %v5929_v18, %v9415_v9 }
0x2820   :  { %7571 = vmatmul.mubr.bf16.vlgmr.msra.gmra.mrb[72].mxu0 %v5831_v62 }
0x28f3   :  { %v5920_v2 = vpop.f32.mrb[72].mxu0 }
0x28f4   :  { %v5921_v46 = vadd.f32 %v6945_v1, %v5920_v2  ;;  %v7572_v22 = vpop.f32.mrb[73].mxu0  ;;  %v5961_v2 = vrot.slane %v5929_v18, %v9418_v11 }
0x28f5   :  { %v5923_v25 = vpop.f32.mrb[74].mxu0 }
0x28f6   :  { %v5927_v14 = vadd.f32 %v5921_v46, %v9910_v3  ;;  %v5924_v33 = vadd.f32 %v6945_v1, %v5923_v25  ;;  %v7573_v12 = vpop.f32.mrb[75].mxu0 }
0x28f7   :  { %v8412_v12 = vld [vmem:[#allocation20 + $0x24] ss:$16 sps:$4 sm:$0xff]  }
0x28f8   :  { %v5928_v53 = vadd.f32 %v5924_v33, %v9913_v21  ;;  %5930 = vadd.xlane.f32.xlu1 %v5927_v14  ;;  %v8112_v21 = vld [vmem:[#allocation29 + $0x24] ss:$8 sps:$4 sm:$0xff]   ;;  %v8411_v33 = vld [vmem:[#allocation20] ss:$16 sps:$4 sm:$0xff]  }
0x28f9   :  { %6077 = vmatprep.subr.bf16.mxu1 %v8112_v21  ;;  %v8128_v21 = vld [vmem:[#allocation31 + $0x40] sm:$0xff]  }
0x28fa   :  { %5932 = vadd.xlane.f32.xlu0 %v5928_v53  ;;  %6078 = vmatpush1.bf16.msra.mxu1 %v8110_v57  ;;  %v8129_v57 = vld [vmem:[#allocation31] sm:$0xff]  }
0x28fb   :  { %6079 = vmatprep.subr.bf16.mxu1 %v8115_v6  ;;  %7244 = vmatprep.subr.bf16.mxu0 %v8128_v21  ;;  %v8130_v6 = vld [vmem:[#allocation31 + $0x48] sm:$0xff]  }
0x28fc   :  { %7245 = vmatpush3.bf16.msra.mxu0 %v8129_v57 }
0x28fd   :  { %7246 = vmatprep.subr.bf16.mxu0 %v8130_v6 }
0x28fe   :  { %6080 = vmatpush1.bf16.msra.mxu1 %v8113_v31  ;;  %v8131_v31 = vld [vmem:[#allocation31 + $0x8] sm:$0xff]  }
0x28ff   :  { %6081 = vmatprep.subr.bf16.mxu1 %v8118_v32  ;;  %v8132_v32 = vld [vmem:[#allocation31 + $0x50] sm:$0xff]  }
0x2900   :  { %7247 = vmatpush3.bf16.msra.mxu0 %v8131_v31 }
0x2901   :  { %7248 = vmatprep.subr.bf16.mxu0 %v8132_v32 }
0x2902   :  { %6082 = vmatpush1.bf16.msra.mxu1 %v8116_v48  ;;  %v8133_v48 = vld [vmem:[#allocation31 + $0x10] sm:$0xff]  }
0x2903   :  { %6083 = vmatprep.subr.bf16.mxu1 %v8121_v44  ;;  %v8134_v44 = vld [vmem:[#allocation31 + $0x58] sm:$0xff]  }
0x2904   :  { %7249 = vmatpush3.bf16.msra.mxu0 %v8133_v48 }
0x2905   :  { %7250 = vmatprep.subr.bf16.mxu0 %v8134_v44 }
0x2906   :  { %6084 = vmatpush1.bf16.msra.mxu1 %v8119_v45  ;;  %v8135_v45 = vld [vmem:[#allocation31 + $0x18] sm:$0xff]  }
0x2907   :  { %6085 = vmatprep.subr.bf16.mxu1 %v8124_v51  ;;  %v8137_v51 = vld [vmem:[#allocation31 + $0x20] sm:$0xff]  }
0x2908   :  { %7251 = vmatpush3.bf16.msra.mxu0 %v8135_v45 }
0x290a   :  { %6086 = vmatpush1.bf16.msra.mxu1 %v8122_v50  ;;  %v8136_v50 = vld [vmem:[#allocation31 + $0x60] sm:$0xff]  }
0x290b   :  { %6087 = vmatprep.subr.bf16.mxu1 %v8127_v52  ;;  %7252 = vmatprep.subr.bf16.mxu0 %v8136_v50  ;;  %v8138_v52 = vld [vmem:[#allocation31 + $0x68] sm:$0xff]  }
0x290c   :  { %7253 = vmatpush3.bf16.msra.mxu0 %v8137_v51 }
0x290d   :  { %7254 = vmatprep.subr.bf16.mxu0 %v8138_v52 }
0x290e   :  { %6088 = vmatpush1.bf16.msra.mxu1 %v8125_v47  ;;  %v8139_v47 = vld [vmem:[#allocation31 + $0x28] sm:$0xff]  }
0x290f   :  { %6368 = vmatprep.subr.bf16.mxu1 %v8410_v55  ;;  %v8140_v55 = vld [vmem:[#allocation31 + $0x70] sm:$0xff]  }
0x2910   :  { %7255 = vmatpush3.bf16.msra.mxu0 %v8139_v47 }
0x2911   :  { %7256 = vmatprep.subr.bf16.mxu0 %v8140_v55 }
0x2985   :  { %v5931_v15 = vpop.xlane.xlu1 %5930 }
0x2986   :  { %v5934_v8 = vmul.f32 0.0078125, %v5931_v15  ;;  %v8418_v15 = vld [vmem:[#allocation20 + $0x84] ss:$16 sps:$4 sm:$0xff]  }
0x2987   :  { %v5933_v19 = vpop.xlane.xlu0 %5932 }
0x2988   :  { %v5936_v27 = vsub.f32 %v5927_v14, %v5934_v8  ;;  %v5935_v28 = vmul.f32 0.0078125, %v5933_v19  ;;  %v8419_v8 = vld [vmem:[#allocation20 + $0x80] ss:$16 sps:$4 sm:$0xff]   ;;  %v8420_v19 = vld [vmem:[#allocation20 + $0xa4] ss:$16 sps:$4 sm:$0xff]  }
0x298a   :  { %v5937_v3 = vsub.f32 %v5928_v53, %v5935_v28  ;;  %v5938_v29 = vmul.f32 %v5936_v27, %v5936_v27  ;;  %v8413_v53 = vld [vmem:[#allocation20 + $0x20] ss:$16 sps:$4 sm:$0xff]   ;;  %v8422_v28 = vld [vmem:[#allocation20 + $0xc4] ss:$16 sps:$4 sm:$0xff]  }
0x298c   :  { %5940 = vadd.xlane.f32.xlu0 %v5938_v29  ;;  %v5939_v30 = vmul.f32 %v5937_v3, %v5937_v3  ;;  %v8424_v29 = vld [vmem:[#allocation20 + $0xe4] ss:$16 sps:$4 sm:$0xff]  }
0x298e   :  { %5942 = vadd.xlane.f32.xlu1 %v5939_v30  ;;  %v8425_v30 = vld [vmem:[#allocation20 + $0xe0] ss:$16 sps:$4 sm:$0xff]  }
0x2a19   :  { %v5941_v16 = vpop.xlane.xlu0 %5940 }
0x2a1a   :  { %v5944_v10 = vmul.f32 0.0078125, %v5941_v16  ;;  %v8141_v16 = vld [vmem:[#allocation31 + $0x30] sm:$0xff]  }
0x2a1b   :  { %v5943_v54 = vpop.xlane.xlu1 %5942  ;;  %7257 = vmatpush3.bf16.msra.mxu0 %v8141_v16 }
0x2a1c   :  { %v5946_v59 = vadd.f32 1e-05, %v5944_v10  ;;  %v5945_v49 = vmul.f32 0.0078125, %v5943_v54  ;;  %v8142_v10 = vld [vmem:[#allocation31 + $0x78] sm:$0xff]  }
0x2a1d   :  { %v8143_v54 = vld [vmem:[#allocation31 + $0x38] sm:$0xff]   ;;  %7258 = vmatprep.subr.bf16.mxu0 %v8142_v10 }
0x2a1e   :  { %8298 = vrsqrt.f32 %v5946_v59  ;;  %v5947_v58 = vadd.f32 1e-05, %v5945_v49  ;;  %v8426_v59 = vld [vmem:[#allocation20 + $0xc] ss:$16 sps:$4 sm:$0xff]   ;;  %v5980_v49 = vld [vmem:[%s10373_s7] sm:$0x3] }
0x2a1f   :  { %7259 = vmatpush3.bf16.msra.mxu0 %v8143_v54  ;;  %v5990_v18 = vrot.slane %v5980_v49, %v9418_v11 }
0x2a20   :  { %8300 = vrsqrt.f32 %v5947_v58  ;;  %6411 = vmatprep.subr.bf16.mxu0 %v8426_v59  ;;  %v5986_v58 = vrot.slane %v5980_v49, %v9415_v9 }
0x2a28   :  { %v8299_v20 = vpop.eup %8298 }
0x2a29   :  { %v5950_v56 = vmul.f32 %v8299_v20, %v5936_v27  ;;  %v8421_v27 = vld [vmem:[#allocation20 + $0xa0] ss:$16 sps:$4 sm:$0xff]  }
0x2a2a   :  { %v8301_v61 = vpop.eup %8300 }
0x2a2b   :  { %v5951_v62 = vmul.f32 %v8301_v61, %v5937_v3  ;;  %v5956_v1 = vmul.f32 %v5955_v63, %v5950_v56  ;;  %v8423_v3 = vld [vmem:[#allocation20 + $0xc0] ss:$16 sps:$4 sm:$0xff]  }
0x2a2d   :  { %v5957_v46 = vmul.f32 %v5955_v63, %v5951_v62  ;;  %v10012_v22 = vadd.f32 %v5961_v2, %v5956_v1 }
0x2a2f   :  { %v10014_v25 = vadd.f32 %v5961_v2, %v5957_v46 }
0x2a31   :  { %v5981_v14 = vpack.c.bf16 %v10014_v25, %v10012_v22 }
0x2a33   :  { %6106 = vmatmul.mubr.bf16.vlgmr.msra.gmra.mrb[100].mxu1 %v5981_v14 }
0x2a34   :  { %6369 = vmatpush1.bf16.msra.mxu1 %v8411_v33  ;;  %6400 = vmatprep.mubr.bf16.mxu1 %v9021_v0 }
0x2a35   :  { %6370 = vmatprep.subr.bf16.mxu1 %v8412_v12 }
0x2a38   :  { %6371 = vmatpush1.bf16.msra.mxu1 %v8413_v53 }
0x2a39   :  { %6372 = vmatprep.subr.bf16.mxu1 %v8414_v4 }
0x2a3c   :  { %6373 = vmatpush1.bf16.msra.mxu1 %v8415_v5 }
0x2a3d   :  { %6374 = vmatprep.subr.bf16.mxu1 %v8416_v13 }
0x2a40   :  { %6375 = vmatpush1.bf16.msra.mxu1 %v8417_v26 }
0x2a41   :  { %6376 = vmatprep.subr.bf16.mxu1 %v8418_v15 }
0x2a44   :  { %6377 = vmatpush1.bf16.msra.mxu1 %v8419_v8 }
0x2a45   :  { %6378 = vmatprep.subr.bf16.mxu1 %v8420_v19 }
0x2a48   :  { %6379 = vmatpush1.bf16.msra.mxu1 %v8421_v27 }
0x2a49   :  { %6380 = vmatprep.subr.bf16.mxu1 %v8422_v28 }
0x2a4c   :  { %6381 = vmatpush1.bf16.msra.mxu1 %v8423_v3 }
0x2a4d   :  { %6382 = vmatprep.subr.bf16.mxu1 %v8424_v29 }
0x2a50   :  { %6383 = vmatpush1.bf16.msra.mxu1 %v8425_v30 }
0x2b06   :  { %v6107_v63 = vpop.f32.mrb[100].mxu1 }
0x2b07   :  { %v6108_v20 = vadd.f32 %v6107_v63, %v5986_v58  ;;  %v6109_v56 = vpop.f32.mrb[101].mxu1 }
0x2b08   :  { %v6110_v61 = vadd.f32 %v6109_v56, %v5990_v18  ;;  %v6111_v62 = vpop.f32.mrb[102].mxu1 }
0x2b09   :  { %v6120_v1 = vmul.f32 0.044715, %v6108_v20  ;;  %v6112_v2 = vadd.f32 %v6111_v62, %v5986_v58  ;;  %v6113_v46 = vpop.f32.mrb[103].mxu1  ;;  %v6116_v52 = vmul.f32 0.5, %v6108_v20  ;;  %v8427_v62 = vld [vmem:[#allocation20 + $0x8] ss:$16 sps:$4 sm:$0xff]  }
0x2b0a   :  { %v6121_v14 = vmul.f32 0.044715, %v6110_v61  ;;  %v6114_v33 = vadd.f32 %v6113_v46, %v5990_v18  ;;  %v6117_v16 = vmul.f32 0.5, %v6110_v61  ;;  %v8432_v46 = vld [vmem:[#allocation20 + $0x6c] ss:$16 sps:$4 sm:$0xff]  }
0x2b0b   :  { %v6124_v12 = vmul.f32 %v6120_v1, %v6108_v20  ;;  %v6122_v53 = vmul.f32 0.044715, %v6112_v2  ;;  %v6118_v47 = vmul.f32 0.5, %v6112_v2  ;;  %v8428_v1 = vld [vmem:[#allocation20 + $0x2c] ss:$16 sps:$4 sm:$0xff]  }
0x2b0c   :  { %v6125_v4 = vmul.f32 %v6121_v14, %v6110_v61  ;;  %v6123_v5 = vmul.f32 0.044715, %v6114_v33  ;;  %v6119_v10 = vmul.f32 0.5, %v6114_v33  ;;  %v8433_v14 = vld [vmem:[#allocation20 + $0x68] ss:$16 sps:$4 sm:$0xff]  }
0x2b0d   :  { %v6128_v13 = vmul.f32 %v6124_v12, %v6108_v20  ;;  %v6126_v26 = vmul.f32 %v6122_v53, %v6112_v2  ;;  %v8435_v12 = vld [vmem:[#allocation20 + $0x88] ss:$16 sps:$4 sm:$0xff]   ;;  %v8436_v53 = vld [vmem:[#allocation20 + $0xac] ss:$16 sps:$4 sm:$0xff]  }
0x2b0e   :  { %v6129_v15 = vmul.f32 %v6125_v4, %v6110_v61  ;;  %v6127_v8 = vmul.f32 %v6123_v5, %v6114_v33  ;;  %v8437_v4 = vld [vmem:[#allocation20 + $0xa8] ss:$16 sps:$4 sm:$0xff]  }
0x2b0f   :  { %v6132_v19 = vadd.f32 %v6128_v13, %v6108_v20  ;;  %v6130_v27 = vmul.f32 %v6126_v26, %v6112_v2  ;;  %v8429_v20 = vld [vmem:[#allocation20 + $0x28] ss:$16 sps:$4 sm:$0xff]   ;;  %v8440_v13 = vld [vmem:[#allocation20 + $0xec] ss:$16 sps:$4 sm:$0xff]  }
0x2b10   :  { %v6131_v28 = vmul.f32 %v6127_v8, %v6114_v33  ;;  %v6133_v3 = vadd.f32 %v6129_v15, %v6110_v61  ;;  %v8431_v61 = vld [vmem:[#allocation20 + $0x48] ss:$16 sps:$4 sm:$0xff]  }
0x2b11   :  { %v6136_v29 = vmul.f32 0.7978846, %v6132_v19  ;;  %v6134_v30 = vadd.f32 %v6130_v27, %v6112_v2  ;;  %v8430_v2 = vld [vmem:[#allocation20 + $0x4c] ss:$16 sps:$4 sm:$0xff]   ;;  %v8439_v5 = vld [vmem:[#allocation20 + $0xc8] ss:$16 sps:$4 sm:$0xff]  }
0x2b12   :  { %v6135_v21 = vadd.f32 %v6131_v28, %v6114_v33  ;;  %v6137_v57 = vmul.f32 0.7978846, %v6133_v3  ;;  %v8434_v33 = vld [vmem:[#allocation20 + $0x8c] ss:$16 sps:$4 sm:$0xff]   ;;  %v8441_v26 = vld [vmem:[#allocation20 + $0xe8] ss:$16 sps:$4 sm:$0xff]  }
0x2b13   :  { %8302 = vtanh.f32 %v6136_v29  ;;  %v6138_v6 = vmul.f32 0.7978846, %v6134_v30  ;;  %v6970_v8 = vld [vmem:[#allocation32] ss:$0 sm:$0xff] }
0x2b14   :  { %v6139_v31 = vmul.f32 0.7978846, %v6135_v21  ;;  %8304 = vtanh.f32 %v6137_v57 }
0x2b15   :  { %8306 = vtanh.f32 %v6138_v6 }
0x2b16   :  { %8308 = vtanh.f32 %v6139_v31  ;;  %v533_v31 = vld [vmem:[#allocation22] sm:$0xf] }
0x2b1d   :  { %v8303_v32 = vpop.eup %8302 }
0x2b1e   :  { %v8305_v48 = vpop.eup %8304  ;;  %v6144_v44 = vadd.f32 1.0, %v8303_v32  ;;  %v4080_v32 = vsub.s32 3, %v9412_v7 }
0x2b1f   :  { %v8307_v45 = vpop.eup %8306  ;;  %v6145_v50 = vadd.f32 1.0, %v8305_v48  ;;  %v10027_v48 = vrot.slane %v533_v31, %v9415_v9 }
0x2b20   :  { %v8309_v51 = vpop.eup %8308  ;;  %v6146_v55 = vadd.f32 1.0, %v8307_v45  ;;  %v6148_v59 = vmul.f32 %v6144_v44, %v6116_v52  ;;  %v10030_v44 = vrot.slane %v533_v31, %v9468_v23  ;;  %v10033_v45 = vrot.slane %v533_v31, %v9418_v11 }
0x2b21   :  { %v6147_v54 = vadd.f32 1.0, %v8309_v51  ;;  %v6149_v58 = vmul.f32 %v6145_v50, %v6117_v16  ;;  %v10035_v50 = vrot.slane %v533_v31, %v4080_v32 }
0x2b22   :  { %v6150_v49 = vmul.f32 %v6146_v55, %v6118_v47  ;;  %v10043_v51 = vadd.f32 %v9828_v60, %v10030_v44  ;;  %v10047_v52 = vadd.f32 %v9830_v34, %v10033_v45  ;;  %v10055_v55 = vadd.f32 %v9834_v37, %v10027_v48 }
0x2b23   :  { %v6151_v18 = vmul.f32 %v6147_v54, %v6119_v10  ;;  %v10051_v23 = vadd.f32 %v9832_v35, %v10035_v50  ;;  %v10063_v60 = vadd.f32 %v9838_v43, %v10033_v45  ;;  %v10067_v34 = vadd.f32 %v9840_v42, %v10035_v50 }
0x2b24   :  { %v6185_v63 = vpack.c.bf16 %v6150_v49, %v6148_v59 }
0x2b25   :  { %v6186_v56 = vpack.c.bf16 %v6151_v18, %v6149_v58  ;;  %v4335_v37 = vmax.f32 %v10047_v52, %v10051_v23  ;;  %v4340_v43 = vmax.f32 %v10063_v60, %v10067_v34 }
0x2b27   :  { %6321 = vmatprep.mubr.bf16.mxu0 %v6186_v56 }
0x2b28   :  { %6322 = vmatmul.mubr.bf16.vlgmr.msra.gmra.mrb[76].mxu0 %v6185_v63 }
0x2b29   :  { %6412 = vmatpush1.bf16.msra.mxu0 %v8427_v62  ;;  %6443 = vmatprep.mubr.bf16.mxu0 %v9021_v0  ;;  %v8438_v0 = vld [vmem:[#allocation20 + $0xcc] ss:$16 sps:$4 sm:$0xff]  }
0x2b2a   :  { %6413 = vmatprep.subr.bf16.mxu0 %v8428_v1 }
0x2b2d   :  { %6414 = vmatpush1.bf16.msra.mxu0 %v8429_v20 }
0x2b2e   :  { %6415 = vmatprep.subr.bf16.mxu0 %v8430_v2 }
0x2b31   :  { %6416 = vmatpush1.bf16.msra.mxu0 %v8431_v61 }
0x2b32   :  { %6417 = vmatprep.subr.bf16.mxu0 %v8432_v46 }
0x2b35   :  { %6418 = vmatpush1.bf16.msra.mxu0 %v8433_v14 }
0x2b36   :  { %6419 = vmatprep.subr.bf16.mxu0 %v8434_v33 }
0x2b39   :  { %6420 = vmatpush1.bf16.msra.mxu0 %v8435_v12 }
0x2b3a   :  { %6421 = vmatprep.subr.bf16.mxu0 %v8436_v53 }
0x2b3d   :  { %6422 = vmatpush1.bf16.msra.mxu0 %v8437_v4 }
0x2b3e   :  { %6423 = vmatprep.subr.bf16.mxu0 %v8438_v0 }
0x2b41   :  { %6424 = vmatpush1.bf16.msra.mxu0 %v8439_v5 }
0x2b42   :  { %6425 = vmatprep.subr.bf16.mxu0 %v8440_v13 }
0x2b45   :  { %6426 = vmatpush1.bf16.msra.mxu0 %v8441_v26 }
0x2bfb   :  { %v7260_v15 = vpop.f32.mrb[76].mxu0 }
0x2bfc   :  { %v7261_v19 = vpop.f32.mrb[77].mxu0 }
0x2bfd   :  { %v7262_v27 = vadd.f32 %v7261_v19, %v7260_v15  ;;  %v7263_v28 = vpop.f32.mrb[78].mxu0 }
0x2bfe   :  { %v7264_v3 = vpop.f32.mrb[79].mxu0 }
0x2bff   :  { %v6324_v29 = vadd.f32 %v7262_v27, %v6970_v8  ;;  %v7265_v30 = vadd.f32 %v7264_v3, %v7263_v28  ;;  %v6332_v3 = vld [vmem:[#allocation34] sm:$0x3] }
0x2c01   :  { %v6327_v21 = vadd.f32 %v7265_v30, %v6970_v8  ;;  %v6330_v57 = vadd.f32 %v6324_v29, %v10012_v22  ;;  %v10039_v22 = vadd.f32 %v9826_v17, %v10027_v48  ;;  %v10059_v17 = vadd.f32 %v9836_v40, %v10030_v44 }
0x2c03   :  { %6333 = vadd.xlane.f32.xlu0 %v6330_v57  ;;  %v6331_v6 = vadd.f32 %v6327_v21, %v10014_v25  ;;  %v4334_v54 = vmax.f32 %v10039_v22, %v10043_v51  ;;  %v4339_v49 = vmax.f32 %v10055_v55, %v10059_v17  ;;  %v6358_v21 = vrot.slane %v6332_v3, %v9415_v9 }
0x2c05   :  { %6335 = vadd.xlane.f32.xlu1 %v6331_v6  ;;  %v4336_v42 = vmax.f32 %v4334_v54, %v4335_v37  ;;  %v4341_v18 = vmax.f32 %v4339_v49, %v4340_v43 }
0x2c90   :  { %v6334_v25 = vpop.xlane.xlu0 %6333 }
0x2c91   :  { %v6337_v47 = vmul.f32 0.0078125, %v6334_v25 }
0x2c92   :  { %v6336_v16 = vpop.xlane.xlu1 %6335 }
0x2c93   :  { %v6339_v35 = vsub.f32 %v6330_v57, %v6337_v47  ;;  %v6338_v10 = vmul.f32 0.0078125, %v6336_v16  ;;  %v6364_v47 = vrot.slane %v6332_v3, %v9418_v11 }
0x2c95   :  { %v6340_v59 = vsub.f32 %v6331_v6, %v6338_v10  ;;  %v6341_v40 = vmul.f32 %v6339_v35, %v6339_v35 }
0x2c97   :  { %6343 = vadd.xlane.f32.xlu0 %v6341_v40  ;;  %v6342_v58 = vmul.f32 %v6340_v59, %v6340_v59 }
0x2c99   :  { %6345 = vadd.xlane.f32.xlu1 %v6342_v58 }
0x2c9b   :  { %4337 = vmax.xlane.f32.xlu0 %v4336_v42 }
0x2c9d   :  { %4342 = vmax.xlane.f32.xlu1 %v4341_v18 }
0x2d24   :  { %v6344_v63 = vpop.xlane.xlu0 %6343 }
0x2d25   :  { %v6347_v56 = vmul.f32 0.0078125, %v6344_v63 }
0x2d26   :  { %v6346_v62 = vpop.xlane.xlu1 %6345 }
0x2d27   :  { %v6349_v1 = vadd.f32 1e-05, %v6347_v56  ;;  %v6348_v20 = vmul.f32 0.0078125, %v6346_v62 }
0x2d28   :  { %v4338_v2 = vpop.xlane.xlu0 %4337 }
0x2d29   :  { %8310 = vrsqrt.f32 %v6349_v1  ;;  %v6350_v61 = vadd.f32 1e-05, %v6348_v20  ;;  %v10078_v46 = vsub.f32 %v10039_v22, %v4338_v2  ;;  %v10081_v14 = vsub.f32 %v10047_v52, %v4338_v2  ;;  %v4445_v20 = vld [vmem:[%s10374_s27] sm:$0xff] }
0x2d2a   :  { %v10084_v33 = vsub.f32 %v10043_v51, %v4338_v2  ;;  %v10087_v12 = vsub.f32 %v10051_v23, %v4338_v2  ;;  %v4343_v53 = vpop.xlane.xlu1 %4342  ;;  %v10113_v2 = vld [vmem:[%s10375_s16] sm:$0xff] }
0x2d2b   :  { %8312 = vrsqrt.f32 %v6350_v61  ;;  %v4352_v4 = vmul.f32 1.442695, %v10078_v46  ;;  %v4354_v0 = vmul.f32 1.442695, %v10081_v14  ;;  %v10092_v5 = vsub.f32 %v10055_v55, %v4343_v53  ;;  %v4446_v61 = vld [vmem:[%s10374_s27 + $0x8] sm:$0xff] }
0x2d2c   :  { %v4356_v13 = vmul.f32 1.442695, %v10084_v33  ;;  %v4358_v26 = vmul.f32 1.442695, %v10087_v12  ;;  %v10097_v15 = vsub.f32 %v10063_v60, %v4343_v53  ;;  %v10100_v8 = vsub.f32 %v10059_v17, %v4343_v53 }
0x2d2d   :  { %8314 = vpow2.f32 %v4352_v4  ;;  %v4360_v19 = vmul.f32 1.442695, %v10092_v5  ;;  %v10104_v27 = vsub.f32 %v10067_v34, %v4343_v53  ;;  %v10118_v53 = vld [vmem:[%s10375_s16 + $0x8] sm:$0xff]  ;;  %vm4414_vm8 = vcmp.ne.s32.totalorder %v10113_v2, 4294967196 }
0x2d2e   :  { %8316 = vpow2.f32 %v4354_v0  ;;  %v4362_v28 = vmul.f32 1.442695, %v10097_v15  ;;  %v4364_v29 = vmul.f32 1.442695, %v10100_v8  ;;  %vm4415_vm9 = vcmp.ne.s32.totalorder %v10118_v53, 4294967196 }
0x2d2f   :  { %8318 = vpow2.f32 %v4356_v13  ;;  %v4366_v30 = vmul.f32 1.442695, %v10104_v27 }
0x2d30   :  { %8320 = vpow2.f32 %v4358_v26 }
0x2d31   :  { %8322 = vpow2.f32 %v4360_v19 }
0x2d32   :  { %8324 = vpow2.f32 %v4362_v28 }
0x2d33   :  { %v8311_v57 = vpop.eup %8310  ;;  %8326 = vpow2.f32 %v4364_v29 }
0x2d34   :  { %v6353_v6 = vmul.f32 %v8311_v57, %v6339_v35  ;;  %8328 = vpow2.f32 %v4366_v30 }
0x2d35   :  { %v8313_v31 = vpop.eup %8312 }
0x2d36   :  { %v6354_v32 = vmul.f32 %v8313_v31, %v6340_v59  ;;  %v6359_v25 = vmul.f32 %v6358_v21, %v6353_v6 }
0x2d37   :  { %v8315_v16 = vpop.eup %8314 }
0x2d38   :  { %v8317_v10 = vpop.eup %8316  ;;  %v6360_v54 = vmul.f32 %v6358_v21, %v6354_v32  ;;  %v6365_v43 = vadd.f32 %v6364_v47, %v6359_v25 }
0x2d39   :  { %v8319_v37 = vpop.eup %8318  ;;  %v4368_v40 = vadd.f32 %v8317_v10, %v8315_v16 }
0x2d3a   :  { %v8321_v49 = vpop.eup %8320  ;;  %v6366_v58 = vadd.f32 %v6364_v47, %v6360_v54 }
0x2d3b   :  { %v8323_v9 = vpop.eup %8322  ;;  %v4369_v42 = vadd.f32 %v8319_v37, %v4368_v40 }
0x2d3c   :  { %v8325_v35 = vpop.eup %8324  ;;  %v6367_v18 = vpack.c.bf16 %v6366_v58, %v6365_v43 }
0x2d3d   :  { %v4370_v59 = vadd.f32 %v8321_v49, %v4369_v42  ;;  %v4373_v63 = vadd.f32 %v8325_v35, %v8323_v9  ;;  %v8327_v56 = vpop.eup %8326 }
0x2d3e   :  { %6401 = vmatmul.mubr.bf16.vlgmr.msra.gmra.mrb[104].mxu1 %v6367_v18  ;;  %6444 = vmatmul.mubr.bf16.vlgmr.msra.gmra.mrb[80].mxu0 %v6367_v18  ;;  %v8329_v62 = vpop.eup %8328 }
0x2d3f   :  { %4371 = vadd.xlane.f32.xlu0 %v4370_v59  ;;  %v4374_v11 = vadd.f32 %v8327_v56, %v4373_v63 }
0x2d41   :  { %v4375_v1 = vadd.f32 %v8329_v62, %v4374_v11 }
0x2d43   :  { %4376 = vadd.xlane.f32.xlu1 %v4375_v1 }
0x2d54   :  { %4449 = vperm.xlu1 %7761, %v4445_v20  }
0x2d55   :  { %4383 = vperm.xlu0 %7652, %v10113_v2  }
0x2d58   :  { %4454 = vperm.xlu1 %7761, %v4446_v61  }
0x2d59   :  { %4386 = vperm.xlu0 %7652, %v10118_v53  }
0x2dcc   :  { %v10121_v4 = vpop.xlane.xlu0 %4371 }
0x2dcd   :  { %8330 = vlog2.f32 %v10121_v4  ;;  %v10196_v4 = vsel %vm4415_vm9, 1.0, %v9023_v24 }
0x2dd0   :  { %v10123_v0 = vpop.xlane.xlu1 %4376 }
0x2dd1   :  { %8332 = vlog2.f32 %v10123_v0 }
0x2dd4   :  { %v4450_v13 = vpop.permute.xlu1 %4449  ;;  %v4384_v26 = vpop.permute.xlu0 %4383 }
0x2dd5   :  { %v4457_v19 = vadd.f32 %v4450_v13, %v10039_v22  ;;  %v4458_v28 = vadd.f32 %v4450_v13, %v10047_v52  ;;  %v4459_v3 = vadd.f32 %v4450_v13, %v10043_v51  ;;  %v4460_v29 = vadd.f32 %v4450_v13, %v10051_v23 }
0x2dd6   :  { %vm4388_vm12 = vcmp.eq.s32.totalorder %v9388_v36, %v4384_v26  ;;  %vm4389_vm13 = vcmp.eq.s32.totalorder %v9391_v38, %v4384_v26  ;;  %vm4390_vm14 = vcmp.eq.s32.totalorder %v9397_v41, %v4384_v26  ;;  %vm4391_vm15 = vcmp.eq.s32.totalorder %v9394_v39, %v4384_v26 }
0x2dd7   :  { %v4465_v30 = vrot.slane %v4457_v19, 4  ;;  %v4471_v21 = vrot.slane %v4458_v28, 4  ;;  %v4477_v57 = vrot.slane %v4459_v3, 4  ;;  %v4483_v6 = vrot.slane %v4460_v29, 4 }
0x2dd8   :  { %v4396_v22 = vsel %vm4388_vm12, %v10078_v46, 0.0  ;;  %v4397_v52 = vsel %vm4389_vm13, %v10081_v14, 0.0  ;;  %v4455_v31 = vpop.permute.xlu1 %4454  ;;  %v4398_v47 = vsel %vm4390_vm14, %v10084_v33, 0.0  ;;  %v4387_v13 = vpop.permute.xlu0 %4386 }
0x2dd9   :  { %v4466_v51 = vmax.f32 %v4457_v19, %v4465_v30  ;;  %v4472_v32 = vmax.f32 %v4458_v28, %v4471_v21  ;;  %v4478_v23 = vmax.f32 %v4459_v3, %v4477_v57  ;;  %v4484_v25 = vmax.f32 %v4460_v29, %v4483_v6 }
0x2dda   :  { %v4461_v16 = vadd.f32 %v4455_v31, %v10055_v55  ;;  %v4462_v10 = vadd.f32 %v4455_v31, %v10063_v60  ;;  %v4463_v54 = vadd.f32 %v4455_v31, %v10059_v17  ;;  %v4464_v46 = vadd.f32 %v4455_v31, %v10067_v34 }
0x2ddb   :  { %v4467_v37 = vrot.slane %v4466_v51, 2  ;;  %v4473_v40 = vrot.slane %v4472_v32, 2  ;;  %v4479_v49 = vrot.slane %v4478_v23, 2  ;;  %v4485_v43 = vrot.slane %v4484_v25, 2 }
0x2ddc   :  { %v4489_v14 = vrot.slane %v4461_v16, 4  ;;  %v4495_v58 = vrot.slane %v4462_v10, 4  ;;  %v4501_v9 = vrot.slane %v4463_v54, 4  ;;  %v4507_v60 = vrot.slane %v4464_v46, 4 }
0x2ddd   :  { %v4468_v42 = vmax.f32 %v4466_v51, %v4467_v37  ;;  %v4474_v35 = vmax.f32 %v4472_v32, %v4473_v40  ;;  %v4480_v18 = vmax.f32 %v4478_v23, %v4479_v49  ;;  %v4486_v59 = vmax.f32 %v4484_v25, %v4485_v43 }
0x2dde   :  { %v4490_v33 = vmax.f32 %v4461_v16, %v4489_v14  ;;  %v4496_v55 = vmax.f32 %v4462_v10, %v4495_v58  ;;  %v4502_v63 = vmax.f32 %v4463_v54, %v4501_v9  ;;  %v4399_v34 = vsel %vm4391_vm15, %v10087_v12, 0.0 }
0x2ddf   :  { %v4469_v17 = vrot.slane %v4468_v42, 1  ;;  %v4475_v56 = vrot.slane %v4474_v35, 1  ;;  %v4481_v11 = vrot.slane %v4480_v18, 1  ;;  %v4508_v61 = vmax.f32 %v4464_v46, %v4507_v60 }
0x2de0   :  { %v4491_v62 = vrot.slane %v4490_v33, 2  ;;  %v4497_v1 = vrot.slane %v4496_v55, 2  ;;  %v4503_v20 = vrot.slane %v4502_v63, 2  ;;  %v4487_v3 = vrot.slane %v4486_v59, 1 }
0x2de1   :  { %v10143_v19 = vmax.f32 %v4468_v42, %v4469_v17  ;;  %v10145_v28 = vmax.f32 %v4474_v35, %v4475_v56  ;;  %v4404_v29 = vadd.f32 %v4397_v52, %v4396_v22  ;;  %v4509_v6 = vrot.slane %v4508_v61, 2 }
0x2de2   :  { %v4492_v30 = vmax.f32 %v4490_v33, %v4491_v62  ;;  %v4498_v21 = vmax.f32 %v4496_v55, %v4497_v1  ;;  %v4504_v57 = vmax.f32 %v4502_v63, %v4503_v20  ;;  %v10147_v31 = vmax.f32 %v4480_v18, %v4481_v11  ;;  %v8331_v20 = vpop.eup %8330 }
0x2de3   :  { %vm4392_vm4 = vcmp.eq.s32.totalorder %v9388_v36, %v4387_v13  ;;  %vm4393_vm5 = vcmp.eq.s32.totalorder %v9391_v38, %v4387_v13  ;;  %vm4394_vm6 = vcmp.eq.s32.totalorder %v9397_v41, %v4387_v13  ;;  %v4510_v32 = vmax.f32 %v4508_v61, %v4509_v6 }
0x2de4   :  { %v4493_v12 = vrot.slane %v4492_v30, 1  ;;  %v4499_v26 = vrot.slane %v4498_v21, 1  ;;  %v4505_v51 = vrot.slane %v4504_v57, 1  ;;  %v10152_v23 = vmax.f32 %v4486_v59, %v4487_v3 }
0x2de5   :  { %v4400_v22 = vsel %vm4392_vm4, %v10092_v5, 0.0  ;;  %v4401_v52 = vsel %vm4393_vm5, %v10097_v15, 0.0  ;;  %v4405_v25 = vadd.f32 %v4404_v29, %v4398_v47  ;;  %v4511_v37 = vrot.slane %v4510_v32, 1 }
0x2de6   :  { %v4494_v16 = vmax.f32 %v4492_v30, %v4493_v12  ;;  %v4500_v10 = vmax.f32 %v4498_v21, %v4499_v26  ;;  %v4506_v54 = vmax.f32 %v4504_v57, %v4505_v51  ;;  %vm4395_vm7 = vcmp.eq.s32.totalorder %v9394_v39, %v4387_v13  ;;  %v8333_v13 = vpop.eup %8332 }
0x2de7   :  { %v4402_v40 = vsel %vm4394_vm6, %v10100_v8, 0.0  ;;  %v4409_v49 = vadd.f32 %v4401_v52, %v4400_v22  ;;  %v4406_v43 = vadd.f32 %v4405_v25, %v4399_v34  ;;  %v4512_v46 = vmax.f32 %v4510_v32, %v4511_v37 }
0x2de8   :  { %v4522_v14 = vsel %vm4521_vm0, %v4494_v16, %v10143_v19  ;;  %v4523_v5 = vsel %vm4521_vm0, %v4500_v10, %v10145_v28  ;;  %v4524_v15 = vsel %vm4521_vm0, %v4506_v54, %v10147_v31  ;;  %v4403_v42 = vsel %vm4395_vm7, %v10104_v27, 0.0 }
0x2de9   :  { %4407 = vadd.xlane.f32.xlu1 %v4406_v43  ;;  %v4410_v47 = vadd.f32 %v4409_v49, %v4402_v40  ;;  %v4531_v58 = vsel %vm4530_vm3, %v4522_v14, -inf  ;;  %v4532_v9 = vsel %vm4530_vm3, %v4523_v5, -inf  ;;  %v4533_v8 = vsel %vm4530_vm3, %v4524_v15, -inf }
0x2dea   :  { %v4525_v35 = vsel %vm4521_vm0, %v4512_v46, %v10152_v23  ;;  %v4535_v18 = vmax.f32 %v4531_v58, %v4532_v9  ;;  %v4379_v61 = vmul.f32 0.6931472, %v8331_v20  ;;  %v10191_v30 = vsel %vm4414_vm8, 1.0, %v9023_v24 }
0x2deb   :  { %v4411_v59 = vadd.f32 %v4410_v47, %v4403_v42  ;;  %v4534_v33 = vsel %vm4530_vm3, %v4525_v35, -inf  ;;  %v4381_v21 = vmul.f32 0.6931472, %v8333_v13 }
0x2dec   :  { %v4536_v55 = vmax.f32 %v4533_v8, %v4534_v33 }
0x2ded   :  { %4412 = vadd.xlane.f32.xlu0 %v4411_v59 }
0x2dee   :  { %v4537_v63 = vmax.f32 %v4535_v18, %v4536_v55 }
0x2df1   :  { %4538 = vmax.xlane.f32.xlu0 %v4537_v63 }
0x2e11   :  { %v10171_v60 = vpop.f32.mrb[104].mxu1  ;;  %v10173_v17 = vpop.f32.mrb[80].mxu0 }
0x2e12   :  { %v10175_v56 = vpop.f32.mrb[105].mxu1  ;;  %v10177_v11 = vpop.f32.mrb[81].mxu0  ;;  %v6403_v13 = vadd.f32 %v10171_v60, %v10027_v48 }
0x2e13   :  { %v10179_v27 = vpop.f32.mrb[106].mxu1  ;;  %v10181_v34 = vpop.f32.mrb[82].mxu0 }
0x2e14   :  { %v10183_v62 = vpop.f32.mrb[107].mxu1  ;;  %v10185_v1 = vpop.f32.mrb[83].mxu0 }
0x2e76   :  { %v4408_v3 = vpop.xlane.xlu1 %4407 }
0x2e77   :  { %v4420_v29 = vsub.f32 %v4379_v61, %v4408_v3  ;;  %v6446_v3 = vadd.f32 %v10173_v17, %v10030_v44 }
0x2e79   :  { %v4422_v57 = vmul.f32 %v10191_v30, %v4420_v29 }
0x2e7a   :  { %v4413_v6 = vpop.xlane.xlu0 %4412 }
0x2e7b   :  { %v4421_v12 = vsub.f32 %v4381_v21, %v4413_v6  ;;  %v4425_v2 = vsel %vm4424_vm10, %v4422_v57, 0.0  ;;  %v6405_v57 = vadd.f32 %v10175_v56, %v10033_v45  ;;  %v6448_v6 = vadd.f32 %v10177_v11, %v10035_v50 }
0x2e7d   :  { %v4423_v0 = vmul.f32 %v10196_v4, %v4421_v12  ;;  %v6457_v17 = vmax.f32 %v6405_v57, %v6448_v6 }
0x2e7e   :  { %v4539_v26 = vpop.xlane.xlu0 %4538 }
0x2e7f   :  { %v4426_v51 = vsel %vm4424_vm10, %v4423_v0, 0.0  ;;  %v4541_v32 = vrot.slane %v4539_v26, 1  ;;  %v10202_v22 = vsub.f32 %v10143_v19, %v4539_v26  ;;  %v10205_v53 = vsub.f32 %v10145_v28, %v4539_v26 }
0x2e80   :  { %v10207_v52 = vadd.f32 %v4426_v51, %v4425_v2  ;;  %v10220_v19 = vsub.f32 %v10147_v31, %v4539_v26  ;;  %v10224_v5 = vsub.f32 %v10152_v23, %v4539_v26  ;;  %v6456_v51 = vmax.f32 %v6403_v13, %v6446_v3 }
0x2e81   :  { %v10209_v25 = vsub.f32 %v4494_v16, %v4541_v32  ;;  %v10211_v37 = vsub.f32 %v4500_v10, %v4541_v32  ;;  %v10213_v40 = vsub.f32 %v4506_v54, %v4541_v32  ;;  %v4552_v49 = vmul.f32 1.442695, %v10202_v22 }
0x2e82   :  { %v4554_v43 = vmul.f32 1.442695, %v10205_v53  ;;  %v10217_v14 = vsub.f32 %v4512_v46, %v4541_v32  ;;  %v4556_v15 = vmul.f32 1.442695, %v10220_v19  ;;  %v4558_v46 = vmul.f32 1.442695, %v10224_v5 }
0x2e83   :  { %v4560_v28 = vmul.f32 1.442695, %v10209_v25  ;;  %v4562_v16 = vmul.f32 1.442695, %v10211_v37  ;;  %8334 = vpow2.f32 %v4552_v49  ;;  %v4564_v10 = vmul.f32 1.442695, %v10213_v40 }
0x2e84   :  { %8336 = vpow2.f32 %v4554_v43  ;;  %v4566_v54 = vmul.f32 1.442695, %v10217_v14  ;;  %v6458_v49 = vmax.f32 %v6456_v51, %v6457_v17  ;;  %v4611_v51 = vld [vmem:[%s10376_s25] sm:$0xff] }
0x2e85   :  { %8338 = vpow2.f32 %v4560_v28 }
0x2e86   :  { %8340 = vpow2.f32 %v4562_v16 }
0x2e87   :  { %8342 = vpow2.f32 %v4564_v10 }
0x2e88   :  { %8344 = vpow2.f32 %v4566_v54  ;;  %v9026_v54 = vmov 1983009808  }
0x2e89   :  { %8346 = vpow2.f32 %v4556_v15  ;;  %v4623_v15 = vunpack.c.l.s4 %v9026_v54 }
0x2e8a   :  { %8348 = vpow2.f32 %v4558_v46 }
0x2e8d   :  { %v8335_v31 = vpop.eup %8334 }
0x2e8e   :  { %v8337_v23 = vpop.eup %8336 }
0x2e8f   :  { %v8339_v47 = vpop.eup %8338 }
0x2e90   :  { %v8341_v58 = vpop.eup %8340  ;;  %v4576_v9 = vrot.slane %v8339_v47, 7 }
0x2e91   :  { %v8343_v8 = vpop.eup %8342  ;;  %v4578_v42 = vrot.slane %v8341_v58, 7 }
0x2e92   :  { %v8345_v35 = vpop.eup %8344  ;;  %v4577_v18 = vsel %vm4521_vm0, %v4576_v9, %v8335_v31  ;;  %v4580_v59 = vrot.slane %v8343_v8, 7  ;;  %v4624_v9 = vunpack.c.0.s8 %v4623_v15 }
0x2e93   :  { %v8347_v33 = vpop.eup %8346  ;;  %v4579_v55 = vsel %vm4521_vm0, %v4578_v42, %v8337_v23  ;;  %v4582_v63 = vrot.slane %v8345_v35, 7  ;;  %v4588_v20 = vsel %vm4530_vm3, %v4577_v18, 0.0 }
0x2e94   :  { %v8349_v61 = vpop.eup %8348  ;;  %v4581_v29 = vsel %vm4521_vm0, %v4580_v59, %v8347_v33  ;;  %v4589_v21 = vsel %vm4530_vm3, %v4579_v55, 0.0  ;;  %v4627_v33 = vsub.s32 %v4624_v9, %v9412_v7  ;;  %v6450_v9 = vadd.f32 %v10181_v34, %v10030_v44 }
0x2e95   :  { %v4583_v12 = vsel %vm4521_vm0, %v4582_v63, %v8349_v61  ;;  %v4590_v0 = vadd.f32 %v4589_v21, %v4588_v20  ;;  %v4591_v2 = vsel %vm4530_vm3, %v4581_v29, 0.0 }
0x2e96   :  { %v4593_v60 = vsel %vm4530_vm3, %v4583_v12, 0.0 }
0x2e97   :  { %v4592_v26 = vadd.f32 %v4591_v2, %v4590_v0 }
0x2e99   :  { %v4594_v32 = vadd.f32 %v4593_v60, %v4592_v26 }
0x2e9b   :  { %4595 = vadd.xlane.f32.xlu1 %v4594_v32 }
0x2e9f   :  { %6459 = vmax.xlane.f32.xlu1 %v6458_v49 }
0x2f28   :  { %v4596_v43 = vpop.xlane.xlu1 %4595 }
0x2f29   :  { %8350 = vlog2.f32 %v4596_v43 }
0x2f2c   :  { %v6460_v56 = vpop.xlane.xlu1 %6459 }
0x2f2d   :  { %v10247_v28 = vsub.f32 %v6403_v13, %v6460_v56  ;;  %v10249_v11 = vsub.f32 %v6405_v57, %v6460_v56  ;;  %v10251_v16 = vsub.f32 %v6446_v3, %v6460_v56  ;;  %v10253_v10 = vsub.f32 %v6448_v6, %v6460_v56 }
0x2f2f   :  { %v6474_v46 = vmul.f32 1.442695, %v10247_v28  ;;  %v6476_v31 = vmul.f32 1.442695, %v10249_v11  ;;  %v6478_v23 = vmul.f32 1.442695, %v10251_v16 }
0x2f30   :  { %v6480_v47 = vmul.f32 1.442695, %v10253_v10 }
0x2f31   :  { %8352 = vpow2.f32 %v6474_v46 }
0x2f32   :  { %8354 = vpow2.f32 %v6476_v31  ;;  %v6407_v31 = vadd.f32 %v10179_v27, %v10027_v48 }
0x2f33   :  { %v8351_v58 = vpop.eup %8350  ;;  %8356 = vpow2.f32 %v6478_v23 }
0x2f34   :  { %v4598_v8 = vmul.f32 0.6931472, %v8351_v58  ;;  %8358 = vpow2.f32 %v6480_v47  ;;  %v6461_v27 = vmax.f32 %v6407_v31, %v6450_v9 }
0x2f36   :  { %v4600_v42 = vrot.slane %v4598_v8, 1  ;;  %v4603_v35 = vsub.f32 %v10202_v22, %v4598_v8  ;;  %v4604_v18 = vsub.f32 %v10205_v53, %v4598_v8  ;;  %v4605_v59 = vsub.f32 %v10220_v19, %v4598_v8 }
0x2f37   :  { %v4606_v55 = vsub.f32 %v10224_v5, %v4598_v8  ;;  %v6409_v8 = vadd.f32 %v10183_v62, %v10033_v45 }
0x2f38   :  { %v4607_v63 = vsub.f32 %v10209_v25, %v4600_v42  ;;  %v4608_v20 = vsub.f32 %v10211_v37, %v4600_v42  ;;  %v4609_v61 = vsub.f32 %v10213_v40, %v4600_v42  ;;  %v4610_v13 = vsub.f32 %v10217_v14, %v4600_v42 }
0x2f39   :  { %v4620_v3 = vcombine.low %v4603_v35, %v4604_v18  ;;  %v4621_v29 = vcombine.low %v4605_v59, %v4606_v55  ;;  %v6452_v42 = vadd.f32 %v10185_v1, %v10035_v50 }
0x2f3a   :  { %v4637_v21 = vcombine.low %v4607_v63, %v4608_v20  ;;  %v4638_v22 = vcombine.low %v4609_v61, %v4610_v13  ;;  %v6454_v63 = vld [vmem:[%s10377_s30] sm:$0xff] }
0x2f3b   :  { %v8353_v57 = vpop.eup %8352  ;;  %v4628_v6 = vrot.slane %v4620_v3, %v4627_v33  ;;  %v4635_v19 = vrot.slane %v4621_v29, %v4627_v33 }
0x2f3c   :  { %v8355_v53 = vpop.eup %8354  ;;  %v4645_v7 = vrot.slane %v4637_v21, %v4627_v33  ;;  %v4652_v12 = vrot.slane %v4638_v22, %v4627_v33 }
0x2f3d   :  { %v6490_v5 = vadd.f32 %v8355_v53, %v8353_v57  ;;  %v8357_v0 = vpop.eup %8356  ;;  %v4636_v26 = vcombine.low %v4628_v6, %v4635_v19 }
0x2f3e   :  { %v4653_v25 = vcombine.low %v4645_v7, %v4652_v12  ;;  %v8359_v2 = vpop.eup %8358 }
0x2f3f   :  { %v6491_v37 = vadd.f32 %v8357_v0, %v6490_v5 }
0x2f40   :  { %v4658_v40 = vrot.slane %v4653_v25, 7 }
0x2f41   :  { %v6492_v14 = vadd.f32 %v8359_v2, %v6491_v37  ;;  %v6455_v37 = vld [vmem:[%s10377_s30 + $0x8] sm:$0xff] }
0x2f42   :  { %v4659_v60 = vsel %vm4521_vm0, %v4658_v40, %v4636_v26  ;;  %vm6536_vm0 = vcmp.ne.s32.totalorder %v6454_v63, 4294967196  ;;  %vm6537_vm4 = vcmp.ne.s32.totalorder %v6455_v37, 4294967196 }
0x2f43   :  { %6493 = vadd.xlane.f32.xlu1 %v6492_v14  ;;  %v4661_v17 = vsel %vm4660_vm11, %v4658_v40, %v4659_v60  ;;  %v6987_v26 = vsel %vm6536_vm0, 1.0, %v9023_v24  ;;  %v6988_v14 = vsel %vm6537_vm4, 1.0, %v9023_v24 }
0x2f44   :  { %v4663_v32 = vsel %vm4662_vm1, %v4658_v40, %v4661_v17  ;;  %v6556_v60 = vsel %vm4424_vm10, %v6988_v14, 0.0 }
0x2f45   :  { %v4665_v49 = vsel %vm4664_vm2, %v4658_v40, %v4663_v32  ;;  %v6555_v40 = vsel %vm4424_vm10, %v6987_v26, 0.0 }
0x2f46   :  { %v4667_v43 = vmul.f32 %v4665_v49, %v4611_v51  ;;  %v6557_v51 = vadd.f32 %v6556_v60, %v6555_v40 }
0x2f48   :  { %v4669_v56 = vcombine.high %v4667_v43, %v4667_v43  ;;  %v4676_v54 = vrot.slane %v4667_v43, %v4627_v33 }
0x2f4a   :  { %v4683_v15 = vrot.slane %v4669_v56, %v4627_v33  ;;  %v4684_v46 = vcombine.high %v4676_v54, %v4676_v54  ;;  %v4690_v47 = vsel %vm4530_vm3, %v4676_v54, 0.0  ;;  %v6462_v33 = vmax.f32 %v6409_v8, %v6452_v42 }
0x2f4c   :  { %v4685_v23 = vcombine.high %v4683_v15, %v4683_v15  ;;  %v4691_v58 = vsel %vm4530_vm3, %v4684_v46, 0.0  ;;  %v4693_v18 = vsel %vm4530_vm3, %v4683_v15, 0.0  ;;  %v6463_v20 = vmax.f32 %v6461_v27, %v6462_v33 }
0x2f4d   :  { %v4692_v35 = vadd.f32 %v4691_v58, %v4690_v47 }
0x2f4e   :  { %v4695_v48 = vsel %vm4530_vm3, %v4685_v23, 0.0 }
0x2f4f   :  { %v4694_v59 = vadd.f32 %v4693_v18, %v4692_v35 }
0x2f51   :  { %v4696_v55 = vadd.f32 %v4695_v48, %v4694_v59 }
0x2f53   :  { %4697 = vadd.xlane.f32.xlu0 %v4696_v55 }
0x2f54   :  { %6505 = vperm.xlu1 %7761, %v6454_v63  }
0x2f57   :  { %6464 = vmax.xlane.f32.xlu0 %v6463_v20 }
0x2fd0   :  { %v6494_v44 = vpop.xlane.xlu1 %6493 }
0x2fd4   :  { %v6506_v34 = vpop.permute.xlu1 %6505 }
0x2fd5   :  { %vm6510_vm12 = vcmp.eq.s32.totalorder %v9388_v36, %v6506_v34  ;;  %vm6511_vm13 = vcmp.eq.s32.totalorder %v9391_v38, %v6506_v34  ;;  %vm6512_vm14 = vcmp.eq.s32.totalorder %v9397_v41, %v6506_v34  ;;  %vm6513_vm15 = vcmp.eq.s32.totalorder %v9394_v39, %v6506_v34 }
0x2fd6   :  { %v6518_v45 = vsel %vm6510_vm12, %v10247_v28, 0.0  ;;  %v6519_v50 = vsel %vm6511_vm13, %v10249_v11, 0.0  ;;  %v6520_v1 = vsel %vm6512_vm14, %v10251_v16, 0.0  ;;  %v6521_v13 = vsel %vm6513_vm15, %v10253_v10, 0.0 }
0x2fd7   :  { %v6526_v62 = vadd.f32 %v6519_v50, %v6518_v45 }
0x2fd9   :  { %v6527_v61 = vadd.f32 %v6526_v62, %v6520_v1 }
0x2fdb   :  { %v6528_v3 = vadd.f32 %v6527_v61, %v6521_v13 }
0x2fdd   :  { %6529 = vadd.xlane.f32.xlu1 %v6528_v3 }
0x2fe0   :  { %v4698_v29 = vpop.xlane.xlu0 %4697 }
0x2fe4   :  { %v6465_v21 = vpop.xlane.xlu0 %6464 }
0x2fe5   :  { %v6470_v22 = vsub.f32 %v6407_v31, %v6465_v21  ;;  %v6471_v57 = vsub.f32 %v6409_v8, %v6465_v21  ;;  %v6472_v53 = vsub.f32 %v6450_v9, %v6465_v21  ;;  %v6473_v6 = vsub.f32 %v6452_v42, %v6465_v21 }
0x2fe6   :  { %v4434_v8 = vsel %vm4424_vm10, %v10191_v30, 0.0  ;;  %v4428_v30 = vrot.slane %v10207_v52, 4 }
0x2fe7   :  { %v6482_v19 = vmul.f32 1.442695, %v6470_v22  ;;  %v6484_v28 = vmul.f32 1.442695, %v6471_v57  ;;  %v6486_v11 = vmul.f32 1.442695, %v6472_v53 }
0x2fe8   :  { %v6488_v7 = vmul.f32 1.442695, %v6473_v6  ;;  %v4429_v61 = vadd.f32 %v4428_v30, %v10207_v52 }
0x2fe9   :  { %8360 = vpow2.f32 %v6482_v19 }
0x2fea   :  { %8362 = vpow2.f32 %v6484_v28 }
0x2feb   :  { %8364 = vpow2.f32 %v6486_v11 }
0x2fec   :  { %8366 = vpow2.f32 %v6488_v7 }
0x2fed   :  { %8368 = vlog2.f32 %v6494_v44 }
0x2ff3   :  { %v8361_v16 = vpop.eup %8360 }
0x2ff4   :  { %v8363_v12 = vpop.eup %8362 }
0x2ff5   :  { %v6495_v10 = vadd.f32 %v8363_v12, %v8361_v16  ;;  %v8365_v5 = vpop.eup %8364 }
0x2ff6   :  { %v8367_v25 = vpop.eup %8366 }
0x2ff7   :  { %v6496_v0 = vadd.f32 %v8365_v5, %v6495_v10  ;;  %v8369_v17 = vpop.eup %8368 }
0x2ff8   :  { %v6501_v32 = vmul.f32 0.6931472, %v8369_v17 }
0x2ff9   :  { %v6497_v2 = vadd.f32 %v8367_v25, %v6496_v0 }
0x2ffb   :  { %6498 = vadd.xlane.f32.xlu0 %v6497_v2 }
0x3011   :  { %6508 = vperm.xlu0 %7652, %v6455_v37  }
0x306a   :  { %v6530_v49 = vpop.xlane.xlu1 %6529 }
0x306b   :  { %v6542_v43 = vsub.f32 %v6501_v32, %v6530_v49 }
0x306d   :  { %v6544_v56 = vmul.f32 %v6987_v26, %v6542_v43 }
0x3088   :  { %v6499_v54 = vpop.xlane.xlu0 %6498 }
0x3089   :  { %8370 = vlog2.f32 %v6499_v54 }
0x3090   :  { %v6509_v15 = vpop.permute.xlu0 %6508 }
0x3091   :  { %vm6514_vm5 = vcmp.eq.s32.totalorder %v9388_v36, %v6509_v15  ;;  %vm6515_vm6 = vcmp.eq.s32.totalorder %v9391_v38, %v6509_v15  ;;  %vm6516_vm7 = vcmp.eq.s32.totalorder %v9397_v41, %v6509_v15  ;;  %vm6517_vm8 = vcmp.eq.s32.totalorder %v9394_v39, %v6509_v15 }
0x3092   :  { %v6522_v46 = vsel %vm6514_vm5, %v6470_v22, 0.0  ;;  %v6523_v31 = vsel %vm6515_vm6, %v6471_v57, 0.0  ;;  %v6524_v23 = vsel %vm6516_vm7, %v6472_v53, 0.0  ;;  %v6525_v58 = vsel %vm6517_vm8, %v6473_v6, 0.0 }
0x3093   :  { %v6531_v24 = vadd.f32 %v6523_v31, %v6522_v46  ;;  %v4435_v36 = vsel %vm4424_vm10, %v10196_v4, 0.0  ;;  %v6558_v38 = vrot.slane %v6557_v51, 4  ;;  %v4699_v41 = vsub.f32 0.0, %v4698_v29  ;;  %v8371_v63 = vpop.eup %8370 }
0x3094   :  { %v4436_v42 = vadd.f32 %v4435_v36, %v4434_v8  ;;  %v6503_v34 = vmul.f32 0.6931472, %v8371_v63  ;;  %v6546_v22 = vsel %vm4424_vm10, %v6544_v56, 0.0  ;;  %v4430_v53 = vrot.slane %v4429_v61, 2 }
0x3095   :  { %v6532_v47 = vadd.f32 %v6531_v24, %v6524_v23  ;;  %v6559_v18 = vadd.f32 %v6558_v38, %v6557_v51  ;;  %v4700_v39 = vsel %vm4530_vm3, %v4699_v41, 0.0  ;;  %vm6569_vm3 = vcmask 0  }
0x3096   :  { %v4437_v35 = vrot.slane %v4436_v42, 4  ;;  %v4701_v27 = vrot.slane %v4700_v39, 4  ;;  %v4431_v11 = vadd.f32 %v4430_v53, %v4429_v61 }
0x3097   :  { %v6533_v9 = vadd.f32 %v6532_v47, %v6525_v58  ;;  %v6560_v48 = vrot.slane %v6559_v18, 2 }
0x3098   :  { %v4438_v59 = vadd.f32 %v4437_v35, %v4436_v42  ;;  %v4702_v20 = vadd.f32 %v4701_v27, %v4700_v39  ;;  %v4432_v10 = vrot.slane %v4431_v11, 1 }
0x3099   :  { %6534 = vadd.xlane.f32.xlu0 %v6533_v9  ;;  %v6561_v55 = vadd.f32 %v6560_v48, %v6559_v18 }
0x309a   :  { %v4439_v33 = vrot.slane %v4438_v59, 2  ;;  %v4703_v45 = vrot.slane %v4702_v20, 2  ;;  %v4433_v37 = vadd.f32 %v4432_v10, %v4431_v11 }
0x309b   :  { %v6562_v4 = vrot.slane %v6561_v55, 1 }
0x309c   :  { %v4440_v44 = vadd.f32 %v4439_v33, %v4438_v59  ;;  %v4704_v29 = vadd.f32 %v4703_v45, %v4702_v20 }
0x309d   :  { %v6563_v13 = vadd.f32 %v6562_v4, %v6561_v55 }
0x309e   :  { %v4441_v62 = vrot.slane %v4440_v44, 1  ;;  %v4705_v19 = vrot.slane %v4704_v29, 1 }
0x309f   :  { %8372 = vrcp.f32 %v6563_v13 }
0x30a0   :  { %v4442_v21 = vadd.f32 %v4441_v62, %v4440_v44  ;;  %v4706_v16 = vadd.f32 %v4705_v19, %v4704_v29 }
0x30a2   :  { %8374 = vrcp.f32 %v4442_v21  ;;  %v4707_v5 = vmul.f32 0.5, %v4706_v16 }
0x30a4   :  { %v6566_v40 = vmul.f32 0.1, %v4707_v5 }
0x30a9   :  { %v8373_v25 = vpop.eup %8372 }
0x30ac   :  { %v8375_v26 = vpop.eup %8374 }
0x30ad   :  { %v4444_v60 = vmul.f32 %v8375_v26, %v4433_v37 }
0x3126   :  { %v6535_v50 = vpop.xlane.xlu0 %6534 }
0x3127   :  { %v6543_v1 = vsub.f32 %v6503_v34, %v6535_v50 }
0x3129   :  { %v6545_v3 = vmul.f32 %v6988_v14, %v6543_v1 }
0x312b   :  { %v6547_v57 = vsel %vm4424_vm10, %v6545_v3, 0.0 }
0x312c   :  { %v6548_v6 = vadd.f32 %v6547_v57, %v6546_v22 }
0x312e   :  { %v6549_v28 = vrot.slane %v6548_v6, 4 }
0x3130   :  { %v6550_v7 = vadd.f32 %v6549_v28, %v6548_v6 }
0x3132   :  { %v6551_v12 = vrot.slane %v6550_v7, 2 }
0x3134   :  { %v6552_v52 = vadd.f32 %v6551_v12, %v6550_v7 }
0x3136   :  { %v6553_v0 = vrot.slane %v6552_v52, 1 }
0x3138   :  { %v6554_v2 = vadd.f32 %v6553_v0, %v6552_v52 }
0x313a   :  { %v6565_v14 = vmul.f32 %v8373_v25, %v6554_v2 }
0x313c   :  { %v6567_v51 = vadd.f32 %v6566_v40, %v6565_v14 }
0x313e   :  { %v6568_v17 = vadd.f32 %v6567_v51, %v4444_v60 }
0x3140   :  { %6570 = vst.msk [vmem:[#allocation35] sm:$0x1] %vm6569_vm3, %v6568_v17 }
0x3141   :  { %8915 = shalt.err (!%p8912_p4)
}
0x3142   :  { %s8916_s5 = scalar_lea.hbm %s9236_s14, 16 }
0x3143   :  { %p8917_p5 = scmp.ne.s32.totalorder %s9236_s14, %s8916_s5  ;;  %p8920_p6 = scmp.lt.u32.totalorder %s8916_s5, %s9236_s14 }
0x3145   :  { %p8922_p7 = pnand %p8920_p6, %p8917_p5 }
0x3147   :  { %8925 = shalt.err (!%p8922_p7)
}
0x3148   :  { %6580 = dma.vmem_to_hbm [thread:$0]  %s6578_s4, 16, %s9236_s14, [#allocation4]  }
0x3149   :  { %8948 = dma.done.wait [#allocation4], 16  }
0x314a   :  { %8949 = vsyncadd [#allocation4], 4294967280 }
0x314b   :  { %6584 = vsyncpa [#allocation3], 1 }
0x314c   :  { %6585 = vsyncpa [#allocation6], 1 }
0x314d   :  { %6586 = vsyncpa [#allocation9], 1 }
0x314e   :  { %6587 = vsyncpa [#allocation12], 1 }
0x314f   :  { %6588 = vsyncpa [#allocation15], 1 }
0x3150   :  { %6589 = vsyncpa [#allocation18], 1 }
0x3151   :  { %6590 = vsyncpa [#allocation21], 1 }
0x3152   :  { %6591 = vsyncpa [#allocation24], 1 }
0x3153   :  { %6592 = vsyncpa [#allocation27], 1 }
0x3154   :  { %6593 = vsyncpa [#allocation30], 1 }
0x3155   :  { %6594 = vsyncpa [#allocation33], 1 }
0x3156   :  { %6595 = vsyncpa [#allocation4], 1 }

</bundles_post_ra>
